<compile_context>
chip_gen: v6e
topology: v6e:2x2x1
jax: 0.10.0
libtpu: 0.0.40
codegen_flags: <defaults>
</compile_context>

<pallas_src>
import functools

import jax
import jax.numpy as jnp
from jax.experimental import pallas as pl
from jax.experimental.pallas import tpu as pltpu

# Model hyper-parameters (from the PyTorch module).
INPUT_SIZE = 1
HIDDEN_SIZE1 = 64
HIDDEN_SIZE2 = 128
HIDDEN_SIZE3 = 32
OUTPUT_SIZE = 1

LANE = 128     # each gate is padded to one full 128-lane slab
SUBLANE = 8    # batch padded to a sublane multiple


# --------------------------------------------------------------------------
# Fused Pallas kernel: 3 LSTM layers + Linear, everything resident in VMEM.
# --------------------------------------------------------------------------
def _fused_lstm_kernel(T, BP,
                       x_ref,
                       wih1_ref, whh1_ref, b1_ref,
                       wih2_ref, whh2_ref, b2_ref,
                       wih3_ref, whh3_ref, b3_ref,
                       wlin_ref, blin_ref,
                       out_ref,
                       seq1_ref, seq2_ref):
    HP = LANE

    def scan(gx_all, whh_ref, seq_ref):
        """Serial LSTM recurrence.

        gx_all : (T*BP, 4*HP) hoisted x-projection (bias already added).
        Writes per-step hidden states to seq_ref (if not None); returns final h.
        Padded hidden lanes stay exactly 0 (zero weights & biases in pad columns
        -> pre-activation 0 -> g=tanh(0)=0 -> c_pad stays 0 -> h_pad = 0).
        """
        h = jnp.zeros((BP, HP), jnp.float32)
        c = jnp.zeros((BP, HP), jnp.float32)
        for t in range(T):  # static unroll; only h @ W_hh is on the serial path
            gates = gx_all[t * BP:(t + 1) * BP, :] + jnp.dot(
                h, whh_ref[...], preferred_element_type=jnp.float32)
            i_g = jax.nn.sigmoid(gates[:, 0 * HP:1 * HP])
            f_g = jax.nn.sigmoid(gates[:, 1 * HP:2 * HP])
            g_g = jnp.tanh(gates[:, 2 * HP:3 * HP])
            o_g = jax.nn.sigmoid(gates[:, 3 * HP:4 * HP])
            c = f_g * c + i_g * g_g
            h = o_g * jnp.tanh(c)
            if seq_ref is not None:
                seq_ref[pl.ds(t * BP, BP), :] = h
        return h

    # ---- Layer 1: hoisted input projection over all T*BP rows (one MXU matmul)
    gx1 = jnp.dot(x_ref[...], wih1_ref[...],
                  preferred_element_type=jnp.float32) + b1_ref[...]
    scan(gx1, whh1_ref, seq1_ref)

    # ---- Layer 2 (input = layer-1 hidden sequence kept in VMEM scratch)
    gx2 = jnp.dot(seq1_ref[...], wih2_ref[...],
                  preferred_element_type=jnp.float32) + b2_ref[...]
    scan(gx2, whh2_ref, seq2_ref)

    # ---- Layer 3: only the final hidden state is needed (no (T,B,H) output)
    gx3 = jnp.dot(seq2_ref[...], wih3_ref[...],
                  preferred_element_type=jnp.float32) + b3_ref[...]
    h_last = scan(gx3, whh3_ref, None)

    # ---- Final Linear, fused into the same kernel.
    # TODO(synk): nn.Dropout(p=0.3) is identity in eval mode; training-mode
    # stochastic dropout is not reproduced here.
    out_ref[...] = jnp.dot(h_last, wlin_ref[...],
                           preferred_element_type=jnp.float32) + blin_ref[...]


def fused_lstm_forward(x_flat, packed_params, T, BP):
    """x_flat: (T*BP, INPUT_SIZE), time-major, batch padded to BP. Returns (BP, 1)."""
    kernel = functools.partial(_fused_lstm_kernel, T, BP)
    return pl.pallas_call(
        kernel,
        out_shape=jax.ShapeDtypeStruct((BP, OUTPUT_SIZE), jnp.float32),
        scratch_shapes=[
            pltpu.VMEM((T * BP, LANE), jnp.float32),   # layer-1 hidden sequence
            pltpu.VMEM((T * BP, LANE), jnp.float32),   # layer-2 hidden sequence
        ],
    )(x_flat, *packed_params)


# --------------------------------------------------------------------------
# Parameters: PyTorch-shaped init + packing into the padded kernel layout.
# --------------------------------------------------------------------------
def init_params(key):
    """PyTorch-style U(-1/sqrt(H), 1/sqrt(H)); gate order [i, f, g, o]."""
    params = {}
    layers = [("lstm1", INPUT_SIZE, HIDDEN_SIZE1),
              ("lstm2", HIDDEN_SIZE1, HIDDEN_SIZE2),
              ("lstm3", HIDDEN_SIZE2, HIDDEN_SIZE3)]
    for name, d_in, h in layers:
        key, k1, k2, k3, k4 = jax.random.split(key, 5)
        bound = 1.0 / jnp.sqrt(h)
        params[name] = dict(
            w_ih=jax.random.uniform(k1, (4 * h, d_in), jnp.float32, -bound, bound),
            w_hh=jax.random.uniform(k2, (4 * h, h), jnp.float32, -bound, bound),
            b_ih=jax.random.uniform(k3, (4 * h,), jnp.float32, -bound, bound),
            b_hh=jax.random.uniform(k4, (4 * h,), jnp.float32, -bound, bound),
        )
    key, k1, k2 = jax.random.split(key, 3)
    bound = 1.0 / jnp.sqrt(HIDDEN_SIZE3)
    params["linear"] = dict(
        w=jax.random.uniform(k1, (OUTPUT_SIZE, HIDDEN_SIZE3), jnp.float32, -bound, bound),
        b=jax.random.uniform(k2, (OUTPUT_SIZE,), jnp.float32, -bound, bound),
    )
    return params


def _pack_lstm(layer, d_in, h, d_in_pad):
    """torch (4H,Din)/(4H,H) -> kernel (Din_pad, 4*LANE)/(LANE, 4*LANE), (1, 4*LANE).

    Each gate occupies its own 128-lane slab; all padding is zero so the padded
    hidden lanes remain exactly 0 throughout the recurrence.
    """
    w_ih = jnp.zeros((d_in_pad, 4 * LANE), jnp.float32)
    w_hh = jnp.zeros((LANE, 4 * LANE), jnp.float32)
    bias = jnp.zeros((1, 4 * LANE), jnp.float32)
    b_sum = layer["b_ih"] + layer["b_hh"]
    for g in range(4):
        w_ih = w_ih.at[:d_in, g * LANE:g * LANE + h].set(
            layer["w_ih"][g * h:(g + 1) * h, :].T)
        w_hh = w_hh.at[:h, g * LANE:g * LANE + h].set(
            layer["w_hh"][g * h:(g + 1) * h, :].T)
        bias = bias.at[0, g * LANE:g * LANE + h].set(b_sum[g * h:(g + 1) * h])
    return w_ih, w_hh, bias


def pack_params(params):
    p1 = _pack_lstm(params["lstm1"], INPUT_SIZE, HIDDEN_SIZE1, INPUT_SIZE)
    p2 = _pack_lstm(params["lstm2"], HIDDEN_SIZE1, HIDDEN_SIZE2, LANE)
    p3 = _pack_lstm(params["lstm3"], HIDDEN_SIZE2, HIDDEN_SIZE3, LANE)
    w_lin = jnp.zeros((LANE, OUTPUT_SIZE), jnp.float32)
    w_lin = w_lin.at[:HIDDEN_SIZE3, :].set(params["linear"]["w"].T)
    b_lin = params["linear"]["b"].reshape(1, OUTPUT_SIZE).astype(jnp.float32)
    return (*p1, *p2, *p3, w_lin, b_lin)


# --------------------------------------------------------------------------
# Model forward (batch_first, like the PyTorch module).
# --------------------------------------------------------------------------
def lstm_model_forward(packed_params, x):
    """x: (B, T, input_size). Returns (B,) — matches torch `out.squeeze()`."""
    B, T, D = x.shape
    BP = ((B + SUBLANE - 1) // SUBLANE) * SUBLANE
    x_tm = jnp.transpose(x.astype(jnp.float32), (1, 0, 2))   # (T, B, D) time-major
    x_tm = jnp.pad(x_tm, ((0, 0), (0, BP - B), (0, 0)))      # pad batch -> sublane multiple
    x_flat = x_tm.reshape(T * BP, D)
    y = fused_lstm_forward(x_flat, packed_params, T, BP)     # (BP, 1)
    return jnp.squeeze(y[:B], axis=-1)                       # (B,)


# --------------------------------------------------------------------------
# Pure-JAX reference (torch-shaped params) for a correctness sanity check.
# --------------------------------------------------------------------------
def reference_forward(params, x):
    def lstm(x_seq, layer, h_size):
        B = x_seq.shape[0]
        h = jnp.zeros((B, h_size), jnp.float32)
        c = jnp.zeros((B, h_size), jnp.float32)
        w_ih, w_hh = layer["w_ih"], layer["w_hh"]
        b = layer["b_ih"] + layer["b_hh"]
        outs = []
        for t in range(x_seq.shape[1]):
            gates = x_seq[:, t, :] @ w_ih.T + h @ w_hh.T + b
            i, f, g, o = jnp.split(gates, 4, axis=-1)
            i, f, o = jax.nn.sigmoid(i), jax.nn.sigmoid(f), jax.nn.sigmoid(o)
            g = jnp.tanh(g)
            c = f * c + i * g
            h = o * jnp.tanh(c)
            outs.append(h)
        return jnp.stack(outs, axis=1)

    out = lstm(x.astype(jnp.float32), params["lstm1"], HIDDEN_SIZE1)
    out = lstm(out, params["lstm2"], HIDDEN_SIZE2)
    out = lstm(out, params["lstm3"], HIDDEN_SIZE3)
    h_last = out[:, -1, :]
    y = h_last @ params["linear"]["w"].T + params["linear"]["b"]
    return jnp.squeeze(y)


if __name__ == "__main__":
    key = jax.random.PRNGKey(0)
    key, pkey, xkey = jax.random.split(key, 3)

    params = init_params(pkey)
    packed = pack_params(params)

    batch, seq = 2, 8
    x = jax.random.normal(xkey, (batch, seq, INPUT_SIZE), dtype=jnp.float32)

    fwd = jax.jit(lstm_model_forward)
    y = fwd(packed, x)
    jax.block_until_ready(y)
    assert y.shape == (batch,)

    y_ref = reference_forward(params, x)
    assert bool(jnp.allclose(y, y_ref, atol=2e-2, rtol=2e-2)), (y, y_ref)

    print("KERNEL_OK")
</pallas_src>

<mosaic_0001>
module attributes {stable_mosaic.version = 11 : i64} {
  func.func @_fused_lstm_kernel(%arg0: memref<64x1xf32, #tpu.memory_space<vmem>>, %arg1: memref<1x512xf32, #tpu.memory_space<vmem>>, %arg2: memref<128x512xf32, #tpu.memory_space<vmem>>, %arg3: memref<1x512xf32, #tpu.memory_space<vmem>>, %arg4: memref<128x512xf32, #tpu.memory_space<vmem>>, %arg5: memref<128x512xf32, #tpu.memory_space<vmem>>, %arg6: memref<1x512xf32, #tpu.memory_space<vmem>>, %arg7: memref<128x512xf32, #tpu.memory_space<vmem>>, %arg8: memref<128x512xf32, #tpu.memory_space<vmem>>, %arg9: memref<1x512xf32, #tpu.memory_space<vmem>>, %arg10: memref<128x1xf32, #tpu.memory_space<vmem>>, %arg11: memref<1x1xf32, #tpu.memory_space<vmem>>, %arg12: memref<8x1xf32, #tpu.memory_space<vmem>>, %arg13: memref<64x128xf32, #tpu.memory_space<vmem>>, %arg14: memref<64x128xf32, #tpu.memory_space<vmem>>) attributes {dimension_semantics = [], scalar_prefetch = 0 : i64, scratch_operands = 2 : i64, tpu.core_type = #tpu.core_type<tc>} {
    %c0 = arith.constant 0 : index
    %c0_0 = arith.constant 0 : index
    %0 = vector.load %arg0[%c0, %c0_0] : memref<64x1xf32, #tpu.memory_space<vmem>>, vector<64x1xf32>
    %c0_1 = arith.constant 0 : index
    %c0_2 = arith.constant 0 : index
    %1 = vector.load %arg1[%c0_1, %c0_2] : memref<1x512xf32, #tpu.memory_space<vmem>>, vector<1x512xf32>
    %cst = arith.constant dense<0.000000e+00> : vector<64x512xf32>
    %2 = tpu.matmul %0, %1, %cst {dimension_numbers = #tpu.dot_dimension_numbers<[1], [0], [0], [1], [0, 0, 1, 1], [], []>} : vector<64x1xf32>, vector<1x512xf32>, vector<64x512xf32> -> vector<64x512xf32>
    %c0_3 = arith.constant 0 : index
    %c0_4 = arith.constant 0 : index
    %3 = vector.load %arg3[%c0_3, %c0_4] : memref<1x512xf32, #tpu.memory_space<vmem>>, vector<1x512xf32>
    %4 = vector.broadcast %3 : vector<1x512xf32> to vector<64x512xf32>
    %5 = arith.addf %2, %4 : vector<64x512xf32>
    %cst_5 = arith.constant 0.000000e+00 : f32
    %6 = vector.broadcast %cst_5 : f32 to vector<8x128xf32>
    %cst_6 = arith.constant 0.000000e+00 : f32
    %7 = vector.broadcast %cst_6 : f32 to vector<8x128xf32>
    %8 = vector.extract_strided_slice %5 {offsets = [0, 0], sizes = [8, 512], strides = [1, 1]} : vector<64x512xf32> to vector<8x512xf32>
    %c0_7 = arith.constant 0 : index
    %c0_8 = arith.constant 0 : index
    %9 = vector.load %arg2[%c0_7, %c0_8] : memref<128x512xf32, #tpu.memory_space<vmem>>, vector<128x512xf32>
    %cst_9 = arith.constant dense<0.000000e+00> : vector<8x512xf32>
    %10 = tpu.matmul %6, %9, %cst_9 {dimension_numbers = #tpu.dot_dimension_numbers<[1], [0], [0], [1], [0, 0, 1, 1], [], []>} : vector<8x128xf32>, vector<128x512xf32>, vector<8x512xf32> -> vector<8x512xf32>
    %11 = arith.addf %8, %10 : vector<8x512xf32>
    %12 = vector.extract_strided_slice %11 {offsets = [0, 0], sizes = [8, 128], strides = [1, 1]} : vector<8x512xf32> to vector<8x128xf32>
    %13 = arith.negf %12 : vector<8x128xf32>
    %14 = math.exp %13 : vector<8x128xf32>
    %cst_10 = arith.constant 1.000000e+00 : f32
    %15 = vector.broadcast %cst_10 : f32 to vector<8x128xf32>
    %16 = arith.addf %15, %14 : vector<8x128xf32>
    %17 = arith.divf %15, %16 : vector<8x128xf32>
    %18 = vector.extract_strided_slice %11 {offsets = [0, 128], sizes = [8, 128], strides = [1, 1]} : vector<8x512xf32> to vector<8x128xf32>
    %19 = arith.negf %18 : vector<8x128xf32>
    %20 = math.exp %19 : vector<8x128xf32>
    %cst_11 = arith.constant 1.000000e+00 : f32
    %21 = vector.broadcast %cst_11 : f32 to vector<8x128xf32>
    %22 = arith.addf %21, %20 : vector<8x128xf32>
    %23 = arith.divf %21, %22 : vector<8x128xf32>
    %24 = vector.extract_strided_slice %11 {offsets = [0, 256], sizes = [8, 128], strides = [1, 1]} : vector<8x512xf32> to vector<8x128xf32>
    %25 = math.tanh %24 : vector<8x128xf32>
    %26 = vector.extract_strided_slice %11 {offsets = [0, 384], sizes = [8, 128], strides = [1, 1]} : vector<8x512xf32> to vector<8x128xf32>
    %27 = arith.negf %26 : vector<8x128xf32>
    %28 = math.exp %27 : vector<8x128xf32>
    %cst_12 = arith.constant 1.000000e+00 : f32
    %29 = vector.broadcast %cst_12 : f32 to vector<8x128xf32>
    %30 = arith.addf %29, %28 : vector<8x128xf32>
    %31 = arith.divf %29, %30 : vector<8x128xf32>
    %32 = arith.mulf %23, %7 : vector<8x128xf32>
    %33 = arith.mulf %17, %25 : vector<8x128xf32>
    %34 = arith.addf %32, %33 : vector<8x128xf32>
    %35 = math.tanh %34 : vector<8x128xf32>
    %36 = arith.mulf %31, %35 : vector<8x128xf32>
    %c0_13 = arith.constant 0 : index
    %c0_14 = arith.constant 0 : index
    %37 = vector.load %arg13[%c0_13, %c0_14] : memref<64x128xf32, #tpu.memory_space<vmem>>, vector<8x128xf32>
    tpu.vector_store %arg13[%c0_13, %c0_14], %36 {strides = array<i32>} : memref<64x128xf32, #tpu.memory_space<vmem>>, vector<8x128xf32>,
    %38 = vector.extract_strided_slice %5 {offsets = [8, 0], sizes = [8, 512], strides = [1, 1]} : vector<64x512xf32> to vector<8x512xf32>
    %c0_15 = arith.constant 0 : index
    %c0_16 = arith.constant 0 : index
    %39 = vector.load %arg2[%c0_15, %c0_16] : memref<128x512xf32, #tpu.memory_space<vmem>>, vector<128x512xf32>
    %cst_17 = arith.constant dense<0.000000e+00> : vector<8x512xf32>
    %40 = tpu.matmul %36, %39, %cst_17 {dimension_numbers = #tpu.dot_dimension_numbers<[1], [0], [0], [1], [0, 0, 1, 1], [], []>} : vector<8x128xf32>, vector<128x512xf32>, vector<8x512xf32> -> vector<8x512xf32>
    %41 = arith.addf %38, %40 : vector<8x512xf32>
    %42 = vector.extract_strided_slice %41 {offsets = [0, 0], sizes = [8, 128], strides = [1, 1]} : vector<8x512xf32> to vector<8x128xf32>
    %43 = arith.negf %42 : vector<8x128xf32>
    %44 = math.exp %43 : vector<8x128xf32>
    %cst_18 = arith.constant 1.000000e+00 : f32
    %45 = vector.broadcast %cst_18 : f32 to vector<8x128xf32>
    %46 = arith.addf %45, %44 : vector<8x128xf32>
    %47 = arith.divf %45, %46 : vector<8x128xf32>
    %48 = vector.extract_strided_slice %41 {offsets = [0, 128], sizes = [8, 128], strides = [1, 1]} : vector<8x512xf32> to vector<8x128xf32>
    %49 = arith.negf %48 : vector<8x128xf32>
    %50 = math.exp %49 : vector<8x128xf32>
    %cst_19 = arith.constant 1.000000e+00 : f32
    %51 = vector.broadcast %cst_19 : f32 to vector<8x128xf32>
    %52 = arith.addf %51, %50 : vector<8x128xf32>
    %53 = arith.divf %51, %52 : vector<8x128xf32>
    %54 = vector.extract_strided_slice %41 {offsets = [0, 256], sizes = [8, 128], strides = [1, 1]} : vector<8x512xf32> to vector<8x128xf32>
    %55 = math.tanh %54 : vector<8x128xf32>
    %56 = vector.extract_strided_slice %41 {offsets = [0, 384], sizes = [8, 128], strides = [1, 1]} : vector<8x512xf32> to vector<8x128xf32>
    %57 = arith.negf %56 : vector<8x128xf32>
    %58 = math.exp %57 : vector<8x128xf32>
    %cst_20 = arith.constant 1.000000e+00 : f32
    %59 = vector.broadcast %cst_20 : f32 to vector<8x128xf32>
    %60 = arith.addf %59, %58 : vector<8x128xf32>
    %61 = arith.divf %59, %60 : vector<8x128xf32>
    %62 = arith.mulf %53, %34 : vector<8x128xf32>
    %63 = arith.mulf %47, %55 : vector<8x128xf32>
    %64 = arith.addf %62, %63 : vector<8x128xf32>
    %65 = math.tanh %64 : vector<8x128xf32>
    %66 = arith.mulf %61, %65 : vector<8x128xf32>
    %c8 = arith.constant 8 : index
    %c0_21 = arith.constant 0 : index
    %67 = vector.load %arg13[%c8, %c0_21] : memref<64x128xf32, #tpu.memory_space<vmem>>, vector<8x128xf32>
    tpu.vector_store %arg13[%c8, %c0_21], %66 {strides = array<i32>} : memref<64x128xf32, #tpu.memory_space<vmem>>, vector<8x128xf32>,
    %68 = vector.extract_strided_slice %5 {offsets = [16, 0], sizes = [8, 512], strides = [1, 1]} : vector<64x512xf32> to vector<8x512xf32>
    %c0_22 = arith.constant 0 : index
    %c0_23 = arith.constant 0 : index
    %69 = vector.load %arg2[%c0_22, %c0_23] : memref<128x512xf32, #tpu.memory_space<vmem>>, vector<128x512xf32>
    %cst_24 = arith.constant dense<0.000000e+00> : vector<8x512xf32>
    %70 = tpu.matmul %66, %69, %cst_24 {dimension_numbers = #tpu.dot_dimension_numbers<[1], [0], [0], [1], [0, 0, 1, 1], [], []>} : vector<8x128xf32>, vector<128x512xf32>, vector<8x512xf32> -> vector<8x512xf32>
    %71 = arith.addf %68, %70 : vector<8x512xf32>
    %72 = vector.extract_strided_slice %71 {offsets = [0, 0], sizes = [8, 128], strides = [1, 1]} : vector<8x512xf32> to vector<8x128xf32>
    %73 = arith.negf %72 : vector<8x128xf32>
    %74 = math.exp %73 : vector<8x128xf32>
    %cst_25 = arith.constant 1.000000e+00 : f32
    %75 = vector.broadcast %cst_25 : f32 to vector<8x128xf32>
    %76 = arith.addf %75, %74 : vector<8x128xf32>
    %77 = arith.divf %75, %76 : vector<8x128xf32>
    %78 = vector.extract_strided_slice %71 {offsets = [0, 128], sizes = [8, 128], strides = [1, 1]} : vector<8x512xf32> to vector<8x128xf32>
    %79 = arith.negf %78 : vector<8x128xf32>
    %80 = math.exp %79 : vector<8x128xf32>
    %cst_26 = arith.constant 1.000000e+00 : f32
    %81 = vector.broadcast %cst_26 : f32 to vector<8x128xf32>
    %82 = arith.addf %81, %80 : vector<8x128xf32>
    %83 = arith.divf %81, %82 : vector<8x128xf32>
    %84 = vector.extract_strided_slice %71 {offsets = [0, 256], sizes = [8, 128], strides = [1, 1]} : vector<8x512xf32> to vector<8x128xf32>
    %85 = math.tanh %84 : vector<8x128xf32>
    %86 = vector.extract_strided_slice %71 {offsets = [0, 384], sizes = [8, 128], strides = [1, 1]} : vector<8x512xf32> to vector<8x128xf32>
    %87 = arith.negf %86 : vector<8x128xf32>
    %88 = math.exp %87 : vector<8x128xf32>
    %cst_27 = arith.constant 1.000000e+00 : f32
    %89 = vector.broadcast %cst_27 : f32 to vector<8x128xf32>
    %90 = arith.addf %89, %88 : vector<8x128xf32>
    %91 = arith.divf %89, %90 : vector<8x128xf32>
    %92 = arith.mulf %83, %64 : vector<8x128xf32>
    %93 = arith.mulf %77, %85 : vector<8x128xf32>
    %94 = arith.addf %92, %93 : vector<8x128xf32>
    %95 = math.tanh %94 : vector<8x128xf32>
    %96 = arith.mulf %91, %95 : vector<8x128xf32>
    %c16 = arith.constant 16 : index
    %c0_28 = arith.constant 0 : index
    %97 = vector.load %arg13[%c16, %c0_28] : memref<64x128xf32, #tpu.memory_space<vmem>>, vector<8x128xf32>
    tpu.vector_store %arg13[%c16, %c0_28], %96 {strides = array<i32>} : memref<64x128xf32, #tpu.memory_space<vmem>>, vector<8x128xf32>,
    %98 = vector.extract_strided_slice %5 {offsets = [24, 0], sizes = [8, 512], strides = [1, 1]} : vector<64x512xf32> to vector<8x512xf32>
    %c0_29 = arith.constant 0 : index
    %c0_30 = arith.constant 0 : index
    %99 = vector.load %arg2[%c0_29, %c0_30] : memref<128x512xf32, #tpu.memory_space<vmem>>, vector<128x512xf32>
    %cst_31 = arith.constant dense<0.000000e+00> : vector<8x512xf32>
    %100 = tpu.matmul %96, %99, %cst_31 {dimension_numbers = #tpu.dot_dimension_numbers<[1], [0], [0], [1], [0, 0, 1, 1], [], []>} : vector<8x128xf32>, vector<128x512xf32>, vector<8x512xf32> -> vector<8x512xf32>
    %101 = arith.addf %98, %100 : vector<8x512xf32>
    %102 = vector.extract_strided_slice %101 {offsets = [0, 0], sizes = [8, 128], strides = [1, 1]} : vector<8x512xf32> to vector<8x128xf32>
    %103 = arith.negf %102 : vector<8x128xf32>
    %104 = math.exp %103 : vector<8x128xf32>
    %cst_32 = arith.constant 1.000000e+00 : f32
    %105 = vector.broadcast %cst_32 : f32 to vector<8x128xf32>
    %106 = arith.addf %105, %104 : vector<8x128xf32>
    %107 = arith.divf %105, %106 : vector<8x128xf32>
    %108 = vector.extract_strided_slice %101 {offsets = [0, 128], sizes = [8, 128], strides = [1, 1]} : vector<8x512xf32> to vector<8x128xf32>
    %109 = arith.negf %108 : vector<8x128xf32>
    %110 = math.exp %109 : vector<8x128xf32>
    %cst_33 = arith.constant 1.000000e+00 : f32
    %111 = vector.broadcast %cst_33 : f32 to vector<8x128xf32>
    %112 = arith.addf %111, %110 : vector<8x128xf32>
    %113 = arith.divf %111, %112 : vector<8x128xf32>
    %114 = vector.extract_strided_slice %101 {offsets = [0, 256], sizes = [8, 128], strides = [1, 1]} : vector<8x512xf32> to vector<8x128xf32>
    %115 = math.tanh %114 : vector<8x128xf32>
    %116 = vector.extract_strided_slice %101 {offsets = [0, 384], sizes = [8, 128], strides = [1, 1]} : vector<8x512xf32> to vector<8x128xf32>
    %117 = arith.negf %116 : vector<8x128xf32>
    %118 = math.exp %117 : vector<8x128xf32>
    %cst_34 = arith.constant 1.000000e+00 : f32
    %119 = vector.broadcast %cst_34 : f32 to vector<8x128xf32>
    %120 = arith.addf %119, %118 : vector<8x128xf32>
    %121 = arith.divf %119, %120 : vector<8x128xf32>
    %122 = arith.mulf %113, %94 : vector<8x128xf32>
    %123 = arith.mulf %107, %115 : vector<8x128xf32>
    %124 = arith.addf %122, %123 : vector<8x128xf32>
    %125 = math.tanh %124 : vector<8x128xf32>
    %126 = arith.mulf %121, %125 : vector<8x128xf32>
    %c24 = arith.constant 24 : index
    %c0_35 = arith.constant 0 : index
    %127 = vector.load %arg13[%c24, %c0_35] : memref<64x128xf32, #tpu.memory_space<vmem>>, vector<8x128xf32>
    tpu.vector_store %arg13[%c24, %c0_35], %126 {strides = array<i32>} : memref<64x128xf32, #tpu.memory_space<vmem>>, vector<8x128xf32>,
    %128 = vector.extract_strided_slice %5 {offsets = [32, 0], sizes = [8, 512], strides = [1, 1]} : vector<64x512xf32> to vector<8x512xf32>
    %c0_36 = arith.constant 0 : index
    %c0_37 = arith.constant 0 : index
    %129 = vector.load %arg2[%c0_36, %c0_37] : memref<128x512xf32, #tpu.memory_space<vmem>>, vector<128x512xf32>
    %cst_38 = arith.constant dense<0.000000e+00> : vector<8x512xf32>
    %130 = tpu.matmul %126, %129, %cst_38 {dimension_numbers = #tpu.dot_dimension_numbers<[1], [0], [0], [1], [0, 0, 1, 1], [], []>} : vector<8x128xf32>, vector<128x512xf32>, vector<8x512xf32> -> vector<8x512xf32>
    %131 = arith.addf %128, %130 : vector<8x512xf32>
    %132 = vector.extract_strided_slice %131 {offsets = [0, 0], sizes = [8, 128], strides = [1, 1]} : vector<8x512xf32> to vector<8x128xf32>
    %133 = arith.negf %132 : vector<8x128xf32>
    %134 = math.exp %133 : vector<8x128xf32>
    %cst_39 = arith.constant 1.000000e+00 : f32
    %135 = vector.broadcast %cst_39 : f32 to vector<8x128xf32>
    %136 = arith.addf %135, %134 : vector<8x128xf32>
    %137 = arith.divf %135, %136 : vector<8x128xf32>
    %138 = vector.extract_strided_slice %131 {offsets = [0, 128], sizes = [8, 128], strides = [1, 1]} : vector<8x512xf32> to vector<8x128xf32>
    %139 = arith.negf %138 : vector<8x128xf32>
    %140 = math.exp %139 : vector<8x128xf32>
    %cst_40 = arith.constant 1.000000e+00 : f32
    %141 = vector.broadcast %cst_40 : f32 to vector<8x128xf32>
    %142 = arith.addf %141, %140 : vector<8x128xf32>
    %143 = arith.divf %141, %142 : vector<8x128xf32>
    %144 = vector.extract_strided_slice %131 {offsets = [0, 256], sizes = [8, 128], strides = [1, 1]} : vector<8x512xf32> to vector<8x128xf32>
    %145 = math.tanh %144 : vector<8x128xf32>
    %146 = vector.extract_strided_slice %131 {offsets = [0, 384], sizes = [8, 128], strides = [1, 1]} : vector<8x512xf32> to vector<8x128xf32>
    %147 = arith.negf %146 : vector<8x128xf32>
    %148 = math.exp %147 : vector<8x128xf32>
    %cst_41 = arith.constant 1.000000e+00 : f32
    %149 = vector.broadcast %cst_41 : f32 to vector<8x128xf32>
    %150 = arith.addf %149, %148 : vector<8x128xf32>
    %151 = arith.divf %149, %150 : vector<8x128xf32>
    %152 = arith.mulf %143, %124 : vector<8x128xf32>
    %153 = arith.mulf %137, %145 : vector<8x128xf32>
    %154 = arith.addf %152, %153 : vector<8x128xf32>
    %155 = math.tanh %154 : vector<8x128xf32>
    %156 = arith.mulf %151, %155 : vector<8x128xf32>
    %c32 = arith.constant 32 : index
    %c0_42 = arith.constant 0 : index
    %157 = vector.load %arg13[%c32, %c0_42] : memref<64x128xf32, #tpu.memory_space<vmem>>, vector<8x128xf32>
    tpu.vector_store %arg13[%c32, %c0_42], %156 {strides = array<i32>} : memref<64x128xf32, #tpu.memory_space<vmem>>, vector<8x128xf32>,
    %158 = vector.extract_strided_slice %5 {offsets = [40, 0], sizes = [8, 512], strides = [1, 1]} : vector<64x512xf32> to vector<8x512xf32>
    %c0_43 = arith.constant 0 : index
    %c0_44 = arith.constant 0 : index
    %159 = vector.load %arg2[%c0_43, %c0_44] : memref<128x512xf32, #tpu.memory_space<vmem>>, vector<128x512xf32>
    %cst_45 = arith.constant dense<0.000000e+00> : vector<8x512xf32>
    %160 = tpu.matmul %156, %159, %cst_45 {dimension_numbers = #tpu.dot_dimension_numbers<[1], [0], [0], [1], [0, 0, 1, 1], [], []>} : vector<8x128xf32>, vector<128x512xf32>, vector<8x512xf32> -> vector<8x512xf32>
    %161 = arith.addf %158, %160 : vector<8x512xf32>
    %162 = vector.extract_strided_slice %161 {offsets = [0, 0], sizes = [8, 128], strides = [1, 1]} : vector<8x512xf32> to vector<8x128xf32>
    %163 = arith.negf %162 : vector<8x128xf32>
    %164 = math.exp %163 : vector<8x128xf32>
    %cst_46 = arith.constant 1.000000e+00 : f32
    %165 = vector.broadcast %cst_46 : f32 to vector<8x128xf32>
    %166 = arith.addf %165, %164 : vector<8x128xf32>
    %167 = arith.divf %165, %166 : vector<8x128xf32>
    %168 = vector.extract_strided_slice %161 {offsets = [0, 128], sizes = [8, 128], strides = [1, 1]} : vector<8x512xf32> to vector<8x128xf32>
    %169 = arith.negf %168 : vector<8x128xf32>
    %170 = math.exp %169 : vector<8x128xf32>
    %cst_47 = arith.constant 1.000000e+00 : f32
    %171 = vector.broadcast %cst_47 : f32 to vector<8x128xf32>
    %172 = arith.addf %171, %170 : vector<8x128xf32>
    %173 = arith.divf %171, %172 : vector<8x128xf32>
    %174 = vector.extract_strided_slice %161 {offsets = [0, 256], sizes = [8, 128], strides = [1, 1]} : vector<8x512xf32> to vector<8x128xf32>
    %175 = math.tanh %174 : vector<8x128xf32>
    %176 = vector.extract_strided_slice %161 {offsets = [0, 384], sizes = [8, 128], strides = [1, 1]} : vector<8x512xf32> to vector<8x128xf32>
    %177 = arith.negf %176 : vector<8x128xf32>
    %178 = math.exp %177 : vector<8x128xf32>
    %cst_48 = arith.constant 1.000000e+00 : f32
    %179 = vector.broadcast %cst_48 : f32 to vector<8x128xf32>
    %180 = arith.addf %179, %178 : vector<8x128xf32>
    %181 = arith.divf %179, %180 : vector<8x128xf32>
    %182 = arith.mulf %173, %154 : vector<8x128xf32>
    %183 = arith.mulf %167, %175 : vector<8x128xf32>
    %184 = arith.addf %182, %183 : vector<8x128xf32>
    %185 = math.tanh %184 : vector<8x128xf32>
    %186 = arith.mulf %181, %185 : vector<8x128xf32>
    %c40 = arith.constant 40 : index
    %c0_49 = arith.constant 0 : index
    %187 = vector.load %arg13[%c40, %c0_49] : memref<64x128xf32, #tpu.memory_space<vmem>>, vector<8x128xf32>
    tpu.vector_store %arg13[%c40, %c0_49], %186 {strides = array<i32>} : memref<64x128xf32, #tpu.memory_space<vmem>>, vector<8x128xf32>,
    %188 = vector.extract_strided_slice %5 {offsets = [48, 0], sizes = [8, 512], strides = [1, 1]} : vector<64x512xf32> to vector<8x512xf32>
    %c0_50 = arith.constant 0 : index
    %c0_51 = arith.constant 0 : index
    %189 = vector.load %arg2[%c0_50, %c0_51] : memref<128x512xf32, #tpu.memory_space<vmem>>, vector<128x512xf32>
    %cst_52 = arith.constant dense<0.000000e+00> : vector<8x512xf32>
    %190 = tpu.matmul %186, %189, %cst_52 {dimension_numbers = #tpu.dot_dimension_numbers<[1], [0], [0], [1], [0, 0, 1, 1], [], []>} : vector<8x128xf32>, vector<128x512xf32>, vector<8x512xf32> -> vector<8x512xf32>
    %191 = arith.addf %188, %190 : vector<8x512xf32>
    %192 = vector.extract_strided_slice %191 {offsets = [0, 0], sizes = [8, 128], strides = [1, 1]} : vector<8x512xf32> to vector<8x128xf32>
    %193 = arith.negf %192 : vector<8x128xf32>
    %194 = math.exp %193 : vector<8x128xf32>
    %cst_53 = arith.constant 1.000000e+00 : f32
    %195 = vector.broadcast %cst_53 : f32 to vector<8x128xf32>
    %196 = arith.addf %195, %194 : vector<8x128xf32>
    %197 = arith.divf %195, %196 : vector<8x128xf32>
    %198 = vector.extract_strided_slice %191 {offsets = [0, 128], sizes = [8, 128], strides = [1, 1]} : vector<8x512xf32> to vector<8x128xf32>
    %199 = arith.negf %198 : vector<8x128xf32>
    %200 = math.exp %199 : vector<8x128xf32>
    %cst_54 = arith.constant 1.000000e+00 : f32
    %201 = vector.broadcast %cst_54 : f32 to vector<8x128xf32>
    %202 = arith.addf %201, %200 : vector<8x128xf32>
    %203 = arith.divf %201, %202 : vector<8x128xf32>
    %204 = vector.extract_strided_slice %191 {offsets = [0, 256], sizes = [8, 128], strides = [1, 1]} : vector<8x512xf32> to vector<8x128xf32>
    %205 = math.tanh %204 : vector<8x128xf32>
    %206 = vector.extract_strided_slice %191 {offsets = [0, 384], sizes = [8, 128], strides = [1, 1]} : vector<8x512xf32> to vector<8x128xf32>
    %207 = arith.negf %206 : vector<8x128xf32>
    %208 = math.exp %207 : vector<8x128xf32>
    %cst_55 = arith.constant 1.000000e+00 : f32
    %209 = vector.broadcast %cst_55 : f32 to vector<8x128xf32>
    %210 = arith.addf %209, %208 : vector<8x128xf32>
    %211 = arith.divf %209, %210 : vector<8x128xf32>
    %212 = arith.mulf %203, %184 : vector<8x128xf32>
    %213 = arith.mulf %197, %205 : vector<8x128xf32>
    %214 = arith.addf %212, %213 : vector<8x128xf32>
    %215 = math.tanh %214 : vector<8x128xf32>
    %216 = arith.mulf %211, %215 : vector<8x128xf32>
    %c48 = arith.constant 48 : index
    %c0_56 = arith.constant 0 : index
    %217 = vector.load %arg13[%c48, %c0_56] : memref<64x128xf32, #tpu.memory_space<vmem>>, vector<8x128xf32>
    tpu.vector_store %arg13[%c48, %c0_56], %216 {strides = array<i32>} : memref<64x128xf32, #tpu.memory_space<vmem>>, vector<8x128xf32>,
    %218 = vector.extract_strided_slice %5 {offsets = [56, 0], sizes = [8, 512], strides = [1, 1]} : vector<64x512xf32> to vector<8x512xf32>
    %c0_57 = arith.constant 0 : index
    %c0_58 = arith.constant 0 : index
    %219 = vector.load %arg2[%c0_57, %c0_58] : memref<128x512xf32, #tpu.memory_space<vmem>>, vector<128x512xf32>
    %cst_59 = arith.constant dense<0.000000e+00> : vector<8x512xf32>
    %220 = tpu.matmul %216, %219, %cst_59 {dimension_numbers = #tpu.dot_dimension_numbers<[1], [0], [0], [1], [0, 0, 1, 1], [], []>} : vector<8x128xf32>, vector<128x512xf32>, vector<8x512xf32> -> vector<8x512xf32>
    %221 = arith.addf %218, %220 : vector<8x512xf32>
    %222 = vector.extract_strided_slice %221 {offsets = [0, 0], sizes = [8, 128], strides = [1, 1]} : vector<8x512xf32> to vector<8x128xf32>
    %223 = arith.negf %222 : vector<8x128xf32>
    %224 = math.exp %223 : vector<8x128xf32>
    %cst_60 = arith.constant 1.000000e+00 : f32
    %225 = vector.broadcast %cst_60 : f32 to vector<8x128xf32>
    %226 = arith.addf %225, %224 : vector<8x128xf32>
    %227 = arith.divf %225, %226 : vector<8x128xf32>
    %228 = vector.extract_strided_slice %221 {offsets = [0, 128], sizes = [8, 128], strides = [1, 1]} : vector<8x512xf32> to vector<8x128xf32>
    %229 = arith.negf %228 : vector<8x128xf32>
    %230 = math.exp %229 : vector<8x128xf32>
    %cst_61 = arith.constant 1.000000e+00 : f32
    %231 = vector.broadcast %cst_61 : f32 to vector<8x128xf32>
    %232 = arith.addf %231, %230 : vector<8x128xf32>
    %233 = arith.divf %231, %232 : vector<8x128xf32>
    %234 = vector.extract_strided_slice %221 {offsets = [0, 256], sizes = [8, 128], strides = [1, 1]} : vector<8x512xf32> to vector<8x128xf32>
    %235 = math.tanh %234 : vector<8x128xf32>
    %236 = vector.extract_strided_slice %221 {offsets = [0, 384], sizes = [8, 128], strides = [1, 1]} : vector<8x512xf32> to vector<8x128xf32>
    %237 = arith.negf %236 : vector<8x128xf32>
    %238 = math.exp %237 : vector<8x128xf32>
    %cst_62 = arith.constant 1.000000e+00 : f32
    %239 = vector.broadcast %cst_62 : f32 to vector<8x128xf32>
    %240 = arith.addf %239, %238 : vector<8x128xf32>
    %241 = arith.divf %239, %240 : vector<8x128xf32>
    %242 = arith.mulf %233, %214 : vector<8x128xf32>
    %243 = arith.mulf %227, %235 : vector<8x128xf32>
    %244 = arith.addf %242, %243 : vector<8x128xf32>
    %245 = math.tanh %244 : vector<8x128xf32>
    %246 = arith.mulf %241, %245 : vector<8x128xf32>
    %c56 = arith.constant 56 : index
    %c0_63 = arith.constant 0 : index
    %247 = vector.load %arg13[%c56, %c0_63] : memref<64x128xf32, #tpu.memory_space<vmem>>, vector<8x128xf32>
    tpu.vector_store %arg13[%c56, %c0_63], %246 {strides = array<i32>} : memref<64x128xf32, #tpu.memory_space<vmem>>, vector<8x128xf32>,
    %c0_64 = arith.constant 0 : index
    %c0_65 = arith.constant 0 : index
    %248 = vector.load %arg13[%c0_64, %c0_65] : memref<64x128xf32, #tpu.memory_space<vmem>>, vector<64x128xf32>
    %c0_66 = arith.constant 0 : index
    %c0_67 = arith.constant 0 : index
    %249 = vector.load %arg4[%c0_66, %c0_67] : memref<128x512xf32, #tpu.memory_space<vmem>>, vector<128x512xf32>
    %cst_68 = arith.constant dense<0.000000e+00> : vector<64x512xf32>
    %250 = tpu.matmul %248, %249, %cst_68 {dimension_numbers = #tpu.dot_dimension_numbers<[1], [0], [0], [1], [0, 0, 1, 1], [], []>} : vector<64x128xf32>, vector<128x512xf32>, vector<64x512xf32> -> vector<64x512xf32>
    %c0_69 = arith.constant 0 : index
    %c0_70 = arith.constant 0 : index
    %251 = vector.load %arg6[%c0_69, %c0_70] : memref<1x512xf32, #tpu.memory_space<vmem>>, vector<1x512xf32>
    %252 = vector.broadcast %251 : vector<1x512xf32> to vector<64x512xf32>
    %253 = arith.addf %250, %252 : vector<64x512xf32>
    %cst_71 = arith.constant 0.000000e+00 : f32
    %254 = vector.broadcast %cst_71 : f32 to vector<8x128xf32>
    %cst_72 = arith.constant 0.000000e+00 : f32
    %255 = vector.broadcast %cst_72 : f32 to vector<8x128xf32>
    %256 = vector.extract_strided_slice %253 {offsets = [0, 0], sizes = [8, 512], strides = [1, 1]} : vector<64x512xf32> to vector<8x512xf32>
    %c0_73 = arith.constant 0 : index
    %c0_74 = arith.constant 0 : index
    %257 = vector.load %arg5[%c0_73, %c0_74] : memref<128x512xf32, #tpu.memory_space<vmem>>, vector<128x512xf32>
    %cst_75 = arith.constant dense<0.000000e+00> : vector<8x512xf32>
    %258 = tpu.matmul %254, %257, %cst_75 {dimension_numbers = #tpu.dot_dimension_numbers<[1], [0], [0], [1], [0, 0, 1, 1], [], []>} : vector<8x128xf32>, vector<128x512xf32>, vector<8x512xf32> -> vector<8x512xf32>
    %259 = arith.addf %256, %258 : vector<8x512xf32>
    %260 = vector.extract_strided_slice %259 {offsets = [0, 0], sizes = [8, 128], strides = [1, 1]} : vector<8x512xf32> to vector<8x128xf32>
    %261 = arith.negf %260 : vector<8x128xf32>
    %262 = math.exp %261 : vector<8x128xf32>
    %cst_76 = arith.constant 1.000000e+00 : f32
    %263 = vector.broadcast %cst_76 : f32 to vector<8x128xf32>
    %264 = arith.addf %263, %262 : vector<8x128xf32>
    %265 = arith.divf %263, %264 : vector<8x128xf32>
    %266 = vector.extract_strided_slice %259 {offsets = [0, 128], sizes = [8, 128], strides = [1, 1]} : vector<8x512xf32> to vector<8x128xf32>
    %267 = arith.negf %266 : vector<8x128xf32>
    %268 = math.exp %267 : vector<8x128xf32>
    %cst_77 = arith.constant 1.000000e+00 : f32
    %269 = vector.broadcast %cst_77 : f32 to vector<8x128xf32>
    %270 = arith.addf %269, %268 : vector<8x128xf32>
    %271 = arith.divf %269, %270 : vector<8x128xf32>
    %272 = vector.extract_strided_slice %259 {offsets = [0, 256], sizes = [8, 128], strides = [1, 1]} : vector<8x512xf32> to vector<8x128xf32>
    %273 = math.tanh %272 : vector<8x128xf32>
    %274 = vector.extract_strided_slice %259 {offsets = [0, 384], sizes = [8, 128], strides = [1, 1]} : vector<8x512xf32> to vector<8x128xf32>
    %275 = arith.negf %274 : vector<8x128xf32>
    %276 = math.exp %275 : vector<8x128xf32>
    %cst_78 = arith.constant 1.000000e+00 : f32
    %277 = vector.broadcast %cst_78 : f32 to vector<8x128xf32>
    %278 = arith.addf %277, %276 : vector<8x128xf32>
    %279 = arith.divf %277, %278 : vector<8x128xf32>
    %280 = arith.mulf %271, %255 : vector<8x128xf32>
    %281 = arith.mulf %265, %273 : vector<8x128xf32>
    %282 = arith.addf %280, %281 : vector<8x128xf32>
    %283 = math.tanh %282 : vector<8x128xf32>
    %284 = arith.mulf %279, %283 : vector<8x128xf32>
    %c0_79 = arith.constant 0 : index
    %c0_80 = arith.constant 0 : index
    %285 = vector.load %arg14[%c0_79, %c0_80] : memref<64x128xf32, #tpu.memory_space<vmem>>, vector<8x128xf32>
    tpu.vector_store %arg14[%c0_79, %c0_80], %284 {strides = array<i32>} : memref<64x128xf32, #tpu.memory_space<vmem>>, vector<8x128xf32>,
    %286 = vector.extract_strided_slice %253 {offsets = [8, 0], sizes = [8, 512], strides = [1, 1]} : vector<64x512xf32> to vector<8x512xf32>
    %c0_81 = arith.constant 0 : index
    %c0_82 = arith.constant 0 : index
    %287 = vector.load %arg5[%c0_81, %c0_82] : memref<128x512xf32, #tpu.memory_space<vmem>>, vector<128x512xf32>
    %cst_83 = arith.constant dense<0.000000e+00> : vector<8x512xf32>
    %288 = tpu.matmul %284, %287, %cst_83 {dimension_numbers = #tpu.dot_dimension_numbers<[1], [0], [0], [1], [0, 0, 1, 1], [], []>} : vector<8x128xf32>, vector<128x512xf32>, vector<8x512xf32> -> vector<8x512xf32>
    %289 = arith.addf %286, %288 : vector<8x512xf32>
    %290 = vector.extract_strided_slice %289 {offsets = [0, 0], sizes = [8, 128], strides = [1, 1]} : vector<8x512xf32> to vector<8x128xf32>
    %291 = arith.negf %290 : vector<8x128xf32>
    %292 = math.exp %291 : vector<8x128xf32>
    %cst_84 = arith.constant 1.000000e+00 : f32
    %293 = vector.broadcast %cst_84 : f32 to vector<8x128xf32>
    %294 = arith.addf %293, %292 : vector<8x128xf32>
    %295 = arith.divf %293, %294 : vector<8x128xf32>
    %296 = vector.extract_strided_slice %289 {offsets = [0, 128], sizes = [8, 128], strides = [1, 1]} : vector<8x512xf32> to vector<8x128xf32>
    %297 = arith.negf %296 : vector<8x128xf32>
    %298 = math.exp %297 : vector<8x128xf32>
    %cst_85 = arith.constant 1.000000e+00 : f32
    %299 = vector.broadcast %cst_85 : f32 to vector<8x128xf32>
    %300 = arith.addf %299, %298 : vector<8x128xf32>
    %301 = arith.divf %299, %300 : vector<8x128xf32>
    %302 = vector.extract_strided_slice %289 {offsets = [0, 256], sizes = [8, 128], strides = [1, 1]} : vector<8x512xf32> to vector<8x128xf32>
    %303 = math.tanh %302 : vector<8x128xf32>
    %304 = vector.extract_strided_slice %289 {offsets = [0, 384], sizes = [8, 128], strides = [1, 1]} : vector<8x512xf32> to vector<8x128xf32>
    %305 = arith.negf %304 : vector<8x128xf32>
    %306 = math.exp %305 : vector<8x128xf32>
    %cst_86 = arith.constant 1.000000e+00 : f32
    %307 = vector.broadcast %cst_86 : f32 to vector<8x128xf32>
    %308 = arith.addf %307, %306 : vector<8x128xf32>
    %309 = arith.divf %307, %308 : vector<8x128xf32>
    %310 = arith.mulf %301, %282 : vector<8x128xf32>
    %311 = arith.mulf %295, %303 : vector<8x128xf32>
    %312 = arith.addf %310, %311 : vector<8x128xf32>
    %313 = math.tanh %312 : vector<8x128xf32>
    %314 = arith.mulf %309, %313 : vector<8x128xf32>
    %c8_87 = arith.constant 8 : index
    %c0_88 = arith.constant 0 : index
    %315 = vector.load %arg14[%c8_87, %c0_88] : memref<64x128xf32, #tpu.memory_space<vmem>>, vector<8x128xf32>
    tpu.vector_store %arg14[%c8_87, %c0_88], %314 {strides = array<i32>} : memref<64x128xf32, #tpu.memory_space<vmem>>, vector<8x128xf32>,
    %316 = vector.extract_strided_slice %253 {offsets = [16, 0], sizes = [8, 512], strides = [1, 1]} : vector<64x512xf32> to vector<8x512xf32>
    %c0_89 = arith.constant 0 : index
    %c0_90 = arith.constant 0 : index
    %317 = vector.load %arg5[%c0_89, %c0_90] : memref<128x512xf32, #tpu.memory_space<vmem>>, vector<128x512xf32>
    %cst_91 = arith.constant dense<0.000000e+00> : vector<8x512xf32>
    %318 = tpu.matmul %314, %317, %cst_91 {dimension_numbers = #tpu.dot_dimension_numbers<[1], [0], [0], [1], [0, 0, 1, 1], [], []>} : vector<8x128xf32>, vector<128x512xf32>, vector<8x512xf32> -> vector<8x512xf32>
    %319 = arith.addf %316, %318 : vector<8x512xf32>
    %320 = vector.extract_strided_slice %319 {offsets = [0, 0], sizes = [8, 128], strides = [1, 1]} : vector<8x512xf32> to vector<8x128xf32>
    %321 = arith.negf %320 : vector<8x128xf32>
    %322 = math.exp %321 : vector<8x128xf32>
    %cst_92 = arith.constant 1.000000e+00 : f32
    %323 = vector.broadcast %cst_92 : f32 to vector<8x128xf32>
    %324 = arith.addf %323, %322 : vector<8x128xf32>
    %325 = arith.divf %323, %324 : vector<8x128xf32>
    %326 = vector.extract_strided_slice %319 {offsets = [0, 128], sizes = [8, 128], strides = [1, 1]} : vector<8x512xf32> to vector<8x128xf32>
    %327 = arith.negf %326 : vector<8x128xf32>
    %328 = math.exp %327 : vector<8x128xf32>
    %cst_93 = arith.constant 1.000000e+00 : f32
    %329 = vector.broadcast %cst_93 : f32 to vector<8x128xf32>
    %330 = arith.addf %329, %328 : vector<8x128xf32>
    %331 = arith.divf %329, %330 : vector<8x128xf32>
    %332 = vector.extract_strided_slice %319 {offsets = [0, 256], sizes = [8, 128], strides = [1, 1]} : vector<8x512xf32> to vector<8x128xf32>
    %333 = math.tanh %332 : vector<8x128xf32>
    %334 = vector.extract_strided_slice %319 {offsets = [0, 384], sizes = [8, 128], strides = [1, 1]} : vector<8x512xf32> to vector<8x128xf32>
    %335 = arith.negf %334 : vector<8x128xf32>
    %336 = math.exp %335 : vector<8x128xf32>
    %cst_94 = arith.constant 1.000000e+00 : f32
    %337 = vector.broadcast %cst_94 : f32 to vector<8x128xf32>
    %338 = arith.addf %337, %336 : vector<8x128xf32>
    %339 = arith.divf %337, %338 : vector<8x128xf32>
    %340 = arith.mulf %331, %312 : vector<8x128xf32>
    %341 = arith.mulf %325, %333 : vector<8x128xf32>
    %342 = arith.addf %340, %341 : vector<8x128xf32>
    %343 = math.tanh %342 : vector<8x128xf32>
    %344 = arith.mulf %339, %343 : vector<8x128xf32>
    %c16_95 = arith.constant 16 : index
    %c0_96 = arith.constant 0 : index
    %345 = vector.load %arg14[%c16_95, %c0_96] : memref<64x128xf32, #tpu.memory_space<vmem>>, vector<8x128xf32>
    tpu.vector_store %arg14[%c16_95, %c0_96], %344 {strides = array<i32>} : memref<64x128xf32, #tpu.memory_space<vmem>>, vector<8x128xf32>,
    %346 = vector.extract_strided_slice %253 {offsets = [24, 0], sizes = [8, 512], strides = [1, 1]} : vector<64x512xf32> to vector<8x512xf32>
    %c0_97 = arith.constant 0 : index
    %c0_98 = arith.constant 0 : index
    %347 = vector.load %arg5[%c0_97, %c0_98] : memref<128x512xf32, #tpu.memory_space<vmem>>, vector<128x512xf32>
    %cst_99 = arith.constant dense<0.000000e+00> : vector<8x512xf32>
    %348 = tpu.matmul %344, %347, %cst_99 {dimension_numbers = #tpu.dot_dimension_numbers<[1], [0], [0], [1], [0, 0, 1, 1], [], []>} : vector<8x128xf32>, vector<128x512xf32>, vector<8x512xf32> -> vector<8x512xf32>
    %349 = arith.addf %346, %348 : vector<8x512xf32>
    %350 = vector.extract_strided_slice %349 {offsets = [0, 0], sizes = [8, 128], strides = [1, 1]} : vector<8x512xf32> to vector<8x128xf32>
    %351 = arith.negf %350 : vector<8x128xf32>
    %352 = math.exp %351 : vector<8x128xf32>
    %cst_100 = arith.constant 1.000000e+00 : f32
    %353 = vector.broadcast %cst_100 : f32 to vector<8x128xf32>
    %354 = arith.addf %353, %352 : vector<8x128xf32>
    %355 = arith.divf %353, %354 : vector<8x128xf32>
    %356 = vector.extract_strided_slice %349 {offsets = [0, 128], sizes = [8, 128], strides = [1, 1]} : vector<8x512xf32> to vector<8x128xf32>
    %357 = arith.negf %356 : vector<8x128xf32>
    %358 = math.exp %357 : vector<8x128xf32>
    %cst_101 = arith.constant 1.000000e+00 : f32
    %359 = vector.broadcast %cst_101 : f32 to vector<8x128xf32>
    %360 = arith.addf %359, %358 : vector<8x128xf32>
    %361 = arith.divf %359, %360 : vector<8x128xf32>
    %362 = vector.extract_strided_slice %349 {offsets = [0, 256], sizes = [8, 128], strides = [1, 1]} : vector<8x512xf32> to vector<8x128xf32>
    %363 = math.tanh %362 : vector<8x128xf32>
    %364 = vector.extract_strided_slice %349 {offsets = [0, 384], sizes = [8, 128], strides = [1, 1]} : vector<8x512xf32> to vector<8x128xf32>
    %365 = arith.negf %364 : vector<8x128xf32>
    %366 = math.exp %365 : vector<8x128xf32>
    %cst_102 = arith.constant 1.000000e+00 : f32
    %367 = vector.broadcast %cst_102 : f32 to vector<8x128xf32>
    %368 = arith.addf %367, %366 : vector<8x128xf32>
    %369 = arith.divf %367, %368 : vector<8x128xf32>
    %370 = arith.mulf %361, %342 : vector<8x128xf32>
    %371 = arith.mulf %355, %363 : vector<8x128xf32>
    %372 = arith.addf %370, %371 : vector<8x128xf32>
    %373 = math.tanh %372 : vector<8x128xf32>
    %374 = arith.mulf %369, %373 : vector<8x128xf32>
    %c24_103 = arith.constant 24 : index
    %c0_104 = arith.constant 0 : index
    %375 = vector.load %arg14[%c24_103, %c0_104] : memref<64x128xf32, #tpu.memory_space<vmem>>, vector<8x128xf32>
    tpu.vector_store %arg14[%c24_103, %c0_104], %374 {strides = array<i32>} : memref<64x128xf32, #tpu.memory_space<vmem>>, vector<8x128xf32>,
    %376 = vector.extract_strided_slice %253 {offsets = [32, 0], sizes = [8, 512], strides = [1, 1]} : vector<64x512xf32> to vector<8x512xf32>
    %c0_105 = arith.constant 0 : index
    %c0_106 = arith.constant 0 : index
    %377 = vector.load %arg5[%c0_105, %c0_106] : memref<128x512xf32, #tpu.memory_space<vmem>>, vector<128x512xf32>
    %cst_107 = arith.constant dense<0.000000e+00> : vector<8x512xf32>
    %378 = tpu.matmul %374, %377, %cst_107 {dimension_numbers = #tpu.dot_dimension_numbers<[1], [0], [0], [1], [0, 0, 1, 1], [], []>} : vector<8x128xf32>, vector<128x512xf32>, vector<8x512xf32> -> vector<8x512xf32>
    %379 = arith.addf %376, %378 : vector<8x512xf32>
    %380 = vector.extract_strided_slice %379 {offsets = [0, 0], sizes = [8, 128], strides = [1, 1]} : vector<8x512xf32> to vector<8x128xf32>
    %381 = arith.negf %380 : vector<8x128xf32>
    %382 = math.exp %381 : vector<8x128xf32>
    %cst_108 = arith.constant 1.000000e+00 : f32
    %383 = vector.broadcast %cst_108 : f32 to vector<8x128xf32>
    %384 = arith.addf %383, %382 : vector<8x128xf32>
    %385 = arith.divf %383, %384 : vector<8x128xf32>
    %386 = vector.extract_strided_slice %379 {offsets = [0, 128], sizes = [8, 128], strides = [1, 1]} : vector<8x512xf32> to vector<8x128xf32>
    %387 = arith.negf %386 : vector<8x128xf32>
    %388 = math.exp %387 : vector<8x128xf32>
    %cst_109 = arith.constant 1.000000e+00 : f32
    %389 = vector.broadcast %cst_109 : f32 to vector<8x128xf32>
    %390 = arith.addf %389, %388 : vector<8x128xf32>
    %391 = arith.divf %389, %390 : vector<8x128xf32>
    %392 = vector.extract_strided_slice %379 {offsets = [0, 256], sizes = [8, 128], strides = [1, 1]} : vector<8x512xf32> to vector<8x128xf32>
    %393 = math.tanh %392 : vector<8x128xf32>
    %394 = vector.extract_strided_slice %379 {offsets = [0, 384], sizes = [8, 128], strides = [1, 1]} : vector<8x512xf32> to vector<8x128xf32>
    %395 = arith.negf %394 : vector<8x128xf32>
    %396 = math.exp %395 : vector<8x128xf32>
    %cst_110 = arith.constant 1.000000e+00 : f32
    %397 = vector.broadcast %cst_110 : f32 to vector<8x128xf32>
    %398 = arith.addf %397, %396 : vector<8x128xf32>
    %399 = arith.divf %397, %398 : vector<8x128xf32>
    %400 = arith.mulf %391, %372 : vector<8x128xf32>
    %401 = arith.mulf %385, %393 : vector<8x128xf32>
    %402 = arith.addf %400, %401 : vector<8x128xf32>
    %403 = math.tanh %402 : vector<8x128xf32>
    %404 = arith.mulf %399, %403 : vector<8x128xf32>
    %c32_111 = arith.constant 32 : index
    %c0_112 = arith.constant 0 : index
    %405 = vector.load %arg14[%c32_111, %c0_112] : memref<64x128xf32, #tpu.memory_space<vmem>>, vector<8x128xf32>
    tpu.vector_store %arg14[%c32_111, %c0_112], %404 {strides = array<i32>} : memref<64x128xf32, #tpu.memory_space<vmem>>, vector<8x128xf32>,
    %406 = vector.extract_strided_slice %253 {offsets = [40, 0], sizes = [8, 512], strides = [1, 1]} : vector<64x512xf32> to vector<8x512xf32>
    %c0_113 = arith.constant 0 : index
    %c0_114 = arith.constant 0 : index
    %407 = vector.load %arg5[%c0_113, %c0_114] : memref<128x512xf32, #tpu.memory_space<vmem>>, vector<128x512xf32>
    %cst_115 = arith.constant dense<0.000000e+00> : vector<8x512xf32>
    %408 = tpu.matmul %404, %407, %cst_115 {dimension_numbers = #tpu.dot_dimension_numbers<[1], [0], [0], [1], [0, 0, 1, 1], [], []>} : vector<8x128xf32>, vector<128x512xf32>, vector<8x512xf32> -> vector<8x512xf32>
    %409 = arith.addf %406, %408 : vector<8x512xf32>
    %410 = vector.extract_strided_slice %409 {offsets = [0, 0], sizes = [8, 128], strides = [1, 1]} : vector<8x512xf32> to vector<8x128xf32>
    %411 = arith.negf %410 : vector<8x128xf32>
    %412 = math.exp %411 : vector<8x128xf32>
    %cst_116 = arith.constant 1.000000e+00 : f32
    %413 = vector.broadcast %cst_116 : f32 to vector<8x128xf32>
    %414 = arith.addf %413, %412 : vector<8x128xf32>
    %415 = arith.divf %413, %414 : vector<8x128xf32>
    %416 = vector.extract_strided_slice %409 {offsets = [0, 128], sizes = [8, 128], strides = [1, 1]} : vector<8x512xf32> to vector<8x128xf32>
    %417 = arith.negf %416 : vector<8x128xf32>
    %418 = math.exp %417 : vector<8x128xf32>
    %cst_117 = arith.constant 1.000000e+00 : f32
    %419 = vector.broadcast %cst_117 : f32 to vector<8x128xf32>
    %420 = arith.addf %419, %418 : vector<8x128xf32>
    %421 = arith.divf %419, %420 : vector<8x128xf32>
    %422 = vector.extract_strided_slice %409 {offsets = [0, 256], sizes = [8, 128], strides = [1, 1]} : vector<8x512xf32> to vector<8x128xf32>
    %423 = math.tanh %422 : vector<8x128xf32>
    %424 = vector.extract_strided_slice %409 {offsets = [0, 384], sizes = [8, 128], strides = [1, 1]} : vector<8x512xf32> to vector<8x128xf32>
    %425 = arith.negf %424 : vector<8x128xf32>
    %426 = math.exp %425 : vector<8x128xf32>
    %cst_118 = arith.constant 1.000000e+00 : f32
    %427 = vector.broadcast %cst_118 : f32 to vector<8x128xf32>
    %428 = arith.addf %427, %426 : vector<8x128xf32>
    %429 = arith.divf %427, %428 : vector<8x128xf32>
    %430 = arith.mulf %421, %402 : vector<8x128xf32>
    %431 = arith.mulf %415, %423 : vector<8x128xf32>
    %432 = arith.addf %430, %431 : vector<8x128xf32>
    %433 = math.tanh %432 : vector<8x128xf32>
    %434 = arith.mulf %429, %433 : vector<8x128xf32>
    %c40_119 = arith.constant 40 : index
    %c0_120 = arith.constant 0 : index
    %435 = vector.load %arg14[%c40_119, %c0_120] : memref<64x128xf32, #tpu.memory_space<vmem>>, vector<8x128xf32>
    tpu.vector_store %arg14[%c40_119, %c0_120], %434 {strides = array<i32>} : memref<64x128xf32, #tpu.memory_space<vmem>>, vector<8x128xf32>,
    %436 = vector.extract_strided_slice %253 {offsets = [48, 0], sizes = [8, 512], strides = [1, 1]} : vector<64x512xf32> to vector<8x512xf32>
    %c0_121 = arith.constant 0 : index
    %c0_122 = arith.constant 0 : index
    %437 = vector.load %arg5[%c0_121, %c0_122] : memref<128x512xf32, #tpu.memory_space<vmem>>, vector<128x512xf32>
    %cst_123 = arith.constant dense<0.000000e+00> : vector<8x512xf32>
    %438 = tpu.matmul %434, %437, %cst_123 {dimension_numbers = #tpu.dot_dimension_numbers<[1], [0], [0], [1], [0, 0, 1, 1], [], []>} : vector<8x128xf32>, vector<128x512xf32>, vector<8x512xf32> -> vector<8x512xf32>
    %439 = arith.addf %436, %438 : vector<8x512xf32>
    %440 = vector.extract_strided_slice %439 {offsets = [0, 0], sizes = [8, 128], strides = [1, 1]} : vector<8x512xf32> to vector<8x128xf32>
    %441 = arith.negf %440 : vector<8x128xf32>
    %442 = math.exp %441 : vector<8x128xf32>
    %cst_124 = arith.constant 1.000000e+00 : f32
    %443 = vector.broadcast %cst_124 : f32 to vector<8x128xf32>
    %444 = arith.addf %443, %442 : vector<8x128xf32>
    %445 = arith.divf %443, %444 : vector<8x128xf32>
    %446 = vector.extract_strided_slice %439 {offsets = [0, 128], sizes = [8, 128], strides = [1, 1]} : vector<8x512xf32> to vector<8x128xf32>
    %447 = arith.negf %446 : vector<8x128xf32>
    %448 = math.exp %447 : vector<8x128xf32>
    %cst_125 = arith.constant 1.000000e+00 : f32
    %449 = vector.broadcast %cst_125 : f32 to vector<8x128xf32>
    %450 = arith.addf %449, %448 : vector<8x128xf32>
    %451 = arith.divf %449, %450 : vector<8x128xf32>
    %452 = vector.extract_strided_slice %439 {offsets = [0, 256], sizes = [8, 128], strides = [1, 1]} : vector<8x512xf32> to vector<8x128xf32>
    %453 = math.tanh %452 : vector<8x128xf32>
    %454 = vector.extract_strided_slice %439 {offsets = [0, 384], sizes = [8, 128], strides = [1, 1]} : vector<8x512xf32> to vector<8x128xf32>
    %455 = arith.negf %454 : vector<8x128xf32>
    %456 = math.exp %455 : vector<8x128xf32>
    %cst_126 = arith.constant 1.000000e+00 : f32
    %457 = vector.broadcast %cst_126 : f32 to vector<8x128xf32>
    %458 = arith.addf %457, %456 : vector<8x128xf32>
    %459 = arith.divf %457, %458 : vector<8x128xf32>
    %460 = arith.mulf %451, %432 : vector<8x128xf32>
    %461 = arith.mulf %445, %453 : vector<8x128xf32>
    %462 = arith.addf %460, %461 : vector<8x128xf32>
    %463 = math.tanh %462 : vector<8x128xf32>
    %464 = arith.mulf %459, %463 : vector<8x128xf32>
    %c48_127 = arith.constant 48 : index
    %c0_128 = arith.constant 0 : index
    %465 = vector.load %arg14[%c48_127, %c0_128] : memref<64x128xf32, #tpu.memory_space<vmem>>, vector<8x128xf32>
    tpu.vector_store %arg14[%c48_127, %c0_128], %464 {strides = array<i32>} : memref<64x128xf32, #tpu.memory_space<vmem>>, vector<8x128xf32>,
    %466 = vector.extract_strided_slice %253 {offsets = [56, 0], sizes = [8, 512], strides = [1, 1]} : vector<64x512xf32> to vector<8x512xf32>
    %c0_129 = arith.constant 0 : index
    %c0_130 = arith.constant 0 : index
    %467 = vector.load %arg5[%c0_129, %c0_130] : memref<128x512xf32, #tpu.memory_space<vmem>>, vector<128x512xf32>
    %cst_131 = arith.constant dense<0.000000e+00> : vector<8x512xf32>
    %468 = tpu.matmul %464, %467, %cst_131 {dimension_numbers = #tpu.dot_dimension_numbers<[1], [0], [0], [1], [0, 0, 1, 1], [], []>} : vector<8x128xf32>, vector<128x512xf32>, vector<8x512xf32> -> vector<8x512xf32>
    %469 = arith.addf %466, %468 : vector<8x512xf32>
    %470 = vector.extract_strided_slice %469 {offsets = [0, 0], sizes = [8, 128], strides = [1, 1]} : vector<8x512xf32> to vector<8x128xf32>
    %471 = arith.negf %470 : vector<8x128xf32>
    %472 = math.exp %471 : vector<8x128xf32>
    %cst_132 = arith.constant 1.000000e+00 : f32
    %473 = vector.broadcast %cst_132 : f32 to vector<8x128xf32>
    %474 = arith.addf %473, %472 : vector<8x128xf32>
    %475 = arith.divf %473, %474 : vector<8x128xf32>
    %476 = vector.extract_strided_slice %469 {offsets = [0, 128], sizes = [8, 128], strides = [1, 1]} : vector<8x512xf32> to vector<8x128xf32>
    %477 = arith.negf %476 : vector<8x128xf32>
    %478 = math.exp %477 : vector<8x128xf32>
    %cst_133 = arith.constant 1.000000e+00 : f32
    %479 = vector.broadcast %cst_133 : f32 to vector<8x128xf32>
    %480 = arith.addf %479, %478 : vector<8x128xf32>
    %481 = arith.divf %479, %480 : vector<8x128xf32>
    %482 = vector.extract_strided_slice %469 {offsets = [0, 256], sizes = [8, 128], strides = [1, 1]} : vector<8x512xf32> to vector<8x128xf32>
    %483 = math.tanh %482 : vector<8x128xf32>
    %484 = vector.extract_strided_slice %469 {offsets = [0, 384], sizes = [8, 128], strides = [1, 1]} : vector<8x512xf32> to vector<8x128xf32>
    %485 = arith.negf %484 : vector<8x128xf32>
    %486 = math.exp %485 : vector<8x128xf32>
    %cst_134 = arith.constant 1.000000e+00 : f32
    %487 = vector.broadcast %cst_134 : f32 to vector<8x128xf32>
    %488 = arith.addf %487, %486 : vector<8x128xf32>
    %489 = arith.divf %487, %488 : vector<8x128xf32>
    %490 = arith.mulf %481, %462 : vector<8x128xf32>
    %491 = arith.mulf %475, %483 : vector<8x128xf32>
    %492 = arith.addf %490, %491 : vector<8x128xf32>
    %493 = math.tanh %492 : vector<8x128xf32>
    %494 = arith.mulf %489, %493 : vector<8x128xf32>
    %c56_135 = arith.constant 56 : index
    %c0_136 = arith.constant 0 : index
    %495 = vector.load %arg14[%c56_135, %c0_136] : memref<64x128xf32, #tpu.memory_space<vmem>>, vector<8x128xf32>
    tpu.vector_store %arg14[%c56_135, %c0_136], %494 {strides = array<i32>} : memref<64x128xf32, #tpu.memory_space<vmem>>, vector<8x128xf32>,
    %c0_137 = arith.constant 0 : index
    %c0_138 = arith.constant 0 : index
    %496 = vector.load %arg14[%c0_137, %c0_138] : memref<64x128xf32, #tpu.memory_space<vmem>>, vector<64x128xf32>
    %c0_139 = arith.constant 0 : index
    %c0_140 = arith.constant 0 : index
    %497 = vector.load %arg7[%c0_139, %c0_140] : memref<128x512xf32, #tpu.memory_space<vmem>>, vector<128x512xf32>
    %cst_141 = arith.constant dense<0.000000e+00> : vector<64x512xf32>
    %498 = tpu.matmul %496, %497, %cst_141 {dimension_numbers = #tpu.dot_dimension_numbers<[1], [0], [0], [1], [0, 0, 1, 1], [], []>} : vector<64x128xf32>, vector<128x512xf32>, vector<64x512xf32> -> vector<64x512xf32>
    %c0_142 = arith.constant 0 : index
    %c0_143 = arith.constant 0 : index
    %499 = vector.load %arg9[%c0_142, %c0_143] : memref<1x512xf32, #tpu.memory_space<vmem>>, vector<1x512xf32>
    %500 = vector.broadcast %499 : vector<1x512xf32> to vector<64x512xf32>
    %501 = arith.addf %498, %500 : vector<64x512xf32>
    %cst_144 = arith.constant 0.000000e+00 : f32
    %502 = vector.broadcast %cst_144 : f32 to vector<8x128xf32>
    %cst_145 = arith.constant 0.000000e+00 : f32
    %503 = vector.broadcast %cst_145 : f32 to vector<8x128xf32>
    %504 = vector.extract_strided_slice %501 {offsets = [0, 0], sizes = [8, 512], strides = [1, 1]} : vector<64x512xf32> to vector<8x512xf32>
    %c0_146 = arith.constant 0 : index
    %c0_147 = arith.constant 0 : index
    %505 = vector.load %arg8[%c0_146, %c0_147] : memref<128x512xf32, #tpu.memory_space<vmem>>, vector<128x512xf32>
    %cst_148 = arith.constant dense<0.000000e+00> : vector<8x512xf32>
    %506 = tpu.matmul %502, %505, %cst_148 {dimension_numbers = #tpu.dot_dimension_numbers<[1], [0], [0], [1], [0, 0, 1, 1], [], []>} : vector<8x128xf32>, vector<128x512xf32>, vector<8x512xf32> -> vector<8x512xf32>
    %507 = arith.addf %504, %506 : vector<8x512xf32>
    %508 = vector.extract_strided_slice %507 {offsets = [0, 0], sizes = [8, 128], strides = [1, 1]} : vector<8x512xf32> to vector<8x128xf32>
    %509 = arith.negf %508 : vector<8x128xf32>
    %510 = math.exp %509 : vector<8x128xf32>
    %cst_149 = arith.constant 1.000000e+00 : f32
    %511 = vector.broadcast %cst_149 : f32 to vector<8x128xf32>
    %512 = arith.addf %511, %510 : vector<8x128xf32>
    %513 = arith.divf %511, %512 : vector<8x128xf32>
    %514 = vector.extract_strided_slice %507 {offsets = [0, 128], sizes = [8, 128], strides = [1, 1]} : vector<8x512xf32> to vector<8x128xf32>
    %515 = arith.negf %514 : vector<8x128xf32>
    %516 = math.exp %515 : vector<8x128xf32>
    %cst_150 = arith.constant 1.000000e+00 : f32
    %517 = vector.broadcast %cst_150 : f32 to vector<8x128xf32>
    %518 = arith.addf %517, %516 : vector<8x128xf32>
    %519 = arith.divf %517, %518 : vector<8x128xf32>
    %520 = vector.extract_strided_slice %507 {offsets = [0, 256], sizes = [8, 128], strides = [1, 1]} : vector<8x512xf32> to vector<8x128xf32>
    %521 = math.tanh %520 : vector<8x128xf32>
    %522 = vector.extract_strided_slice %507 {offsets = [0, 384], sizes = [8, 128], strides = [1, 1]} : vector<8x512xf32> to vector<8x128xf32>
    %523 = arith.negf %522 : vector<8x128xf32>
    %524 = math.exp %523 : vector<8x128xf32>
    %cst_151 = arith.constant 1.000000e+00 : f32
    %525 = vector.broadcast %cst_151 : f32 to vector<8x128xf32>
    %526 = arith.addf %525, %524 : vector<8x128xf32>
    %527 = arith.divf %525, %526 : vector<8x128xf32>
    %528 = arith.mulf %519, %503 : vector<8x128xf32>
    %529 = arith.mulf %513, %521 : vector<8x128xf32>
    %530 = arith.addf %528, %529 : vector<8x128xf32>
    %531 = math.tanh %530 : vector<8x128xf32>
    %532 = arith.mulf %527, %531 : vector<8x128xf32>
    %533 = vector.extract_strided_slice %501 {offsets = [8, 0], sizes = [8, 512], strides = [1, 1]} : vector<64x512xf32> to vector<8x512xf32>
    %c0_152 = arith.constant 0 : index
    %c0_153 = arith.constant 0 : index
    %534 = vector.load %arg8[%c0_152, %c0_153] : memref<128x512xf32, #tpu.memory_space<vmem>>, vector<128x512xf32>
    %cst_154 = arith.constant dense<0.000000e+00> : vector<8x512xf32>
    %535 = tpu.matmul %532, %534, %cst_154 {dimension_numbers = #tpu.dot_dimension_numbers<[1], [0], [0], [1], [0, 0, 1, 1], [], []>} : vector<8x128xf32>, vector<128x512xf32>, vector<8x512xf32> -> vector<8x512xf32>
    %536 = arith.addf %533, %535 : vector<8x512xf32>
    %537 = vector.extract_strided_slice %536 {offsets = [0, 0], sizes = [8, 128], strides = [1, 1]} : vector<8x512xf32> to vector<8x128xf32>
    %538 = arith.negf %537 : vector<8x128xf32>
    %539 = math.exp %538 : vector<8x128xf32>
    %cst_155 = arith.constant 1.000000e+00 : f32
    %540 = vector.broadcast %cst_155 : f32 to vector<8x128xf32>
    %541 = arith.addf %540, %539 : vector<8x128xf32>
    %542 = arith.divf %540, %541 : vector<8x128xf32>
    %543 = vector.extract_strided_slice %536 {offsets = [0, 128], sizes = [8, 128], strides = [1, 1]} : vector<8x512xf32> to vector<8x128xf32>
    %544 = arith.negf %543 : vector<8x128xf32>
    %545 = math.exp %544 : vector<8x128xf32>
    %cst_156 = arith.constant 1.000000e+00 : f32
    %546 = vector.broadcast %cst_156 : f32 to vector<8x128xf32>
    %547 = arith.addf %546, %545 : vector<8x128xf32>
    %548 = arith.divf %546, %547 : vector<8x128xf32>
    %549 = vector.extract_strided_slice %536 {offsets = [0, 256], sizes = [8, 128], strides = [1, 1]} : vector<8x512xf32> to vector<8x128xf32>
    %550 = math.tanh %549 : vector<8x128xf32>
    %551 = vector.extract_strided_slice %536 {offsets = [0, 384], sizes = [8, 128], strides = [1, 1]} : vector<8x512xf32> to vector<8x128xf32>
    %552 = arith.negf %551 : vector<8x128xf32>
    %553 = math.exp %552 : vector<8x128xf32>
    %cst_157 = arith.constant 1.000000e+00 : f32
    %554 = vector.broadcast %cst_157 : f32 to vector<8x128xf32>
    %555 = arith.addf %554, %553 : vector<8x128xf32>
    %556 = arith.divf %554, %555 : vector<8x128xf32>
    %557 = arith.mulf %548, %530 : vector<8x128xf32>
    %558 = arith.mulf %542, %550 : vector<8x128xf32>
    %559 = arith.addf %557, %558 : vector<8x128xf32>
    %560 = math.tanh %559 : vector<8x128xf32>
    %561 = arith.mulf %556, %560 : vector<8x128xf32>
    %562 = vector.extract_strided_slice %501 {offsets = [16, 0], sizes = [8, 512], strides = [1, 1]} : vector<64x512xf32> to vector<8x512xf32>
    %c0_158 = arith.constant 0 : index
    %c0_159 = arith.constant 0 : index
    %563 = vector.load %arg8[%c0_158, %c0_159] : memref<128x512xf32, #tpu.memory_space<vmem>>, vector<128x512xf32>
    %cst_160 = arith.constant dense<0.000000e+00> : vector<8x512xf32>
    %564 = tpu.matmul %561, %563, %cst_160 {dimension_numbers = #tpu.dot_dimension_numbers<[1], [0], [0], [1], [0, 0, 1, 1], [], []>} : vector<8x128xf32>, vector<128x512xf32>, vector<8x512xf32> -> vector<8x512xf32>
    %565 = arith.addf %562, %564 : vector<8x512xf32>
    %566 = vector.extract_strided_slice %565 {offsets = [0, 0], sizes = [8, 128], strides = [1, 1]} : vector<8x512xf32> to vector<8x128xf32>
    %567 = arith.negf %566 : vector<8x128xf32>
    %568 = math.exp %567 : vector<8x128xf32>
    %cst_161 = arith.constant 1.000000e+00 : f32
    %569 = vector.broadcast %cst_161 : f32 to vector<8x128xf32>
    %570 = arith.addf %569, %568 : vector<8x128xf32>
    %571 = arith.divf %569, %570 : vector<8x128xf32>
    %572 = vector.extract_strided_slice %565 {offsets = [0, 128], sizes = [8, 128], strides = [1, 1]} : vector<8x512xf32> to vector<8x128xf32>
    %573 = arith.negf %572 : vector<8x128xf32>
    %574 = math.exp %573 : vector<8x128xf32>
    %cst_162 = arith.constant 1.000000e+00 : f32
    %575 = vector.broadcast %cst_162 : f32 to vector<8x128xf32>
    %576 = arith.addf %575, %574 : vector<8x128xf32>
    %577 = arith.divf %575, %576 : vector<8x128xf32>
    %578 = vector.extract_strided_slice %565 {offsets = [0, 256], sizes = [8, 128], strides = [1, 1]} : vector<8x512xf32> to vector<8x128xf32>
    %579 = math.tanh %578 : vector<8x128xf32>
    %580 = vector.extract_strided_slice %565 {offsets = [0, 384], sizes = [8, 128], strides = [1, 1]} : vector<8x512xf32> to vector<8x128xf32>
    %581 = arith.negf %580 : vector<8x128xf32>
    %582 = math.exp %581 : vector<8x128xf32>
    %cst_163 = arith.constant 1.000000e+00 : f32
    %583 = vector.broadcast %cst_163 : f32 to vector<8x128xf32>
    %584 = arith.addf %583, %582 : vector<8x128xf32>
    %585 = arith.divf %583, %584 : vector<8x128xf32>
    %586 = arith.mulf %577, %559 : vector<8x128xf32>
    %587 = arith.mulf %571, %579 : vector<8x128xf32>
    %588 = arith.addf %586, %587 : vector<8x128xf32>
    %589 = math.tanh %588 : vector<8x128xf32>
    %590 = arith.mulf %585, %589 : vector<8x128xf32>
    %591 = vector.extract_strided_slice %501 {offsets = [24, 0], sizes = [8, 512], strides = [1, 1]} : vector<64x512xf32> to vector<8x512xf32>
    %c0_164 = arith.constant 0 : index
    %c0_165 = arith.constant 0 : index
    %592 = vector.load %arg8[%c0_164, %c0_165] : memref<128x512xf32, #tpu.memory_space<vmem>>, vector<128x512xf32>
    %cst_166 = arith.constant dense<0.000000e+00> : vector<8x512xf32>
    %593 = tpu.matmul %590, %592, %cst_166 {dimension_numbers = #tpu.dot_dimension_numbers<[1], [0], [0], [1], [0, 0, 1, 1], [], []>} : vector<8x128xf32>, vector<128x512xf32>, vector<8x512xf32> -> vector<8x512xf32>
    %594 = arith.addf %591, %593 : vector<8x512xf32>
    %595 = vector.extract_strided_slice %594 {offsets = [0, 0], sizes = [8, 128], strides = [1, 1]} : vector<8x512xf32> to vector<8x128xf32>
    %596 = arith.negf %595 : vector<8x128xf32>
    %597 = math.exp %596 : vector<8x128xf32>
    %cst_167 = arith.constant 1.000000e+00 : f32
    %598 = vector.broadcast %cst_167 : f32 to vector<8x128xf32>
    %599 = arith.addf %598, %597 : vector<8x128xf32>
    %600 = arith.divf %598, %599 : vector<8x128xf32>
    %601 = vector.extract_strided_slice %594 {offsets = [0, 128], sizes = [8, 128], strides = [1, 1]} : vector<8x512xf32> to vector<8x128xf32>
    %602 = arith.negf %601 : vector<8x128xf32>
    %603 = math.exp %602 : vector<8x128xf32>
    %cst_168 = arith.constant 1.000000e+00 : f32
    %604 = vector.broadcast %cst_168 : f32 to vector<8x128xf32>
    %605 = arith.addf %604, %603 : vector<8x128xf32>
    %606 = arith.divf %604, %605 : vector<8x128xf32>
    %607 = vector.extract_strided_slice %594 {offsets = [0, 256], sizes = [8, 128], strides = [1, 1]} : vector<8x512xf32> to vector<8x128xf32>
    %608 = math.tanh %607 : vector<8x128xf32>
    %609 = vector.extract_strided_slice %594 {offsets = [0, 384], sizes = [8, 128], strides = [1, 1]} : vector<8x512xf32> to vector<8x128xf32>
    %610 = arith.negf %609 : vector<8x128xf32>
    %611 = math.exp %610 : vector<8x128xf32>
    %cst_169 = arith.constant 1.000000e+00 : f32
    %612 = vector.broadcast %cst_169 : f32 to vector<8x128xf32>
    %613 = arith.addf %612, %611 : vector<8x128xf32>
    %614 = arith.divf %612, %613 : vector<8x128xf32>
    %615 = arith.mulf %606, %588 : vector<8x128xf32>
    %616 = arith.mulf %600, %608 : vector<8x128xf32>
    %617 = arith.addf %615, %616 : vector<8x128xf32>
    %618 = math.tanh %617 : vector<8x128xf32>
    %619 = arith.mulf %614, %618 : vector<8x128xf32>
    %620 = vector.extract_strided_slice %501 {offsets = [32, 0], sizes = [8, 512], strides = [1, 1]} : vector<64x512xf32> to vector<8x512xf32>
    %c0_170 = arith.constant 0 : index
    %c0_171 = arith.constant 0 : index
    %621 = vector.load %arg8[%c0_170, %c0_171] : memref<128x512xf32, #tpu.memory_space<vmem>>, vector<128x512xf32>
    %cst_172 = arith.constant dense<0.000000e+00> : vector<8x512xf32>
    %622 = tpu.matmul %619, %621, %cst_172 {dimension_numbers = #tpu.dot_dimension_numbers<[1], [0], [0], [1], [0, 0, 1, 1], [], []>} : vector<8x128xf32>, vector<128x512xf32>, vector<8x512xf32> -> vector<8x512xf32>
    %623 = arith.addf %620, %622 : vector<8x512xf32>
    %624 = vector.extract_strided_slice %623 {offsets = [0, 0], sizes = [8, 128], strides = [1, 1]} : vector<8x512xf32> to vector<8x128xf32>
    %625 = arith.negf %624 : vector<8x128xf32>
    %626 = math.exp %625 : vector<8x128xf32>
    %cst_173 = arith.constant 1.000000e+00 : f32
    %627 = vector.broadcast %cst_173 : f32 to vector<8x128xf32>
    %628 = arith.addf %627, %626 : vector<8x128xf32>
    %629 = arith.divf %627, %628 : vector<8x128xf32>
    %630 = vector.extract_strided_slice %623 {offsets = [0, 128], sizes = [8, 128], strides = [1, 1]} : vector<8x512xf32> to vector<8x128xf32>
    %631 = arith.negf %630 : vector<8x128xf32>
    %632 = math.exp %631 : vector<8x128xf32>
    %cst_174 = arith.constant 1.000000e+00 : f32
    %633 = vector.broadcast %cst_174 : f32 to vector<8x128xf32>
    %634 = arith.addf %633, %632 : vector<8x128xf32>
    %635 = arith.divf %633, %634 : vector<8x128xf32>
    %636 = vector.extract_strided_slice %623 {offsets = [0, 256], sizes = [8, 128], strides = [1, 1]} : vector<8x512xf32> to vector<8x128xf32>
    %637 = math.tanh %636 : vector<8x128xf32>
    %638 = vector.extract_strided_slice %623 {offsets = [0, 384], sizes = [8, 128], strides = [1, 1]} : vector<8x512xf32> to vector<8x128xf32>
    %639 = arith.negf %638 : vector<8x128xf32>
    %640 = math.exp %639 : vector<8x128xf32>
    %cst_175 = arith.constant 1.000000e+00 : f32
    %641 = vector.broadcast %cst_175 : f32 to vector<8x128xf32>
    %642 = arith.addf %641, %640 : vector<8x128xf32>
    %643 = arith.divf %641, %642 : vector<8x128xf32>
    %644 = arith.mulf %635, %617 : vector<8x128xf32>
    %645 = arith.mulf %629, %637 : vector<8x128xf32>
    %646 = arith.addf %644, %645 : vector<8x128xf32>
    %647 = math.tanh %646 : vector<8x128xf32>
    %648 = arith.mulf %643, %647 : vector<8x128xf32>
    %649 = vector.extract_strided_slice %501 {offsets = [40, 0], sizes = [8, 512], strides = [1, 1]} : vector<64x512xf32> to vector<8x512xf32>
    %c0_176 = arith.constant 0 : index
    %c0_177 = arith.constant 0 : index
    %650 = vector.load %arg8[%c0_176, %c0_177] : memref<128x512xf32, #tpu.memory_space<vmem>>, vector<128x512xf32>
    %cst_178 = arith.constant dense<0.000000e+00> : vector<8x512xf32>
    %651 = tpu.matmul %648, %650, %cst_178 {dimension_numbers = #tpu.dot_dimension_numbers<[1], [0], [0], [1], [0, 0, 1, 1], [], []>} : vector<8x128xf32>, vector<128x512xf32>, vector<8x512xf32> -> vector<8x512xf32>
    %652 = arith.addf %649, %651 : vector<8x512xf32>
    %653 = vector.extract_strided_slice %652 {offsets = [0, 0], sizes = [8, 128], strides = [1, 1]} : vector<8x512xf32> to vector<8x128xf32>
    %654 = arith.negf %653 : vector<8x128xf32>
    %655 = math.exp %654 : vector<8x128xf32>
    %cst_179 = arith.constant 1.000000e+00 : f32
    %656 = vector.broadcast %cst_179 : f32 to vector<8x128xf32>
    %657 = arith.addf %656, %655 : vector<8x128xf32>
    %658 = arith.divf %656, %657 : vector<8x128xf32>
    %659 = vector.extract_strided_slice %652 {offsets = [0, 128], sizes = [8, 128], strides = [1, 1]} : vector<8x512xf32> to vector<8x128xf32>
    %660 = arith.negf %659 : vector<8x128xf32>
    %661 = math.exp %660 : vector<8x128xf32>
    %cst_180 = arith.constant 1.000000e+00 : f32
    %662 = vector.broadcast %cst_180 : f32 to vector<8x128xf32>
    %663 = arith.addf %662, %661 : vector<8x128xf32>
    %664 = arith.divf %662, %663 : vector<8x128xf32>
    %665 = vector.extract_strided_slice %652 {offsets = [0, 256], sizes = [8, 128], strides = [1, 1]} : vector<8x512xf32> to vector<8x128xf32>
    %666 = math.tanh %665 : vector<8x128xf32>
    %667 = vector.extract_strided_slice %652 {offsets = [0, 384], sizes = [8, 128], strides = [1, 1]} : vector<8x512xf32> to vector<8x128xf32>
    %668 = arith.negf %667 : vector<8x128xf32>
    %669 = math.exp %668 : vector<8x128xf32>
    %cst_181 = arith.constant 1.000000e+00 : f32
    %670 = vector.broadcast %cst_181 : f32 to vector<8x128xf32>
    %671 = arith.addf %670, %669 : vector<8x128xf32>
    %672 = arith.divf %670, %671 : vector<8x128xf32>
    %673 = arith.mulf %664, %646 : vector<8x128xf32>
    %674 = arith.mulf %658, %666 : vector<8x128xf32>
    %675 = arith.addf %673, %674 : vector<8x128xf32>
    %676 = math.tanh %675 : vector<8x128xf32>
    %677 = arith.mulf %672, %676 : vector<8x128xf32>
    %678 = vector.extract_strided_slice %501 {offsets = [48, 0], sizes = [8, 512], strides = [1, 1]} : vector<64x512xf32> to vector<8x512xf32>
    %c0_182 = arith.constant 0 : index
    %c0_183 = arith.constant 0 : index
    %679 = vector.load %arg8[%c0_182, %c0_183] : memref<128x512xf32, #tpu.memory_space<vmem>>, vector<128x512xf32>
    %cst_184 = arith.constant dense<0.000000e+00> : vector<8x512xf32>
    %680 = tpu.matmul %677, %679, %cst_184 {dimension_numbers = #tpu.dot_dimension_numbers<[1], [0], [0], [1], [0, 0, 1, 1], [], []>} : vector<8x128xf32>, vector<128x512xf32>, vector<8x512xf32> -> vector<8x512xf32>
    %681 = arith.addf %678, %680 : vector<8x512xf32>
    %682 = vector.extract_strided_slice %681 {offsets = [0, 0], sizes = [8, 128], strides = [1, 1]} : vector<8x512xf32> to vector<8x128xf32>
    %683 = arith.negf %682 : vector<8x128xf32>
    %684 = math.exp %683 : vector<8x128xf32>
    %cst_185 = arith.constant 1.000000e+00 : f32
    %685 = vector.broadcast %cst_185 : f32 to vector<8x128xf32>
    %686 = arith.addf %685, %684 : vector<8x128xf32>
    %687 = arith.divf %685, %686 : vector<8x128xf32>
    %688 = vector.extract_strided_slice %681 {offsets = [0, 128], sizes = [8, 128], strides = [1, 1]} : vector<8x512xf32> to vector<8x128xf32>
    %689 = arith.negf %688 : vector<8x128xf32>
    %690 = math.exp %689 : vector<8x128xf32>
    %cst_186 = arith.constant 1.000000e+00 : f32
    %691 = vector.broadcast %cst_186 : f32 to vector<8x128xf32>
    %692 = arith.addf %691, %690 : vector<8x128xf32>
    %693 = arith.divf %691, %692 : vector<8x128xf32>
    %694 = vector.extract_strided_slice %681 {offsets = [0, 256], sizes = [8, 128], strides = [1, 1]} : vector<8x512xf32> to vector<8x128xf32>
    %695 = math.tanh %694 : vector<8x128xf32>
    %696 = vector.extract_strided_slice %681 {offsets = [0, 384], sizes = [8, 128], strides = [1, 1]} : vector<8x512xf32> to vector<8x128xf32>
    %697 = arith.negf %696 : vector<8x128xf32>
    %698 = math.exp %697 : vector<8x128xf32>
    %cst_187 = arith.constant 1.000000e+00 : f32
    %699 = vector.broadcast %cst_187 : f32 to vector<8x128xf32>
    %700 = arith.addf %699, %698 : vector<8x128xf32>
    %701 = arith.divf %699, %700 : vector<8x128xf32>
    %702 = arith.mulf %693, %675 : vector<8x128xf32>
    %703 = arith.mulf %687, %695 : vector<8x128xf32>
    %704 = arith.addf %702, %703 : vector<8x128xf32>
    %705 = math.tanh %704 : vector<8x128xf32>
    %706 = arith.mulf %701, %705 : vector<8x128xf32>
    %707 = vector.extract_strided_slice %501 {offsets = [56, 0], sizes = [8, 512], strides = [1, 1]} : vector<64x512xf32> to vector<8x512xf32>
    %c0_188 = arith.constant 0 : index
    %c0_189 = arith.constant 0 : index
    %708 = vector.load %arg8[%c0_188, %c0_189] : memref<128x512xf32, #tpu.memory_space<vmem>>, vector<128x512xf32>
    %cst_190 = arith.constant dense<0.000000e+00> : vector<8x512xf32>
    %709 = tpu.matmul %706, %708, %cst_190 {dimension_numbers = #tpu.dot_dimension_numbers<[1], [0], [0], [1], [0, 0, 1, 1], [], []>} : vector<8x128xf32>, vector<128x512xf32>, vector<8x512xf32> -> vector<8x512xf32>
    %710 = arith.addf %707, %709 : vector<8x512xf32>
    %711 = vector.extract_strided_slice %710 {offsets = [0, 0], sizes = [8, 128], strides = [1, 1]} : vector<8x512xf32> to vector<8x128xf32>
    %712 = arith.negf %711 : vector<8x128xf32>
    %713 = math.exp %712 : vector<8x128xf32>
    %cst_191 = arith.constant 1.000000e+00 : f32
    %714 = vector.broadcast %cst_191 : f32 to vector<8x128xf32>
    %715 = arith.addf %714, %713 : vector<8x128xf32>
    %716 = arith.divf %714, %715 : vector<8x128xf32>
    %717 = vector.extract_strided_slice %710 {offsets = [0, 128], sizes = [8, 128], strides = [1, 1]} : vector<8x512xf32> to vector<8x128xf32>
    %718 = arith.negf %717 : vector<8x128xf32>
    %719 = math.exp %718 : vector<8x128xf32>
    %cst_192 = arith.constant 1.000000e+00 : f32
    %720 = vector.broadcast %cst_192 : f32 to vector<8x128xf32>
    %721 = arith.addf %720, %719 : vector<8x128xf32>
    %722 = arith.divf %720, %721 : vector<8x128xf32>
    %723 = vector.extract_strided_slice %710 {offsets = [0, 256], sizes = [8, 128], strides = [1, 1]} : vector<8x512xf32> to vector<8x128xf32>
    %724 = math.tanh %723 : vector<8x128xf32>
    %725 = vector.extract_strided_slice %710 {offsets = [0, 384], sizes = [8, 128], strides = [1, 1]} : vector<8x512xf32> to vector<8x128xf32>
    %726 = arith.negf %725 : vector<8x128xf32>
    %727 = math.exp %726 : vector<8x128xf32>
    %cst_193 = arith.constant 1.000000e+00 : f32
    %728 = vector.broadcast %cst_193 : f32 to vector<8x128xf32>
    %729 = arith.addf %728, %727 : vector<8x128xf32>
    %730 = arith.divf %728, %729 : vector<8x128xf32>
    %731 = arith.mulf %722, %704 : vector<8x128xf32>
    %732 = arith.mulf %716, %724 : vector<8x128xf32>
    %733 = arith.addf %731, %732 : vector<8x128xf32>
    %734 = math.tanh %733 : vector<8x128xf32>
    %735 = arith.mulf %730, %734 : vector<8x128xf32>
    %c0_194 = arith.constant 0 : index
    %c0_195 = arith.constant 0 : index
    %736 = vector.load %arg10[%c0_194, %c0_195] : memref<128x1xf32, #tpu.memory_space<vmem>>, vector<128x1xf32>
    %cst_196 = arith.constant dense<0.000000e+00> : vector<8x1xf32>
    %737 = tpu.matmul %735, %736, %cst_196 {dimension_numbers = #tpu.dot_dimension_numbers<[1], [0], [0], [1], [0, 0, 1, 1], [], []>} : vector<8x128xf32>, vector<128x1xf32>, vector<8x1xf32> -> vector<8x1xf32>
    %c0_197 = arith.constant 0 : index
    %c0_198 = arith.constant 0 : index
    %738 = vector.load %arg11[%c0_197, %c0_198] : memref<1x1xf32, #tpu.memory_space<vmem>>, vector<1x1xf32>
    %739 = vector.broadcast %738 : vector<1x1xf32> to vector<8x1xf32>
    %740 = arith.addf %737, %739 : vector<8x1xf32>
    %c0_199 = arith.constant 0 : index
    %c0_200 = arith.constant 0 : index
    %741 = vector.load %arg12[%c0_199, %c0_200] : memref<8x1xf32, #tpu.memory_space<vmem>>, vector<8x1xf32>
    tpu.vector_store %arg12[%c0_199, %c0_200], %740 {strides = array<i32>} : memref<8x1xf32, #tpu.memory_space<vmem>>, vector<8x1xf32>,
    return
  }
}

</mosaic_0001>

<bundles_post_ra>
// kernel: lstm_model_forward.1
= control target key start
LH: loop header
LB: loop body
LE: loop exit
PB: predicated region body
PF: predicated region fallthrough
CT: control target
= control target key end

     0   :  { %s10146_s0 = inlined_call_operand.vmem [shape: f32[64,1], index: 0, kind: input, shape index: {}]   ;;  %s10147_s1 = inlined_call_operand.vmem [shape: f32[1,512], index: 1, kind: input, shape index: {}]   ;;  %s10148_s2 = inlined_call_operand.hbm [shape: f32[128,512], index: 2, kind: input, shape index: {}]   ;;  %s10149_s3 = inlined_call_operand.vmem [shape: f32[1,512], index: 3, kind: input, shape index: {}]   ;;  %s10150_s4 = inlined_call_operand.hbm [shape: f32[128,512], index: 4, kind: input, shape index: {}]   ;;  %s10151_s5 = inlined_call_operand.hbm [shape: f32[128,512], index: 5, kind: input, shape index: {}]   ;;  %s10152_s6 = inlined_call_operand.vmem [shape: f32[1,512], index: 6, kind: input, shape index: {}]   ;;  %s10153_s7 = inlined_call_operand.hbm [shape: f32[128,512], index: 7, kind: input, shape index: {}]   ;;  %s10154_s8 = inlined_call_operand.hbm [shape: f32[128,512], index: 8, kind: input, shape index: {}]   ;;  %s10155_s9 = inlined_call_operand.vmem [shape: f32[1,512], index: 9, kind: input, shape index: {}]   ;;  %s10156_s10 = inlined_call_operand.vmem [shape: f32[128,1], index: 10, kind: input, shape index: {}]   ;;  %s10157_s11 = inlined_call_operand.<no memory space> [shape: f32[1,1], index: 11, kind: input, shape index: {}]   ;;  %s10158_s12 = inlined_call_operand.vmem [shape: f32[8,1], index: 12, kind: output, shape index: {}]  }
   0x1   :  { %v17_v0 = vstv %s10157_s11 }
   0x2   :  { %18 = vst [vmem:[#allocation4] sm:$0x1] %v17_v0 }
   0x3   :  { %19 = vsyncpa [#allocation6], 0 }
   0x4   :  { %20 = vsyncpa [#allocation8], 0 }
   0x5   :  { %21 = vsyncpa [#allocation11], 0  ;;  %s7052_s23 = smov [#allocation7]   ;;  %s7053_s25 = smov [#allocation10]  }
   0x6   :  { %s45_s24 = sshll.u32 %s7052_s23, 4  ;;  %s71_s26 = sshll.u32 %s7053_s25, 4  ;;  %s46_s24 = int_to_ptr.vmem [resolvable:$true] %s45_s24  ;;  %s72_s26 = int_to_ptr.vmem [resolvable:$true] %s71_s26 }
   0x7   :  { %s6954_s27 = scalar_lea.vmem %s46_s24, 8192  ;;  %p6959_p1 = scmp.lt.s32.totalorder %s46_s24, %s46_s24 }
   0x8   :  { %p6955_p0 = scmp.ne.s32.totalorder %s46_s24, %s6954_s27  ;;  %p6960_p2 = scmp.lt.s32.totalorder %s6954_s27, %s6954_s27 }
   0xa   :  { %p6961_p3 = por %p6960_p2, %p6959_p1 }
   0xc   :  { %p6962_p4 = pnand %p6961_p3, %p6955_p0 }
   0xe   :  { %6965 = shalt.err (!%p6962_p4)
}
   0xf   :  { %s7054_s28 = smov 512   ;;  %s7055_s29 = smov 32  }
  0x10   :  { %51 = dma.hbm_to_vmem [thread:$0]  %s10150_s4, 8192, %s46_s24, [#allocation8], %s7054_s28, %s7054_s28, %s7055_s29  }
  0x11   :  { %s6974_s13 = scalar_lea.vmem %s72_s26, 8192  ;;  %p6979_p6 = scmp.lt.s32.totalorder %s72_s26, %s72_s26 }
  0x12   :  { %p6975_p5 = scmp.ne.s32.totalorder %s72_s26, %s6974_s13  ;;  %p6980_p7 = scmp.lt.s32.totalorder %s6974_s13, %s6974_s13 }
  0x14   :  { %p6981_p8 = por %p6980_p7, %p6979_p6 }
  0x16   :  { %p6982_p9 = pnand %p6981_p8, %p6975_p5 }
  0x18   :  { %6985 = shalt.err (!%p6982_p9)
}
  0x19   :  { %77 = dma.hbm_to_vmem [thread:$0]  %s10153_s7, 8192, %s72_s26, [#allocation11], %s7054_s28, %s7054_s28, %s7055_s29  }
  0x1a   :  { %s7056_s16 = smov [#allocation5]   ;;  %s7057_s18 = smov [#allocation9]  }
  0x1b   :  { %s31_s17 = sshll.u32 %s7056_s16, 4  ;;  %s57_s19 = sshll.u32 %s7057_s18, 4  ;;  %s32_s17 = int_to_ptr.vmem [resolvable:$true] %s31_s17  ;;  %s58_s19 = int_to_ptr.vmem [resolvable:$true] %s57_s19 }
  0x1c   :  { %s6994_s4 = scalar_lea.vmem %s32_s17, 8192  ;;  %p6999_p11 = scmp.lt.s32.totalorder %s32_s17, %s32_s17 }
  0x1d   :  { %p6995_p10 = scmp.ne.s32.totalorder %s32_s17, %s6994_s4  ;;  %p7000_p12 = scmp.lt.s32.totalorder %s6994_s4, %s6994_s4 }
  0x1f   :  { %p7001_p13 = por %p7000_p12, %p6999_p11 }
  0x21   :  { %p7002_p0 = pnand %p7001_p13, %p6995_p10 }
  0x23   :  { %7005 = shalt.err (!%p7002_p0)
}
  0x24   :  { %37 = dma.hbm_to_vmem [thread:$0]  %s10148_s2, 8192, %s32_s17, [#allocation6], %s7054_s28, %s7054_s28, %s7055_s29  }
  0x25   :  { %s7014_s7 = scalar_lea.vmem %s58_s19, 8192  ;;  %p7019_p2 = scmp.lt.s32.totalorder %s58_s19, %s58_s19 }
  0x26   :  { %p7015_p1 = scmp.ne.s32.totalorder %s58_s19, %s7014_s7  ;;  %p7020_p3 = scmp.lt.s32.totalorder %s7014_s7, %s7014_s7 }
  0x28   :  { %p7021_p4 = por %p7020_p3, %p7019_p2 }
  0x2a   :  { %p7022_p5 = pnand %p7021_p4, %p7015_p1 }
  0x2c   :  { %7025 = shalt.err (!%p7022_p5)
}
  0x2d   :  { %63 = dma.hbm_to_vmem [thread:$0]  %s10151_s5, 8192, %s58_s19, [#allocation8], %s7054_s28, %s7054_s28, %s7055_s29  }
  0x2e   :  { %s7058_s24 = smov [#allocation12]  }
  0x2f   :  { %s83_s25 = sshll.u32 %s7058_s24, 4  ;;  %s84_s25 = int_to_ptr.vmem [resolvable:$true] %s83_s25 }
  0x30   :  { %s7034_s26 = scalar_lea.vmem %s84_s25, 8192  ;;  %p7039_p7 = scmp.lt.s32.totalorder %s84_s25, %s84_s25 }
  0x31   :  { %p7035_p6 = scmp.ne.s32.totalorder %s84_s25, %s7034_s26  ;;  %p7040_p8 = scmp.lt.s32.totalorder %s7034_s26, %s7034_s26 }
  0x33   :  { %p7041_p9 = por %p7040_p8, %p7039_p7 }
  0x35   :  { %p7042_p10 = pnand %p7041_p9, %p7035_p6 }
  0x37   :  { %7045 = shalt.err (!%p7042_p10)
}
  0x38   :  { %89 = dma.hbm_to_vmem [thread:$0]  %s10154_s8, 8192, %s84_s25, [#allocation11], %s7054_s28, %s7054_s28, %s7055_s29  }
  0x39   :  { %7046 = dma.done.wait [#allocation6], 8192  }
  0x3a   :  { %7047 = vsyncadd [#allocation6], 4294959104 }
  0x3b   :  { %7048 = dma.done.wait [#allocation8], 16384  }
  0x3c   :  { %7049 = vsyncadd [#allocation8], 4294950912 }
  0x3d   :  { %7050 = dma.done.wait [#allocation11], 16384  }
  0x3e   :  { %7051 = vsyncadd [#allocation11], 4294950912  ;;  %v122_v1 = vlaneseq  ;;  %v10167_v2 = vmov 0.0   ;;  %v119_v8 = vld [vmem:[%s10147_s1] sm:$0xf]  ;;  %vm184_vm0 = vcmask 1040384  }
  0x3f   :  { %257 = vmatprep.mubr.f32.mxu0 %v10167_v2  ;;  %370 = vmatprep.mubr.f32.mxu1 %v10167_v2  ;;  %v111_v13 = vld [vmem:[%s10146_s0] sm:$0xff]  ;;  %vm159_vm1 = vcmask 7168   ;;  %v7179_v14 = vld [vmem:[#allocation5 + $0x1e8] sm:$0xff]  ;;  %v7185_v17 = vld [vmem:[#allocation5 + $0x1f0] sm:$0xff]  ;;  %vm7060_vm2 = vmmov 0  }
  0x40   :  { %v123_v3 = vshrl.u32 %v122_v1, 7  ;;  %v7181_v15 = vld [vmem:[#allocation5 + $0x1f8] sm:$0xff]  ;;  %v7183_v16 = vld [vmem:[#allocation5 + $0x1e0] sm:$0xff]  ;;  %v7189_v18 = vld [vmem:[#allocation5 + $0x1c8] sm:$0xff] }
  0x41   :  { %v7191_v19 = vld [vmem:[#allocation5 + $0x1d8] sm:$0xff]  ;;  %v7197_v20 = vld [vmem:[#allocation5 + $0x1c0] sm:$0xff]  ;;  %v7199_v21 = vld [vmem:[#allocation5 + $0x1d0] sm:$0xff] }
  0x42   :  { %v7161_v4 = vsub.s32 1, %v123_v3  ;;  %v7163_v5 = vsub.s32 3, %v123_v3  ;;  %v7165_v6 = vsub.s32 0, %v123_v3  ;;  %v7167_v7 = vsub.s32 2, %v123_v3  ;;  %v112_v22 = vld [vmem:[%s10146_s0 + $0x8] sm:$0xff]  ;;  %v7210_v24 = vld [vmem:[#allocation5 + $0x1b8] sm:$0xff] }
  0x43   :  { %v7208_v23 = vld [vmem:[#allocation5 + $0x1a8] sm:$0xff]  ;;  %v7214_v25 = vld [vmem:[#allocation5 + $0x1a0] sm:$0xff]  ;;  %v7216_v26 = vld [vmem:[#allocation5 + $0x1b0] sm:$0xff] }
  0x44   :  { %10455 = vst [vmem:[#allocation16_spill] sm:$0xff] %v7161_v4  ;;  %10456 = vst [vmem:[#allocation17_spill] sm:$0xff] %v7163_v5  ;;  %v150_v9 = vrot.slane %v119_v8, %v7161_v4  ;;  %v158_v10 = vrot.slane %v119_v8, %v7163_v5  ;;  %v146_v11 = vrot.slane %v119_v8, %v7165_v6  ;;  %v7220_v27 = vld [vmem:[#allocation5 + $0x188] sm:$0xff]  ;;  %v7222_v28 = vld [vmem:[#allocation5 + $0x198] sm:$0xff] }
  0x45   :  { %10457 = vst [vmem:[#allocation18_spill] sm:$0xff] %v7165_v6  ;;  %10458 = vst [vmem:[#allocation19_spill] sm:$0xff] %v7167_v7  ;;  %v154_v12 = vrot.slane %v119_v8, %v7167_v7  ;;  %v7228_v29 = vld [vmem:[#allocation5 + $0x180] sm:$0xff]  ;;  %v7230_v30 = vld [vmem:[#allocation5 + $0x190] sm:$0xff] }
  0x46   :  { %6344 = vmatprep.subr.msk.mxu0 %vm184_vm0, %v150_v9  ;;  %6354 = vmatprep.subr.msk.mxu1 %vm184_vm0, %v158_v10  ;;  %v113_v31 = vld [vmem:[%s10146_s0 + $0x10] sm:$0xff]  ;;  %v7241_v33 = vld [vmem:[#allocation5 + $0x178] sm:$0xff]  ;;  %v7245_v34 = vld [vmem:[#allocation5 + $0x160] sm:$0xff] }
  0x47   :  { %6345 = vmatpush1.msk.msra.mxu0 %vm184_vm0, %v146_v11  ;;  %6355 = vmatpush1.msk.msra.mxu1 %vm184_vm0, %v154_v12  ;;  %v7239_v32 = vld [vmem:[#allocation5 + $0x168] sm:$0xff]  ;;  %v7247_v35 = vld [vmem:[#allocation5 + $0x170] sm:$0xff]  ;;  %v7253_v37 = vld [vmem:[#allocation5 + $0x158] sm:$0xff] }
  0x48   :  { %6346 = vmatmul.mubr.msk.f32.vlgmr.msra.gmra.mxu0 %vm159_vm1, %v111_v13  ;;  %6356 = vmatmul.mubr.msk.f32.vlgmr.msra.gmra.mxu1 %vm159_vm1, %v111_v13  ;;  %v7251_v36 = vld [vmem:[#allocation5 + $0x148] sm:$0xff]  ;;  %v7259_v38 = vld [vmem:[#allocation5 + $0x140] sm:$0xff]  ;;  %v7261_v39 = vld [vmem:[#allocation5 + $0x150] sm:$0xff] }
  0x49   :  { %483 = vmatprep.subr.mxu0 %v7179_v14  ;;  %554 = vmatprep.subr.mxu1 %v7181_v15  ;;  %v114_v40 = vld [vmem:[%s10146_s0 + $0x18] sm:$0xff]  ;;  %v7270_v41 = vld [vmem:[#allocation5 + $0x128] sm:$0xff]  ;;  %v7276_v43 = vld [vmem:[#allocation5 + $0x120] sm:$0xff] }
  0x4a   :  { %484 = vmatpush1.msra.mxu0 %v7183_v16  ;;  %555 = vmatpush1.msra.mxu1 %v7185_v17  ;;  %v7272_v42 = vld [vmem:[#allocation5 + $0x138] sm:$0xff]  ;;  %v7278_v44 = vld [vmem:[#allocation5 + $0x130] sm:$0xff]  ;;  %v7282_v45 = vld [vmem:[#allocation5 + $0x108] sm:$0xff] }
  0x4b   :  { %485 = vmatprep.subr.mxu0 %v7189_v18  ;;  %556 = vmatprep.subr.mxu1 %v7191_v19  ;;  %v7284_v46 = vld [vmem:[#allocation5 + $0x118] sm:$0xff]  ;;  %v7290_v47 = vld [vmem:[#allocation5 + $0x100] sm:$0xff]  ;;  %v7292_v48 = vld [vmem:[#allocation5 + $0x110] sm:$0xff] }
  0x4c   :  { %263 = vmatprep.mubr.f32.mxu0 %v10167_v2  ;;  %376 = vmatprep.mubr.f32.mxu1 %v10167_v2  ;;  %v115_v49 = vld [vmem:[%s10146_s0 + $0x20] sm:$0xff]  ;;  %v7301_v50 = vld [vmem:[#allocation5 + $0xe8] sm:$0xff]  ;;  %v7309_v53 = vld [vmem:[#allocation5 + $0xf0] sm:$0xff] }
  0x4d   :  { %486 = vmatpush1.msra.mxu0 %v7197_v20  ;;  %557 = vmatpush1.msra.mxu1 %v7199_v21  ;;  %v7303_v51 = vld [vmem:[#allocation5 + $0xf8] sm:$0xff]  ;;  %v7307_v52 = vld [vmem:[#allocation5 + $0xe0] sm:$0xff]  ;;  %v7313_v54 = vld [vmem:[#allocation5 + $0xc8] sm:$0xff] }
  0x4e   :  { %6347 = vmatmul.mubr.msk.f32.gmra.mxu0 %vm159_vm1, %v112_v22  ;;  %6357 = vmatmul.mubr.msk.f32.gmra.mxu1 %vm159_vm1, %v112_v22  ;;  %v7315_v55 = vld [vmem:[#allocation5 + $0xd8] sm:$0xff]  ;;  %v7321_v56 = vld [vmem:[#allocation5 + $0xc0] sm:$0xff]  ;;  %v7323_v57 = vld [vmem:[#allocation5 + $0xd0] sm:$0xff] }
  0x4f   :  { %487 = vmatprep.subr.mxu0 %v7208_v23  ;;  %558 = vmatprep.subr.mxu1 %v7210_v24  ;;  %v116_v58 = vld [vmem:[%s10146_s0 + $0x28] sm:$0xff]  ;;  %v7334_v60 = vld [vmem:[#allocation5 + $0xb8] sm:$0xff]  ;;  %v7340_v62 = vld [vmem:[#allocation5 + $0xb0] sm:$0xff] }
  0x50   :  { %488 = vmatpush1.msra.mxu0 %v7214_v25  ;;  %559 = vmatpush1.msra.mxu1 %v7216_v26  ;;  %v7332_v59 = vld [vmem:[#allocation5 + $0xa8] sm:$0xff]  ;;  %v7338_v61 = vld [vmem:[#allocation5 + $0xa0] sm:$0xff]  ;;  %v7346_v0 = vld [vmem:[#allocation5 + $0x98] sm:$0xff] }
  0x51   :  { %489 = vmatprep.subr.mxu0 %v7220_v27  ;;  %560 = vmatprep.subr.mxu1 %v7222_v28  ;;  %v7344_v63 = vld [vmem:[#allocation5 + $0x88] sm:$0xff]  ;;  %10460 = vst [vmem:[#allocation21_spill] sm:$0xff] %v7346_v0  ;;  %v7352_v1 = vld [vmem:[#allocation5 + $0x80] sm:$0xff]  ;;  %v7354_v3 = vld [vmem:[#allocation5 + $0x90] sm:$0xff] }
  0x52   :  { %269 = vmatprep.mubr.f32.mxu0 %v10167_v2  ;;  %382 = vmatprep.mubr.f32.mxu1 %v10167_v2  ;;  %10459 = vst [vmem:[#allocation20_spill] sm:$0xff] %v7344_v63  ;;  %10461 = vst [vmem:[#allocation22_spill] sm:$0xff] %v7352_v1  ;;  %v117_v8 = vld [vmem:[%s10146_s0 + $0x30] sm:$0xff]  ;;  %v7365_v10 = vld [vmem:[#allocation5 + $0x78] sm:$0xff] }
  0x53   :  { %490 = vmatpush1.msra.mxu0 %v7228_v29  ;;  %561 = vmatpush1.msra.mxu1 %v7230_v30  ;;  %10462 = vst [vmem:[#allocation23_spill] sm:$0xff] %v7354_v3  ;;  %v7363_v9 = vld [vmem:[#allocation5 + $0x68] sm:$0xff]  ;;  %10464 = vst [vmem:[#allocation25_spill] sm:$0xff] %v7365_v10  ;;  %v7369_v11 = vld [vmem:[#allocation5 + $0x60] sm:$0xff] }
  0x54   :  { %6348 = vmatmul.mubr.msk.f32.gmra.mxu0 %vm159_vm1, %v113_v31  ;;  %6358 = vmatmul.mubr.msk.f32.gmra.mxu1 %vm159_vm1, %v113_v31  ;;  %10463 = vst [vmem:[#allocation24_spill] sm:$0xff] %v7363_v9  ;;  %10465 = vst [vmem:[#allocation26_spill] sm:$0xff] %v7369_v11  ;;  %v7371_v12 = vld [vmem:[#allocation5 + $0x70] sm:$0xff]  ;;  %v7375_v13 = vld [vmem:[#allocation5 + $0x48] sm:$0xff] }
  0x55   :  { %491 = vmatprep.subr.mxu0 %v7239_v32  ;;  %562 = vmatprep.subr.mxu1 %v7241_v33  ;;  %10466 = vst [vmem:[#allocation27_spill] sm:$0xff] %v7371_v12  ;;  %10467 = vst [vmem:[#allocation28_spill] sm:$0xff] %v7375_v13  ;;  %v7377_v22 = vld [vmem:[#allocation5 + $0x58] sm:$0xff]  ;;  %v7383_v31 = vld [vmem:[#allocation5 + $0x40] sm:$0xff] }
  0x56   :  { %492 = vmatpush1.msra.mxu0 %v7245_v34  ;;  %563 = vmatpush1.msra.mxu1 %v7247_v35  ;;  %10468 = vst [vmem:[#allocation29_spill] sm:$0xff] %v7377_v22  ;;  %10469 = vst [vmem:[#allocation30_spill] sm:$0xff] %v7383_v31  ;;  %v7400_v5 = vld [vmem:[#allocation5 + $0x20] sm:$0xff]  ;;  %v7402_v4 = vld [vmem:[#allocation5 + $0x30] sm:$0xff] }
  0x57   :  { %493 = vmatprep.subr.mxu0 %v7251_v36  ;;  %564 = vmatprep.subr.mxu1 %v7253_v37  ;;  %10473 = vst [vmem:[#allocation34_spill] sm:$0xff] %v7400_v5  ;;  %10474 = vst [vmem:[#allocation35_spill] sm:$0xff] %v7402_v4  ;;  %v7406_v7 = vld [vmem:[#allocation5 + $0x8] sm:$0xff]  ;;  %v7408_v6 = vld [vmem:[#allocation5 + $0x18] sm:$0xff] }
  0x58   :  { %275 = vmatprep.mubr.f32.mxu0 %v10167_v2  ;;  %388 = vmatprep.mubr.f32.mxu1 %v10167_v2  ;;  %10475 = vst [vmem:[#allocation36_spill] sm:$0xff] %v7406_v7  ;;  %10476 = vst [vmem:[#allocation37_spill] sm:$0xff] %v7408_v6 }
  0x59   :  { %494 = vmatpush1.msra.mxu0 %v7259_v38  ;;  %565 = vmatpush1.msra.mxu1 %v7261_v39 }
  0x5a   :  { %6349 = vmatmul.mubr.msk.f32.gmra.mxu0 %vm159_vm1, %v114_v40  ;;  %6359 = vmatmul.mubr.msk.f32.gmra.mxu1 %vm159_vm1, %v114_v40  ;;  %v7385_v40 = vld [vmem:[#allocation5 + $0x50] sm:$0xff] }
  0x5b   :  { %495 = vmatprep.subr.mxu0 %v7270_v41  ;;  %566 = vmatprep.subr.mxu1 %v7272_v42  ;;  %10470 = vst [vmem:[#allocation31_spill] sm:$0xff] %v7385_v40 }
  0x5c   :  { %496 = vmatpush1.msra.mxu0 %v7276_v43  ;;  %567 = vmatpush1.msra.mxu1 %v7278_v44 }
  0x5d   :  { %497 = vmatprep.subr.mxu0 %v7282_v45  ;;  %568 = vmatprep.subr.mxu1 %v7284_v46 }
  0x5e   :  { %281 = vmatprep.mubr.f32.mxu0 %v10167_v2  ;;  %394 = vmatprep.mubr.f32.mxu1 %v10167_v2 }
  0x5f   :  { %498 = vmatpush1.msra.mxu0 %v7290_v47  ;;  %569 = vmatpush1.msra.mxu1 %v7292_v48 }
  0x60   :  { %6350 = vmatmul.mubr.msk.f32.gmra.mxu0 %vm159_vm1, %v115_v49  ;;  %6360 = vmatmul.mubr.msk.f32.gmra.mxu1 %vm159_vm1, %v115_v49  ;;  %v118_v49 = vld [vmem:[%s10146_s0 + $0x38] sm:$0xff] }
  0x61   :  { %499 = vmatprep.subr.mxu0 %v7301_v50  ;;  %570 = vmatprep.subr.mxu1 %v7303_v51 }
  0x62   :  { %500 = vmatpush1.msra.mxu0 %v7307_v52  ;;  %571 = vmatpush1.msra.mxu1 %v7309_v53 }
  0x63   :  { %501 = vmatprep.subr.mxu0 %v7313_v54  ;;  %572 = vmatprep.subr.mxu1 %v7315_v55 }
  0x64   :  { %287 = vmatprep.mubr.f32.mxu0 %v10167_v2  ;;  %400 = vmatprep.mubr.f32.mxu1 %v10167_v2 }
  0x65   :  { %502 = vmatpush1.msra.mxu0 %v7321_v56  ;;  %573 = vmatpush1.msra.mxu1 %v7323_v57 }
  0x66   :  { %6351 = vmatmul.mubr.msk.f32.gmra.mxu0 %vm159_vm1, %v116_v58  ;;  %6361 = vmatmul.mubr.msk.f32.gmra.mxu1 %vm159_vm1, %v116_v58  ;;  %v7394_v58 = vld [vmem:[#allocation5 + $0x28] sm:$0xff] }
  0x67   :  { %503 = vmatprep.subr.mxu0 %v7332_v59  ;;  %574 = vmatprep.subr.mxu1 %v7334_v60  ;;  %10471 = vst [vmem:[#allocation32_spill] sm:$0xff] %v7394_v58 }
  0x68   :  { %504 = vmatpush1.msra.mxu0 %v7338_v61  ;;  %575 = vmatpush1.msra.mxu1 %v7340_v62 }
  0x69   :  { %505 = vmatprep.subr.mxu0 %v7344_v63  ;;  %576 = vmatprep.subr.mxu1 %v7346_v0 }
  0x6a   :  { %293 = vmatprep.mubr.f32.mxu0 %v10167_v2  ;;  %406 = vmatprep.mubr.f32.mxu1 %v10167_v2 }
  0x6b   :  { %506 = vmatpush1.msra.mxu0 %v7352_v1  ;;  %577 = vmatpush1.msra.mxu1 %v7354_v3 }
  0x6c   :  { %6352 = vmatmul.mubr.msk.f32.gmra.mxu0 %vm159_vm1, %v117_v8  ;;  %6362 = vmatmul.mubr.msk.f32.gmra.mxu1 %vm159_vm1, %v117_v8  ;;  %v7396_v8 = vld [vmem:[#allocation5 + $0x38] sm:$0xff] }
  0x6d   :  { %507 = vmatprep.subr.mxu0 %v7363_v9  ;;  %578 = vmatprep.subr.mxu1 %v7365_v10  ;;  %10472 = vst [vmem:[#allocation33_spill] sm:$0xff] %v7396_v8 }
  0x6e   :  { %508 = vmatpush1.msra.mxu0 %v7369_v11  ;;  %579 = vmatpush1.msra.mxu1 %v7371_v12 }
  0x6f   :  { %509 = vmatprep.subr.mxu0 %v7375_v13  ;;  %580 = vmatprep.subr.mxu1 %v7377_v22 }
  0x70   :  { %299 = vmatprep.mubr.f32.mxu0 %v10167_v2  ;;  %412 = vmatprep.mubr.f32.mxu1 %v10167_v2  ;;  %v7412_v2 = vld [vmem:[#allocation5] sm:$0xff] }
  0x71   :  { %510 = vmatpush1.msra.mxu0 %v7383_v31  ;;  %581 = vmatpush1.msra.mxu1 %v7385_v40  ;;  %10477 = vst [vmem:[#allocation38_spill] sm:$0xff] %v7412_v2  ;;  %v7416_v40 = vld [vmem:[#allocation5 + $0x10] sm:$0xff] }
  0x72   :  { %6353 = vmatmul.mubr.msk.f32.gmra.mxu0 %vm159_vm1, %v118_v49  ;;  %6363 = vmatmul.mubr.msk.f32.gmra.mxu1 %vm159_vm1, %v118_v49  ;;  %10478 = vst [vmem:[#allocation39_spill] sm:$0xff] %v7416_v40  ;;  %v10479_v49 = vmov 0.0  }
  0x73   :  { %511 = vmatprep.subr.mxu0 %v7394_v58  ;;  %582 = vmatprep.subr.mxu1 %v7396_v8 }
  0x74   :  { %512 = vmatpush1.msra.mxu0 %v7400_v5  ;;  %583 = vmatpush1.msra.mxu1 %v7402_v4 }
  0x75   :  { %513 = vmatprep.subr.mxu0 %v7406_v7  ;;  %584 = vmatprep.subr.mxu1 %v7408_v6 }
  0x76   :  { %514 = vmatpush1.msra.mxu0 %v7412_v2  ;;  %547 = vmatprep.mubr.f32.mxu0 %v10479_v49 }
  0x77   :  { %585 = vmatpush1.msra.mxu1 %v7416_v40  ;;  %618 = vmatprep.mubr.f32.mxu1 %v10479_v49 }
  0x78   :  { %548 = vmatmul.mubr.f32.vlgmr.msra.gmra.mxu0 %v10479_v49  ;;  %619 = vmatmul.mubr.f32.vlgmr.msra.gmra.mxu1 %v10479_v49 }
  0x79   :  { %718 = vmatprep.subr.mxu0 %v7179_v14  ;;  %789 = vmatprep.subr.mxu1 %v7181_v15 }
  0x7a   :  { %719 = vmatpush1.msra.mxu0 %v7183_v16  ;;  %790 = vmatpush1.msra.mxu1 %v7185_v17 }
  0x7b   :  { %720 = vmatprep.subr.mxu0 %v7189_v18  ;;  %791 = vmatprep.subr.mxu1 %v7191_v19 }
  0x7c   :  { %721 = vmatpush1.msra.mxu0 %v7197_v20  ;;  %792 = vmatpush1.msra.mxu1 %v7199_v21 }
  0x7d   :  { %722 = vmatprep.subr.mxu0 %v7208_v23  ;;  %793 = vmatprep.subr.mxu1 %v7210_v24 }
  0x7e   :  { %723 = vmatpush1.msra.mxu0 %v7214_v25  ;;  %794 = vmatpush1.msra.mxu1 %v7216_v26 }
  0x7f   :  { %724 = vmatprep.subr.mxu0 %v7220_v27  ;;  %795 = vmatprep.subr.mxu1 %v7222_v28 }
  0x80   :  { %725 = vmatpush1.msra.mxu0 %v7228_v29  ;;  %796 = vmatpush1.msra.mxu1 %v7230_v30 }
  0x81   :  { %726 = vmatprep.subr.mxu0 %v7239_v32  ;;  %797 = vmatprep.subr.mxu1 %v7241_v33 }
  0x82   :  { %727 = vmatpush1.msra.mxu0 %v7245_v34  ;;  %798 = vmatpush1.msra.mxu1 %v7247_v35 }
  0x83   :  { %728 = vmatprep.subr.mxu0 %v7251_v36  ;;  %799 = vmatprep.subr.mxu1 %v7253_v37 }
  0x84   :  { %729 = vmatpush1.msra.mxu0 %v7259_v38  ;;  %800 = vmatpush1.msra.mxu1 %v7261_v39 }
  0x85   :  { %730 = vmatprep.subr.mxu0 %v7270_v41  ;;  %801 = vmatprep.subr.mxu1 %v7272_v42 }
  0x86   :  { %731 = vmatpush1.msra.mxu0 %v7276_v43  ;;  %802 = vmatpush1.msra.mxu1 %v7278_v44 }
  0x87   :  { %732 = vmatprep.subr.mxu0 %v7282_v45  ;;  %803 = vmatprep.subr.mxu1 %v7284_v46 }
  0x88   :  { %733 = vmatpush1.msra.mxu0 %v7290_v47  ;;  %804 = vmatpush1.msra.mxu1 %v7292_v48 }
  0x89   :  { %734 = vmatprep.subr.mxu0 %v7301_v50  ;;  %805 = vmatprep.subr.mxu1 %v7303_v51 }
  0x8a   :  { %735 = vmatpush1.msra.mxu0 %v7307_v52  ;;  %806 = vmatpush1.msra.mxu1 %v7309_v53 }
  0x8b   :  { %736 = vmatprep.subr.mxu0 %v7313_v54  ;;  %807 = vmatprep.subr.mxu1 %v7315_v55 }
  0x8c   :  { %737 = vmatpush1.msra.mxu0 %v7321_v56  ;;  %808 = vmatpush1.msra.mxu1 %v7323_v57 }
  0x8d   :  { %738 = vmatprep.subr.mxu0 %v7332_v59  ;;  %809 = vmatprep.subr.mxu1 %v7334_v60 }
  0x8e   :  { %739 = vmatpush1.msra.mxu0 %v7338_v61  ;;  %810 = vmatpush1.msra.mxu1 %v7340_v62 }
  0x8f   :  { %740 = vmatprep.subr.mxu0 %v7344_v63  ;;  %811 = vmatprep.subr.mxu1 %v7346_v0  ;;  %v10480_v63 = vld [vmem:[#allocation31_spill] sm:$0xff] }
  0x90   :  { %741 = vmatpush1.msra.mxu0 %v7352_v1  ;;  %812 = vmatpush1.msra.mxu1 %v7354_v3 }
  0x91   :  { %742 = vmatprep.subr.mxu0 %v7363_v9  ;;  %813 = vmatprep.subr.mxu1 %v7365_v10 }
  0x92   :  { %743 = vmatpush1.msra.mxu0 %v7369_v11  ;;  %814 = vmatpush1.msra.mxu1 %v7371_v12 }
  0x93   :  { %744 = vmatprep.subr.mxu0 %v7375_v13  ;;  %815 = vmatprep.subr.mxu1 %v7377_v22  ;;  %v10484_v22 = vld [vmem:[#allocation17_spill] sm:$0xff] }
  0x94   :  { %745 = vmatpush1.msra.mxu0 %v7383_v31  ;;  %816 = vmatpush1.msra.mxu1 %v10480_v63 }
  0x95   :  { %746 = vmatprep.subr.mxu0 %v7394_v58  ;;  %817 = vmatprep.subr.mxu1 %v7396_v8  ;;  %v10482_v58 = vld [vmem:[#allocation19_spill] sm:$0xff] }
  0x96   :  { %747 = vmatpush1.msra.mxu0 %v7400_v5  ;;  %818 = vmatpush1.msra.mxu1 %v7402_v4  ;;  %v10481_v4 = vld [vmem:[#allocation18_spill] sm:$0xff] }
  0x97   :  { %748 = vmatprep.subr.mxu0 %v7406_v7  ;;  %819 = vmatprep.subr.mxu1 %v7408_v6  ;;  %v120_v6 = vld [vmem:[%s10149_s3] sm:$0xf] }
  0x98   :  { %749 = vmatpush1.msra.mxu0 %v7412_v2  ;;  %782 = vmatprep.mubr.f32.mxu0 %v10479_v49  ;;  %v7511_v13 = vrot.slane %v120_v6, %v10484_v22 }
  0x99   :  { %820 = vmatpush1.msra.mxu1 %v7416_v40  ;;  %853 = vmatprep.mubr.f32.mxu1 %v10479_v49  ;;  %v125_v40 = vrot.slane %v120_v6, %v10481_v4  ;;  %v7507_v49 = vrot.slane %v120_v6, %v10482_v58 }
  0x9a   :  { %953 = vmatprep.subr.mxu0 %v7179_v14  ;;  %1024 = vmatprep.subr.mxu1 %v7181_v15  ;;  %v10483_v15 = vld [vmem:[#allocation16_spill] sm:$0xff] }
  0x9b   :  { %v129_v31 = vrot.slane %v120_v6, %v10483_v15 }
 0x108   :  { %v7494_v8 = vpop.f32.mrf.mxu0  ;;  %v7496_v5 = vpop.f32.mrf.mxu1 }
 0x10a   :  { %v7501_v7 = vpop.f32.mrf.mxu0  ;;  %v7503_v2 = vpop.f32.mrf.mxu1 }
 0x10e   :  { %v265_v14 = vpop.f32.mrf.mxu0  ;;  %v378_v63 = vpop.f32.mrf.mxu1 }
 0x10f   :  { %v7513_v12 = vadd.f32 %v265_v14, %v125_v40  ;;  %v7516_v11 = vadd.f32 %v378_v63, %v7507_v49 }
 0x110   :  { %v267_v10 = vpop.f32.mrf.mxu0  ;;  %v380_v9 = vpop.f32.mrf.mxu1 }
 0x111   :  { %10485 = vst [vmem:[#allocation40_spill] sm:$0xff] %v7513_v12  ;;  %10486 = vst [vmem:[#allocation41_spill] sm:$0xff] %v7516_v11  ;;  %v7518_v3 = vadd.f32 %v267_v10, %v129_v31  ;;  %v7521_v4 = vadd.f32 %v380_v9, %v7511_v13 }
 0x113   :  { %10487 = vst [vmem:[#allocation42_spill] sm:$0xff] %v7518_v3  ;;  %10488 = vst [vmem:[#allocation43_spill] sm:$0xff] %v7521_v4 }
 0x114   :  { %v271_v58 = vpop.f32.mrf.mxu0  ;;  %v384_v1 = vpop.f32.mrf.mxu1 }
 0x115   :  { %v7523_v0 = vadd.f32 %v271_v58, %v125_v40  ;;  %v7526_v15 = vadd.f32 %v384_v1, %v7507_v49 }
 0x116   :  { %v273_v6 = vpop.f32.mrf.mxu0  ;;  %v386_v14 = vpop.f32.mrf.mxu1 }
 0x117   :  { %10489 = vst [vmem:[#allocation44_spill] sm:$0xff] %v7523_v0  ;;  %10490 = vst [vmem:[#allocation45_spill] sm:$0xff] %v7526_v15  ;;  %v7528_v22 = vadd.f32 %v273_v6, %v129_v31  ;;  %v7531_v63 = vadd.f32 %v386_v14, %v7511_v13 }
 0x119   :  { %10491 = vst [vmem:[#allocation46_spill] sm:$0xff] %v7528_v22  ;;  %10492 = vst [vmem:[#allocation47_spill] sm:$0xff] %v7531_v63 }
 0x11a   :  { %v277_v11 = vpop.f32.mrf.mxu0  ;;  %v390_v10 = vpop.f32.mrf.mxu1 }
 0x11b   :  { %v7533_v3 = vadd.f32 %v277_v11, %v125_v40  ;;  %v7536_v9 = vadd.f32 %v390_v10, %v7507_v49 }
 0x11c   :  { %v279_v4 = vpop.f32.mrf.mxu0  ;;  %v392_v58 = vpop.f32.mrf.mxu1 }
 0x11d   :  { %10493 = vst [vmem:[#allocation48_spill] sm:$0xff] %v7533_v3  ;;  %10494 = vst [vmem:[#allocation49_spill] sm:$0xff] %v7536_v9  ;;  %v7538_v0 = vadd.f32 %v279_v4, %v129_v31  ;;  %v7541_v1 = vadd.f32 %v392_v58, %v7511_v13 }
 0x11f   :  { %10495 = vst [vmem:[#allocation50_spill] sm:$0xff] %v7538_v0  ;;  %10496 = vst [vmem:[#allocation51_spill] sm:$0xff] %v7541_v1 }
 0x120   :  { %v283_v15 = vpop.f32.mrf.mxu0  ;;  %v396_v6 = vpop.f32.mrf.mxu1 }
 0x121   :  { %v7543_v22 = vadd.f32 %v283_v15, %v125_v40  ;;  %v7546_v14 = vadd.f32 %v396_v6, %v7507_v49 }
 0x122   :  { %v285_v63 = vpop.f32.mrf.mxu0  ;;  %v398_v11 = vpop.f32.mrf.mxu1 }
 0x123   :  { %10497 = vst [vmem:[#allocation52_spill] sm:$0xff] %v7543_v22  ;;  %10498 = vst [vmem:[#allocation53_spill] sm:$0xff] %v7546_v14  ;;  %v7548_v3 = vadd.f32 %v285_v63, %v129_v31  ;;  %v7551_v10 = vadd.f32 %v398_v11, %v7511_v13 }
 0x125   :  { %10499 = vst [vmem:[#allocation54_spill] sm:$0xff] %v7548_v3  ;;  %10500 = vst [vmem:[#allocation55_spill] sm:$0xff] %v7551_v10 }
 0x126   :  { %v289_v9 = vpop.f32.mrf.mxu0  ;;  %v402_v4 = vpop.f32.mrf.mxu1 }
 0x127   :  { %v7553_v0 = vadd.f32 %v289_v9, %v125_v40  ;;  %v7556_v58 = vadd.f32 %v402_v4, %v7507_v49 }
 0x128   :  { %v291_v1 = vpop.f32.mrf.mxu0  ;;  %v404_v15 = vpop.f32.mrf.mxu1 }
 0x129   :  { %10501 = vst [vmem:[#allocation56_spill] sm:$0xff] %v7553_v0  ;;  %10502 = vst [vmem:[#allocation57_spill] sm:$0xff] %v7556_v58  ;;  %v7558_v22 = vadd.f32 %v291_v1, %v129_v31  ;;  %v7561_v6 = vadd.f32 %v404_v15, %v7511_v13 }
 0x12b   :  { %10503 = vst [vmem:[#allocation58_spill] sm:$0xff] %v7558_v22  ;;  %10504 = vst [vmem:[#allocation59_spill] sm:$0xff] %v7561_v6 }
 0x12c   :  { %v295_v14 = vpop.f32.mrf.mxu0  ;;  %v408_v63 = vpop.f32.mrf.mxu1 }
 0x12d   :  { %v7563_v3 = vadd.f32 %v295_v14, %v125_v40  ;;  %v7566_v11 = vadd.f32 %v408_v63, %v7507_v49 }
 0x12e   :  { %v297_v10 = vpop.f32.mrf.mxu0  ;;  %v410_v9 = vpop.f32.mrf.mxu1 }
 0x12f   :  { %10505 = vst [vmem:[#allocation60_spill] sm:$0xff] %v7563_v3  ;;  %10506 = vst [vmem:[#allocation61_spill] sm:$0xff] %v7566_v11  ;;  %v7568_v0 = vadd.f32 %v297_v10, %v129_v31  ;;  %v7571_v4 = vadd.f32 %v410_v9, %v7511_v13  ;;  %v260_v10 = vadd.f32 %v7494_v8, %v125_v40 }
 0x130   :  { %v262_v9 = vadd.f32 %v7501_v7, %v129_v31 }
 0x131   :  { %10507 = vst [vmem:[#allocation62_spill] sm:$0xff] %v7568_v0  ;;  %10508 = vst [vmem:[#allocation63_spill] sm:$0xff] %v7571_v4 }
 0x132   :  { %v301_v58 = vpop.f32.mrf.mxu0  ;;  %v414_v1 = vpop.f32.mrf.mxu1 }
 0x133   :  { %v7573_v22 = vadd.f32 %v301_v58, %v125_v40  ;;  %v7576_v15 = vadd.f32 %v414_v1, %v7507_v49 }
 0x134   :  { %v303_v6 = vpop.f32.mrf.mxu0  ;;  %v416_v14 = vpop.f32.mrf.mxu1 }
 0x135   :  { %10509 = vst [vmem:[#allocation64_spill] sm:$0xff] %v7573_v22  ;;  %10510 = vst [vmem:[#allocation65_spill] sm:$0xff] %v7576_v15  ;;  %v7578_v3 = vadd.f32 %v303_v6, %v129_v31  ;;  %v7581_v63 = vadd.f32 %v416_v14, %v7511_v13  ;;  %v375_v6 = vadd.f32 %v7503_v2, %v7511_v13 }
 0x136   :  { %v373_v14 = vadd.f32 %v7496_v5, %v7507_v49 }
 0x137   :  { %10511 = vst [vmem:[#allocation66_spill] sm:$0xff] %v7578_v3  ;;  %10512 = vst [vmem:[#allocation67_spill] sm:$0xff] %v7581_v63 }
 0x138   :  { %v549_v11 = vpop.f32.mrf.mxu0  ;;  %v620_v22 = vpop.f32.mrf.mxu1 }
 0x139   :  { %v625_v4 = vadd.f32 %v549_v11, %v260_v10  ;;  %v627_v63 = vadd.f32 %v620_v22, %v373_v14 }
 0x13a   :  { %v551_v0 = vpop.f32.mrf.mxu0  ;;  %v622_v15 = vpop.f32.mrf.mxu1 }
 0x13b   :  { %v6364_v12 = vmul.f32 -1.442695, %v625_v4  ;;  %v626_v58 = vadd.f32 %v551_v0, %v262_v9  ;;  %v628_v3 = vadd.f32 %v622_v15, %v375_v6 }
 0x13d   :  { %6498 = vpow2.f32 %v6364_v12  ;;  %v6365_v1 = vmul.f32 -1.442695, %v626_v58  ;;  %v6366_v40 = vmul.f32 -1.442695, %v628_v3 }
 0x13f   :  { %6500 = vpow2.f32 %v6365_v1 }
 0x140   :  { %6502 = vpow2.f32 %v6366_v40 }
 0x14a   :  { %v6499_v8 = vpop.eup %6498 }
 0x14b   :  { %v632_v7 = vadd.f32 1.0, %v6499_v8 }
 0x14c   :  { %v6501_v31 = vpop.eup %6500 }
 0x14d   :  { %6504 = vrcp.f32 %v632_v7  ;;  %v638_v0 = vadd.f32 1.0, %v6501_v31  ;;  %v6503_v12 = vpop.eup %6502  ;;  %v7674_v31 = vld [vmem:[#allocation5 + $0x1e8] sm:$0xff] }
 0x14e   :  { %6506 = vtanh.f32 %v627_v63  ;;  %v645_v9 = vadd.f32 1.0, %v6503_v12  ;;  %v7680_v12 = vld [vmem:[#allocation5 + $0x1e0] sm:$0xff] }
 0x14f   :  { %6508 = vrcp.f32 %v638_v0  ;;  %v7676_v0 = vld [vmem:[#allocation5 + $0x1f8] sm:$0xff] }
 0x150   :  { %6510 = vrcp.f32 %v645_v9  ;;  %v7692_v9 = vld [vmem:[#allocation5 + $0x1c0] sm:$0xff] }
 0x15a   :  { %v6505_v11 = vpop.eup %6504 }
 0x15b   :  { %v6507_v4 = vpop.eup %6506 }
 0x15c   :  { %v6509_v10 = vpop.eup %6508  ;;  %v649_v13 = vmul.f32 %v6507_v4, %v6505_v11  ;;  %v7682_v11 = vld [vmem:[#allocation5 + $0x1f0] sm:$0xff]  ;;  %v7686_v4 = vld [vmem:[#allocation5 + $0x1c8] sm:$0xff] }
 0x15d   :  { %v648_v2 = vmul.f32 0.0, %v6509_v10  ;;  %v6511_v5 = vpop.eup %6510  ;;  %v7688_v10 = vld [vmem:[#allocation5 + $0x1d8] sm:$0xff] }
 0x15f   :  { %v7589_v15 = vadd.f32 %v649_v13, %v648_v2  ;;  %v7694_v2 = vld [vmem:[#allocation5 + $0x1d0] sm:$0xff]  ;;  %v7698_v13 = vld [vmem:[#allocation5 + $0x1a8] sm:$0xff] }
 0x161   :  { %6512 = vtanh.f32 %v7589_v15 }
 0x16e   :  { %v6513_v3 = vpop.eup %6512 }
 0x16f   :  { %v7592_v22 = vmul.f32 %v6513_v3, %v6511_v5  ;;  %v7704_v5 = vld [vmem:[#allocation5 + $0x1a0] sm:$0xff]  ;;  %v7706_v3 = vld [vmem:[#allocation5 + $0x1b0] sm:$0xff] }
 0x171   :  { %10513 = vst [vmem:[#allocation68_spill] sm:$0xff] %v7592_v22  ;;  %783 = vmatmul.mubr.f32.vlgmr.msra.gmra.mxu0 %v7592_v22  ;;  %854 = vmatmul.mubr.f32.vlgmr.msra.gmra.mxu1 %v7592_v22  ;;  %v7852_v22 = vld [vmem:[#allocation5 + $0x18] sm:$0xff] }
 0x172   :  { %954 = vmatpush1.msra.mxu0 %v7183_v16  ;;  %1025 = vmatpush1.msra.mxu1 %v7185_v17  ;;  %v10514_v16 = vld [vmem:[#allocation20_spill] sm:$0xff]  ;;  %v10515_v17 = vld [vmem:[#allocation21_spill] sm:$0xff] }
 0x173   :  { %955 = vmatprep.subr.mxu0 %v7189_v18  ;;  %1026 = vmatprep.subr.mxu1 %v7191_v19  ;;  %v10516_v18 = vld [vmem:[#allocation22_spill] sm:$0xff]  ;;  %v10517_v19 = vld [vmem:[#allocation23_spill] sm:$0xff]  ;;  %10540 = vst [vmem:[#allocation21_spill] sm:$0xff] %v7674_v31 }
 0x174   :  { %956 = vmatpush1.msra.mxu0 %v7197_v20  ;;  %1027 = vmatpush1.msra.mxu1 %v7199_v21  ;;  %v10518_v20 = vld [vmem:[#allocation24_spill] sm:$0xff]  ;;  %v10519_v21 = vld [vmem:[#allocation25_spill] sm:$0xff]  ;;  %10541 = vst [vmem:[#allocation22_spill] sm:$0xff] %v7676_v0 }
 0x175   :  { %957 = vmatprep.subr.mxu0 %v7208_v23  ;;  %1028 = vmatprep.subr.mxu1 %v7210_v24  ;;  %v10520_v23 = vld [vmem:[#allocation26_spill] sm:$0xff]  ;;  %v10521_v24 = vld [vmem:[#allocation27_spill] sm:$0xff] }
 0x176   :  { %958 = vmatpush1.msra.mxu0 %v7214_v25  ;;  %1029 = vmatpush1.msra.mxu1 %v7216_v26  ;;  %v10522_v25 = vld [vmem:[#allocation28_spill] sm:$0xff]  ;;  %v10523_v26 = vld [vmem:[#allocation29_spill] sm:$0xff] }
 0x177   :  { %959 = vmatprep.subr.mxu0 %v7220_v27  ;;  %1030 = vmatprep.subr.mxu1 %v7222_v28  ;;  %v10524_v27 = vld [vmem:[#allocation30_spill] sm:$0xff]  ;;  %v10525_v28 = vld [vmem:[#allocation31_spill] sm:$0xff] }
 0x178   :  { %960 = vmatpush1.msra.mxu0 %v7228_v29  ;;  %1031 = vmatpush1.msra.mxu1 %v7230_v30  ;;  %v10526_v29 = vld [vmem:[#allocation32_spill] sm:$0xff]  ;;  %v10527_v30 = vld [vmem:[#allocation33_spill] sm:$0xff] }
 0x179   :  { %961 = vmatprep.subr.mxu0 %v7239_v32  ;;  %1032 = vmatprep.subr.mxu1 %v7241_v33  ;;  %v10528_v32 = vld [vmem:[#allocation34_spill] sm:$0xff]  ;;  %v10529_v33 = vld [vmem:[#allocation35_spill] sm:$0xff] }
 0x17a   :  { %962 = vmatpush1.msra.mxu0 %v7245_v34  ;;  %1033 = vmatpush1.msra.mxu1 %v7247_v35  ;;  %v10530_v34 = vld [vmem:[#allocation36_spill] sm:$0xff]  ;;  %v10531_v35 = vld [vmem:[#allocation37_spill] sm:$0xff] }
 0x17b   :  { %963 = vmatprep.subr.mxu0 %v7251_v36  ;;  %1034 = vmatprep.subr.mxu1 %v7253_v37  ;;  %v10532_v36 = vld [vmem:[#allocation38_spill] sm:$0xff]  ;;  %v10533_v37 = vmov 0.0   ;;  %10556 = vst [vmem:[#allocation37_spill] sm:$0xff] %v7852_v22 }
 0x17c   :  { %964 = vmatpush1.msra.mxu0 %v7259_v38  ;;  %1035 = vmatpush1.msra.mxu1 %v7261_v39  ;;  %v10534_v38 = vld [vmem:[#allocation39_spill] sm:$0xff] }
 0x17d   :  { %965 = vmatprep.subr.mxu0 %v7270_v41  ;;  %1036 = vmatprep.subr.mxu1 %v7272_v42  ;;  %v10535_v41 = vld [vmem:[#allocation40_spill] sm:$0xff] }
 0x17e   :  { %966 = vmatpush1.msra.mxu0 %v7276_v43  ;;  %1037 = vmatpush1.msra.mxu1 %v7278_v44 }
 0x17f   :  { %967 = vmatprep.subr.mxu0 %v7282_v45  ;;  %1038 = vmatprep.subr.mxu1 %v7284_v46  ;;  %v10536_v45 = vld [vmem:[#allocation42_spill] sm:$0xff] }
 0x180   :  { %968 = vmatpush1.msra.mxu0 %v7290_v47  ;;  %1039 = vmatpush1.msra.mxu1 %v7292_v48 }
 0x181   :  { %969 = vmatprep.subr.mxu0 %v7301_v50  ;;  %1040 = vmatprep.subr.mxu1 %v7303_v51  ;;  %v10537_v51 = vld [vmem:[#allocation43_spill] sm:$0xff] }
 0x182   :  { %970 = vmatpush1.msra.mxu0 %v7307_v52  ;;  %1041 = vmatpush1.msra.mxu1 %v7309_v53  ;;  %v10538_v53 = vld [vmem:[#allocation41_spill] sm:$0xff] }
 0x183   :  { %971 = vmatprep.subr.mxu0 %v7313_v54  ;;  %1042 = vmatprep.subr.mxu1 %v7315_v55 }
 0x184   :  { %972 = vmatpush1.msra.mxu0 %v7321_v56  ;;  %1043 = vmatpush1.msra.mxu1 %v7323_v57 }
 0x185   :  { %973 = vmatprep.subr.mxu0 %v7332_v59  ;;  %1044 = vmatprep.subr.mxu1 %v7334_v60 }
 0x186   :  { %974 = vmatpush1.msra.mxu0 %v7338_v61  ;;  %1045 = vmatpush1.msra.mxu1 %v7340_v62 }
 0x187   :  { %975 = vmatprep.subr.mxu0 %v10514_v16  ;;  %1046 = vmatprep.subr.mxu1 %v10515_v17  ;;  %v7710_v16 = vld [vmem:[#allocation5 + $0x188] sm:$0xff]  ;;  %v7712_v17 = vld [vmem:[#allocation5 + $0x198] sm:$0xff] }
 0x188   :  { %976 = vmatpush1.msra.mxu0 %v10516_v18  ;;  %1047 = vmatpush1.msra.mxu1 %v10517_v19  ;;  %v7716_v18 = vld [vmem:[#allocation5 + $0x180] sm:$0xff]  ;;  %v7718_v19 = vld [vmem:[#allocation5 + $0x190] sm:$0xff] }
 0x189   :  { %977 = vmatprep.subr.mxu0 %v10518_v20  ;;  %1048 = vmatprep.subr.mxu1 %v10519_v21  ;;  %v7722_v20 = vld [vmem:[#allocation5 + $0x168] sm:$0xff]  ;;  %v7724_v21 = vld [vmem:[#allocation5 + $0x178] sm:$0xff] }
 0x18a   :  { %978 = vmatpush1.msra.mxu0 %v10520_v23  ;;  %1049 = vmatpush1.msra.mxu1 %v10521_v24  ;;  %v7728_v23 = vld [vmem:[#allocation5 + $0x160] sm:$0xff]  ;;  %v7730_v24 = vld [vmem:[#allocation5 + $0x170] sm:$0xff] }
 0x18b   :  { %979 = vmatprep.subr.mxu0 %v10522_v25  ;;  %1050 = vmatprep.subr.mxu1 %v10523_v26  ;;  %v7734_v25 = vld [vmem:[#allocation5 + $0x148] sm:$0xff]  ;;  %v7736_v26 = vld [vmem:[#allocation5 + $0x158] sm:$0xff] }
 0x18c   :  { %980 = vmatpush1.msra.mxu0 %v10524_v27  ;;  %1051 = vmatpush1.msra.mxu1 %v10525_v28  ;;  %v7740_v27 = vld [vmem:[#allocation5 + $0x140] sm:$0xff]  ;;  %v7742_v28 = vld [vmem:[#allocation5 + $0x150] sm:$0xff] }
 0x18d   :  { %981 = vmatprep.subr.mxu0 %v10526_v29  ;;  %1052 = vmatprep.subr.mxu1 %v10527_v30  ;;  %v7746_v29 = vld [vmem:[#allocation5 + $0x128] sm:$0xff]  ;;  %v7748_v30 = vld [vmem:[#allocation5 + $0x138] sm:$0xff] }
 0x18e   :  { %982 = vmatpush1.msra.mxu0 %v10528_v32  ;;  %1053 = vmatpush1.msra.mxu1 %v10529_v33  ;;  %v7752_v32 = vld [vmem:[#allocation5 + $0x120] sm:$0xff]  ;;  %v7754_v33 = vld [vmem:[#allocation5 + $0x130] sm:$0xff] }
 0x18f   :  { %983 = vmatprep.subr.mxu0 %v10530_v34  ;;  %1054 = vmatprep.subr.mxu1 %v10531_v35  ;;  %v7758_v34 = vld [vmem:[#allocation5 + $0x108] sm:$0xff]  ;;  %v7760_v35 = vld [vmem:[#allocation5 + $0x118] sm:$0xff] }
 0x190   :  { %984 = vmatpush1.msra.mxu0 %v10532_v36  ;;  %1017 = vmatprep.mubr.f32.mxu0 %v10533_v37  ;;  %v7762_v36 = vld [vmem:[#allocation5 + $0x100] sm:$0xff] }
 0x191   :  { %1055 = vmatpush1.msra.mxu1 %v10534_v38  ;;  %1088 = vmatprep.mubr.f32.mxu1 %v10533_v37  ;;  %v7766_v38 = vld [vmem:[#allocation5 + $0x110] sm:$0xff] }
 0x192   :  { %1188 = vmatprep.subr.mxu0 %v7674_v31  ;;  %1259 = vmatprep.subr.mxu1 %v7676_v0 }
 0x231   :  { %v784_v39 = vpop.f32.mrf.mxu0  ;;  %v855_v47 = vpop.f32.mrf.mxu1 }
 0x232   :  { %v860_v42 = vadd.f32 %v784_v39, %v10535_v41  ;;  %v862_v54 = vadd.f32 %v855_v47, %v10538_v53  ;;  %v7768_v39 = vld [vmem:[#allocation5 + $0xe8] sm:$0xff]  ;;  %v7770_v41 = vld [vmem:[#allocation5 + $0xf8] sm:$0xff]  ;;  %v7786_v47 = vld [vmem:[#allocation5 + $0xd0] sm:$0xff] }
 0x233   :  { %v786_v43 = vpop.f32.mrf.mxu0  ;;  %v857_v50 = vpop.f32.mrf.mxu1  ;;  %v7802_v53 = vld [vmem:[#allocation5 + $0x88] sm:$0xff] }
 0x234   :  { %v6367_v44 = vmul.f32 -1.442695, %v860_v42  ;;  %v861_v46 = vadd.f32 %v786_v43, %v10536_v45  ;;  %v863_v52 = vadd.f32 %v857_v50, %v10537_v51  ;;  %v7774_v42 = vld [vmem:[#allocation5 + $0xe0] sm:$0xff]  ;;  %v7776_v43 = vld [vmem:[#allocation5 + $0xf0] sm:$0xff]  ;;  %v7782_v45 = vld [vmem:[#allocation5 + $0xd8] sm:$0xff] }
 0x235   :  { %v7792_v50 = vld [vmem:[#allocation5 + $0xb8] sm:$0xff]  ;;  %v7796_v51 = vld [vmem:[#allocation5 + $0xa0] sm:$0xff] }
 0x236   :  { %6514 = vpow2.f32 %v6367_v44  ;;  %v6368_v48 = vmul.f32 -1.442695, %v861_v46  ;;  %v6369_v55 = vmul.f32 -1.442695, %v863_v52  ;;  %v7778_v44 = vld [vmem:[#allocation5 + $0xc8] sm:$0xff]  ;;  %v7784_v46 = vld [vmem:[#allocation5 + $0xc0] sm:$0xff] }
 0x237   :  { %v7798_v52 = vld [vmem:[#allocation5 + $0xb0] sm:$0xff] }
 0x238   :  { %6516 = vpow2.f32 %v6368_v48  ;;  %v7790_v48 = vld [vmem:[#allocation5 + $0xa8] sm:$0xff] }
 0x239   :  { %6518 = vtanh.f32 %v862_v54  ;;  %v7804_v54 = vld [vmem:[#allocation5 + $0x98] sm:$0xff] }
 0x23a   :  { %6520 = vpow2.f32 %v6369_v55  ;;  %v7808_v55 = vld [vmem:[#allocation5 + $0x80] sm:$0xff] }
 0x243   :  { %v6515_v56 = vpop.eup %6514 }
 0x244   :  { %v867_v57 = vadd.f32 1.0, %v6515_v56  ;;  %v7810_v56 = vld [vmem:[#allocation5 + $0x90] sm:$0xff] }
 0x245   :  { %v6517_v59 = vpop.eup %6516  ;;  %10542 = vst [vmem:[#allocation23_spill] sm:$0xff] %v7810_v56 }
 0x246   :  { %6522 = vrcp.f32 %v867_v57  ;;  %v873_v60 = vadd.f32 1.0, %v6517_v59  ;;  %v6519_v61 = vpop.eup %6518  ;;  %v7814_v57 = vld [vmem:[#allocation5 + $0x68] sm:$0xff]  ;;  %v7816_v59 = vld [vmem:[#allocation5 + $0x78] sm:$0xff] }
 0x247   :  { %v6521_v62 = vpop.eup %6520  ;;  %10543 = vst [vmem:[#allocation24_spill] sm:$0xff] %v7814_v57  ;;  %10544 = vst [vmem:[#allocation25_spill] sm:$0xff] %v7816_v59 }
 0x248   :  { %6524 = vrcp.f32 %v873_v60  ;;  %v880_v1 = vadd.f32 1.0, %v6521_v62  ;;  %v7820_v60 = vld [vmem:[#allocation5 + $0x60] sm:$0xff]  ;;  %v7826_v62 = vld [vmem:[#allocation5 + $0x48] sm:$0xff] }
 0x249   :  { %10545 = vst [vmem:[#allocation26_spill] sm:$0xff] %v7820_v60  ;;  %10547 = vst [vmem:[#allocation28_spill] sm:$0xff] %v7826_v62 }
 0x24a   :  { %6526 = vrcp.f32 %v880_v1  ;;  %v7838_v1 = vld [vmem:[#allocation5 + $0x28] sm:$0xff] }
 0x24b   :  { %10551 = vst [vmem:[#allocation32_spill] sm:$0xff] %v7838_v1 }
 0x253   :  { %v6523_v49 = vpop.eup %6522 }
 0x254   :  { %v884_v63 = vmul.f32 %v6523_v49, %v6519_v61  ;;  %v7822_v61 = vld [vmem:[#allocation5 + $0x70] sm:$0xff]  ;;  %v7828_v49 = vld [vmem:[#allocation5 + $0x58] sm:$0xff] }
 0x255   :  { %v6525_v58 = vpop.eup %6524  ;;  %10546 = vst [vmem:[#allocation27_spill] sm:$0xff] %v7822_v61  ;;  %10548 = vst [vmem:[#allocation29_spill] sm:$0xff] %v7828_v49 }
 0x256   :  { %v883_v6 = vmul.f32 %v6525_v58, %v7589_v15  ;;  %v7700_v15 = vld [vmem:[#allocation5 + $0x1b8] sm:$0xff]  ;;  %v7834_v58 = vld [vmem:[#allocation5 + $0x50] sm:$0xff] }
 0x257   :  { %v6527_v40 = vpop.eup %6526  ;;  %10550 = vst [vmem:[#allocation31_spill] sm:$0xff] %v7834_v58 }
 0x258   :  { %v7665_v14 = vadd.f32 %v884_v63, %v883_v6  ;;  %v7832_v63 = vld [vmem:[#allocation5 + $0x40] sm:$0xff]  ;;  %v7840_v6 = vld [vmem:[#allocation5 + $0x38] sm:$0xff] }
 0x259   :  { %10549 = vst [vmem:[#allocation30_spill] sm:$0xff] %v7832_v63  ;;  %10552 = vst [vmem:[#allocation33_spill] sm:$0xff] %v7840_v6 }
 0x25a   :  { %6528 = vtanh.f32 %v7665_v14 }
 0x267   :  { %v6529_v8 = vpop.eup %6528 }
 0x268   :  { %v7668_v7 = vmul.f32 %v6529_v8, %v6527_v40  ;;  %v7844_v40 = vld [vmem:[#allocation5 + $0x20] sm:$0xff]  ;;  %v7846_v8 = vld [vmem:[#allocation5 + $0x30] sm:$0xff] }
 0x269   :  { %10553 = vst [vmem:[#allocation34_spill] sm:$0xff] %v7844_v40  ;;  %10554 = vst [vmem:[#allocation35_spill] sm:$0xff] %v7846_v8 }
 0x26a   :  { %10539 = vst [vmem:[#allocation20_spill] sm:$0xff] %v7668_v7  ;;  %1018 = vmatmul.mubr.f32.vlgmr.msra.gmra.mxu0 %v7668_v7  ;;  %1089 = vmatmul.mubr.f32.vlgmr.msra.gmra.mxu1 %v7668_v7  ;;  %v7850_v7 = vld [vmem:[#allocation5 + $0x8] sm:$0xff] }
 0x26b   :  { %1252 = vmatprep.mubr.f32.mxu0 %v10533_v37  ;;  %1323 = vmatprep.mubr.f32.mxu1 %v10533_v37  ;;  %10555 = vst [vmem:[#allocation36_spill] sm:$0xff] %v7850_v7  ;;  %v7856_v37 = vld [vmem:[#allocation5] sm:$0xff] }
 0x26c   :  { %1189 = vmatpush1.msra.mxu0 %v7680_v12  ;;  %1260 = vmatpush1.msra.mxu1 %v7682_v11  ;;  %10557 = vst [vmem:[#allocation38_spill] sm:$0xff] %v7856_v37 }
 0x26d   :  { %1190 = vmatprep.subr.mxu0 %v7686_v4  ;;  %1261 = vmatprep.subr.mxu1 %v7688_v10 }
 0x26e   :  { %1191 = vmatpush1.msra.mxu0 %v7692_v9  ;;  %1262 = vmatpush1.msra.mxu1 %v7694_v2 }
 0x26f   :  { %1192 = vmatprep.subr.mxu0 %v7698_v13  ;;  %1263 = vmatprep.subr.mxu1 %v7700_v15 }
 0x270   :  { %1193 = vmatpush1.msra.mxu0 %v7704_v5  ;;  %1264 = vmatpush1.msra.mxu1 %v7706_v3 }
 0x271   :  { %1194 = vmatprep.subr.mxu0 %v7710_v16  ;;  %1265 = vmatprep.subr.mxu1 %v7712_v17 }
 0x272   :  { %1195 = vmatpush1.msra.mxu0 %v7716_v18  ;;  %1266 = vmatpush1.msra.mxu1 %v7718_v19 }
 0x273   :  { %1196 = vmatprep.subr.mxu0 %v7722_v20  ;;  %1267 = vmatprep.subr.mxu1 %v7724_v21 }
 0x274   :  { %1197 = vmatpush1.msra.mxu0 %v7728_v23  ;;  %1268 = vmatpush1.msra.mxu1 %v7730_v24 }
 0x275   :  { %1198 = vmatprep.subr.mxu0 %v7734_v25  ;;  %1269 = vmatprep.subr.mxu1 %v7736_v26 }
 0x276   :  { %1199 = vmatpush1.msra.mxu0 %v7740_v27  ;;  %1270 = vmatpush1.msra.mxu1 %v7742_v28 }
 0x277   :  { %1200 = vmatprep.subr.mxu0 %v7746_v29  ;;  %1271 = vmatprep.subr.mxu1 %v7748_v30 }
 0x278   :  { %1201 = vmatpush1.msra.mxu0 %v7752_v32  ;;  %1272 = vmatpush1.msra.mxu1 %v7754_v33 }
 0x279   :  { %1202 = vmatprep.subr.mxu0 %v7758_v34  ;;  %1273 = vmatprep.subr.mxu1 %v7760_v35 }
 0x27a   :  { %1203 = vmatpush1.msra.mxu0 %v7762_v36  ;;  %1274 = vmatpush1.msra.mxu1 %v7766_v38 }
 0x27b   :  { %1204 = vmatprep.subr.mxu0 %v7768_v39  ;;  %1275 = vmatprep.subr.mxu1 %v7770_v41 }
 0x27c   :  { %1205 = vmatpush1.msra.mxu0 %v7774_v42  ;;  %1276 = vmatpush1.msra.mxu1 %v7776_v43 }
 0x27d   :  { %1206 = vmatprep.subr.mxu0 %v7778_v44  ;;  %1277 = vmatprep.subr.mxu1 %v7782_v45 }
 0x27e   :  { %1207 = vmatpush1.msra.mxu0 %v7784_v46  ;;  %1278 = vmatpush1.msra.mxu1 %v7786_v47 }
 0x27f   :  { %1208 = vmatprep.subr.mxu0 %v7790_v48  ;;  %1279 = vmatprep.subr.mxu1 %v7792_v50 }
 0x280   :  { %1209 = vmatpush1.msra.mxu0 %v7796_v51  ;;  %1280 = vmatpush1.msra.mxu1 %v7798_v52 }
 0x281   :  { %1210 = vmatprep.subr.mxu0 %v7802_v53  ;;  %1281 = vmatprep.subr.mxu1 %v7804_v54 }
 0x282   :  { %1211 = vmatpush1.msra.mxu0 %v7808_v55  ;;  %1282 = vmatpush1.msra.mxu1 %v7810_v56 }
 0x283   :  { %1212 = vmatprep.subr.mxu0 %v7814_v57  ;;  %1283 = vmatprep.subr.mxu1 %v7816_v59  ;;  %v10562_v59 = vld [vmem:[#allocation45_spill] sm:$0xff] }
 0x284   :  { %1213 = vmatpush1.msra.mxu0 %v7820_v60  ;;  %1284 = vmatpush1.msra.mxu1 %v7822_v61  ;;  %v10561_v60 = vld [vmem:[#allocation47_spill] sm:$0xff] }
 0x285   :  { %1214 = vmatprep.subr.mxu0 %v7826_v62  ;;  %1285 = vmatprep.subr.mxu1 %v7828_v49  ;;  %v7858_v62 = vld [vmem:[#allocation5 + $0x10] sm:$0xff] }
 0x286   :  { %1215 = vmatpush1.msra.mxu0 %v7832_v63  ;;  %1286 = vmatpush1.msra.mxu1 %v7834_v58  ;;  %10558 = vst [vmem:[#allocation39_spill] sm:$0xff] %v7858_v62 }
 0x287   :  { %1216 = vmatprep.subr.mxu0 %v7838_v1  ;;  %1287 = vmatprep.subr.mxu1 %v7840_v6  ;;  %v10559_v1 = vld [vmem:[#allocation44_spill] sm:$0xff] }
 0x288   :  { %1217 = vmatpush1.msra.mxu0 %v7844_v40  ;;  %1288 = vmatpush1.msra.mxu1 %v7846_v8  ;;  %v10560_v40 = vld [vmem:[#allocation46_spill] sm:$0xff] }
 0x289   :  { %1218 = vmatprep.subr.mxu0 %v7850_v7  ;;  %1289 = vmatprep.subr.mxu1 %v7852_v22 }
 0x28a   :  { %1219 = vmatpush1.msra.mxu0 %v7856_v37  ;;  %1290 = vmatpush1.msra.mxu1 %v7858_v62 }
 0x28b   :  { %1423 = vmatprep.subr.mxu0 %v7674_v31  ;;  %1494 = vmatprep.subr.mxu1 %v7676_v0 }
 0x32a   :  { %v1019_v6 = vpop.f32.mrf.mxu0  ;;  %v1090_v8 = vpop.f32.mrf.mxu1 }
 0x32b   :  { %v1095_v58 = vadd.f32 %v1019_v6, %v10559_v1  ;;  %v1097_v62 = vadd.f32 %v1090_v8, %v10562_v59  ;;  %v10570_v8 = vld [vmem:[#allocation29_spill] sm:$0xff] }
 0x32c   :  { %v1021_v63 = vpop.f32.mrf.mxu0  ;;  %v1092_v22 = vpop.f32.mrf.mxu1 }
 0x32d   :  { %v6370_v49 = vmul.f32 -1.442695, %v1095_v58  ;;  %v1096_v61 = vadd.f32 %v1021_v63, %v10560_v40  ;;  %v1098_v37 = vadd.f32 %v1092_v22, %v10561_v60  ;;  %v10568_v60 = vld [vmem:[#allocation27_spill] sm:$0xff] }
 0x32f   :  { %6530 = vpow2.f32 %v6370_v49  ;;  %v6371_v7 = vmul.f32 -1.442695, %v1096_v61  ;;  %v6372_v57 = vmul.f32 -1.442695, %v1098_v37 }
 0x331   :  { %6532 = vpow2.f32 %v6371_v7 }
 0x332   :  { %6534 = vtanh.f32 %v1097_v62  ;;  %v10569_v62 = vld [vmem:[#allocation28_spill] sm:$0xff] }
 0x333   :  { %6536 = vpow2.f32 %v6372_v57  ;;  %v10567_v57 = vld [vmem:[#allocation26_spill] sm:$0xff] }
 0x33c   :  { %v6531_v31 = vpop.eup %6530 }
 0x33d   :  { %v1102_v56 = vadd.f32 1.0, %v6531_v31 }
 0x33e   :  { %v6533_v0 = vpop.eup %6532 }
 0x33f   :  { %6538 = vrcp.f32 %v1102_v56  ;;  %v1108_v1 = vadd.f32 1.0, %v6533_v0  ;;  %v6535_v58 = vpop.eup %6534  ;;  %v10565_v0 = vld [vmem:[#allocation24_spill] sm:$0xff]  ;;  %v10566_v56 = vld [vmem:[#allocation25_spill] sm:$0xff] }
 0x340   :  { %v6537_v63 = vpop.eup %6536 }
 0x341   :  { %6540 = vrcp.f32 %v1108_v1  ;;  %v1115_v7 = vadd.f32 1.0, %v6537_v63  ;;  %v10571_v1 = vld [vmem:[#allocation30_spill] sm:$0xff]  ;;  %v10573_v63 = vld [vmem:[#allocation32_spill] sm:$0xff] }
 0x343   :  { %6542 = vrcp.f32 %v1115_v7  ;;  %v10577_v7 = vld [vmem:[#allocation36_spill] sm:$0xff] }
 0x34c   :  { %v6539_v49 = vpop.eup %6538 }
 0x34d   :  { %v1119_v6 = vmul.f32 %v6539_v49, %v6535_v58  ;;  %v10572_v58 = vld [vmem:[#allocation31_spill] sm:$0xff]  ;;  %v10574_v49 = vld [vmem:[#allocation33_spill] sm:$0xff] }
 0x34e   :  { %v6541_v61 = vpop.eup %6540 }
 0x34f   :  { %v1118_v40 = vmul.f32 %v6541_v61, %v7665_v14  ;;  %v10564_v14 = vld [vmem:[#allocation23_spill] sm:$0xff] }
 0x350   :  { %v6543_v37 = vpop.eup %6542  ;;  %v10576_v61 = vld [vmem:[#allocation35_spill] sm:$0xff] }
 0x351   :  { %v7873_v22 = vadd.f32 %v1119_v6, %v1118_v40  ;;  %v10575_v6 = vld [vmem:[#allocation34_spill] sm:$0xff]  ;;  %v10578_v40 = vld [vmem:[#allocation37_spill] sm:$0xff] }
 0x353   :  { %6544 = vtanh.f32 %v7873_v22 }
 0x360   :  { %v6545_v31 = vpop.eup %6544 }
 0x361   :  { %v7876_v59 = vmul.f32 %v6545_v31, %v6543_v37  ;;  %v10579_v37 = vld [vmem:[#allocation38_spill] sm:$0xff]  ;;  %v10580_v31 = vmov 0.0  }
 0x363   :  { %10563 = vst [vmem:[#allocation40_spill] sm:$0xff] %v7876_v59  ;;  %1253 = vmatmul.mubr.f32.vlgmr.msra.gmra.mxu0 %v7876_v59  ;;  %1324 = vmatmul.mubr.f32.vlgmr.msra.gmra.mxu1 %v7876_v59  ;;  %v10581_v59 = vld [vmem:[#allocation39_spill] sm:$0xff] }
 0x364   :  { %1424 = vmatpush1.msra.mxu0 %v7680_v12  ;;  %1495 = vmatpush1.msra.mxu1 %v7682_v11 }
 0x365   :  { %1425 = vmatprep.subr.mxu0 %v7686_v4  ;;  %1496 = vmatprep.subr.mxu1 %v7688_v10 }
 0x366   :  { %1426 = vmatpush1.msra.mxu0 %v7692_v9  ;;  %1497 = vmatpush1.msra.mxu1 %v7694_v2 }
 0x367   :  { %1427 = vmatprep.subr.mxu0 %v7698_v13  ;;  %1498 = vmatprep.subr.mxu1 %v7700_v15 }
 0x368   :  { %1428 = vmatpush1.msra.mxu0 %v7704_v5  ;;  %1499 = vmatpush1.msra.mxu1 %v7706_v3 }
 0x369   :  { %1429 = vmatprep.subr.mxu0 %v7710_v16  ;;  %1500 = vmatprep.subr.mxu1 %v7712_v17 }
 0x36a   :  { %1430 = vmatpush1.msra.mxu0 %v7716_v18  ;;  %1501 = vmatpush1.msra.mxu1 %v7718_v19 }
 0x36b   :  { %1431 = vmatprep.subr.mxu0 %v7722_v20  ;;  %1502 = vmatprep.subr.mxu1 %v7724_v21 }
 0x36c   :  { %1432 = vmatpush1.msra.mxu0 %v7728_v23  ;;  %1503 = vmatpush1.msra.mxu1 %v7730_v24 }
 0x36d   :  { %1433 = vmatprep.subr.mxu0 %v7734_v25  ;;  %1504 = vmatprep.subr.mxu1 %v7736_v26 }
 0x36e   :  { %1434 = vmatpush1.msra.mxu0 %v7740_v27  ;;  %1505 = vmatpush1.msra.mxu1 %v7742_v28 }
 0x36f   :  { %1435 = vmatprep.subr.mxu0 %v7746_v29  ;;  %1506 = vmatprep.subr.mxu1 %v7748_v30 }
 0x370   :  { %1436 = vmatpush1.msra.mxu0 %v7752_v32  ;;  %1507 = vmatpush1.msra.mxu1 %v7754_v33 }
 0x371   :  { %1437 = vmatprep.subr.mxu0 %v7758_v34  ;;  %1508 = vmatprep.subr.mxu1 %v7760_v35 }
 0x372   :  { %1438 = vmatpush1.msra.mxu0 %v7762_v36  ;;  %1509 = vmatpush1.msra.mxu1 %v7766_v38 }
 0x373   :  { %1439 = vmatprep.subr.mxu0 %v7768_v39  ;;  %1510 = vmatprep.subr.mxu1 %v7770_v41 }
 0x374   :  { %1440 = vmatpush1.msra.mxu0 %v7774_v42  ;;  %1511 = vmatpush1.msra.mxu1 %v7776_v43 }
 0x375   :  { %1441 = vmatprep.subr.mxu0 %v7778_v44  ;;  %1512 = vmatprep.subr.mxu1 %v7782_v45 }
 0x376   :  { %1442 = vmatpush1.msra.mxu0 %v7784_v46  ;;  %1513 = vmatpush1.msra.mxu1 %v7786_v47 }
 0x377   :  { %1443 = vmatprep.subr.mxu0 %v7790_v48  ;;  %1514 = vmatprep.subr.mxu1 %v7792_v50 }
 0x378   :  { %1444 = vmatpush1.msra.mxu0 %v7796_v51  ;;  %1515 = vmatpush1.msra.mxu1 %v7798_v52 }
 0x379   :  { %1445 = vmatprep.subr.mxu0 %v7802_v53  ;;  %1516 = vmatprep.subr.mxu1 %v7804_v54 }
 0x37a   :  { %1446 = vmatpush1.msra.mxu0 %v7808_v55  ;;  %1517 = vmatpush1.msra.mxu1 %v10564_v14 }
 0x37b   :  { %1447 = vmatprep.subr.mxu0 %v10565_v0  ;;  %1518 = vmatprep.subr.mxu1 %v10566_v56  ;;  %v10587_v56 = vld [vmem:[#allocation49_spill] sm:$0xff] }
 0x37c   :  { %1448 = vmatpush1.msra.mxu0 %v10567_v57  ;;  %1519 = vmatpush1.msra.mxu1 %v10568_v60  ;;  %v10586_v57 = vld [vmem:[#allocation51_spill] sm:$0xff] }
 0x37d   :  { %1449 = vmatprep.subr.mxu0 %v10569_v62  ;;  %1520 = vmatprep.subr.mxu1 %v10570_v8 }
 0x37e   :  { %1450 = vmatpush1.msra.mxu0 %v10571_v1  ;;  %1521 = vmatpush1.msra.mxu1 %v10572_v58  ;;  %v10582_v58 = vld [vmem:[#allocation21_spill] sm:$0xff] }
 0x37f   :  { %1451 = vmatprep.subr.mxu0 %v10573_v63  ;;  %1522 = vmatprep.subr.mxu1 %v10574_v49  ;;  %v10583_v63 = vld [vmem:[#allocation22_spill] sm:$0xff] }
 0x380   :  { %1452 = vmatpush1.msra.mxu0 %v10575_v6  ;;  %1523 = vmatpush1.msra.mxu1 %v10576_v61  ;;  %v10584_v6 = vld [vmem:[#allocation48_spill] sm:$0xff] }
 0x381   :  { %1453 = vmatprep.subr.mxu0 %v10577_v7  ;;  %1524 = vmatprep.subr.mxu1 %v10578_v40  ;;  %v10585_v7 = vld [vmem:[#allocation50_spill] sm:$0xff] }
 0x382   :  { %1454 = vmatpush1.msra.mxu0 %v10579_v37  ;;  %1487 = vmatprep.mubr.f32.mxu0 %v10580_v31 }
 0x383   :  { %1525 = vmatpush1.msra.mxu1 %v10581_v59  ;;  %1558 = vmatprep.mubr.f32.mxu1 %v10580_v31 }
 0x384   :  { %1658 = vmatprep.subr.mxu0 %v10582_v58  ;;  %1729 = vmatprep.subr.mxu1 %v10583_v63 }
 0x423   :  { %v1254_v49 = vpop.f32.mrf.mxu0  ;;  %v1325_v40 = vpop.f32.mrf.mxu1 }
 0x424   :  { %v1330_v1 = vadd.f32 %v1254_v49, %v10584_v6  ;;  %v1332_v31 = vadd.f32 %v1325_v40, %v10587_v56  ;;  %v10594_v40 = vld [vmem:[#allocation28_spill] sm:$0xff] }
 0x425   :  { %v1256_v61 = vpop.f32.mrf.mxu0  ;;  %v1327_v60 = vpop.f32.mrf.mxu1 }
 0x426   :  { %v6373_v8 = vmul.f32 -1.442695, %v1330_v1  ;;  %v1331_v62 = vadd.f32 %v1256_v61, %v10585_v7  ;;  %v1333_v59 = vadd.f32 %v1327_v60, %v10586_v57 }
 0x428   :  { %6546 = vpow2.f32 %v6373_v8  ;;  %v6374_v37 = vmul.f32 -1.442695, %v1331_v62  ;;  %v6375_v0 = vmul.f32 -1.442695, %v1333_v59 }
 0x42a   :  { %6548 = vpow2.f32 %v6374_v37 }
 0x42b   :  { %6550 = vtanh.f32 %v1332_v31  ;;  %v10595_v31 = vld [vmem:[#allocation29_spill] sm:$0xff] }
 0x42c   :  { %6552 = vpow2.f32 %v6375_v0  ;;  %v10591_v0 = vld [vmem:[#allocation25_spill] sm:$0xff] }
 0x435   :  { %v6547_v58 = vpop.eup %6546 }
 0x436   :  { %v1337_v14 = vadd.f32 1.0, %v6547_v58  ;;  %v10592_v58 = vld [vmem:[#allocation26_spill] sm:$0xff] }
 0x437   :  { %v6549_v63 = vpop.eup %6548 }
 0x438   :  { %6554 = vrcp.f32 %v1337_v14  ;;  %v1343_v49 = vadd.f32 1.0, %v6549_v63  ;;  %v6551_v1 = vpop.eup %6550  ;;  %v10590_v14 = vld [vmem:[#allocation24_spill] sm:$0xff]  ;;  %v10593_v63 = vld [vmem:[#allocation27_spill] sm:$0xff] }
 0x439   :  { %v6553_v6 = vpop.eup %6552 }
 0x43a   :  { %6556 = vrcp.f32 %v1343_v49  ;;  %v1350_v7 = vadd.f32 1.0, %v6553_v6  ;;  %v10596_v49 = vld [vmem:[#allocation30_spill] sm:$0xff]  ;;  %v10598_v6 = vld [vmem:[#allocation32_spill] sm:$0xff] }
 0x43c   :  { %6558 = vrcp.f32 %v1350_v7  ;;  %v10602_v7 = vld [vmem:[#allocation36_spill] sm:$0xff] }
 0x445   :  { %v6555_v8 = vpop.eup %6554 }
 0x446   :  { %v1354_v61 = vmul.f32 %v6555_v8, %v6551_v1  ;;  %v10597_v1 = vld [vmem:[#allocation31_spill] sm:$0xff]  ;;  %v10599_v8 = vld [vmem:[#allocation33_spill] sm:$0xff] }
 0x447   :  { %v6557_v62 = vpop.eup %6556 }
 0x448   :  { %v1353_v37 = vmul.f32 %v6557_v62, %v7873_v22  ;;  %v10589_v22 = vld [vmem:[#allocation23_spill] sm:$0xff] }
 0x449   :  { %v6559_v59 = vpop.eup %6558  ;;  %v10601_v62 = vld [vmem:[#allocation35_spill] sm:$0xff] }
 0x44a   :  { %v7951_v57 = vadd.f32 %v1354_v61, %v1353_v37  ;;  %v10600_v61 = vld [vmem:[#allocation34_spill] sm:$0xff]  ;;  %v10603_v37 = vld [vmem:[#allocation37_spill] sm:$0xff] }
 0x44c   :  { %6560 = vtanh.f32 %v7951_v57 }
 0x459   :  { %v6561_v56 = vpop.eup %6560 }
 0x45a   :  { %v7954_v60 = vmul.f32 %v6561_v56, %v6559_v59  ;;  %v10604_v59 = vld [vmem:[#allocation38_spill] sm:$0xff]  ;;  %v10605_v56 = vmov 0.0  }
 0x45c   :  { %10588 = vst [vmem:[#allocation42_spill] sm:$0xff] %v7954_v60  ;;  %1488 = vmatmul.mubr.f32.vlgmr.msra.gmra.mxu0 %v7954_v60  ;;  %1559 = vmatmul.mubr.f32.vlgmr.msra.gmra.mxu1 %v7954_v60  ;;  %v10606_v60 = vld [vmem:[#allocation39_spill] sm:$0xff] }
 0x45d   :  { %1659 = vmatpush1.msra.mxu0 %v7680_v12  ;;  %1730 = vmatpush1.msra.mxu1 %v7682_v11 }
 0x45e   :  { %1660 = vmatprep.subr.mxu0 %v7686_v4  ;;  %1731 = vmatprep.subr.mxu1 %v7688_v10 }
 0x45f   :  { %1661 = vmatpush1.msra.mxu0 %v7692_v9  ;;  %1732 = vmatpush1.msra.mxu1 %v7694_v2 }
 0x460   :  { %1662 = vmatprep.subr.mxu0 %v7698_v13  ;;  %1733 = vmatprep.subr.mxu1 %v7700_v15 }
 0x461   :  { %1663 = vmatpush1.msra.mxu0 %v7704_v5  ;;  %1734 = vmatpush1.msra.mxu1 %v7706_v3 }
 0x462   :  { %1664 = vmatprep.subr.mxu0 %v7710_v16  ;;  %1735 = vmatprep.subr.mxu1 %v7712_v17 }
 0x463   :  { %1665 = vmatpush1.msra.mxu0 %v7716_v18  ;;  %1736 = vmatpush1.msra.mxu1 %v7718_v19 }
 0x464   :  { %1666 = vmatprep.subr.mxu0 %v7722_v20  ;;  %1737 = vmatprep.subr.mxu1 %v7724_v21 }
 0x465   :  { %1667 = vmatpush1.msra.mxu0 %v7728_v23  ;;  %1738 = vmatpush1.msra.mxu1 %v7730_v24 }
 0x466   :  { %1668 = vmatprep.subr.mxu0 %v7734_v25  ;;  %1739 = vmatprep.subr.mxu1 %v7736_v26 }
 0x467   :  { %1669 = vmatpush1.msra.mxu0 %v7740_v27  ;;  %1740 = vmatpush1.msra.mxu1 %v7742_v28 }
 0x468   :  { %1670 = vmatprep.subr.mxu0 %v7746_v29  ;;  %1741 = vmatprep.subr.mxu1 %v7748_v30 }
 0x469   :  { %1671 = vmatpush1.msra.mxu0 %v7752_v32  ;;  %1742 = vmatpush1.msra.mxu1 %v7754_v33 }
 0x46a   :  { %1672 = vmatprep.subr.mxu0 %v7758_v34  ;;  %1743 = vmatprep.subr.mxu1 %v7760_v35 }
 0x46b   :  { %1673 = vmatpush1.msra.mxu0 %v7762_v36  ;;  %1744 = vmatpush1.msra.mxu1 %v7766_v38 }
 0x46c   :  { %1674 = vmatprep.subr.mxu0 %v7768_v39  ;;  %1745 = vmatprep.subr.mxu1 %v7770_v41 }
 0x46d   :  { %1675 = vmatpush1.msra.mxu0 %v7774_v42  ;;  %1746 = vmatpush1.msra.mxu1 %v7776_v43 }
 0x46e   :  { %1676 = vmatprep.subr.mxu0 %v7778_v44  ;;  %1747 = vmatprep.subr.mxu1 %v7782_v45 }
 0x46f   :  { %1677 = vmatpush1.msra.mxu0 %v7784_v46  ;;  %1748 = vmatpush1.msra.mxu1 %v7786_v47 }
 0x470   :  { %1678 = vmatprep.subr.mxu0 %v7790_v48  ;;  %1749 = vmatprep.subr.mxu1 %v7792_v50 }
 0x471   :  { %1679 = vmatpush1.msra.mxu0 %v7796_v51  ;;  %1750 = vmatpush1.msra.mxu1 %v7798_v52 }
 0x472   :  { %1680 = vmatprep.subr.mxu0 %v7802_v53  ;;  %1751 = vmatprep.subr.mxu1 %v7804_v54 }
 0x473   :  { %1681 = vmatpush1.msra.mxu0 %v7808_v55  ;;  %1752 = vmatpush1.msra.mxu1 %v10589_v22 }
 0x474   :  { %1682 = vmatprep.subr.mxu0 %v10590_v14  ;;  %1753 = vmatprep.subr.mxu1 %v10591_v0  ;;  %v10612_v0 = vld [vmem:[#allocation53_spill] sm:$0xff] }
 0x475   :  { %1683 = vmatpush1.msra.mxu0 %v10592_v58  ;;  %1754 = vmatpush1.msra.mxu1 %v10593_v63  ;;  %v10611_v58 = vld [vmem:[#allocation55_spill] sm:$0xff] }
 0x476   :  { %1684 = vmatprep.subr.mxu0 %v10594_v40  ;;  %1755 = vmatprep.subr.mxu1 %v10595_v31 }
 0x477   :  { %1685 = vmatpush1.msra.mxu0 %v10596_v49  ;;  %1756 = vmatpush1.msra.mxu1 %v10597_v1  ;;  %v10607_v1 = vld [vmem:[#allocation21_spill] sm:$0xff] }
 0x478   :  { %1686 = vmatprep.subr.mxu0 %v10598_v6  ;;  %1757 = vmatprep.subr.mxu1 %v10599_v8  ;;  %v10608_v6 = vld [vmem:[#allocation22_spill] sm:$0xff] }
 0x479   :  { %1687 = vmatpush1.msra.mxu0 %v10600_v61  ;;  %1758 = vmatpush1.msra.mxu1 %v10601_v62  ;;  %v10609_v61 = vld [vmem:[#allocation52_spill] sm:$0xff] }
 0x47a   :  { %1688 = vmatprep.subr.mxu0 %v10602_v7  ;;  %1759 = vmatprep.subr.mxu1 %v10603_v37  ;;  %v10610_v7 = vld [vmem:[#allocation54_spill] sm:$0xff] }
 0x47b   :  { %1689 = vmatpush1.msra.mxu0 %v10604_v59  ;;  %1722 = vmatprep.mubr.f32.mxu0 %v10605_v56 }
 0x47c   :  { %1760 = vmatpush1.msra.mxu1 %v10606_v60  ;;  %1793 = vmatprep.mubr.f32.mxu1 %v10605_v56 }
 0x47d   :  { %1893 = vmatprep.subr.mxu0 %v10607_v1  ;;  %1964 = vmatprep.subr.mxu1 %v10608_v6 }
 0x51c   :  { %v1489_v8 = vpop.f32.mrf.mxu0  ;;  %v1560_v37 = vpop.f32.mrf.mxu1 }
 0x51d   :  { %v1565_v49 = vadd.f32 %v1489_v8, %v10609_v61  ;;  %v1567_v56 = vadd.f32 %v1560_v37, %v10612_v0  ;;  %v2125_v37 = vld [vmem:[#allocation5 + $0x1e8] sm:$0xff] }
 0x51e   :  { %v1491_v62 = vpop.f32.mrf.mxu0  ;;  %v1562_v63 = vpop.f32.mrf.mxu1 }
 0x51f   :  { %v6376_v31 = vmul.f32 -1.442695, %v1565_v49  ;;  %v1566_v40 = vadd.f32 %v1491_v62, %v10610_v7  ;;  %v1568_v60 = vadd.f32 %v1562_v63, %v10611_v58 }
 0x521   :  { %6562 = vpow2.f32 %v6376_v31  ;;  %v6377_v59 = vmul.f32 -1.442695, %v1566_v40  ;;  %v6378_v14 = vmul.f32 -1.442695, %v1568_v60 }
 0x523   :  { %6564 = vpow2.f32 %v6377_v59 }
 0x524   :  { %6566 = vtanh.f32 %v1567_v56  ;;  %v2127_v56 = vld [vmem:[#allocation5 + $0x1f8] sm:$0xff] }
 0x525   :  { %6568 = vpow2.f32 %v6378_v14 }
 0x52e   :  { %v6563_v1 = vpop.eup %6562 }
 0x52f   :  { %v1572_v22 = vadd.f32 1.0, %v6563_v1  ;;  %v2124_v1 = vld [vmem:[#allocation5 + $0x1e0] sm:$0xff] }
 0x530   :  { %v6565_v6 = vpop.eup %6564 }
 0x531   :  { %6570 = vrcp.f32 %v1572_v22  ;;  %v1578_v8 = vadd.f32 1.0, %v6565_v6  ;;  %v6567_v49 = vpop.eup %6566  ;;  %v2126_v6 = vld [vmem:[#allocation5 + $0x1f0] sm:$0xff] }
 0x532   :  { %v6569_v61 = vpop.eup %6568 }
 0x533   :  { %6572 = vrcp.f32 %v1578_v8  ;;  %v1585_v7 = vadd.f32 1.0, %v6569_v61  ;;  %v2121_v8 = vld [vmem:[#allocation5 + $0x1c8] sm:$0xff]  ;;  %v2120_v61 = vld [vmem:[#allocation5 + $0x1c0] sm:$0xff] }
 0x535   :  { %6574 = vrcp.f32 %v1585_v7  ;;  %v2116_v7 = vld [vmem:[#allocation5 + $0x1a0] sm:$0xff] }
 0x53e   :  { %v6571_v31 = vpop.eup %6570 }
 0x53f   :  { %v1589_v62 = vmul.f32 %v6571_v31, %v6567_v49  ;;  %v2123_v49 = vld [vmem:[#allocation5 + $0x1d8] sm:$0xff]  ;;  %v2122_v31 = vld [vmem:[#allocation5 + $0x1d0] sm:$0xff] }
 0x540   :  { %v6573_v40 = vpop.eup %6572 }
 0x541   :  { %v1588_v59 = vmul.f32 %v6573_v40, %v7951_v57  ;;  %v2119_v40 = vld [vmem:[#allocation5 + $0x1b8] sm:$0xff] }
 0x542   :  { %v6575_v60 = vpop.eup %6574 }
 0x543   :  { %v8029_v58 = vadd.f32 %v1589_v62, %v1588_v59  ;;  %v2117_v62 = vld [vmem:[#allocation5 + $0x1a8] sm:$0xff]  ;;  %v2118_v59 = vld [vmem:[#allocation5 + $0x1b0] sm:$0xff] }
 0x545   :  { %6576 = vtanh.f32 %v8029_v58 }
 0x552   :  { %v6577_v0 = vpop.eup %6576 }
 0x553   :  { %v8032_v63 = vmul.f32 %v6577_v0, %v6575_v60  ;;  %v2115_v60 = vld [vmem:[#allocation5 + $0x198] sm:$0xff]  ;;  %v2112_v0 = vld [vmem:[#allocation5 + $0x180] sm:$0xff] }
 0x555   :  { %1723 = vmatmul.mubr.f32.vlgmr.msra.gmra.mxu0 %v8032_v63  ;;  %1794 = vmatmul.mubr.f32.vlgmr.msra.gmra.mxu1 %v8032_v63 }
 0x556   :  { %1894 = vmatpush1.msra.mxu0 %v7680_v12  ;;  %1965 = vmatpush1.msra.mxu1 %v7682_v11  ;;  %v10613_v12 = vld [vmem:[#allocation23_spill] sm:$0xff]  ;;  %v10614_v11 = vld [vmem:[#allocation24_spill] sm:$0xff] }
 0x557   :  { %1895 = vmatprep.subr.mxu0 %v7686_v4  ;;  %1966 = vmatprep.subr.mxu1 %v7688_v10  ;;  %v10615_v4 = vld [vmem:[#allocation25_spill] sm:$0xff]  ;;  %v10616_v10 = vld [vmem:[#allocation26_spill] sm:$0xff] }
 0x558   :  { %1896 = vmatpush1.msra.mxu0 %v7692_v9  ;;  %1967 = vmatpush1.msra.mxu1 %v7694_v2  ;;  %v10617_v9 = vld [vmem:[#allocation27_spill] sm:$0xff]  ;;  %v10618_v2 = vld [vmem:[#allocation28_spill] sm:$0xff] }
 0x559   :  { %1897 = vmatprep.subr.mxu0 %v7698_v13  ;;  %1968 = vmatprep.subr.mxu1 %v7700_v15  ;;  %v10619_v13 = vld [vmem:[#allocation29_spill] sm:$0xff]  ;;  %v10620_v15 = vld [vmem:[#allocation30_spill] sm:$0xff] }
 0x55a   :  { %1898 = vmatpush1.msra.mxu0 %v7704_v5  ;;  %1969 = vmatpush1.msra.mxu1 %v7706_v3  ;;  %v10621_v5 = vld [vmem:[#allocation31_spill] sm:$0xff]  ;;  %v10622_v3 = vld [vmem:[#allocation32_spill] sm:$0xff] }
 0x55b   :  { %1899 = vmatprep.subr.mxu0 %v7710_v16  ;;  %1970 = vmatprep.subr.mxu1 %v7712_v17  ;;  %v10623_v16 = vld [vmem:[#allocation33_spill] sm:$0xff]  ;;  %v10624_v17 = vld [vmem:[#allocation34_spill] sm:$0xff] }
 0x55c   :  { %1900 = vmatpush1.msra.mxu0 %v7716_v18  ;;  %1971 = vmatpush1.msra.mxu1 %v7718_v19  ;;  %v10625_v18 = vld [vmem:[#allocation35_spill] sm:$0xff]  ;;  %v10626_v19 = vld [vmem:[#allocation36_spill] sm:$0xff] }
 0x55d   :  { %1901 = vmatprep.subr.mxu0 %v7722_v20  ;;  %1972 = vmatprep.subr.mxu1 %v7724_v21  ;;  %v10627_v20 = vld [vmem:[#allocation37_spill] sm:$0xff]  ;;  %v10628_v21 = vld [vmem:[#allocation38_spill] sm:$0xff] }
 0x55e   :  { %1902 = vmatpush1.msra.mxu0 %v7728_v23  ;;  %1973 = vmatpush1.msra.mxu1 %v7730_v24  ;;  %v10629_v23 = vmov 0.0   ;;  %v10630_v24 = vld [vmem:[#allocation39_spill] sm:$0xff] }
 0x55f   :  { %1903 = vmatprep.subr.mxu0 %v7734_v25  ;;  %1974 = vmatprep.subr.mxu1 %v7736_v26  ;;  %v10631_v26 = vld [vmem:[#allocation56_spill] sm:$0xff] }
 0x560   :  { %1904 = vmatpush1.msra.mxu0 %v7740_v27  ;;  %1975 = vmatpush1.msra.mxu1 %v7742_v28 }
 0x561   :  { %1905 = vmatprep.subr.mxu0 %v7746_v29  ;;  %1976 = vmatprep.subr.mxu1 %v7748_v30  ;;  %v10632_v30 = vld [vmem:[#allocation58_spill] sm:$0xff] }
 0x562   :  { %1906 = vmatpush1.msra.mxu0 %v7752_v32  ;;  %1977 = vmatpush1.msra.mxu1 %v7754_v33 }
 0x563   :  { %1907 = vmatprep.subr.mxu0 %v7758_v34  ;;  %1978 = vmatprep.subr.mxu1 %v7760_v35 }
 0x564   :  { %1908 = vmatpush1.msra.mxu0 %v7762_v36  ;;  %1979 = vmatpush1.msra.mxu1 %v7766_v38  ;;  %v10633_v36 = vld [vmem:[#allocation59_spill] sm:$0xff] }
 0x565   :  { %1909 = vmatprep.subr.mxu0 %v7768_v39  ;;  %1980 = vmatprep.subr.mxu1 %v7770_v41  ;;  %v10634_v39 = vld [vmem:[#allocation57_spill] sm:$0xff] }
 0x566   :  { %1910 = vmatpush1.msra.mxu0 %v7774_v42  ;;  %1981 = vmatpush1.msra.mxu1 %v7776_v43 }
 0x567   :  { %1911 = vmatprep.subr.mxu0 %v7778_v44  ;;  %1982 = vmatprep.subr.mxu1 %v7782_v45 }
 0x568   :  { %1912 = vmatpush1.msra.mxu0 %v7784_v46  ;;  %1983 = vmatpush1.msra.mxu1 %v7786_v47 }
 0x569   :  { %1913 = vmatprep.subr.mxu0 %v7790_v48  ;;  %1984 = vmatprep.subr.mxu1 %v7792_v50 }
 0x56a   :  { %1914 = vmatpush1.msra.mxu0 %v7796_v51  ;;  %1985 = vmatpush1.msra.mxu1 %v7798_v52 }
 0x56b   :  { %1915 = vmatprep.subr.mxu0 %v7802_v53  ;;  %1986 = vmatprep.subr.mxu1 %v7804_v54 }
 0x56c   :  { %1916 = vmatpush1.msra.mxu0 %v7808_v55  ;;  %1987 = vmatpush1.msra.mxu1 %v10613_v12  ;;  %v2114_v12 = vld [vmem:[#allocation5 + $0x190] sm:$0xff] }
 0x56d   :  { %1917 = vmatprep.subr.mxu0 %v10614_v11  ;;  %1988 = vmatprep.subr.mxu1 %v10615_v4  ;;  %v2109_v11 = vld [vmem:[#allocation5 + $0x168] sm:$0xff]  ;;  %v2111_v4 = vld [vmem:[#allocation5 + $0x178] sm:$0xff] }
 0x56e   :  { %1918 = vmatpush1.msra.mxu0 %v10616_v10  ;;  %1989 = vmatpush1.msra.mxu1 %v10617_v9  ;;  %v2108_v10 = vld [vmem:[#allocation5 + $0x160] sm:$0xff]  ;;  %v2110_v9 = vld [vmem:[#allocation5 + $0x170] sm:$0xff] }
 0x56f   :  { %1919 = vmatprep.subr.mxu0 %v10618_v2  ;;  %1990 = vmatprep.subr.mxu1 %v10619_v13  ;;  %v2105_v2 = vld [vmem:[#allocation5 + $0x148] sm:$0xff]  ;;  %v2107_v13 = vld [vmem:[#allocation5 + $0x158] sm:$0xff] }
 0x570   :  { %1920 = vmatpush1.msra.mxu0 %v10620_v15  ;;  %1991 = vmatpush1.msra.mxu1 %v10621_v5  ;;  %v2104_v15 = vld [vmem:[#allocation5 + $0x140] sm:$0xff]  ;;  %v2106_v5 = vld [vmem:[#allocation5 + $0x150] sm:$0xff] }
 0x571   :  { %1921 = vmatprep.subr.mxu0 %v10622_v3  ;;  %1992 = vmatprep.subr.mxu1 %v10623_v16  ;;  %v2101_v3 = vld [vmem:[#allocation5 + $0x128] sm:$0xff]  ;;  %v2103_v16 = vld [vmem:[#allocation5 + $0x138] sm:$0xff] }
 0x572   :  { %1922 = vmatpush1.msra.mxu0 %v10624_v17  ;;  %1993 = vmatpush1.msra.mxu1 %v10625_v18  ;;  %v2100_v17 = vld [vmem:[#allocation5 + $0x120] sm:$0xff]  ;;  %v2102_v18 = vld [vmem:[#allocation5 + $0x130] sm:$0xff] }
 0x573   :  { %1923 = vmatprep.subr.mxu0 %v10626_v19  ;;  %1994 = vmatprep.subr.mxu1 %v10627_v20  ;;  %v2097_v19 = vld [vmem:[#allocation5 + $0x108] sm:$0xff]  ;;  %v2099_v20 = vld [vmem:[#allocation5 + $0x118] sm:$0xff] }
 0x574   :  { %1924 = vmatpush1.msra.mxu0 %v10628_v21  ;;  %1957 = vmatprep.mubr.f32.mxu0 %v10629_v23  ;;  %v2096_v21 = vld [vmem:[#allocation5 + $0x100] sm:$0xff] }
 0x575   :  { %1995 = vmatpush1.msra.mxu1 %v10630_v24  ;;  %2028 = vmatprep.mubr.f32.mxu1 %v10629_v23  ;;  %v2098_v24 = vld [vmem:[#allocation5 + $0x110] sm:$0xff] }
 0x576   :  { %2128 = vmatprep.subr.mxu0 %v2125_v37  ;;  %2199 = vmatprep.subr.mxu1 %v2127_v56  ;;  %v2065_v37 = vld [vmem:[#allocation5 + $0x8] sm:$0xff]  ;;  %v2067_v56 = vld [vmem:[#allocation5 + $0x18] sm:$0xff] }
 0x615   :  { %v1724_v25 = vpop.f32.mrf.mxu0  ;;  %v1795_v33 = vpop.f32.mrf.mxu1 }
 0x616   :  { %v1800_v27 = vadd.f32 %v1724_v25, %v10631_v26  ;;  %v1802_v41 = vadd.f32 %v1795_v33, %v10634_v39  ;;  %v2093_v25 = vld [vmem:[#allocation5 + $0xe8] sm:$0xff]  ;;  %v2095_v26 = vld [vmem:[#allocation5 + $0xf8] sm:$0xff]  ;;  %v2090_v33 = vld [vmem:[#allocation5 + $0xd0] sm:$0xff] }
 0x617   :  { %v1726_v28 = vpop.f32.mrf.mxu0  ;;  %v1797_v35 = vpop.f32.mrf.mxu1  ;;  %v2081_v39 = vld [vmem:[#allocation5 + $0x88] sm:$0xff] }
 0x618   :  { %v6379_v29 = vmul.f32 -1.442695, %v1800_v27  ;;  %v1801_v32 = vadd.f32 %v1726_v28, %v10632_v30  ;;  %v1803_v38 = vadd.f32 %v1797_v35, %v10633_v36  ;;  %v2092_v27 = vld [vmem:[#allocation5 + $0xe0] sm:$0xff]  ;;  %v2094_v28 = vld [vmem:[#allocation5 + $0xf0] sm:$0xff]  ;;  %v2091_v30 = vld [vmem:[#allocation5 + $0xd8] sm:$0xff] }
 0x619   :  { %v2087_v35 = vld [vmem:[#allocation5 + $0xb8] sm:$0xff]  ;;  %v2084_v36 = vld [vmem:[#allocation5 + $0xa0] sm:$0xff] }
 0x61a   :  { %6578 = vpow2.f32 %v6379_v29  ;;  %v6380_v34 = vmul.f32 -1.442695, %v1801_v32  ;;  %v6381_v42 = vmul.f32 -1.442695, %v1803_v38  ;;  %v2089_v29 = vld [vmem:[#allocation5 + $0xc8] sm:$0xff]  ;;  %v2088_v32 = vld [vmem:[#allocation5 + $0xc0] sm:$0xff] }
 0x61b   :  { %v2086_v38 = vld [vmem:[#allocation5 + $0xb0] sm:$0xff] }
 0x61c   :  { %6580 = vpow2.f32 %v6380_v34  ;;  %v2085_v34 = vld [vmem:[#allocation5 + $0xa8] sm:$0xff] }
 0x61d   :  { %6582 = vtanh.f32 %v1802_v41  ;;  %v2083_v41 = vld [vmem:[#allocation5 + $0x98] sm:$0xff] }
 0x61e   :  { %6584 = vpow2.f32 %v6381_v42  ;;  %v2080_v42 = vld [vmem:[#allocation5 + $0x80] sm:$0xff] }
 0x627   :  { %v6579_v43 = vpop.eup %6578 }
 0x628   :  { %v1807_v44 = vadd.f32 1.0, %v6579_v43  ;;  %v2082_v43 = vld [vmem:[#allocation5 + $0x90] sm:$0xff] }
 0x629   :  { %v6581_v45 = vpop.eup %6580 }
 0x62a   :  { %6586 = vrcp.f32 %v1807_v44  ;;  %v1813_v46 = vadd.f32 1.0, %v6581_v45  ;;  %v6583_v47 = vpop.eup %6582  ;;  %v2077_v44 = vld [vmem:[#allocation5 + $0x68] sm:$0xff]  ;;  %v2079_v45 = vld [vmem:[#allocation5 + $0x78] sm:$0xff] }
 0x62b   :  { %v6585_v48 = vpop.eup %6584 }
 0x62c   :  { %6588 = vrcp.f32 %v1813_v46  ;;  %v1820_v53 = vadd.f32 1.0, %v6585_v48  ;;  %v2076_v46 = vld [vmem:[#allocation5 + $0x60] sm:$0xff]  ;;  %v2073_v48 = vld [vmem:[#allocation5 + $0x48] sm:$0xff] }
 0x62e   :  { %6590 = vrcp.f32 %v1820_v53  ;;  %v2069_v53 = vld [vmem:[#allocation5 + $0x28] sm:$0xff] }
 0x637   :  { %v6587_v50 = vpop.eup %6586 }
 0x638   :  { %v1824_v51 = vmul.f32 %v6587_v50, %v6583_v47  ;;  %v2078_v47 = vld [vmem:[#allocation5 + $0x70] sm:$0xff]  ;;  %v2075_v50 = vld [vmem:[#allocation5 + $0x58] sm:$0xff] }
 0x639   :  { %v6589_v52 = vpop.eup %6588 }
 0x63a   :  { %v1823_v54 = vmul.f32 %v6589_v52, %v8029_v58  ;;  %v2113_v58 = vld [vmem:[#allocation5 + $0x188] sm:$0xff]  ;;  %v2074_v52 = vld [vmem:[#allocation5 + $0x50] sm:$0xff] }
 0x63b   :  { %v6591_v57 = vpop.eup %6590 }
 0x63c   :  { %v8105_v55 = vadd.f32 %v1824_v51, %v1823_v54  ;;  %v2072_v51 = vld [vmem:[#allocation5 + $0x40] sm:$0xff]  ;;  %v2071_v54 = vld [vmem:[#allocation5 + $0x38] sm:$0xff] }
 0x63e   :  { %6592 = vtanh.f32 %v8105_v55 }
 0x64b   :  { %v6593_v22 = vpop.eup %6592 }
 0x64c   :  { %v8108_v14 = vmul.f32 %v6593_v22, %v6591_v57  ;;  %v2068_v57 = vld [vmem:[#allocation5 + $0x20] sm:$0xff]  ;;  %v2070_v22 = vld [vmem:[#allocation5 + $0x30] sm:$0xff] }
 0x64e   :  { %1958 = vmatmul.mubr.f32.vlgmr.msra.gmra.mxu0 %v8108_v14  ;;  %2029 = vmatmul.mubr.f32.vlgmr.msra.gmra.mxu1 %v8108_v14 }
 0x64f   :  { %2192 = vmatprep.mubr.f32.mxu0 %v10629_v23  ;;  %2263 = vmatprep.mubr.f32.mxu1 %v10629_v23 }
 0x650   :  { %2129 = vmatpush1.msra.mxu0 %v2124_v1  ;;  %2200 = vmatpush1.msra.mxu1 %v2126_v6  ;;  %v2064_v1 = vld [vmem:[#allocation5] sm:$0xff]  ;;  %v2066_v6 = vld [vmem:[#allocation5 + $0x10] sm:$0xff] }
 0x651   :  { %2130 = vmatprep.subr.mxu0 %v2121_v8  ;;  %2201 = vmatprep.subr.mxu1 %v2123_v49  ;;  %v2368_v8 = vld [vmem:[#allocation7 + $0x1e8] sm:$0xff]  ;;  %v2370_v49 = vld [vmem:[#allocation7 + $0x1f8] sm:$0xff] }
 0x652   :  { %2131 = vmatpush1.msra.mxu0 %v2120_v61  ;;  %2202 = vmatpush1.msra.mxu1 %v2122_v31  ;;  %v10635_v31 = vld [vmem:[#allocation60_spill] sm:$0xff] }
 0x653   :  { %2132 = vmatprep.subr.mxu0 %v2117_v62  ;;  %2203 = vmatprep.subr.mxu1 %v2119_v40 }
 0x654   :  { %2133 = vmatpush1.msra.mxu0 %v2116_v7  ;;  %2204 = vmatpush1.msra.mxu1 %v2118_v59  ;;  %v10636_v59 = vld [vmem:[#allocation62_spill] sm:$0xff] }
 0x655   :  { %2134 = vmatprep.subr.mxu0 %v2113_v58  ;;  %2205 = vmatprep.subr.mxu1 %v2115_v60 }
 0x656   :  { %2135 = vmatpush1.msra.mxu0 %v2112_v0  ;;  %2206 = vmatpush1.msra.mxu1 %v2114_v12 }
 0x657   :  { %2136 = vmatprep.subr.mxu0 %v2109_v11  ;;  %2207 = vmatprep.subr.mxu1 %v2111_v4  ;;  %v10637_v11 = vld [vmem:[#allocation63_spill] sm:$0xff] }
 0x658   :  { %2137 = vmatpush1.msra.mxu0 %v2108_v10  ;;  %2208 = vmatpush1.msra.mxu1 %v2110_v9  ;;  %v10638_v10 = vld [vmem:[#allocation61_spill] sm:$0xff] }
 0x659   :  { %2138 = vmatprep.subr.mxu0 %v2105_v2  ;;  %2209 = vmatprep.subr.mxu1 %v2107_v13 }
 0x65a   :  { %2139 = vmatpush1.msra.mxu0 %v2104_v15  ;;  %2210 = vmatpush1.msra.mxu1 %v2106_v5 }
 0x65b   :  { %2140 = vmatprep.subr.mxu0 %v2101_v3  ;;  %2211 = vmatprep.subr.mxu1 %v2103_v16 }
 0x65c   :  { %2141 = vmatpush1.msra.mxu0 %v2100_v17  ;;  %2212 = vmatpush1.msra.mxu1 %v2102_v18 }
 0x65d   :  { %2142 = vmatprep.subr.mxu0 %v2097_v19  ;;  %2213 = vmatprep.subr.mxu1 %v2099_v20 }
 0x65e   :  { %2143 = vmatpush1.msra.mxu0 %v2096_v21  ;;  %2214 = vmatpush1.msra.mxu1 %v2098_v24 }
 0x65f   :  { %2144 = vmatprep.subr.mxu0 %v2093_v25  ;;  %2215 = vmatprep.subr.mxu1 %v2095_v26 }
 0x660   :  { %2145 = vmatpush1.msra.mxu0 %v2092_v27  ;;  %2216 = vmatpush1.msra.mxu1 %v2094_v28 }
 0x661   :  { %2146 = vmatprep.subr.mxu0 %v2089_v29  ;;  %2217 = vmatprep.subr.mxu1 %v2091_v30  ;;  %v2367_v29 = vld [vmem:[#allocation7 + $0x1e0] sm:$0xff]  ;;  %v2369_v30 = vld [vmem:[#allocation7 + $0x1f0] sm:$0xff] }
 0x662   :  { %2147 = vmatpush1.msra.mxu0 %v2088_v32  ;;  %2218 = vmatpush1.msra.mxu1 %v2090_v33  ;;  %v2364_v32 = vld [vmem:[#allocation7 + $0x1c8] sm:$0xff]  ;;  %v2366_v33 = vld [vmem:[#allocation7 + $0x1d8] sm:$0xff] }
 0x663   :  { %2148 = vmatprep.subr.mxu0 %v2085_v34  ;;  %2219 = vmatprep.subr.mxu1 %v2087_v35  ;;  %v2363_v34 = vld [vmem:[#allocation7 + $0x1c0] sm:$0xff]  ;;  %v2365_v35 = vld [vmem:[#allocation7 + $0x1d0] sm:$0xff] }
 0x664   :  { %2149 = vmatpush1.msra.mxu0 %v2084_v36  ;;  %2220 = vmatpush1.msra.mxu1 %v2086_v38  ;;  %v2362_v36 = vld [vmem:[#allocation7 + $0x1b8] sm:$0xff]  ;;  %v2359_v38 = vld [vmem:[#allocation7 + $0x1a0] sm:$0xff] }
 0x665   :  { %2150 = vmatprep.subr.mxu0 %v2081_v39  ;;  %2221 = vmatprep.subr.mxu1 %v2083_v41  ;;  %v2361_v39 = vld [vmem:[#allocation7 + $0x1b0] sm:$0xff]  ;;  %v2356_v41 = vld [vmem:[#allocation7 + $0x188] sm:$0xff] }
 0x666   :  { %2151 = vmatpush1.msra.mxu0 %v2080_v42  ;;  %2222 = vmatpush1.msra.mxu1 %v2082_v43  ;;  %v2358_v42 = vld [vmem:[#allocation7 + $0x198] sm:$0xff]  ;;  %v2355_v43 = vld [vmem:[#allocation7 + $0x180] sm:$0xff] }
 0x667   :  { %2152 = vmatprep.subr.mxu0 %v2077_v44  ;;  %2223 = vmatprep.subr.mxu1 %v2079_v45  ;;  %v2357_v44 = vld [vmem:[#allocation7 + $0x190] sm:$0xff]  ;;  %v2352_v45 = vld [vmem:[#allocation7 + $0x168] sm:$0xff] }
 0x668   :  { %2153 = vmatpush1.msra.mxu0 %v2076_v46  ;;  %2224 = vmatpush1.msra.mxu1 %v2078_v47  ;;  %v2354_v46 = vld [vmem:[#allocation7 + $0x178] sm:$0xff]  ;;  %v2351_v47 = vld [vmem:[#allocation7 + $0x160] sm:$0xff] }
 0x669   :  { %2154 = vmatprep.subr.mxu0 %v2073_v48  ;;  %2225 = vmatprep.subr.mxu1 %v2075_v50  ;;  %v2353_v48 = vld [vmem:[#allocation7 + $0x170] sm:$0xff]  ;;  %v2348_v50 = vld [vmem:[#allocation7 + $0x148] sm:$0xff] }
 0x66a   :  { %2155 = vmatpush1.msra.mxu0 %v2072_v51  ;;  %2226 = vmatpush1.msra.mxu1 %v2074_v52  ;;  %v2350_v51 = vld [vmem:[#allocation7 + $0x158] sm:$0xff]  ;;  %v2347_v52 = vld [vmem:[#allocation7 + $0x140] sm:$0xff] }
 0x66b   :  { %2156 = vmatprep.subr.mxu0 %v2069_v53  ;;  %2227 = vmatprep.subr.mxu1 %v2071_v54  ;;  %v2349_v53 = vld [vmem:[#allocation7 + $0x150] sm:$0xff]  ;;  %v2344_v54 = vld [vmem:[#allocation7 + $0x128] sm:$0xff] }
 0x66c   :  { %2157 = vmatpush1.msra.mxu0 %v2068_v57  ;;  %2228 = vmatpush1.msra.mxu1 %v2070_v22  ;;  %v2346_v57 = vld [vmem:[#allocation7 + $0x138] sm:$0xff]  ;;  %v2343_v22 = vld [vmem:[#allocation7 + $0x120] sm:$0xff] }
 0x66d   :  { %2158 = vmatprep.subr.mxu0 %v2065_v37  ;;  %2229 = vmatprep.subr.mxu1 %v2067_v56  ;;  %v2345_v37 = vld [vmem:[#allocation7 + $0x130] sm:$0xff]  ;;  %v2340_v56 = vld [vmem:[#allocation7 + $0x108] sm:$0xff] }
 0x66e   :  { %2159 = vmatpush1.msra.mxu0 %v2064_v1  ;;  %2230 = vmatpush1.msra.mxu1 %v2066_v6  ;;  %v2342_v1 = vld [vmem:[#allocation7 + $0x118] sm:$0xff]  ;;  %v2339_v6 = vld [vmem:[#allocation7 + $0x100] sm:$0xff] }
 0x66f   :  { %2393 = vmatprep.subr.mxu0 %v2368_v8  ;;  %2506 = vmatprep.subr.mxu1 %v2370_v49  ;;  %v2341_v8 = vld [vmem:[#allocation7 + $0x110] sm:$0xff]  ;;  %v2336_v49 = vld [vmem:[#allocation7 + $0xe8] sm:$0xff] }
 0x70e   :  { %v1959_v61 = vpop.f32.mrf.mxu0  ;;  %v2030_v60 = vpop.f32.mrf.mxu1 }
 0x70f   :  { %v2035_v62 = vadd.f32 %v1959_v61, %v10635_v31  ;;  %v2037_v9 = vadd.f32 %v2030_v60, %v10638_v10  ;;  %v2338_v61 = vld [vmem:[#allocation7 + $0xf8] sm:$0xff]  ;;  %v2335_v31 = vld [vmem:[#allocation7 + $0xe0] sm:$0xff]  ;;  %v2328_v60 = vld [vmem:[#allocation7 + $0xa8] sm:$0xff] }
 0x710   :  { %v1961_v40 = vpop.f32.mrf.mxu0  ;;  %v2032_v12 = vpop.f32.mrf.mxu1  ;;  %v2326_v10 = vld [vmem:[#allocation7 + $0x98] sm:$0xff] }
 0x711   :  { %v6382_v7 = vmul.f32 -1.442695, %v2035_v62  ;;  %v2036_v58 = vadd.f32 %v1961_v40, %v10636_v59  ;;  %v2038_v4 = vadd.f32 %v2032_v12, %v10637_v11  ;;  %v2337_v62 = vld [vmem:[#allocation7 + $0xf0] sm:$0xff]  ;;  %v2332_v40 = vld [vmem:[#allocation7 + $0xc8] sm:$0xff]  ;;  %v2331_v59 = vld [vmem:[#allocation7 + $0xc0] sm:$0xff] }
 0x712   :  { %v2327_v12 = vld [vmem:[#allocation7 + $0xa0] sm:$0xff]  ;;  %v2329_v11 = vld [vmem:[#allocation7 + $0xb0] sm:$0xff] }
 0x713   :  { %6594 = vpow2.f32 %v6382_v7  ;;  %v6383_v0 = vmul.f32 -1.442695, %v2036_v58  ;;  %v6384_v2 = vmul.f32 -1.442695, %v2038_v4  ;;  %v2334_v7 = vld [vmem:[#allocation7 + $0xd8] sm:$0xff]  ;;  %v2333_v58 = vld [vmem:[#allocation7 + $0xd0] sm:$0xff] }
 0x714   :  { %v2324_v4 = vld [vmem:[#allocation7 + $0x88] sm:$0xff] }
 0x715   :  { %6596 = vpow2.f32 %v6383_v0  ;;  %v2330_v0 = vld [vmem:[#allocation7 + $0xb8] sm:$0xff] }
 0x716   :  { %6598 = vtanh.f32 %v2037_v9  ;;  %v2323_v9 = vld [vmem:[#allocation7 + $0x80] sm:$0xff] }
 0x717   :  { %6600 = vpow2.f32 %v6384_v2  ;;  %v2325_v2 = vld [vmem:[#allocation7 + $0x90] sm:$0xff] }
 0x720   :  { %v6595_v13 = vpop.eup %6594 }
 0x721   :  { %v2042_v15 = vadd.f32 1.0, %v6595_v13  ;;  %v2320_v13 = vld [vmem:[#allocation7 + $0x68] sm:$0xff] }
 0x722   :  { %v6597_v5 = vpop.eup %6596 }
 0x723   :  { %6602 = vrcp.f32 %v2042_v15  ;;  %v2048_v3 = vadd.f32 1.0, %v6597_v5  ;;  %v6599_v16 = vpop.eup %6598  ;;  %v2322_v15 = vld [vmem:[#allocation7 + $0x78] sm:$0xff]  ;;  %v2319_v5 = vld [vmem:[#allocation7 + $0x60] sm:$0xff] }
 0x724   :  { %v6601_v17 = vpop.eup %6600 }
 0x725   :  { %6604 = vrcp.f32 %v2048_v3  ;;  %v2055_v21 = vadd.f32 1.0, %v6601_v17  ;;  %v2321_v3 = vld [vmem:[#allocation7 + $0x70] sm:$0xff]  ;;  %v2318_v17 = vld [vmem:[#allocation7 + $0x58] sm:$0xff] }
 0x727   :  { %6606 = vrcp.f32 %v2055_v21  ;;  %v2314_v21 = vld [vmem:[#allocation7 + $0x38] sm:$0xff] }
 0x730   :  { %v6603_v18 = vpop.eup %6602 }
 0x731   :  { %v2059_v19 = vmul.f32 %v6603_v18, %v6599_v16  ;;  %v2316_v16 = vld [vmem:[#allocation7 + $0x48] sm:$0xff]  ;;  %v2315_v18 = vld [vmem:[#allocation7 + $0x40] sm:$0xff] }
 0x732   :  { %v6605_v20 = vpop.eup %6604 }
 0x733   :  { %v2058_v24 = vmul.f32 %v6605_v20, %v8105_v55  ;;  %v2360_v55 = vld [vmem:[#allocation7 + $0x1a8] sm:$0xff] }
 0x734   :  { %v6607_v26 = vpop.eup %6606  ;;  %v2312_v20 = vld [vmem:[#allocation7 + $0x28] sm:$0xff] }
 0x735   :  { %v8119_v25 = vadd.f32 %v2059_v19, %v2058_v24  ;;  %v2317_v19 = vld [vmem:[#allocation7 + $0x50] sm:$0xff]  ;;  %v2311_v24 = vld [vmem:[#allocation7 + $0x20] sm:$0xff] }
 0x737   :  { %6608 = vtanh.f32 %v8119_v25 }
 0x744   :  { %v6609_v27 = vpop.eup %6608 }
 0x745   :  { %v8122_v28 = vmul.f32 %v6609_v27, %v6607_v26  ;;  %v2313_v26 = vld [vmem:[#allocation7 + $0x30] sm:$0xff]  ;;  %v2308_v27 = vld [vmem:[#allocation7 + $0x8] sm:$0xff] }
 0x747   :  { %2193 = vmatmul.mubr.f32.vlgmr.msra.gmra.mxu0 %v8122_v28  ;;  %2264 = vmatmul.mubr.f32.vlgmr.msra.gmra.mxu1 %v8122_v28 }
 0x748   :  { %2394 = vmatpush1.msra.mxu0 %v2367_v29  ;;  %2507 = vmatpush1.msra.mxu1 %v2369_v30  ;;  %v2310_v29 = vld [vmem:[#allocation7 + $0x18] sm:$0xff]  ;;  %v2307_v30 = vld [vmem:[#allocation7] sm:$0xff] }
 0x749   :  { %2395 = vmatprep.subr.mxu0 %v2364_v32  ;;  %2508 = vmatprep.subr.mxu1 %v2366_v33  ;;  %v2309_v32 = vld [vmem:[#allocation7 + $0x10] sm:$0xff]  ;;  %v10639_v33 = vld [vmem:[#allocation68_spill] sm:$0xff] }
 0x74a   :  { %2396 = vmatpush1.msra.mxu0 %v2363_v34  ;;  %2509 = vmatpush1.msra.mxu1 %v2365_v35  ;;  %v10640_v34 = vld [vmem:[#allocation20_spill] sm:$0xff] }
 0x74b   :  { %2397 = vmatprep.subr.mxu0 %v2360_v55  ;;  %2510 = vmatprep.subr.mxu1 %v2362_v36  ;;  %v10641_v35 = vld [vmem:[#allocation40_spill] sm:$0xff]  ;;  %v10642_v55 = vld [vmem:[#allocation42_spill] sm:$0xff]  ;;  %v8158_v36 = vld [vmem:[#allocation9 + $0x1f8] sm:$0xff] }
 0x74c   :  { %2398 = vmatpush1.msra.mxu0 %v2359_v38  ;;  %2511 = vmatpush1.msra.mxu1 %v2361_v39  ;;  %10644 = vst [vmem:[#allocation41_spill] sm:$0xff] %v8158_v36  ;;  %v8164_v38 = vld [vmem:[#allocation9 + $0x1f0] sm:$0xff]  ;;  %v8170_v39 = vld [vmem:[#allocation9 + $0x1d8] sm:$0xff] }
 0x74d   :  { %2399 = vmatprep.subr.mxu0 %v2356_v41  ;;  %2512 = vmatprep.subr.mxu1 %v2358_v42  ;;  %v8174_v41 = vld [vmem:[#allocation9 + $0x1c0] sm:$0xff]  ;;  %v8176_v42 = vld [vmem:[#allocation9 + $0x1d0] sm:$0xff] }
 0x74e   :  { %2400 = vmatpush1.msra.mxu0 %v2355_v43  ;;  %2513 = vmatpush1.msra.mxu1 %v2357_v44  ;;  %v8180_v43 = vld [vmem:[#allocation9 + $0x1a8] sm:$0xff]  ;;  %v8182_v44 = vld [vmem:[#allocation9 + $0x1b8] sm:$0xff] }
 0x74f   :  { %2401 = vmatprep.subr.mxu0 %v2352_v45  ;;  %2514 = vmatprep.subr.mxu1 %v2354_v46  ;;  %v8186_v45 = vld [vmem:[#allocation9 + $0x1a0] sm:$0xff]  ;;  %v8188_v46 = vld [vmem:[#allocation9 + $0x1b0] sm:$0xff] }
 0x750   :  { %2402 = vmatpush1.msra.mxu0 %v2351_v47  ;;  %2515 = vmatpush1.msra.mxu1 %v2353_v48  ;;  %v8192_v47 = vld [vmem:[#allocation9 + $0x188] sm:$0xff]  ;;  %v8194_v48 = vld [vmem:[#allocation9 + $0x198] sm:$0xff] }
 0x751   :  { %2403 = vmatprep.subr.mxu0 %v2348_v50  ;;  %2516 = vmatprep.subr.mxu1 %v2350_v51  ;;  %v8198_v50 = vld [vmem:[#allocation9 + $0x180] sm:$0xff]  ;;  %v8200_v51 = vld [vmem:[#allocation9 + $0x190] sm:$0xff] }
 0x752   :  { %2404 = vmatpush1.msra.mxu0 %v2347_v52  ;;  %2517 = vmatpush1.msra.mxu1 %v2349_v53  ;;  %v8204_v52 = vld [vmem:[#allocation9 + $0x168] sm:$0xff]  ;;  %v8206_v53 = vld [vmem:[#allocation9 + $0x178] sm:$0xff] }
 0x753   :  { %2405 = vmatprep.subr.mxu0 %v2344_v54  ;;  %2518 = vmatprep.subr.mxu1 %v2346_v57  ;;  %v8210_v54 = vld [vmem:[#allocation9 + $0x160] sm:$0xff]  ;;  %v8212_v57 = vld [vmem:[#allocation9 + $0x170] sm:$0xff] }
 0x754   :  { %2406 = vmatpush1.msra.mxu0 %v2343_v22  ;;  %2519 = vmatpush1.msra.mxu1 %v2345_v37  ;;  %v8216_v22 = vld [vmem:[#allocation9 + $0x148] sm:$0xff]  ;;  %v8218_v37 = vld [vmem:[#allocation9 + $0x158] sm:$0xff] }
 0x755   :  { %2407 = vmatprep.subr.mxu0 %v2340_v56  ;;  %2520 = vmatprep.subr.mxu1 %v2342_v1  ;;  %v8222_v56 = vld [vmem:[#allocation9 + $0x140] sm:$0xff]  ;;  %v8224_v1 = vld [vmem:[#allocation9 + $0x150] sm:$0xff] }
 0x756   :  { %2408 = vmatpush1.msra.mxu0 %v2339_v6  ;;  %2521 = vmatpush1.msra.mxu1 %v2341_v8  ;;  %v8228_v6 = vld [vmem:[#allocation9 + $0x128] sm:$0xff]  ;;  %v8230_v8 = vld [vmem:[#allocation9 + $0x138] sm:$0xff] }
 0x757   :  { %2409 = vmatprep.subr.mxu0 %v2336_v49  ;;  %2522 = vmatprep.subr.mxu1 %v2338_v61  ;;  %v8234_v49 = vld [vmem:[#allocation9 + $0x120] sm:$0xff]  ;;  %v8236_v61 = vld [vmem:[#allocation9 + $0x130] sm:$0xff] }
 0x758   :  { %2410 = vmatpush1.msra.mxu0 %v2335_v31  ;;  %2523 = vmatpush1.msra.mxu1 %v2337_v62  ;;  %v8240_v31 = vld [vmem:[#allocation9 + $0x108] sm:$0xff]  ;;  %v8242_v62 = vld [vmem:[#allocation9 + $0x118] sm:$0xff] }
 0x759   :  { %2411 = vmatprep.subr.mxu0 %v2332_v40  ;;  %2524 = vmatprep.subr.mxu1 %v2334_v7  ;;  %v8246_v40 = vld [vmem:[#allocation9 + $0x100] sm:$0xff]  ;;  %v8248_v7 = vld [vmem:[#allocation9 + $0x110] sm:$0xff] }
 0x75a   :  { %2412 = vmatpush1.msra.mxu0 %v2331_v59  ;;  %2525 = vmatpush1.msra.mxu1 %v2333_v58  ;;  %v8252_v59 = vld [vmem:[#allocation9 + $0xe8] sm:$0xff]  ;;  %v8254_v58 = vld [vmem:[#allocation9 + $0xf8] sm:$0xff] }
 0x75b   :  { %2413 = vmatprep.subr.mxu0 %v2328_v60  ;;  %2526 = vmatprep.subr.mxu1 %v2330_v0  ;;  %v8258_v60 = vld [vmem:[#allocation9 + $0xe0] sm:$0xff]  ;;  %v8260_v0 = vld [vmem:[#allocation9 + $0xf0] sm:$0xff] }
 0x75c   :  { %2414 = vmatpush1.msra.mxu0 %v2327_v12  ;;  %2527 = vmatpush1.msra.mxu1 %v2329_v11  ;;  %v8264_v12 = vld [vmem:[#allocation9 + $0xc8] sm:$0xff]  ;;  %v8266_v11 = vld [vmem:[#allocation9 + $0xd8] sm:$0xff] }
 0x75d   :  { %2415 = vmatprep.subr.mxu0 %v2324_v4  ;;  %2528 = vmatprep.subr.mxu1 %v2326_v10  ;;  %v8270_v4 = vld [vmem:[#allocation9 + $0xc0] sm:$0xff]  ;;  %v8272_v10 = vld [vmem:[#allocation9 + $0xd0] sm:$0xff] }
 0x75e   :  { %2416 = vmatpush1.msra.mxu0 %v2323_v9  ;;  %2529 = vmatpush1.msra.mxu1 %v2325_v2  ;;  %v8276_v9 = vld [vmem:[#allocation9 + $0xa8] sm:$0xff]  ;;  %v8278_v2 = vld [vmem:[#allocation9 + $0xb8] sm:$0xff] }
 0x75f   :  { %2417 = vmatprep.subr.mxu0 %v2320_v13  ;;  %2530 = vmatprep.subr.mxu1 %v2322_v15  ;;  %v8282_v13 = vld [vmem:[#allocation9 + $0xa0] sm:$0xff]  ;;  %v8284_v15 = vld [vmem:[#allocation9 + $0xb0] sm:$0xff] }
 0x760   :  { %2418 = vmatpush1.msra.mxu0 %v2319_v5  ;;  %2531 = vmatpush1.msra.mxu1 %v2321_v3  ;;  %v8288_v5 = vld [vmem:[#allocation9 + $0x88] sm:$0xff]  ;;  %v8290_v3 = vld [vmem:[#allocation9 + $0x98] sm:$0xff] }
 0x761   :  { %2419 = vmatprep.subr.mxu0 %v2316_v16  ;;  %2532 = vmatprep.subr.mxu1 %v2318_v17  ;;  %10645 = vst [vmem:[#allocation44_spill] sm:$0xff] %v8290_v3  ;;  %v8294_v16 = vld [vmem:[#allocation9 + $0x80] sm:$0xff]  ;;  %v8296_v17 = vld [vmem:[#allocation9 + $0x90] sm:$0xff] }
 0x762   :  { %2420 = vmatpush1.msra.mxu0 %v2315_v18  ;;  %2533 = vmatpush1.msra.mxu1 %v2317_v19  ;;  %10646 = vst [vmem:[#allocation46_spill] sm:$0xff] %v8294_v16  ;;  %10647 = vst [vmem:[#allocation47_spill] sm:$0xff] %v8296_v17  ;;  %v8300_v18 = vld [vmem:[#allocation9 + $0x68] sm:$0xff]  ;;  %v8302_v19 = vld [vmem:[#allocation9 + $0x78] sm:$0xff] }
 0x763   :  { %2421 = vmatprep.subr.mxu0 %v2312_v20  ;;  %2534 = vmatprep.subr.mxu1 %v2314_v21  ;;  %10648 = vst [vmem:[#allocation45_spill] sm:$0xff] %v8300_v18  ;;  %10649 = vst [vmem:[#allocation48_spill] sm:$0xff] %v8302_v19  ;;  %v8306_v20 = vld [vmem:[#allocation9 + $0x60] sm:$0xff]  ;;  %v8308_v21 = vld [vmem:[#allocation9 + $0x70] sm:$0xff] }
 0x764   :  { %2422 = vmatpush1.msra.mxu0 %v2311_v24  ;;  %2535 = vmatpush1.msra.mxu1 %v2313_v26  ;;  %10650 = vst [vmem:[#allocation50_spill] sm:$0xff] %v8306_v20  ;;  %10651 = vst [vmem:[#allocation51_spill] sm:$0xff] %v8308_v21  ;;  %v8312_v24 = vld [vmem:[#allocation9 + $0x48] sm:$0xff]  ;;  %v8314_v26 = vld [vmem:[#allocation9 + $0x58] sm:$0xff] }
 0x765   :  { %2423 = vmatprep.subr.mxu0 %v2308_v27  ;;  %2536 = vmatprep.subr.mxu1 %v2310_v29  ;;  %10652 = vst [vmem:[#allocation49_spill] sm:$0xff] %v8312_v24  ;;  %10653 = vst [vmem:[#allocation21_spill] sm:$0xff] %v8314_v26  ;;  %v8318_v27 = vld [vmem:[#allocation9 + $0x40] sm:$0xff]  ;;  %v8320_v29 = vld [vmem:[#allocation9 + $0x50] sm:$0xff] }
 0x766   :  { %2424 = vmatpush1.msra.mxu0 %v2307_v30  ;;  %2457 = vmatprep.mubr.f32.mxu0 %v10629_v23  ;;  %10654 = vst [vmem:[#allocation22_spill] sm:$0xff] %v8318_v27  ;;  %10655 = vst [vmem:[#allocation52_spill] sm:$0xff] %v8320_v29  ;;  %v8324_v30 = vld [vmem:[#allocation9 + $0x28] sm:$0xff] }
 0x767   :  { %2537 = vmatpush1.msra.mxu1 %v2309_v32  ;;  %2570 = vmatprep.mubr.f32.mxu1 %v10629_v23  ;;  %10656 = vst [vmem:[#allocation54_spill] sm:$0xff] %v8324_v30  ;;  %v8326_v32 = vld [vmem:[#allocation9 + $0x38] sm:$0xff] }
 0x768   :  { %2458 = vmatmul.mubr.f32.vlgmr.msra.gmra.mxu0 %v10639_v33  ;;  %2571 = vmatmul.mubr.f32.vlgmr.msra.gmra.mxu1 %v10639_v33  ;;  %10657 = vst [vmem:[#allocation55_spill] sm:$0xff] %v8326_v32  ;;  %v8330_v33 = vld [vmem:[#allocation9 + $0x20] sm:$0xff] }
 0x769   :  { %2463 = vmatprep.mubr.f32.mxu0 %v10629_v23  ;;  %2576 = vmatprep.mubr.f32.mxu1 %v10629_v23  ;;  %10658 = vst [vmem:[#allocation53_spill] sm:$0xff] %v8330_v33 }
 0x76a   :  { %2754 = vmatprep.subr.mxu1 %v8158_v36 }
 0x76b   :  { %2755 = vmatpush1.msra.mxu1 %v8164_v38 }
 0x76c   :  { %2464 = vmatmul.mubr.f32.gmra.mxu0 %v10640_v34  ;;  %2577 = vmatmul.mubr.f32.gmra.mxu1 %v10640_v34  ;;  %v8332_v34 = vld [vmem:[#allocation9 + $0x30] sm:$0xff] }
 0x76d   :  { %2469 = vmatprep.mubr.f32.mxu0 %v10629_v23  ;;  %2582 = vmatprep.mubr.f32.mxu1 %v10629_v23  ;;  %10659 = vst [vmem:[#allocation23_spill] sm:$0xff] %v8332_v34 }
 0x76e   :  { %2756 = vmatprep.subr.mxu1 %v8170_v39 }
 0x76f   :  { %2757 = vmatpush1.msra.mxu1 %v8176_v42 }
 0x770   :  { %2470 = vmatmul.mubr.f32.gmra.mxu0 %v10641_v35  ;;  %2583 = vmatmul.mubr.f32.gmra.mxu1 %v10641_v35  ;;  %v8336_v35 = vld [vmem:[#allocation9 + $0x8] sm:$0xff] }
 0x771   :  { %2475 = vmatprep.mubr.f32.mxu0 %v10629_v23  ;;  %2588 = vmatprep.mubr.f32.mxu1 %v10629_v23  ;;  %10660 = vst [vmem:[#allocation24_spill] sm:$0xff] %v8336_v35 }
 0x772   :  { %2758 = vmatprep.subr.mxu1 %v8182_v44 }
 0x773   :  { %2759 = vmatpush1.msra.mxu1 %v8188_v46 }
 0x774   :  { %2476 = vmatmul.mubr.f32.gmra.mxu0 %v10642_v55  ;;  %2589 = vmatmul.mubr.f32.gmra.mxu1 %v10642_v55  ;;  %v8338_v55 = vld [vmem:[#allocation9 + $0x18] sm:$0xff] }
 0x775   :  { %2481 = vmatprep.mubr.f32.mxu0 %v10629_v23  ;;  %2594 = vmatprep.mubr.f32.mxu1 %v10629_v23  ;;  %10661 = vst [vmem:[#allocation25_spill] sm:$0xff] %v8338_v55 }
 0x776   :  { %2760 = vmatprep.subr.mxu1 %v8194_v48 }
 0x777   :  { %2761 = vmatpush1.msra.mxu1 %v8200_v51 }
 0x778   :  { %2482 = vmatmul.mubr.f32.gmra.mxu0 %v8032_v63  ;;  %2595 = vmatmul.mubr.f32.gmra.mxu1 %v8032_v63  ;;  %v8156_v63 = vld [vmem:[#allocation9 + $0x1e8] sm:$0xff] }
 0x779   :  { %2487 = vmatprep.mubr.f32.mxu0 %v10629_v23  ;;  %2600 = vmatprep.mubr.f32.mxu1 %v10629_v23  ;;  %10643 = vst [vmem:[#allocation43_spill] sm:$0xff] %v8156_v63 }
 0x77a   :  { %2683 = vmatprep.subr.mxu0 %v8156_v63  ;;  %2762 = vmatprep.subr.mxu1 %v8206_v53 }
 0x77b   :  { %2763 = vmatpush1.msra.mxu1 %v8212_v57 }
 0x77c   :  { %2488 = vmatmul.mubr.f32.gmra.mxu0 %v8108_v14  ;;  %2601 = vmatmul.mubr.f32.gmra.mxu1 %v8108_v14  ;;  %v8162_v14 = vld [vmem:[#allocation9 + $0x1e0] sm:$0xff] }
 0x77d   :  { %2493 = vmatprep.mubr.f32.mxu0 %v10629_v23  ;;  %2606 = vmatprep.mubr.f32.mxu1 %v10629_v23 }
 0x77e   :  { %2684 = vmatpush1.msra.mxu0 %v8162_v14  ;;  %2764 = vmatprep.subr.mxu1 %v8218_v37 }
 0x77f   :  { %2765 = vmatpush1.msra.mxu1 %v8224_v1 }
 0x780   :  { %2494 = vmatmul.mubr.f32.gmra.mxu0 %v8122_v28  ;;  %2607 = vmatmul.mubr.f32.gmra.mxu1 %v8122_v28  ;;  %v8168_v28 = vld [vmem:[#allocation9 + $0x1c8] sm:$0xff] }
 0x781   :  { %2499 = vmatprep.mubr.f32.mxu0 %v10629_v23  ;;  %2612 = vmatprep.mubr.f32.mxu1 %v10629_v23 }
 0x782   :  { %2685 = vmatprep.subr.mxu0 %v8168_v28  ;;  %2766 = vmatprep.subr.mxu1 %v8230_v8 }
 0x783   :  { %2686 = vmatpush1.msra.mxu0 %v8174_v41  ;;  %2767 = vmatpush1.msra.mxu1 %v8236_v61 }
 0x784   :  { %2687 = vmatprep.subr.mxu0 %v8180_v43  ;;  %2768 = vmatprep.subr.mxu1 %v8242_v62 }
 0x785   :  { %2688 = vmatpush1.msra.mxu0 %v8186_v45  ;;  %2769 = vmatpush1.msra.mxu1 %v8248_v7 }
 0x786   :  { %2689 = vmatprep.subr.mxu0 %v8192_v47  ;;  %2770 = vmatprep.subr.mxu1 %v8254_v58 }
 0x787   :  { %2690 = vmatpush1.msra.mxu0 %v8198_v50  ;;  %2771 = vmatpush1.msra.mxu1 %v8260_v0 }
 0x788   :  { %2691 = vmatprep.subr.mxu0 %v8204_v52  ;;  %2772 = vmatprep.subr.mxu1 %v8266_v11 }
 0x789   :  { %2692 = vmatpush1.msra.mxu0 %v8210_v54  ;;  %2773 = vmatpush1.msra.mxu1 %v8272_v10 }
 0x78a   :  { %2693 = vmatprep.subr.mxu0 %v8216_v22  ;;  %2774 = vmatprep.subr.mxu1 %v8278_v2 }
 0x78b   :  { %2694 = vmatpush1.msra.mxu0 %v8222_v56  ;;  %2775 = vmatpush1.msra.mxu1 %v8284_v15 }
 0x78c   :  { %2695 = vmatprep.subr.mxu0 %v8228_v6  ;;  %2776 = vmatprep.subr.mxu1 %v8290_v3 }
 0x78d   :  { %2696 = vmatpush1.msra.mxu0 %v8234_v49  ;;  %2777 = vmatpush1.msra.mxu1 %v8296_v17 }
 0x78e   :  { %2697 = vmatprep.subr.mxu0 %v8240_v31  ;;  %2778 = vmatprep.subr.mxu1 %v8302_v19  ;;  %v10666_v19 = vld [vmem:[#allocation67_spill] sm:$0xff] }
 0x78f   :  { %2698 = vmatpush1.msra.mxu0 %v8246_v40  ;;  %2779 = vmatpush1.msra.mxu1 %v8308_v21 }
 0x790   :  { %2699 = vmatprep.subr.mxu0 %v8252_v59  ;;  %2780 = vmatprep.subr.mxu1 %v8314_v26 }
 0x791   :  { %2700 = vmatpush1.msra.mxu0 %v8258_v60  ;;  %2781 = vmatpush1.msra.mxu1 %v8320_v29  ;;  %v8340_v29 = vld [vmem:[#allocation9] sm:$0xff] }
 0x792   :  { %2701 = vmatprep.subr.mxu0 %v8264_v12  ;;  %2782 = vmatprep.subr.mxu1 %v8326_v32  ;;  %10662 = vst [vmem:[#allocation26_spill] sm:$0xff] %v8340_v29 }
 0x793   :  { %2702 = vmatpush1.msra.mxu0 %v8270_v4  ;;  %2783 = vmatpush1.msra.mxu1 %v8332_v34 }
 0x794   :  { %2703 = vmatprep.subr.mxu0 %v8276_v9  ;;  %2784 = vmatprep.subr.mxu1 %v8338_v55 }
 0x795   :  { %2704 = vmatpush1.msra.mxu0 %v8282_v13 }
 0x796   :  { %2705 = vmatprep.subr.mxu0 %v8288_v5 }
 0x797   :  { %2706 = vmatpush1.msra.mxu0 %v8294_v16 }
 0x798   :  { %2707 = vmatprep.subr.mxu0 %v8300_v18  ;;  %v10667_v18 = vld [vmem:[#allocation65_spill] sm:$0xff] }
 0x799   :  { %2708 = vmatpush1.msra.mxu0 %v8306_v20 }
 0x79a   :  { %2709 = vmatprep.subr.mxu0 %v8312_v24  ;;  %v10665_v24 = vld [vmem:[#allocation66_spill] sm:$0xff] }
 0x79b   :  { %2710 = vmatpush1.msra.mxu0 %v8318_v27 }
 0x79c   :  { %2711 = vmatprep.subr.mxu0 %v8324_v30  ;;  %v8344_v30 = vld [vmem:[#allocation9 + $0x10] sm:$0xff] }
 0x79d   :  { %2712 = vmatpush1.msra.mxu0 %v8330_v33  ;;  %10663 = vst [vmem:[#allocation27_spill] sm:$0xff] %v8344_v30  ;;  %2785 = vmatpush1.msra.mxu1 %v8344_v30  ;;  %v10664_v33 = vld [vmem:[#allocation64_spill] sm:$0xff] }
 0x79e   :  { %2713 = vmatprep.subr.mxu0 %v8336_v35  ;;  %2989 = vmatprep.subr.mxu1 %v8158_v36 }
 0x79f   :  { %2714 = vmatpush1.msra.mxu0 %v8340_v29 }
 0x7a0   :  { %2918 = vmatprep.subr.mxu0 %v8156_v63 }
 0x807   :  { %v2194_v34 = vpop.f32.mrf.mxu0  ;;  %v2265_v35 = vpop.f32.mrf.mxu1 }
 0x808   :  { %v2270_v32 = vadd.f32 %v2194_v34, %v10664_v33  ;;  %v2272_v30 = vadd.f32 %v2265_v35, %v10667_v18  ;;  %v10674_v35 = vld [vmem:[#allocation49_spill] sm:$0xff] }
 0x809   :  { %v2196_v27 = vpop.f32.mrf.mxu0  ;;  %v2267_v20 = vpop.f32.mrf.mxu1 }
 0x80a   :  { %v6385_v26 = vmul.f32 -1.442695, %v2270_v32  ;;  %v2271_v21 = vadd.f32 %v2196_v27, %v10665_v24  ;;  %v2273_v29 = vadd.f32 %v2267_v20, %v10666_v19 }
 0x80c   :  { %6610 = vpow2.f32 %v6385_v26  ;;  %v6386_v55 = vmul.f32 -1.442695, %v2271_v21  ;;  %v6387_v17 = vmul.f32 -1.442695, %v2273_v29  ;;  %v10672_v29 = vld [vmem:[#allocation50_spill] sm:$0xff] }
 0x80e   :  { %6612 = vpow2.f32 %v6386_v55 }
 0x80f   :  { %6614 = vtanh.f32 %v2272_v30  ;;  %v10673_v30 = vld [vmem:[#allocation51_spill] sm:$0xff] }
 0x810   :  { %6616 = vpow2.f32 %v6387_v17  ;;  %v10671_v17 = vld [vmem:[#allocation48_spill] sm:$0xff] }
 0x819   :  { %v6611_v63 = vpop.eup %6610 }
 0x81a   :  { %v2277_v16 = vadd.f32 1.0, %v6611_v63 }
 0x81b   :  { %v6613_v36 = vpop.eup %6612 }
 0x81c   :  { %6618 = vrcp.f32 %v2277_v16  ;;  %v2283_v33 = vadd.f32 1.0, %v6613_v36  ;;  %v6615_v32 = vpop.eup %6614  ;;  %v10669_v36 = vld [vmem:[#allocation47_spill] sm:$0xff]  ;;  %v10670_v16 = vld [vmem:[#allocation45_spill] sm:$0xff] }
 0x81d   :  { %v6617_v24 = vpop.eup %6616 }
 0x81e   :  { %6620 = vrcp.f32 %v2283_v33  ;;  %v2290_v34 = vadd.f32 1.0, %v6617_v24  ;;  %v10675_v33 = vld [vmem:[#allocation21_spill] sm:$0xff]  ;;  %v10677_v24 = vld [vmem:[#allocation52_spill] sm:$0xff] }
 0x820   :  { %6622 = vrcp.f32 %v2290_v34  ;;  %v10681_v34 = vld [vmem:[#allocation23_spill] sm:$0xff] }
 0x829   :  { %v6619_v26 = vpop.eup %6618 }
 0x82a   :  { %v2294_v27 = vmul.f32 %v6619_v26, %v6615_v32  ;;  %v10676_v32 = vld [vmem:[#allocation22_spill] sm:$0xff] }
 0x82b   :  { %v6621_v21 = vpop.eup %6620  ;;  %v10678_v26 = vld [vmem:[#allocation54_spill] sm:$0xff] }
 0x82c   :  { %v2293_v55 = vmul.f32 %v6621_v21, %v8119_v25  ;;  %v10668_v25 = vld [vmem:[#allocation46_spill] sm:$0xff]  ;;  %v10680_v21 = vld [vmem:[#allocation53_spill] sm:$0xff] }
 0x82d   :  { %v6623_v18 = vpop.eup %6622 }
 0x82e   :  { %v2295_v19 = vadd.f32 %v2294_v27, %v2293_v55  ;;  %v10679_v27 = vld [vmem:[#allocation55_spill] sm:$0xff]  ;;  %v10682_v55 = vld [vmem:[#allocation24_spill] sm:$0xff] }
 0x830   :  { %6624 = vtanh.f32 %v2295_v19  ;;  %v10683_v19 = vld [vmem:[#allocation25_spill] sm:$0xff] }
 0x83d   :  { %v6625_v20 = vpop.eup %6624 }
 0x83e   :  { %v2297_v63 = vmul.f32 %v6625_v20, %v6623_v18  ;;  %v10684_v18 = vld [vmem:[#allocation26_spill] sm:$0xff]  ;;  %v10685_v20 = vld [vmem:[#allocation27_spill] sm:$0xff] }
 0x840   :  { %2500 = vmatmul.mubr.f32.gmra.mxu0 %v2297_v63  ;;  %2613 = vmatmul.mubr.f32.gmra.mxu1 %v2297_v63  ;;  %v10686_v63 = vld [vmem:[#allocation43_spill] sm:$0xff] }
 0x841   :  { %2747 = vmatprep.mubr.f32.mxu0 %v10629_v23  ;;  %2818 = vmatprep.mubr.f32.mxu1 %v10629_v23 }
 0x844   :  { %2748 = vmatmul.mubr.f32.vlgmr.msra.gmra.mxu0 %v10629_v23  ;;  %2819 = vmatmul.mubr.f32.vlgmr.msra.gmra.mxu1 %v10629_v23 }
 0x845   :  { %2919 = vmatpush1.msra.mxu0 %v8162_v14  ;;  %2990 = vmatpush1.msra.mxu1 %v8164_v38 }
 0x846   :  { %2920 = vmatprep.subr.mxu0 %v8168_v28  ;;  %2991 = vmatprep.subr.mxu1 %v8170_v39 }
 0x847   :  { %2921 = vmatpush1.msra.mxu0 %v8174_v41  ;;  %2992 = vmatpush1.msra.mxu1 %v8176_v42 }
 0x848   :  { %2922 = vmatprep.subr.mxu0 %v8180_v43  ;;  %2993 = vmatprep.subr.mxu1 %v8182_v44 }
 0x849   :  { %2923 = vmatpush1.msra.mxu0 %v8186_v45  ;;  %2994 = vmatpush1.msra.mxu1 %v8188_v46 }
 0x84a   :  { %2924 = vmatprep.subr.mxu0 %v8192_v47  ;;  %2995 = vmatprep.subr.mxu1 %v8194_v48 }
 0x84b   :  { %2925 = vmatpush1.msra.mxu0 %v8198_v50  ;;  %2996 = vmatpush1.msra.mxu1 %v8200_v51 }
 0x84c   :  { %2926 = vmatprep.subr.mxu0 %v8204_v52  ;;  %2997 = vmatprep.subr.mxu1 %v8206_v53 }
 0x84d   :  { %2927 = vmatpush1.msra.mxu0 %v8210_v54  ;;  %2998 = vmatpush1.msra.mxu1 %v8212_v57 }
 0x84e   :  { %2928 = vmatprep.subr.mxu0 %v8216_v22  ;;  %2999 = vmatprep.subr.mxu1 %v8218_v37 }
 0x84f   :  { %2929 = vmatpush1.msra.mxu0 %v8222_v56  ;;  %3000 = vmatpush1.msra.mxu1 %v8224_v1 }
 0x850   :  { %2930 = vmatprep.subr.mxu0 %v8228_v6  ;;  %3001 = vmatprep.subr.mxu1 %v8230_v8 }
 0x851   :  { %2931 = vmatpush1.msra.mxu0 %v8234_v49  ;;  %3002 = vmatpush1.msra.mxu1 %v8236_v61 }
 0x852   :  { %2932 = vmatprep.subr.mxu0 %v8240_v31  ;;  %3003 = vmatprep.subr.mxu1 %v8242_v62 }
 0x853   :  { %2933 = vmatpush1.msra.mxu0 %v8246_v40  ;;  %3004 = vmatpush1.msra.mxu1 %v8248_v7 }
 0x854   :  { %2934 = vmatprep.subr.mxu0 %v8252_v59  ;;  %3005 = vmatprep.subr.mxu1 %v8254_v58 }
 0x855   :  { %2935 = vmatpush1.msra.mxu0 %v8258_v60  ;;  %3006 = vmatpush1.msra.mxu1 %v8260_v0 }
 0x856   :  { %2936 = vmatprep.subr.mxu0 %v8264_v12  ;;  %3007 = vmatprep.subr.mxu1 %v8266_v11 }
 0x857   :  { %2937 = vmatpush1.msra.mxu0 %v8270_v4  ;;  %3008 = vmatpush1.msra.mxu1 %v8272_v10 }
 0x858   :  { %2938 = vmatprep.subr.mxu0 %v8276_v9  ;;  %3009 = vmatprep.subr.mxu1 %v8278_v2 }
 0x859   :  { %2939 = vmatpush1.msra.mxu0 %v8282_v13  ;;  %3010 = vmatpush1.msra.mxu1 %v8284_v15 }
 0x85a   :  { %2940 = vmatprep.subr.mxu0 %v8288_v5  ;;  %3011 = vmatprep.subr.mxu1 %v8290_v3 }
 0x85b   :  { %2941 = vmatpush1.msra.mxu0 %v10668_v25  ;;  %3012 = vmatpush1.msra.mxu1 %v10669_v36 }
 0x85c   :  { %2942 = vmatprep.subr.mxu0 %v10670_v16  ;;  %3013 = vmatprep.subr.mxu1 %v10671_v17 }
 0x85d   :  { %2943 = vmatpush1.msra.mxu0 %v10672_v29  ;;  %3014 = vmatpush1.msra.mxu1 %v10673_v30 }
 0x85e   :  { %2944 = vmatprep.subr.mxu0 %v10674_v35  ;;  %3015 = vmatprep.subr.mxu1 %v10675_v33 }
 0x85f   :  { %2945 = vmatpush1.msra.mxu0 %v10676_v32  ;;  %3016 = vmatpush1.msra.mxu1 %v10677_v24 }
 0x860   :  { %2946 = vmatprep.subr.mxu0 %v10678_v26  ;;  %3017 = vmatprep.subr.mxu1 %v10679_v27  ;;  %v10687_v26 = vld [vmem:[#allocation41_spill] sm:$0xff]  ;;  %v2459_v27 = vpop.f32.mrf.mxu0 }
 0x861   :  { %2947 = vmatpush1.msra.mxu0 %v10680_v21  ;;  %3018 = vmatpush1.msra.mxu1 %v10681_v34  ;;  %v2572_v21 = vpop.f32.mrf.mxu1 }
 0x862   :  { %2948 = vmatprep.subr.mxu0 %v10682_v55  ;;  %3019 = vmatprep.subr.mxu1 %v10683_v19  ;;  %v2461_v24 = vpop.f32.mrf.mxu0 }
 0x863   :  { %2949 = vmatpush1.msra.mxu0 %v10684_v18  ;;  %2982 = vmatprep.mubr.f32.mxu0 %v10629_v23  ;;  %v2574_v34 = vpop.f32.mrf.mxu1 }
 0x864   :  { %3020 = vmatpush1.msra.mxu1 %v10685_v20  ;;  %3053 = vmatprep.mubr.f32.mxu1 %v10629_v23  ;;  %v8425_v32 = vpop.f32.mrf.mxu0 }
 0x865   :  { %3153 = vmatprep.subr.mxu0 %v10686_v63  ;;  %3224 = vmatprep.subr.mxu1 %v10687_v26  ;;  %10688 = vst [vmem:[#allocation28_spill] sm:$0xff] %v8425_v32  ;;  %v8427_v55 = vpop.f32.mrf.mxu1 }
 0x866   :  { %10689 = vst [vmem:[#allocation29_spill] sm:$0xff] %v8427_v55  ;;  %v8429_v19 = vpop.f32.mrf.mxu0 }
 0x867   :  { %10690 = vst [vmem:[#allocation30_spill] sm:$0xff] %v8429_v19  ;;  %v8431_v18 = vpop.f32.mrf.mxu1 }
 0x868   :  { %10691 = vst [vmem:[#allocation31_spill] sm:$0xff] %v8431_v18  ;;  %v8433_v33 = vpop.f32.mrf.mxu0 }
 0x869   :  { %10692 = vst [vmem:[#allocation32_spill] sm:$0xff] %v8433_v33  ;;  %v8435_v20 = vpop.f32.mrf.mxu1 }
 0x86a   :  { %10693 = vst [vmem:[#allocation33_spill] sm:$0xff] %v8435_v20  ;;  %v8437_v23 = vpop.f32.mrf.mxu0 }
 0x86b   :  { %10694 = vst [vmem:[#allocation34_spill] sm:$0xff] %v8437_v23  ;;  %v8439_v63 = vpop.f32.mrf.mxu1 }
 0x86c   :  { %10695 = vst [vmem:[#allocation35_spill] sm:$0xff] %v8439_v63  ;;  %v8441_v26 = vpop.f32.mrf.mxu0 }
 0x86d   :  { %10696 = vst [vmem:[#allocation36_spill] sm:$0xff] %v8441_v26  ;;  %v8443_v35 = vpop.f32.mrf.mxu1 }
 0x86e   :  { %10697 = vst [vmem:[#allocation37_spill] sm:$0xff] %v8443_v35  ;;  %v8445_v30 = vpop.f32.mrf.mxu0 }
 0x86f   :  { %10698 = vst [vmem:[#allocation38_spill] sm:$0xff] %v8445_v30  ;;  %v8447_v32 = vpop.f32.mrf.mxu1 }
 0x870   :  { %10699 = vst [vmem:[#allocation39_spill] sm:$0xff] %v8447_v32  ;;  %v8449_v55 = vpop.f32.mrf.mxu0 }
 0x871   :  { %10700 = vst [vmem:[#allocation56_spill] sm:$0xff] %v8449_v55  ;;  %v8451_v19 = vpop.f32.mrf.mxu1 }
 0x872   :  { %10701 = vst [vmem:[#allocation58_spill] sm:$0xff] %v8451_v19  ;;  %v8453_v18 = vpop.f32.mrf.mxu0  ;;  %v2371_v19 = vld [vmem:[%s10152_s6] sm:$0xf] }
 0x873   :  { %10702 = vst [vmem:[#allocation59_spill] sm:$0xff] %v8453_v18  ;;  %v8455_v33 = vpop.f32.mrf.mxu1  ;;  %v10711_v18 = vld [vmem:[#allocation18_spill] sm:$0xff] }
 0x874   :  { %10703 = vst [vmem:[#allocation57_spill] sm:$0xff] %v8455_v33  ;;  %v8457_v20 = vpop.f32.mrf.mxu0  ;;  %v8475_v33 = vrot.slane %v2371_v19, %v10711_v18 }
 0x875   :  { %10704 = vst [vmem:[#allocation60_spill] sm:$0xff] %v8457_v20  ;;  %v8459_v23 = vpop.f32.mrf.mxu1 }
 0x876   :  { %10705 = vst [vmem:[#allocation62_spill] sm:$0xff] %v8459_v23  ;;  %v8461_v63 = vpop.f32.mrf.mxu0  ;;  %10712 = vst [vmem:[#allocation42_spill] sm:$0xff] %v8475_v33 }
 0x877   :  { %10706 = vst [vmem:[#allocation63_spill] sm:$0xff] %v8461_v63  ;;  %v8463_v26 = vpop.f32.mrf.mxu1  ;;  %v10715_v63 = vld [vmem:[#allocation16_spill] sm:$0xff] }
 0x878   :  { %10707 = vst [vmem:[#allocation61_spill] sm:$0xff] %v8463_v26  ;;  %v8465_v35 = vpop.f32.mrf.mxu0  ;;  %v8482_v32 = vrot.slane %v2371_v19, %v10715_v63  ;;  %v10719_v63 = vld [vmem:[#allocation17_spill] sm:$0xff] }
 0x879   :  { %10708 = vst [vmem:[#allocation68_spill] sm:$0xff] %v8465_v35  ;;  %v8467_v30 = vpop.f32.mrf.mxu1  ;;  %v8493_v3 = vrot.slane %v2371_v19, %v10719_v63 }
 0x87a   :  { %10709 = vst [vmem:[#allocation20_spill] sm:$0xff] %v8467_v30  ;;  %v8472_v55 = vpop.f32.mrf.mxu0  ;;  %v2460_v30 = vadd.f32 %v2459_v27, %v8475_v33  ;;  %v2462_v17 = vadd.f32 %v2461_v24, %v8482_v32  ;;  %v10721_v27 = vld [vmem:[#allocation19_spill] sm:$0xff] }
 0x87b   :  { %10710 = vst [vmem:[#allocation40_spill] sm:$0xff] %v8472_v55  ;;  %v8477_v20 = vpop.f32.mrf.mxu1  ;;  %10720 = vst [vmem:[#allocation41_spill] sm:$0xff] %v8493_v3  ;;  %v8497_v33 = vrot.slane %v2371_v19, %v10721_v27 }
 0x87c   :  { %10713 = vst [vmem:[#allocation64_spill] sm:$0xff] %v8477_v20 }
 0x900   :  { %v8479_v23 = vpop.f32.mrf.mxu0  ;;  %v8484_v26 = vpop.f32.mrf.mxu1 }
 0x901   :  { %10714 = vst [vmem:[#allocation66_spill] sm:$0xff] %v8479_v23  ;;  %10716 = vst [vmem:[#allocation67_spill] sm:$0xff] %v8484_v26 }
 0x902   :  { %v8486_v35 = vpop.f32.mrf.mxu0  ;;  %v8490_v55 = vpop.f32.mrf.mxu1 }
 0x903   :  { %10717 = vst [vmem:[#allocation65_spill] sm:$0xff] %v8486_v35  ;;  %10718 = vst [vmem:[#allocation43_spill] sm:$0xff] %v8490_v55  ;;  %v2575_v35 = vadd.f32 %v2574_v34, %v8493_v3  ;;  %v2573_v55 = vadd.f32 %v2572_v21, %v8497_v33 }
 0x904   :  { %v2749_v29 = vpop.f32.mrf.mxu0  ;;  %v2820_v23 = vpop.f32.mrf.mxu1 }
 0x905   :  { %v2825_v18 = vadd.f32 %v2749_v29, %v2460_v30 }
 0x906   :  { %v2751_v16 = vpop.f32.mrf.mxu0  ;;  %v2822_v26 = vpop.f32.mrf.mxu1 }
 0x907   :  { %v6388_v36 = vmul.f32 -1.442695, %v2825_v18  ;;  %v2826_v20 = vadd.f32 %v2751_v16, %v2462_v17  ;;  %v2828_v24 = vadd.f32 %v2822_v26, %v2575_v35  ;;  %v2827_v18 = vadd.f32 %v2820_v23, %v2573_v55 }
 0x909   :  { %6626 = vpow2.f32 %v6388_v36  ;;  %v6389_v25 = vmul.f32 -1.442695, %v2826_v20  ;;  %v6390_v29 = vmul.f32 -1.442695, %v2828_v24  ;;  %v10747_v24 = vld [vmem:[#allocation31_spill] sm:$0xff] }
 0x90b   :  { %6628 = vpow2.f32 %v6389_v25 }
 0x90c   :  { %6630 = vpow2.f32 %v6390_v29 }
 0x916   :  { %v6627_v30 = vpop.eup %6626 }
 0x917   :  { %v2832_v16 = vadd.f32 1.0, %v6627_v30 }
 0x918   :  { %v6629_v36 = vpop.eup %6628 }
 0x919   :  { %6632 = vrcp.f32 %v2832_v16  ;;  %v2838_v17 = vadd.f32 1.0, %v6629_v36  ;;  %v6631_v25 = vpop.eup %6630 }
 0x91a   :  { %6634 = vtanh.f32 %v2827_v18  ;;  %v2845_v3 = vadd.f32 1.0, %v6631_v25  ;;  %v10748_v18 = vld [vmem:[#allocation29_spill] sm:$0xff] }
 0x91b   :  { %6636 = vrcp.f32 %v2838_v17  ;;  %v2579_v16 = vadd.f32 %v10748_v18, %v8497_v33  ;;  %v8609_v18 = vld [vmem:[#allocation9 + $0x1d0] sm:$0xff] }
 0x91c   :  { %6638 = vrcp.f32 %v2845_v3 }
 0x926   :  { %v6633_v20 = vpop.eup %6632 }
 0x927   :  { %v6635_v63 = vpop.eup %6634 }
 0x928   :  { %v6637_v34 = vpop.eup %6636  ;;  %v2849_v27 = vmul.f32 %v6635_v63, %v6633_v20 }
 0x929   :  { %v2848_v19 = vmul.f32 0.0, %v6637_v34  ;;  %v6639_v23 = vpop.eup %6638 }
 0x92b   :  { %v8500_v35 = vadd.f32 %v2849_v27, %v2848_v19  ;;  %v10746_v27 = vld [vmem:[#allocation41_spill] sm:$0xff] }
 0x92c   :  { %v2581_v29 = vadd.f32 %v10747_v24, %v10746_v27  ;;  %v8601_v24 = vld [vmem:[#allocation9 + $0x1c8] sm:$0xff] }
 0x92d   :  { %6640 = vtanh.f32 %v8500_v35 }
 0x93a   :  { %v6641_v21 = vpop.eup %6640 }
 0x93b   :  { %v8503_v55 = vmul.f32 %v6641_v21, %v6639_v23 }
 0x93d   :  { %10722 = vst [vmem:[#allocation69_spill] sm:$0xff] %v8503_v55  ;;  %2983 = vmatmul.mubr.f32.vlgmr.msra.gmra.mxu0 %v8503_v55  ;;  %3054 = vmatmul.mubr.f32.vlgmr.msra.gmra.mxu1 %v8503_v55  ;;  %v8663_v55 = vld [vmem:[#allocation9 + $0x138] sm:$0xff] }
 0x93e   :  { %3154 = vmatpush1.msra.mxu0 %v8162_v14  ;;  %3225 = vmatpush1.msra.mxu1 %v8164_v38  ;;  %v10723_v14 = vld [vmem:[#allocation44_spill] sm:$0xff]  ;;  %v10724_v38 = vld [vmem:[#allocation46_spill] sm:$0xff] }
 0x93f   :  { %3155 = vmatprep.subr.mxu0 %v8168_v28  ;;  %3226 = vmatprep.subr.mxu1 %v8170_v39  ;;  %v10725_v28 = vld [vmem:[#allocation47_spill] sm:$0xff]  ;;  %v10726_v39 = vld [vmem:[#allocation45_spill] sm:$0xff] }
 0x940   :  { %3156 = vmatpush1.msra.mxu0 %v8174_v41  ;;  %3227 = vmatpush1.msra.mxu1 %v8176_v42  ;;  %v10727_v41 = vld [vmem:[#allocation48_spill] sm:$0xff]  ;;  %v10728_v42 = vld [vmem:[#allocation50_spill] sm:$0xff] }
 0x941   :  { %3157 = vmatprep.subr.mxu0 %v8180_v43  ;;  %3228 = vmatprep.subr.mxu1 %v8182_v44  ;;  %v10729_v43 = vld [vmem:[#allocation51_spill] sm:$0xff]  ;;  %v10730_v44 = vld [vmem:[#allocation49_spill] sm:$0xff] }
 0x942   :  { %3158 = vmatpush1.msra.mxu0 %v8186_v45  ;;  %3229 = vmatpush1.msra.mxu1 %v8188_v46  ;;  %v10731_v45 = vld [vmem:[#allocation21_spill] sm:$0xff]  ;;  %v10732_v46 = vld [vmem:[#allocation22_spill] sm:$0xff] }
 0x943   :  { %3159 = vmatprep.subr.mxu0 %v8192_v47  ;;  %3230 = vmatprep.subr.mxu1 %v8194_v48  ;;  %v10733_v47 = vld [vmem:[#allocation52_spill] sm:$0xff]  ;;  %v10734_v48 = vld [vmem:[#allocation54_spill] sm:$0xff] }
 0x944   :  { %3160 = vmatpush1.msra.mxu0 %v8198_v50  ;;  %3231 = vmatpush1.msra.mxu1 %v8200_v51  ;;  %v10735_v50 = vld [vmem:[#allocation55_spill] sm:$0xff]  ;;  %v10736_v51 = vld [vmem:[#allocation53_spill] sm:$0xff] }
 0x945   :  { %3161 = vmatprep.subr.mxu0 %v8204_v52  ;;  %3232 = vmatprep.subr.mxu1 %v8206_v53  ;;  %v10737_v52 = vld [vmem:[#allocation23_spill] sm:$0xff]  ;;  %v10738_v53 = vld [vmem:[#allocation24_spill] sm:$0xff] }
 0x946   :  { %3162 = vmatpush1.msra.mxu0 %v8210_v54  ;;  %3233 = vmatpush1.msra.mxu1 %v8212_v57  ;;  %v10739_v54 = vld [vmem:[#allocation25_spill] sm:$0xff]  ;;  %v10740_v57 = vld [vmem:[#allocation26_spill] sm:$0xff] }
 0x947   :  { %3163 = vmatprep.subr.mxu0 %v8216_v22  ;;  %3234 = vmatprep.subr.mxu1 %v8218_v37  ;;  %v10741_v22 = vmov 0.0   ;;  %v10742_v37 = vld [vmem:[#allocation27_spill] sm:$0xff] }
 0x948   :  { %3164 = vmatpush1.msra.mxu0 %v8222_v56  ;;  %3235 = vmatpush1.msra.mxu1 %v8224_v1  ;;  %v10743_v56 = vld [vmem:[#allocation42_spill] sm:$0xff]  ;;  %v10744_v1 = vld [vmem:[#allocation28_spill] sm:$0xff] }
 0x949   :  { %3165 = vmatprep.subr.mxu0 %v8228_v6  ;;  %3236 = vmatprep.subr.mxu1 %v8230_v8  ;;  %v2466_v6 = vadd.f32 %v10744_v1, %v10743_v56 }
 0x94a   :  { %3166 = vmatpush1.msra.mxu0 %v8234_v49  ;;  %3237 = vmatpush1.msra.mxu1 %v8236_v61  ;;  %v10745_v49 = vld [vmem:[#allocation30_spill] sm:$0xff] }
 0x94b   :  { %3167 = vmatprep.subr.mxu0 %v8240_v31  ;;  %3238 = vmatprep.subr.mxu1 %v8242_v62  ;;  %v2468_v61 = vadd.f32 %v10745_v49, %v8482_v32 }
 0x94c   :  { %3168 = vmatpush1.msra.mxu0 %v8246_v40  ;;  %3239 = vmatpush1.msra.mxu1 %v8248_v7 }
 0x94d   :  { %3169 = vmatprep.subr.mxu0 %v8252_v59  ;;  %3240 = vmatprep.subr.mxu1 %v8254_v58 }
 0x94e   :  { %3170 = vmatpush1.msra.mxu0 %v8258_v60  ;;  %3241 = vmatpush1.msra.mxu1 %v8260_v0 }
 0x94f   :  { %3171 = vmatprep.subr.mxu0 %v8264_v12  ;;  %3242 = vmatprep.subr.mxu1 %v8266_v11 }
 0x950   :  { %3172 = vmatpush1.msra.mxu0 %v8270_v4  ;;  %3243 = vmatpush1.msra.mxu1 %v8272_v10 }
 0x951   :  { %3173 = vmatprep.subr.mxu0 %v8276_v9  ;;  %3244 = vmatprep.subr.mxu1 %v8278_v2 }
 0x952   :  { %3174 = vmatpush1.msra.mxu0 %v8282_v13  ;;  %3245 = vmatpush1.msra.mxu1 %v8284_v15 }
 0x953   :  { %3175 = vmatprep.subr.mxu0 %v8288_v5  ;;  %3246 = vmatprep.subr.mxu1 %v10723_v14 }
 0x954   :  { %3176 = vmatpush1.msra.mxu0 %v10724_v38  ;;  %3247 = vmatpush1.msra.mxu1 %v10725_v28 }
 0x955   :  { %3177 = vmatprep.subr.mxu0 %v10726_v39  ;;  %3248 = vmatprep.subr.mxu1 %v10727_v41 }
 0x956   :  { %3178 = vmatpush1.msra.mxu0 %v10728_v42  ;;  %3249 = vmatpush1.msra.mxu1 %v10729_v43 }
 0x957   :  { %3179 = vmatprep.subr.mxu0 %v10730_v44  ;;  %3250 = vmatprep.subr.mxu1 %v10731_v45 }
 0x958   :  { %3180 = vmatpush1.msra.mxu0 %v10732_v46  ;;  %3251 = vmatpush1.msra.mxu1 %v10733_v47 }
 0x959   :  { %3181 = vmatprep.subr.mxu0 %v10734_v48  ;;  %3252 = vmatprep.subr.mxu1 %v10735_v50 }
 0x95a   :  { %3182 = vmatpush1.msra.mxu0 %v10736_v51  ;;  %3253 = vmatpush1.msra.mxu1 %v10737_v52 }
 0x95b   :  { %3183 = vmatprep.subr.mxu0 %v10738_v53  ;;  %3254 = vmatprep.subr.mxu1 %v10739_v54 }
 0x95c   :  { %3184 = vmatpush1.msra.mxu0 %v10740_v57  ;;  %3217 = vmatprep.mubr.f32.mxu0 %v10741_v22 }
 0x95d   :  { %3255 = vmatpush1.msra.mxu1 %v10742_v37  ;;  %3288 = vmatprep.mubr.f32.mxu1 %v10741_v22 }
 0x9fd   :  { %v2984_v8 = vpop.f32.mrf.mxu0  ;;  %v3055_v3 = vpop.f32.mrf.mxu1 }
 0x9fe   :  { %v3060_v31 = vadd.f32 %v2984_v8, %v2466_v6  ;;  %v3062_v36 = vadd.f32 %v3055_v3, %v2579_v16  ;;  %v8589_v3 = vld [vmem:[#allocation9 + $0x1e8] sm:$0xff] }
 0x9ff   :  { %v2986_v62 = vpop.f32.mrf.mxu0  ;;  %v3057_v26 = vpop.f32.mrf.mxu1  ;;  %10750 = vst [vmem:[#allocation46_spill] sm:$0xff] %v8589_v3  ;;  %3388 = vmatprep.subr.mxu0 %v8589_v3  ;;  %v8613_v16 = vld [vmem:[#allocation9 + $0x1a8] sm:$0xff] }
 0xa00   :  { %v6391_v40 = vmul.f32 -1.442695, %v3060_v31  ;;  %v3061_v7 = vadd.f32 %v2986_v62, %v2468_v61  ;;  %v3063_v30 = vadd.f32 %v3057_v26, %v2581_v29  ;;  %v8597_v26 = vld [vmem:[#allocation9 + $0x1f0] sm:$0xff]  ;;  %v8603_v29 = vld [vmem:[#allocation9 + $0x1d8] sm:$0xff] }
 0xa02   :  { %6642 = vpow2.f32 %v6391_v40  ;;  %v6392_v63 = vmul.f32 -1.442695, %v3061_v7  ;;  %v6393_v17 = vmul.f32 -1.442695, %v3063_v30  ;;  %v8607_v30 = vld [vmem:[#allocation9 + $0x1c0] sm:$0xff] }
 0xa04   :  { %6644 = vpow2.f32 %v6392_v63  ;;  %v8595_v63 = vld [vmem:[#allocation9 + $0x1e0] sm:$0xff] }
 0xa05   :  { %6646 = vtanh.f32 %v3062_v36  ;;  %v8615_v36 = vld [vmem:[#allocation9 + $0x1b8] sm:$0xff] }
 0xa06   :  { %6648 = vpow2.f32 %v6393_v17  ;;  %v8619_v17 = vld [vmem:[#allocation9 + $0x1a0] sm:$0xff] }
 0xa0f   :  { %v6643_v25 = vpop.eup %6642 }
 0xa10   :  { %v3067_v20 = vadd.f32 1.0, %v6643_v25  ;;  %v8621_v25 = vld [vmem:[#allocation9 + $0x1b0] sm:$0xff] }
 0xa11   :  { %v6645_v34 = vpop.eup %6644 }
 0xa12   :  { %6650 = vrcp.f32 %v3067_v20  ;;  %v3073_v19 = vadd.f32 1.0, %v6645_v34  ;;  %v6647_v23 = vpop.eup %6646  ;;  %v8625_v20 = vld [vmem:[#allocation9 + $0x188] sm:$0xff]  ;;  %v8627_v34 = vld [vmem:[#allocation9 + $0x198] sm:$0xff] }
 0xa13   :  { %v6649_v21 = vpop.eup %6648 }
 0xa14   :  { %6652 = vrcp.f32 %v3073_v19  ;;  %v3080_v49 = vadd.f32 1.0, %v6649_v21  ;;  %v8631_v19 = vld [vmem:[#allocation9 + $0x180] sm:$0xff]  ;;  %v8637_v21 = vld [vmem:[#allocation9 + $0x168] sm:$0xff] }
 0xa16   :  { %6654 = vrcp.f32 %v3080_v49  ;;  %v8649_v49 = vld [vmem:[#allocation9 + $0x148] sm:$0xff] }
 0xa17   :  { %10753 = vst [vmem:[#allocation48_spill] sm:$0xff] %v8649_v49 }
 0xa1f   :  { %v6651_v1 = vpop.eup %6650 }
 0xa20   :  { %v3084_v6 = vmul.f32 %v6651_v1, %v6647_v23  ;;  %v8633_v23 = vld [vmem:[#allocation9 + $0x190] sm:$0xff]  ;;  %v8639_v1 = vld [vmem:[#allocation9 + $0x178] sm:$0xff] }
 0xa21   :  { %v6653_v8 = vpop.eup %6652 }
 0xa22   :  { %v3083_v61 = vmul.f32 %v6653_v8, %v8500_v35  ;;  %v8591_v35 = vld [vmem:[#allocation9 + $0x1f8] sm:$0xff]  ;;  %v8645_v8 = vld [vmem:[#allocation9 + $0x170] sm:$0xff] }
 0xa23   :  { %v6655_v62 = vpop.eup %6654  ;;  %10751 = vst [vmem:[#allocation47_spill] sm:$0xff] %v8591_v35  ;;  %3459 = vmatprep.subr.mxu1 %v8591_v35  ;;  %10752 = vst [vmem:[#allocation45_spill] sm:$0xff] %v8645_v8 }
 0xa24   :  { %v8580_v31 = vadd.f32 %v3084_v6, %v3083_v61  ;;  %v8643_v6 = vld [vmem:[#allocation9 + $0x160] sm:$0xff]  ;;  %v8651_v61 = vld [vmem:[#allocation9 + $0x158] sm:$0xff] }
 0xa25   :  { %10754 = vst [vmem:[#allocation50_spill] sm:$0xff] %v8651_v61 }
 0xa26   :  { %6656 = vtanh.f32 %v8580_v31 }
 0xa33   :  { %v6657_v40 = vpop.eup %6656 }
 0xa34   :  { %v8583_v7 = vmul.f32 %v6657_v40, %v6655_v62  ;;  %v8655_v62 = vld [vmem:[#allocation9 + $0x140] sm:$0xff]  ;;  %v8657_v40 = vld [vmem:[#allocation9 + $0x150] sm:$0xff] }
 0xa35   :  { %10755 = vst [vmem:[#allocation51_spill] sm:$0xff] %v8655_v62  ;;  %10756 = vst [vmem:[#allocation49_spill] sm:$0xff] %v8657_v40 }
 0xa36   :  { %10749 = vst [vmem:[#allocation44_spill] sm:$0xff] %v8583_v7  ;;  %3218 = vmatmul.mubr.f32.vlgmr.msra.gmra.mxu0 %v8583_v7  ;;  %3289 = vmatmul.mubr.f32.vlgmr.msra.gmra.mxu1 %v8583_v7  ;;  %v8661_v7 = vld [vmem:[#allocation9 + $0x128] sm:$0xff] }
 0xa37   :  { %3452 = vmatprep.mubr.f32.mxu0 %v10741_v22  ;;  %3523 = vmatprep.mubr.f32.mxu1 %v10741_v22  ;;  %v8667_v22 = vld [vmem:[#allocation9 + $0x120] sm:$0xff] }
 0xa38   :  { %3389 = vmatpush1.msra.mxu0 %v8595_v63  ;;  %3460 = vmatpush1.msra.mxu1 %v8597_v26 }
 0xa39   :  { %3390 = vmatprep.subr.mxu0 %v8601_v24  ;;  %3461 = vmatprep.subr.mxu1 %v8603_v29 }
 0xa3a   :  { %3391 = vmatpush1.msra.mxu0 %v8607_v30  ;;  %3462 = vmatpush1.msra.mxu1 %v8609_v18 }
 0xa3b   :  { %3392 = vmatprep.subr.mxu0 %v8613_v16  ;;  %3463 = vmatprep.subr.mxu1 %v8615_v36 }
 0xa3c   :  { %3393 = vmatpush1.msra.mxu0 %v8619_v17  ;;  %3464 = vmatpush1.msra.mxu1 %v8621_v25 }
 0xa3d   :  { %3394 = vmatprep.subr.mxu0 %v8625_v20  ;;  %3465 = vmatprep.subr.mxu1 %v8627_v34 }
 0xa3e   :  { %3395 = vmatpush1.msra.mxu0 %v8631_v19  ;;  %3466 = vmatpush1.msra.mxu1 %v8633_v23 }
 0xa3f   :  { %3396 = vmatprep.subr.mxu0 %v8637_v21  ;;  %3467 = vmatprep.subr.mxu1 %v8639_v1 }
 0xa40   :  { %3397 = vmatpush1.msra.mxu0 %v8643_v6  ;;  %3468 = vmatpush1.msra.mxu1 %v8645_v8  ;;  %v8679_v8 = vld [vmem:[#allocation9 + $0x110] sm:$0xff] }
 0xa41   :  { %3398 = vmatprep.subr.mxu0 %v8649_v49  ;;  %3469 = vmatprep.subr.mxu1 %v8651_v61  ;;  %v8669_v49 = vld [vmem:[#allocation9 + $0x130] sm:$0xff]  ;;  %v8671_v61 = vld [vmem:[#allocation9 + $0x108] sm:$0xff] }
 0xa42   :  { %3399 = vmatpush1.msra.mxu0 %v8655_v62  ;;  %3470 = vmatpush1.msra.mxu1 %v8657_v40  ;;  %v8675_v62 = vld [vmem:[#allocation9 + $0x118] sm:$0xff]  ;;  %v8677_v40 = vld [vmem:[#allocation9 + $0x100] sm:$0xff] }
 0xa43   :  { %3400 = vmatprep.subr.mxu0 %v8661_v7  ;;  %3471 = vmatprep.subr.mxu1 %v8663_v55 }
 0xa44   :  { %3401 = vmatpush1.msra.mxu0 %v8667_v22  ;;  %3472 = vmatpush1.msra.mxu1 %v8669_v49 }
 0xa45   :  { %3402 = vmatprep.subr.mxu0 %v8671_v61  ;;  %3473 = vmatprep.subr.mxu1 %v8675_v62 }
 0xa46   :  { %3403 = vmatpush1.msra.mxu0 %v8677_v40  ;;  %3474 = vmatpush1.msra.mxu1 %v8679_v8 }
 0xa47   :  { %3404 = vmatprep.subr.mxu0 %v8252_v59  ;;  %3475 = vmatprep.subr.mxu1 %v8254_v58  ;;  %v10757_v59 = vld [vmem:[#allocation32_spill] sm:$0xff] }
 0xa48   :  { %3405 = vmatpush1.msra.mxu0 %v8258_v60  ;;  %3476 = vmatpush1.msra.mxu1 %v8260_v0  ;;  %v2472_v58 = vadd.f32 %v10757_v59, %v10743_v56  ;;  %v10758_v0 = vld [vmem:[#allocation34_spill] sm:$0xff] }
 0xa49   :  { %3406 = vmatprep.subr.mxu0 %v8264_v12  ;;  %3477 = vmatprep.subr.mxu1 %v8266_v11  ;;  %v2474_v12 = vadd.f32 %v10758_v0, %v8482_v32  ;;  %v10764_v0 = vld [vmem:[#allocation50_spill] sm:$0xff] }
 0xa4a   :  { %3407 = vmatpush1.msra.mxu0 %v8270_v4  ;;  %3478 = vmatpush1.msra.mxu1 %v8272_v10 }
 0xa4b   :  { %3408 = vmatprep.subr.mxu0 %v8276_v9  ;;  %3479 = vmatprep.subr.mxu1 %v8278_v2 }
 0xa4c   :  { %3409 = vmatpush1.msra.mxu0 %v8282_v13  ;;  %3480 = vmatpush1.msra.mxu1 %v8284_v15 }
 0xa4d   :  { %3410 = vmatprep.subr.mxu0 %v8288_v5  ;;  %3481 = vmatprep.subr.mxu1 %v10723_v14  ;;  %v10759_v5 = vld [vmem:[#allocation35_spill] sm:$0xff] }
 0xa4e   :  { %3411 = vmatpush1.msra.mxu0 %v10724_v38  ;;  %3482 = vmatpush1.msra.mxu1 %v10725_v28  ;;  %v2587_v14 = vadd.f32 %v10759_v5, %v10746_v27  ;;  %v10760_v28 = vld [vmem:[#allocation33_spill] sm:$0xff]  ;;  %v8779_v5 = vld [vmem:[#allocation9 + $0xd8] sm:$0xff] }
 0xa4f   :  { %3412 = vmatprep.subr.mxu0 %v10726_v39  ;;  %3483 = vmatprep.subr.mxu1 %v10727_v41  ;;  %v2585_v39 = vadd.f32 %v10760_v28, %v8497_v33  ;;  %v8787_v28 = vld [vmem:[#allocation9 + $0xa8] sm:$0xff] }
 0xa50   :  { %3413 = vmatpush1.msra.mxu0 %v10728_v42  ;;  %3484 = vmatpush1.msra.mxu1 %v10729_v43 }
 0xa51   :  { %3414 = vmatprep.subr.mxu0 %v10730_v44  ;;  %3485 = vmatprep.subr.mxu1 %v10731_v45 }
 0xa52   :  { %3415 = vmatpush1.msra.mxu0 %v10732_v46  ;;  %3486 = vmatpush1.msra.mxu1 %v10733_v47 }
 0xa53   :  { %3416 = vmatprep.subr.mxu0 %v10734_v48  ;;  %3487 = vmatprep.subr.mxu1 %v10735_v50 }
 0xa54   :  { %3417 = vmatpush1.msra.mxu0 %v10736_v51  ;;  %3488 = vmatpush1.msra.mxu1 %v10737_v52 }
 0xa55   :  { %3418 = vmatprep.subr.mxu0 %v10738_v53  ;;  %3489 = vmatprep.subr.mxu1 %v10739_v54 }
 0xa56   :  { %3419 = vmatpush1.msra.mxu0 %v10740_v57  ;;  %3490 = vmatpush1.msra.mxu1 %v10742_v37 }
 0xa57   :  { %3623 = vmatprep.subr.mxu0 %v8589_v3  ;;  %3694 = vmatprep.subr.mxu1 %v8591_v35 }
 0xaf6   :  { %v3219_v60 = vpop.f32.mrf.mxu0  ;;  %v3290_v2 = vpop.f32.mrf.mxu1 }
 0xaf7   :  { %v3295_v11 = vadd.f32 %v3219_v60, %v2472_v58  ;;  %v3297_v41 = vadd.f32 %v3290_v2, %v2585_v39  ;;  %v10763_v60 = vld [vmem:[#allocation48_spill] sm:$0xff]  ;;  %v8791_v39 = vld [vmem:[#allocation9 + $0xb8] sm:$0xff] }
 0xaf8   :  { %v3221_v4 = vpop.f32.mrf.mxu0  ;;  %v3292_v15 = vpop.f32.mrf.mxu1  ;;  %v8771_v2 = vld [vmem:[#allocation9 + $0xe0] sm:$0xff] }
 0xaf9   :  { %v6394_v10 = vmul.f32 -1.442695, %v3295_v11  ;;  %v3296_v9 = vadd.f32 %v3221_v4, %v2474_v12  ;;  %v3298_v38 = vadd.f32 %v3292_v15, %v2587_v14  ;;  %v10765_v12 = vld [vmem:[#allocation51_spill] sm:$0xff]  ;;  %v10766_v11 = vld [vmem:[#allocation49_spill] sm:$0xff]  ;;  %v10767_v4 = vmov 0.0   ;;  %v8783_v14 = vld [vmem:[#allocation9 + $0xc0] sm:$0xff] }
 0xafa   :  { %v8777_v15 = vld [vmem:[#allocation9 + $0xc8] sm:$0xff] }
 0xafb   :  { %6658 = vpow2.f32 %v6394_v10  ;;  %v6395_v13 = vmul.f32 -1.442695, %v3296_v9  ;;  %v6396_v42 = vmul.f32 -1.442695, %v3298_v38  ;;  %v8767_v10 = vld [vmem:[#allocation9 + $0xe8] sm:$0xff]  ;;  %v8769_v9 = vld [vmem:[#allocation9 + $0xf8] sm:$0xff] }
 0xafc   :  { %v8785_v38 = vld [vmem:[#allocation9 + $0xd0] sm:$0xff] }
 0xafd   :  { %6660 = vpow2.f32 %v6395_v13  ;;  %v8775_v13 = vld [vmem:[#allocation9 + $0xf0] sm:$0xff] }
 0xafe   :  { %6662 = vtanh.f32 %v3297_v41  ;;  %v8793_v41 = vld [vmem:[#allocation9 + $0xa0] sm:$0xff] }
 0xaff   :  { %6664 = vpow2.f32 %v6396_v42  ;;  %v8795_v42 = vld [vmem:[#allocation9 + $0xb0] sm:$0xff] }
 0xb00   :  { %10768 = vst [vmem:[#allocation22_spill] sm:$0xff] %v8795_v42 }
 0xb08   :  { %v6659_v43 = vpop.eup %6658 }
 0xb09   :  { %v3302_v44 = vadd.f32 1.0, %v6659_v43  ;;  %v8799_v43 = vld [vmem:[#allocation9 + $0x88] sm:$0xff] }
 0xb0a   :  { %v6661_v45 = vpop.eup %6660  ;;  %10769 = vst [vmem:[#allocation52_spill] sm:$0xff] %v8799_v43 }
 0xb0b   :  { %6666 = vrcp.f32 %v3302_v44  ;;  %v3308_v46 = vadd.f32 1.0, %v6661_v45  ;;  %v6663_v47 = vpop.eup %6662  ;;  %v8801_v44 = vld [vmem:[#allocation9 + $0x98] sm:$0xff]  ;;  %v8805_v45 = vld [vmem:[#allocation9 + $0x80] sm:$0xff] }
 0xb0c   :  { %v6665_v48 = vpop.eup %6664  ;;  %10770 = vst [vmem:[#allocation54_spill] sm:$0xff] %v8801_v44  ;;  %10771 = vst [vmem:[#allocation55_spill] sm:$0xff] %v8805_v45 }
 0xb0d   :  { %6668 = vrcp.f32 %v3308_v46  ;;  %v3315_v53 = vadd.f32 1.0, %v6665_v48  ;;  %v8807_v46 = vld [vmem:[#allocation9 + $0x90] sm:$0xff]  ;;  %v8813_v48 = vld [vmem:[#allocation9 + $0x78] sm:$0xff] }
 0xb0e   :  { %10772 = vst [vmem:[#allocation53_spill] sm:$0xff] %v8807_v46  ;;  %10774 = vst [vmem:[#allocation24_spill] sm:$0xff] %v8813_v48 }
 0xb0f   :  { %6670 = vrcp.f32 %v3315_v53  ;;  %v8825_v53 = vld [vmem:[#allocation9 + $0x58] sm:$0xff] }
 0xb10   :  { %10778 = vst [vmem:[#allocation28_spill] sm:$0xff] %v8825_v53 }
 0xb18   :  { %v6667_v50 = vpop.eup %6666 }
 0xb19   :  { %v3319_v51 = vmul.f32 %v6667_v50, %v6663_v47  ;;  %v8811_v47 = vld [vmem:[#allocation9 + $0x68] sm:$0xff]  ;;  %v8817_v50 = vld [vmem:[#allocation9 + $0x60] sm:$0xff] }
 0xb1a   :  { %v6669_v52 = vpop.eup %6668  ;;  %10773 = vst [vmem:[#allocation23_spill] sm:$0xff] %v8811_v47  ;;  %10775 = vst [vmem:[#allocation25_spill] sm:$0xff] %v8817_v50 }
 0xb1b   :  { %v3318_v54 = vmul.f32 %v6669_v52, %v8580_v31  ;;  %v10762_v31 = vld [vmem:[#allocation45_spill] sm:$0xff] }
 0xb1c   :  { %v6671_v37 = vpop.eup %6670  ;;  %v8823_v52 = vld [vmem:[#allocation9 + $0x48] sm:$0xff] }
 0xb1d   :  { %v8728_v57 = vadd.f32 %v3319_v51, %v3318_v54  ;;  %v8819_v51 = vld [vmem:[#allocation9 + $0x70] sm:$0xff]  ;;  %10777 = vst [vmem:[#allocation27_spill] sm:$0xff] %v8823_v52  ;;  %v8829_v54 = vld [vmem:[#allocation9 + $0x40] sm:$0xff] }
 0xb1e   :  { %10776 = vst [vmem:[#allocation26_spill] sm:$0xff] %v8819_v51  ;;  %10779 = vst [vmem:[#allocation30_spill] sm:$0xff] %v8829_v54 }
 0xb1f   :  { %6672 = vtanh.f32 %v8728_v57 }
 0xb2c   :  { %v6673_v59 = vpop.eup %6672 }
 0xb2d   :  { %v8731_v58 = vmul.f32 %v6673_v59, %v6671_v37  ;;  %v8831_v37 = vld [vmem:[#allocation9 + $0x50] sm:$0xff]  ;;  %v8835_v59 = vld [vmem:[#allocation9 + $0x28] sm:$0xff] }
 0xb2e   :  { %10780 = vst [vmem:[#allocation41_spill] sm:$0xff] %v8831_v37  ;;  %10781 = vst [vmem:[#allocation31_spill] sm:$0xff] %v8835_v59 }
 0xb2f   :  { %10761 = vst [vmem:[#allocation21_spill] sm:$0xff] %v8731_v58  ;;  %3453 = vmatmul.mubr.f32.vlgmr.msra.gmra.mxu0 %v8731_v58  ;;  %3524 = vmatmul.mubr.f32.vlgmr.msra.gmra.mxu1 %v8731_v58  ;;  %v8837_v58 = vld [vmem:[#allocation9 + $0x38] sm:$0xff] }
 0xb30   :  { %3624 = vmatpush1.msra.mxu0 %v8595_v63  ;;  %3695 = vmatpush1.msra.mxu1 %v8597_v26  ;;  %10782 = vst [vmem:[#allocation29_spill] sm:$0xff] %v8837_v58 }
 0xb31   :  { %3625 = vmatprep.subr.mxu0 %v8601_v24  ;;  %3696 = vmatprep.subr.mxu1 %v8603_v29 }
 0xb32   :  { %3626 = vmatpush1.msra.mxu0 %v8607_v30  ;;  %3697 = vmatpush1.msra.mxu1 %v8609_v18 }
 0xb33   :  { %3627 = vmatprep.subr.mxu0 %v8613_v16  ;;  %3698 = vmatprep.subr.mxu1 %v8615_v36 }
 0xb34   :  { %3628 = vmatpush1.msra.mxu0 %v8619_v17  ;;  %3699 = vmatpush1.msra.mxu1 %v8621_v25 }
 0xb35   :  { %3629 = vmatprep.subr.mxu0 %v8625_v20  ;;  %3700 = vmatprep.subr.mxu1 %v8627_v34 }
 0xb36   :  { %3630 = vmatpush1.msra.mxu0 %v8631_v19  ;;  %3701 = vmatpush1.msra.mxu1 %v8633_v23 }
 0xb37   :  { %3631 = vmatprep.subr.mxu0 %v8637_v21  ;;  %3702 = vmatprep.subr.mxu1 %v8639_v1 }
 0xb38   :  { %3632 = vmatpush1.msra.mxu0 %v8643_v6  ;;  %3703 = vmatpush1.msra.mxu1 %v10762_v31 }
 0xb39   :  { %3633 = vmatprep.subr.mxu0 %v10763_v60  ;;  %3704 = vmatprep.subr.mxu1 %v10764_v0 }
 0xb3a   :  { %3634 = vmatpush1.msra.mxu0 %v10765_v12  ;;  %3705 = vmatpush1.msra.mxu1 %v10766_v11 }
 0xb3b   :  { %3635 = vmatprep.subr.mxu0 %v8661_v7  ;;  %3706 = vmatprep.subr.mxu1 %v8663_v55 }
 0xb3c   :  { %3636 = vmatpush1.msra.mxu0 %v8667_v22  ;;  %3707 = vmatpush1.msra.mxu1 %v8669_v49 }
 0xb3d   :  { %3637 = vmatprep.subr.mxu0 %v8671_v61  ;;  %3708 = vmatprep.subr.mxu1 %v8675_v62 }
 0xb3e   :  { %3638 = vmatpush1.msra.mxu0 %v8677_v40  ;;  %3709 = vmatpush1.msra.mxu1 %v8679_v8 }
 0xb3f   :  { %3687 = vmatprep.mubr.f32.mxu0 %v10767_v4  ;;  %3758 = vmatprep.mubr.f32.mxu1 %v10767_v4  ;;  %v8841_v4 = vld [vmem:[#allocation9 + $0x20] sm:$0xff] }
 0xb40   :  { %3639 = vmatprep.subr.mxu0 %v8767_v10  ;;  %3710 = vmatprep.subr.mxu1 %v8769_v9  ;;  %10783 = vst [vmem:[#allocation32_spill] sm:$0xff] %v8841_v4 }
 0xb41   :  { %3640 = vmatpush1.msra.mxu0 %v8771_v2  ;;  %3711 = vmatpush1.msra.mxu1 %v8775_v13 }
 0xb42   :  { %3641 = vmatprep.subr.mxu0 %v8777_v15  ;;  %3712 = vmatprep.subr.mxu1 %v8779_v5 }
 0xb43   :  { %3642 = vmatpush1.msra.mxu0 %v8783_v14  ;;  %3713 = vmatpush1.msra.mxu1 %v8785_v38 }
 0xb44   :  { %3643 = vmatprep.subr.mxu0 %v8787_v28  ;;  %3714 = vmatprep.subr.mxu1 %v8791_v39 }
 0xb45   :  { %3644 = vmatpush1.msra.mxu0 %v8793_v41  ;;  %3715 = vmatpush1.msra.mxu1 %v8795_v42 }
 0xb46   :  { %3645 = vmatprep.subr.mxu0 %v8799_v43  ;;  %3716 = vmatprep.subr.mxu1 %v8801_v44  ;;  %v10792_v44 = vld [vmem:[#allocation37_spill] sm:$0xff] }
 0xb47   :  { %3646 = vmatpush1.msra.mxu0 %v8805_v45  ;;  %3717 = vmatpush1.msra.mxu1 %v8807_v46 }
 0xb48   :  { %3647 = vmatprep.subr.mxu0 %v8811_v47  ;;  %3718 = vmatprep.subr.mxu1 %v8813_v48  ;;  %v8843_v47 = vld [vmem:[#allocation9 + $0x30] sm:$0xff]  ;;  %v8847_v48 = vld [vmem:[#allocation9 + $0x8] sm:$0xff] }
 0xb49   :  { %3648 = vmatpush1.msra.mxu0 %v8817_v50  ;;  %3719 = vmatpush1.msra.mxu1 %v8819_v51  ;;  %10784 = vst [vmem:[#allocation34_spill] sm:$0xff] %v8843_v47  ;;  %10785 = vst [vmem:[#allocation35_spill] sm:$0xff] %v8847_v48  ;;  %v8849_v50 = vld [vmem:[#allocation9 + $0x18] sm:$0xff]  ;;  %v8853_v51 = vld [vmem:[#allocation9] sm:$0xff] }
 0xb4a   :  { %3649 = vmatprep.subr.mxu0 %v8823_v52  ;;  %3720 = vmatprep.subr.mxu1 %v8825_v53  ;;  %10786 = vst [vmem:[#allocation33_spill] sm:$0xff] %v8849_v50  ;;  %10787 = vst [vmem:[#allocation45_spill] sm:$0xff] %v8853_v51  ;;  %v8855_v52 = vld [vmem:[#allocation9 + $0x10] sm:$0xff] }
 0xb4b   :  { %3650 = vmatpush1.msra.mxu0 %v8829_v54  ;;  %3721 = vmatpush1.msra.mxu1 %v8831_v37  ;;  %10788 = vst [vmem:[#allocation48_spill] sm:$0xff] %v8855_v52 }
 0xb4c   :  { %3651 = vmatprep.subr.mxu0 %v8835_v59  ;;  %3722 = vmatprep.subr.mxu1 %v8837_v58  ;;  %v10789_v58 = vld [vmem:[#allocation36_spill] sm:$0xff] }
 0xb4d   :  { %3652 = vmatpush1.msra.mxu0 %v8841_v4  ;;  %3723 = vmatpush1.msra.mxu1 %v8843_v47  ;;  %v2478_v59 = vadd.f32 %v10789_v58, %v10743_v56  ;;  %v10790_v4 = vld [vmem:[#allocation38_spill] sm:$0xff]  ;;  %v2591_v58 = vadd.f32 %v10792_v44, %v8497_v33 }
 0xb4e   :  { %3653 = vmatprep.subr.mxu0 %v8847_v48  ;;  %3724 = vmatprep.subr.mxu1 %v8849_v50  ;;  %v2480_v54 = vadd.f32 %v10790_v4, %v8482_v32  ;;  %v10796_v44 = vld [vmem:[#allocation54_spill] sm:$0xff] }
 0xb4f   :  { %3654 = vmatpush1.msra.mxu0 %v8853_v51  ;;  %3725 = vmatpush1.msra.mxu1 %v8855_v52 }
 0xb50   :  { %3858 = vmatprep.subr.mxu0 %v8589_v3  ;;  %3929 = vmatprep.subr.mxu1 %v8591_v35  ;;  %v10791_v3 = vld [vmem:[#allocation39_spill] sm:$0xff] }
 0xb51   :  { %v2593_v45 = vadd.f32 %v10791_v3, %v10746_v27 }
 0xbef   :  { %v3454_v37 = vpop.f32.mrf.mxu0  ;;  %v3525_v50 = vpop.f32.mrf.mxu1 }
 0xbf0   :  { %v3530_v47 = vadd.f32 %v3454_v37, %v2478_v59  ;;  %v3532_v56 = vadd.f32 %v3525_v50, %v2591_v58  ;;  %v10797_v50 = vld [vmem:[#allocation55_spill] sm:$0xff]  ;;  %v10798_v59 = vld [vmem:[#allocation53_spill] sm:$0xff] }
 0xbf1   :  { %v3456_v53 = vpop.f32.mrf.mxu0  ;;  %v3527_v52 = vpop.f32.mrf.mxu1  ;;  %v10799_v58 = vld [vmem:[#allocation23_spill] sm:$0xff] }
 0xbf2   :  { %v6397_v48 = vmul.f32 -1.442695, %v3530_v47  ;;  %v3531_v46 = vadd.f32 %v3456_v53, %v2480_v54  ;;  %v3533_v35 = vadd.f32 %v3527_v52, %v2593_v45 }
 0xbf4   :  { %6674 = vpow2.f32 %v6397_v48  ;;  %v6398_v51 = vmul.f32 -1.442695, %v3531_v46  ;;  %v6399_v43 = vmul.f32 -1.442695, %v3533_v35 }
 0xbf6   :  { %6676 = vpow2.f32 %v6398_v51 }
 0xbf7   :  { %6678 = vtanh.f32 %v3532_v56 }
 0xbf8   :  { %6680 = vpow2.f32 %v6399_v43  ;;  %v10795_v43 = vld [vmem:[#allocation52_spill] sm:$0xff] }
 0xc01   :  { %v6675_v42 = vpop.eup %6674 }
 0xc02   :  { %v3537_v4 = vadd.f32 1.0, %v6675_v42 }
 0xc03   :  { %v6677_v37 = vpop.eup %6676 }
 0xc04   :  { %6682 = vrcp.f32 %v3537_v4  ;;  %v3543_v47 = vadd.f32 1.0, %v6677_v37  ;;  %v6679_v46 = vpop.eup %6678  ;;  %v10800_v4 = vld [vmem:[#allocation24_spill] sm:$0xff]  ;;  %v10801_v37 = vld [vmem:[#allocation25_spill] sm:$0xff] }
 0xc05   :  { %v6681_v48 = vpop.eup %6680 }
 0xc06   :  { %6684 = vrcp.f32 %v3543_v47  ;;  %v3550_v3 = vadd.f32 1.0, %v6681_v48  ;;  %v10802_v47 = vld [vmem:[#allocation26_spill] sm:$0xff]  ;;  %v10804_v48 = vld [vmem:[#allocation28_spill] sm:$0xff] }
 0xc08   :  { %6686 = vrcp.f32 %v3550_v3  ;;  %v10808_v3 = vld [vmem:[#allocation29_spill] sm:$0xff] }
 0xc11   :  { %v6683_v51 = vpop.eup %6682 }
 0xc12   :  { %v3554_v53 = vmul.f32 %v6683_v51, %v6679_v46  ;;  %v10803_v46 = vld [vmem:[#allocation27_spill] sm:$0xff]  ;;  %v10805_v51 = vld [vmem:[#allocation30_spill] sm:$0xff] }
 0xc13   :  { %v6685_v54 = vpop.eup %6684 }
 0xc14   :  { %v3553_v45 = vmul.f32 %v6685_v54, %v8728_v57  ;;  %v10794_v57 = vld [vmem:[#allocation22_spill] sm:$0xff]  ;;  %v10807_v54 = vld [vmem:[#allocation31_spill] sm:$0xff] }
 0xc15   :  { %v6687_v35 = vpop.eup %6686 }
 0xc16   :  { %v8874_v52 = vadd.f32 %v3554_v53, %v3553_v45  ;;  %v10806_v53 = vld [vmem:[#allocation41_spill] sm:$0xff]  ;;  %v10809_v45 = vld [vmem:[#allocation32_spill] sm:$0xff] }
 0xc18   :  { %6688 = vtanh.f32 %v8874_v52 }
 0xc25   :  { %v6689_v56 = vpop.eup %6688 }
 0xc26   :  { %v8877_v42 = vmul.f32 %v6689_v56, %v6687_v35  ;;  %v10810_v35 = vld [vmem:[#allocation34_spill] sm:$0xff]  ;;  %v10811_v56 = vld [vmem:[#allocation35_spill] sm:$0xff] }
 0xc28   :  { %10793 = vst [vmem:[#allocation50_spill] sm:$0xff] %v8877_v42  ;;  %3688 = vmatmul.mubr.f32.vlgmr.msra.gmra.mxu0 %v8877_v42  ;;  %3759 = vmatmul.mubr.f32.vlgmr.msra.gmra.mxu1 %v8877_v42  ;;  %v10812_v42 = vld [vmem:[#allocation33_spill] sm:$0xff] }
 0xc29   :  { %3859 = vmatpush1.msra.mxu0 %v8595_v63  ;;  %3930 = vmatpush1.msra.mxu1 %v8597_v26 }
 0xc2a   :  { %3860 = vmatprep.subr.mxu0 %v8601_v24  ;;  %3931 = vmatprep.subr.mxu1 %v8603_v29 }
 0xc2b   :  { %3861 = vmatpush1.msra.mxu0 %v8607_v30  ;;  %3932 = vmatpush1.msra.mxu1 %v8609_v18 }
 0xc2c   :  { %3862 = vmatprep.subr.mxu0 %v8613_v16  ;;  %3933 = vmatprep.subr.mxu1 %v8615_v36 }
 0xc2d   :  { %3863 = vmatpush1.msra.mxu0 %v8619_v17  ;;  %3934 = vmatpush1.msra.mxu1 %v8621_v25 }
 0xc2e   :  { %3864 = vmatprep.subr.mxu0 %v8625_v20  ;;  %3935 = vmatprep.subr.mxu1 %v8627_v34 }
 0xc2f   :  { %3865 = vmatpush1.msra.mxu0 %v8631_v19  ;;  %3936 = vmatpush1.msra.mxu1 %v8633_v23 }
 0xc30   :  { %3866 = vmatprep.subr.mxu0 %v8637_v21  ;;  %3937 = vmatprep.subr.mxu1 %v8639_v1 }
 0xc31   :  { %3867 = vmatpush1.msra.mxu0 %v8643_v6  ;;  %3938 = vmatpush1.msra.mxu1 %v10762_v31 }
 0xc32   :  { %3868 = vmatprep.subr.mxu0 %v10763_v60  ;;  %3939 = vmatprep.subr.mxu1 %v10764_v0 }
 0xc33   :  { %3869 = vmatpush1.msra.mxu0 %v10765_v12  ;;  %3940 = vmatpush1.msra.mxu1 %v10766_v11 }
 0xc34   :  { %3870 = vmatprep.subr.mxu0 %v8661_v7  ;;  %3941 = vmatprep.subr.mxu1 %v8663_v55 }
 0xc35   :  { %3871 = vmatpush1.msra.mxu0 %v8667_v22  ;;  %3942 = vmatpush1.msra.mxu1 %v8669_v49 }
 0xc36   :  { %3872 = vmatprep.subr.mxu0 %v8671_v61  ;;  %3943 = vmatprep.subr.mxu1 %v8675_v62 }
 0xc37   :  { %3873 = vmatpush1.msra.mxu0 %v8677_v40  ;;  %3944 = vmatpush1.msra.mxu1 %v8679_v8 }
 0xc38   :  { %3874 = vmatprep.subr.mxu0 %v8767_v10  ;;  %3945 = vmatprep.subr.mxu1 %v8769_v9 }
 0xc39   :  { %3875 = vmatpush1.msra.mxu0 %v8771_v2  ;;  %3946 = vmatpush1.msra.mxu1 %v8775_v13 }
 0xc3a   :  { %3876 = vmatprep.subr.mxu0 %v8777_v15  ;;  %3947 = vmatprep.subr.mxu1 %v8779_v5 }
 0xc3b   :  { %3877 = vmatpush1.msra.mxu0 %v8783_v14  ;;  %3948 = vmatpush1.msra.mxu1 %v8785_v38 }
 0xc3c   :  { %3878 = vmatprep.subr.mxu0 %v8787_v28  ;;  %3949 = vmatprep.subr.mxu1 %v8791_v39 }
 0xc3d   :  { %3879 = vmatpush1.msra.mxu0 %v8793_v41  ;;  %3950 = vmatpush1.msra.mxu1 %v10794_v57 }
 0xc3e   :  { %3880 = vmatprep.subr.mxu0 %v10795_v43  ;;  %3951 = vmatprep.subr.mxu1 %v10796_v44  ;;  %v10822_v44 = vld [vmem:[#allocation58_spill] sm:$0xff] }
 0xc3f   :  { %3881 = vmatpush1.msra.mxu0 %v10797_v50  ;;  %3952 = vmatpush1.msra.mxu1 %v10798_v59 }
 0xc40   :  { %3882 = vmatprep.subr.mxu0 %v10799_v58  ;;  %3953 = vmatprep.subr.mxu1 %v10800_v4 }
 0xc41   :  { %3883 = vmatpush1.msra.mxu0 %v10801_v37  ;;  %3954 = vmatpush1.msra.mxu1 %v10802_v47  ;;  %v10813_v47 = vld [vmem:[#allocation45_spill] sm:$0xff] }
 0xc42   :  { %3884 = vmatprep.subr.mxu0 %v10803_v46  ;;  %3955 = vmatprep.subr.mxu1 %v10804_v48  ;;  %v10814_v46 = vmov 0.0   ;;  %v10815_v48 = vld [vmem:[#allocation48_spill] sm:$0xff] }
 0xc43   :  { %3885 = vmatpush1.msra.mxu0 %v10805_v51  ;;  %3956 = vmatpush1.msra.mxu1 %v10806_v53  ;;  %v10816_v53 = vld [vmem:[#allocation46_spill] sm:$0xff] }
 0xc44   :  { %3886 = vmatprep.subr.mxu0 %v10807_v54  ;;  %3957 = vmatprep.subr.mxu1 %v10808_v3  ;;  %v10817_v54 = vld [vmem:[#allocation47_spill] sm:$0xff]  ;;  %v10818_v3 = vld [vmem:[#allocation42_spill] sm:$0xff] }
 0xc45   :  { %3887 = vmatpush1.msra.mxu0 %v10809_v45  ;;  %3958 = vmatpush1.msra.mxu1 %v10810_v35  ;;  %v10819_v45 = vld [vmem:[#allocation56_spill] sm:$0xff] }
 0xc46   :  { %3888 = vmatprep.subr.mxu0 %v10811_v56  ;;  %3959 = vmatprep.subr.mxu1 %v10812_v42  ;;  %v2484_v51 = vadd.f32 %v10819_v45, %v10818_v3  ;;  %v10820_v56 = vld [vmem:[#allocation59_spill] sm:$0xff]  ;;  %v2597_v45 = vadd.f32 %v10822_v44, %v8497_v33 }
 0xc47   :  { %3889 = vmatpush1.msra.mxu0 %v10813_v47  ;;  %3922 = vmatprep.mubr.f32.mxu0 %v10814_v46  ;;  %v2486_v37 = vadd.f32 %v10820_v56, %v8482_v32 }
 0xc48   :  { %3960 = vmatpush1.msra.mxu1 %v10815_v48  ;;  %3993 = vmatprep.mubr.f32.mxu1 %v10814_v46 }
 0xc49   :  { %4093 = vmatprep.subr.mxu0 %v10816_v53  ;;  %4164 = vmatprep.subr.mxu1 %v10817_v54  ;;  %v10821_v53 = vld [vmem:[#allocation57_spill] sm:$0xff] }
 0xc4a   :  { %v2599_v50 = vadd.f32 %v10821_v53, %v10746_v27 }
 0xce8   :  { %v3689_v35 = vpop.f32.mrf.mxu0  ;;  %v3760_v59 = vpop.f32.mrf.mxu1 }
 0xce9   :  { %v3765_v42 = vadd.f32 %v3689_v35, %v2484_v51  ;;  %v3767_v3 = vadd.f32 %v3760_v59, %v2597_v45  ;;  %v10848_v45 = vld [vmem:[#allocation61_spill] sm:$0xff] }
 0xcea   :  { %v3691_v4 = vpop.f32.mrf.mxu0  ;;  %v3762_v46 = vpop.f32.mrf.mxu1 }
 0xceb   :  { %v6400_v47 = vmul.f32 -1.442695, %v3765_v42  ;;  %v3766_v58 = vadd.f32 %v3691_v4, %v2486_v37  ;;  %v3768_v54 = vadd.f32 %v3762_v46, %v2599_v50 }
 0xced   :  { %6690 = vpow2.f32 %v6400_v47  ;;  %v6401_v48 = vmul.f32 -1.442695, %v3766_v58  ;;  %v6402_v43 = vmul.f32 -1.442695, %v3768_v54 }
 0xcef   :  { %6692 = vpow2.f32 %v6401_v48 }
 0xcf0   :  { %6694 = vtanh.f32 %v3767_v3 }
 0xcf1   :  { %6696 = vpow2.f32 %v6402_v43 }
 0xcfa   :  { %v6691_v57 = vpop.eup %6690 }
 0xcfb   :  { %v3772_v56 = vadd.f32 1.0, %v6691_v57 }
 0xcfc   :  { %v6693_v51 = vpop.eup %6692 }
 0xcfd   :  { %6698 = vrcp.f32 %v3772_v56  ;;  %v3778_v42 = vadd.f32 1.0, %v6693_v51  ;;  %v6695_v58 = vpop.eup %6694  ;;  %v2605_v56 = vadd.f32 %v10848_v45, %v10746_v27  ;;  %v4321_v45 = vld [vmem:[#allocation9 + $0x1c8] sm:$0xff] }
 0xcfe   :  { %v6697_v4 = vpop.eup %6696 }
 0xcff   :  { %6700 = vrcp.f32 %v3778_v42  ;;  %v3785_v35 = vadd.f32 1.0, %v6697_v4  ;;  %v10849_v42 = vld [vmem:[#allocation62_spill] sm:$0xff] }
 0xd01   :  { %6702 = vrcp.f32 %v3785_v35 }
 0xd0a   :  { %v6699_v37 = vpop.eup %6698 }
 0xd0b   :  { %v3789_v47 = vmul.f32 %v6699_v37, %v6695_v58  ;;  %v2603_v58 = vadd.f32 %v10849_v42, %v8497_v33  ;;  %v4322_v42 = vld [vmem:[#allocation9 + $0x1d0] sm:$0xff] }
 0xd0c   :  { %v6701_v48 = vpop.eup %6700 }
 0xd0d   :  { %v3788_v50 = vmul.f32 %v6701_v48, %v8874_v52 }
 0xd0e   :  { %v6703_v57 = vpop.eup %6702 }
 0xd0f   :  { %v8956_v46 = vadd.f32 %v3789_v47, %v3788_v50 }
 0xd11   :  { %6704 = vtanh.f32 %v8956_v46 }
 0xd1e   :  { %v6705_v44 = vpop.eup %6704 }
 0xd1f   :  { %v8959_v59 = vmul.f32 %v6705_v44, %v6703_v57 }
 0xd21   :  { %3923 = vmatmul.mubr.f32.vlgmr.msra.gmra.mxu0 %v8959_v59  ;;  %3994 = vmatmul.mubr.f32.vlgmr.msra.gmra.mxu1 %v8959_v59 }
 0xd22   :  { %4094 = vmatpush1.msra.mxu0 %v8595_v63  ;;  %4165 = vmatpush1.msra.mxu1 %v8597_v26  ;;  %v10826_v63 = vld [vmem:[#allocation55_spill] sm:$0xff]  ;;  %v10827_v26 = vld [vmem:[#allocation53_spill] sm:$0xff] }
 0xd23   :  { %4095 = vmatprep.subr.mxu0 %v8601_v24  ;;  %4166 = vmatprep.subr.mxu1 %v8603_v29  ;;  %v10828_v24 = vld [vmem:[#allocation23_spill] sm:$0xff]  ;;  %v10829_v29 = vld [vmem:[#allocation24_spill] sm:$0xff] }
 0xd24   :  { %4096 = vmatpush1.msra.mxu0 %v8607_v30  ;;  %4167 = vmatpush1.msra.mxu1 %v8609_v18  ;;  %v10830_v30 = vld [vmem:[#allocation25_spill] sm:$0xff]  ;;  %v10831_v18 = vld [vmem:[#allocation26_spill] sm:$0xff] }
 0xd25   :  { %4097 = vmatprep.subr.mxu0 %v8613_v16  ;;  %4168 = vmatprep.subr.mxu1 %v8615_v36  ;;  %v10832_v16 = vld [vmem:[#allocation27_spill] sm:$0xff]  ;;  %v10833_v36 = vld [vmem:[#allocation28_spill] sm:$0xff] }
 0xd26   :  { %4098 = vmatpush1.msra.mxu0 %v8619_v17  ;;  %4169 = vmatpush1.msra.mxu1 %v8621_v25  ;;  %v10834_v17 = vld [vmem:[#allocation30_spill] sm:$0xff]  ;;  %v10835_v25 = vld [vmem:[#allocation41_spill] sm:$0xff] }
 0xd27   :  { %4099 = vmatprep.subr.mxu0 %v8625_v20  ;;  %4170 = vmatprep.subr.mxu1 %v8627_v34  ;;  %v10836_v20 = vld [vmem:[#allocation31_spill] sm:$0xff]  ;;  %v10837_v34 = vld [vmem:[#allocation29_spill] sm:$0xff] }
 0xd28   :  { %4100 = vmatpush1.msra.mxu0 %v8631_v19  ;;  %4171 = vmatpush1.msra.mxu1 %v8633_v23  ;;  %v10838_v19 = vld [vmem:[#allocation32_spill] sm:$0xff]  ;;  %v10839_v23 = vld [vmem:[#allocation34_spill] sm:$0xff] }
 0xd29   :  { %4101 = vmatprep.subr.mxu0 %v8637_v21  ;;  %4172 = vmatprep.subr.mxu1 %v8639_v1  ;;  %v10840_v21 = vld [vmem:[#allocation35_spill] sm:$0xff]  ;;  %v10841_v1 = vld [vmem:[#allocation33_spill] sm:$0xff] }
 0xd2a   :  { %4102 = vmatpush1.msra.mxu0 %v8643_v6  ;;  %4173 = vmatpush1.msra.mxu1 %v10762_v31  ;;  %v10842_v6 = vld [vmem:[#allocation45_spill] sm:$0xff] }
 0xd2b   :  { %4103 = vmatprep.subr.mxu0 %v10763_v60  ;;  %4174 = vmatprep.subr.mxu1 %v10764_v0  ;;  %v10847_v60 = vld [vmem:[#allocation63_spill] sm:$0xff] }
 0xd2c   :  { %4104 = vmatpush1.msra.mxu0 %v10765_v12  ;;  %4175 = vmatpush1.msra.mxu1 %v10766_v11  ;;  %v2492_v0 = vadd.f32 %v10847_v60, %v8482_v32 }
 0xd2d   :  { %4105 = vmatprep.subr.mxu0 %v8661_v7  ;;  %4176 = vmatprep.subr.mxu1 %v8663_v55  ;;  %v10823_v55 = vld [vmem:[#allocation22_spill] sm:$0xff] }
 0xd2e   :  { %4106 = vmatpush1.msra.mxu0 %v8667_v22  ;;  %4177 = vmatpush1.msra.mxu1 %v8669_v49  ;;  %v10824_v22 = vld [vmem:[#allocation52_spill] sm:$0xff]  ;;  %v10825_v7 = vld [vmem:[#allocation54_spill] sm:$0xff] }
 0xd2f   :  { %4107 = vmatprep.subr.mxu0 %v8671_v61  ;;  %4178 = vmatprep.subr.mxu1 %v8675_v62  ;;  %v10844_v49 = vld [vmem:[#allocation48_spill] sm:$0xff]  ;;  %v10845_v61 = vld [vmem:[#allocation42_spill] sm:$0xff] }
 0xd30   :  { %4108 = vmatpush1.msra.mxu0 %v8677_v40  ;;  %4179 = vmatpush1.msra.mxu1 %v8679_v8  ;;  %v10843_v8 = vmov 0.0   ;;  %v10846_v62 = vld [vmem:[#allocation60_spill] sm:$0xff] }
 0xd31   :  { %4109 = vmatprep.subr.mxu0 %v8767_v10  ;;  %4180 = vmatprep.subr.mxu1 %v8769_v9  ;;  %v2490_v40 = vadd.f32 %v10846_v62, %v10845_v61 }
 0xd32   :  { %4110 = vmatpush1.msra.mxu0 %v8771_v2  ;;  %4181 = vmatpush1.msra.mxu1 %v8775_v13 }
 0xd33   :  { %4111 = vmatprep.subr.mxu0 %v8777_v15  ;;  %4182 = vmatprep.subr.mxu1 %v8779_v5 }
 0xd34   :  { %4112 = vmatpush1.msra.mxu0 %v8783_v14  ;;  %4183 = vmatpush1.msra.mxu1 %v8785_v38 }
 0xd35   :  { %4113 = vmatprep.subr.mxu0 %v8787_v28  ;;  %4184 = vmatprep.subr.mxu1 %v8791_v39 }
 0xd36   :  { %4114 = vmatpush1.msra.mxu0 %v8793_v41  ;;  %4185 = vmatpush1.msra.mxu1 %v10823_v55 }
 0xd37   :  { %4115 = vmatprep.subr.mxu0 %v10824_v22  ;;  %4186 = vmatprep.subr.mxu1 %v10825_v7 }
 0xd38   :  { %4116 = vmatpush1.msra.mxu0 %v10826_v63  ;;  %4187 = vmatpush1.msra.mxu1 %v10827_v26 }
 0xd39   :  { %4117 = vmatprep.subr.mxu0 %v10828_v24  ;;  %4188 = vmatprep.subr.mxu1 %v10829_v29 }
 0xd3a   :  { %4118 = vmatpush1.msra.mxu0 %v10830_v30  ;;  %4189 = vmatpush1.msra.mxu1 %v10831_v18 }
 0xd3b   :  { %4119 = vmatprep.subr.mxu0 %v10832_v16  ;;  %4190 = vmatprep.subr.mxu1 %v10833_v36 }
 0xd3c   :  { %4120 = vmatpush1.msra.mxu0 %v10834_v17  ;;  %4191 = vmatpush1.msra.mxu1 %v10835_v25 }
 0xd3d   :  { %4121 = vmatprep.subr.mxu0 %v10836_v20  ;;  %4192 = vmatprep.subr.mxu1 %v10837_v34 }
 0xd3e   :  { %4122 = vmatpush1.msra.mxu0 %v10838_v19  ;;  %4193 = vmatpush1.msra.mxu1 %v10839_v23 }
 0xd3f   :  { %4123 = vmatprep.subr.mxu0 %v10840_v21  ;;  %4194 = vmatprep.subr.mxu1 %v10841_v1 }
 0xd40   :  { %4124 = vmatpush1.msra.mxu0 %v10842_v6  ;;  %4157 = vmatprep.mubr.f32.mxu0 %v10843_v8 }
 0xd41   :  { %4195 = vmatpush1.msra.mxu1 %v10844_v49  ;;  %4228 = vmatprep.mubr.f32.mxu1 %v10843_v8 }
 0xde1   :  { %v3924_v31 = vpop.f32.mrf.mxu0  ;;  %v3995_v3 = vpop.f32.mrf.mxu1 }
 0xde2   :  { %v4000_v12 = vadd.f32 %v3924_v31, %v2490_v40  ;;  %v4002_v4 = vadd.f32 %v3995_v3, %v2603_v58  ;;  %v4325_v3 = vld [vmem:[#allocation9 + $0x1e8] sm:$0xff] }
 0xde3   :  { %v3926_v11 = vpop.f32.mrf.mxu0  ;;  %v3997_v54 = vpop.f32.mrf.mxu1  ;;  %4328 = vmatprep.subr.mxu0 %v4325_v3  ;;  %v4317_v58 = vld [vmem:[#allocation9 + $0x1a8] sm:$0xff] }
 0xde4   :  { %v6403_v52 = vmul.f32 -1.442695, %v4000_v12  ;;  %v4001_v43 = vadd.f32 %v3926_v11, %v2492_v0  ;;  %v4003_v51 = vadd.f32 %v3997_v54, %v2605_v56  ;;  %v4326_v54 = vld [vmem:[#allocation9 + $0x1f0] sm:$0xff]  ;;  %v4323_v56 = vld [vmem:[#allocation9 + $0x1d8] sm:$0xff]  ;;  %v4301_v3 = vld [vmem:[#allocation9 + $0x128] sm:$0xff] }
 0xde6   :  { %6706 = vpow2.f32 %v6403_v52  ;;  %v6404_v53 = vmul.f32 -1.442695, %v4001_v43  ;;  %v6405_v37 = vmul.f32 -1.442695, %v4003_v51  ;;  %v4320_v51 = vld [vmem:[#allocation9 + $0x1c0] sm:$0xff] }
 0xde8   :  { %6708 = vpow2.f32 %v6404_v53  ;;  %v4327_v53 = vld [vmem:[#allocation9 + $0x1f8] sm:$0xff] }
 0xde9   :  { %6710 = vtanh.f32 %v4002_v4  ;;  %4399 = vmatprep.subr.mxu1 %v4327_v53  ;;  %v4319_v4 = vld [vmem:[#allocation9 + $0x1b8] sm:$0xff] }
 0xdea   :  { %6712 = vpow2.f32 %v6405_v37  ;;  %v4316_v37 = vld [vmem:[#allocation9 + $0x1a0] sm:$0xff]  ;;  %v4303_v53 = vld [vmem:[#allocation9 + $0x138] sm:$0xff] }
 0xdf3   :  { %v6707_v47 = vpop.eup %6706 }
 0xdf4   :  { %v4007_v48 = vadd.f32 1.0, %v6707_v47  ;;  %v4318_v47 = vld [vmem:[#allocation9 + $0x1b0] sm:$0xff] }
 0xdf5   :  { %v6709_v35 = vpop.eup %6708 }
 0xdf6   :  { %6714 = vrcp.f32 %v4007_v48  ;;  %v4013_v50 = vadd.f32 1.0, %v6709_v35  ;;  %v6711_v57 = vpop.eup %6710  ;;  %v4313_v48 = vld [vmem:[#allocation9 + $0x188] sm:$0xff]  ;;  %v4315_v35 = vld [vmem:[#allocation9 + $0x198] sm:$0xff] }
 0xdf7   :  { %v6713_v44 = vpop.eup %6712 }
 0xdf8   :  { %6716 = vrcp.f32 %v4013_v50  ;;  %v4020_v60 = vadd.f32 1.0, %v6713_v44  ;;  %v4312_v50 = vld [vmem:[#allocation9 + $0x180] sm:$0xff]  ;;  %v4309_v44 = vld [vmem:[#allocation9 + $0x168] sm:$0xff] }
 0xdfa   :  { %6718 = vrcp.f32 %v4020_v60  ;;  %v4305_v60 = vld [vmem:[#allocation9 + $0x148] sm:$0xff] }
 0xe03   :  { %v6715_v62 = vpop.eup %6714 }
 0xe04   :  { %v4024_v40 = vmul.f32 %v6715_v62, %v6711_v57  ;;  %v4314_v57 = vld [vmem:[#allocation9 + $0x190] sm:$0xff]  ;;  %v4311_v62 = vld [vmem:[#allocation9 + $0x178] sm:$0xff] }
 0xe05   :  { %v6717_v31 = vpop.eup %6716 }
 0xe06   :  { %v4023_v0 = vmul.f32 %v6717_v31, %v8956_v46  ;;  %v4324_v46 = vld [vmem:[#allocation9 + $0x1e0] sm:$0xff]  ;;  %v4310_v31 = vld [vmem:[#allocation9 + $0x170] sm:$0xff] }
 0xe07   :  { %v6719_v11 = vpop.eup %6718 }
 0xe08   :  { %v9036_v12 = vadd.f32 %v4024_v40, %v4023_v0  ;;  %v4308_v40 = vld [vmem:[#allocation9 + $0x160] sm:$0xff]  ;;  %v4307_v0 = vld [vmem:[#allocation9 + $0x158] sm:$0xff] }
 0xe0a   :  { %6720 = vtanh.f32 %v9036_v12 }
 0xe17   :  { %v6721_v52 = vpop.eup %6720 }
 0xe18   :  { %v9039_v43 = vmul.f32 %v6721_v52, %v6719_v11  ;;  %v4304_v11 = vld [vmem:[#allocation9 + $0x140] sm:$0xff]  ;;  %v4306_v52 = vld [vmem:[#allocation9 + $0x150] sm:$0xff] }
 0xe1a   :  { %4158 = vmatmul.mubr.f32.vlgmr.msra.gmra.mxu0 %v9039_v43  ;;  %4229 = vmatmul.mubr.f32.vlgmr.msra.gmra.mxu1 %v9039_v43 }
 0xe1b   :  { %4392 = vmatprep.mubr.f32.mxu0 %v10843_v8  ;;  %4463 = vmatprep.mubr.f32.mxu1 %v10843_v8 }
 0xe1c   :  { %4329 = vmatpush1.msra.mxu0 %v4324_v46  ;;  %4400 = vmatpush1.msra.mxu1 %v4326_v54  ;;  %v4300_v46 = vld [vmem:[#allocation9 + $0x120] sm:$0xff]  ;;  %v4302_v54 = vld [vmem:[#allocation9 + $0x130] sm:$0xff] }
 0xe1d   :  { %4330 = vmatprep.subr.mxu0 %v4321_v45  ;;  %4401 = vmatprep.subr.mxu1 %v4323_v56  ;;  %v4297_v45 = vld [vmem:[#allocation9 + $0x108] sm:$0xff]  ;;  %v4299_v56 = vld [vmem:[#allocation9 + $0x118] sm:$0xff] }
 0xe1e   :  { %4331 = vmatpush1.msra.mxu0 %v4320_v51  ;;  %4402 = vmatpush1.msra.mxu1 %v4322_v42  ;;  %v4296_v51 = vld [vmem:[#allocation9 + $0x100] sm:$0xff]  ;;  %v4298_v42 = vld [vmem:[#allocation9 + $0x110] sm:$0xff] }
 0xe1f   :  { %4332 = vmatprep.subr.mxu0 %v4317_v58  ;;  %4403 = vmatprep.subr.mxu1 %v4319_v4 }
 0xe20   :  { %4333 = vmatpush1.msra.mxu0 %v4316_v37  ;;  %4404 = vmatpush1.msra.mxu1 %v4318_v47 }
 0xe21   :  { %4334 = vmatprep.subr.mxu0 %v4313_v48  ;;  %4405 = vmatprep.subr.mxu1 %v4315_v35  ;;  %v4567_v48 = vld [vmem:[#allocation10 + $0x1e0] sm:$0xff]  ;;  %v4569_v35 = vld [vmem:[#allocation10 + $0x1f0] sm:$0xff] }
 0xe22   :  { %4335 = vmatpush1.msra.mxu0 %v4312_v50  ;;  %4406 = vmatpush1.msra.mxu1 %v4314_v57  ;;  %v4564_v50 = vld [vmem:[#allocation10 + $0x1c8] sm:$0xff]  ;;  %v4566_v57 = vld [vmem:[#allocation10 + $0x1d8] sm:$0xff] }
 0xe23   :  { %4336 = vmatprep.subr.mxu0 %v4309_v44  ;;  %4407 = vmatprep.subr.mxu1 %v4311_v62  ;;  %v4563_v44 = vld [vmem:[#allocation10 + $0x1c0] sm:$0xff]  ;;  %v4565_v62 = vld [vmem:[#allocation10 + $0x1d0] sm:$0xff] }
 0xe24   :  { %4337 = vmatpush1.msra.mxu0 %v4308_v40  ;;  %4408 = vmatpush1.msra.mxu1 %v4310_v31  ;;  %v4562_v40 = vld [vmem:[#allocation10 + $0x1b8] sm:$0xff]  ;;  %v4559_v31 = vld [vmem:[#allocation10 + $0x1a0] sm:$0xff] }
 0xe25   :  { %4338 = vmatprep.subr.mxu0 %v4305_v60  ;;  %4409 = vmatprep.subr.mxu1 %v4307_v0  ;;  %v4561_v60 = vld [vmem:[#allocation10 + $0x1b0] sm:$0xff]  ;;  %v4556_v0 = vld [vmem:[#allocation10 + $0x188] sm:$0xff] }
 0xe26   :  { %4339 = vmatpush1.msra.mxu0 %v4304_v11  ;;  %4410 = vmatpush1.msra.mxu1 %v4306_v52  ;;  %v4558_v11 = vld [vmem:[#allocation10 + $0x198] sm:$0xff]  ;;  %v4555_v52 = vld [vmem:[#allocation10 + $0x180] sm:$0xff] }
 0xe27   :  { %4340 = vmatprep.subr.mxu0 %v4301_v3  ;;  %4411 = vmatprep.subr.mxu1 %v4303_v53  ;;  %v4557_v3 = vld [vmem:[#allocation10 + $0x190] sm:$0xff]  ;;  %v4552_v53 = vld [vmem:[#allocation10 + $0x168] sm:$0xff] }
 0xe28   :  { %4341 = vmatpush1.msra.mxu0 %v4300_v46  ;;  %4412 = vmatpush1.msra.mxu1 %v4302_v54  ;;  %v4554_v46 = vld [vmem:[#allocation10 + $0x178] sm:$0xff]  ;;  %v4551_v54 = vld [vmem:[#allocation10 + $0x160] sm:$0xff] }
 0xe29   :  { %4342 = vmatprep.subr.mxu0 %v4297_v45  ;;  %4413 = vmatprep.subr.mxu1 %v4299_v56  ;;  %v4553_v45 = vld [vmem:[#allocation10 + $0x170] sm:$0xff]  ;;  %v4548_v56 = vld [vmem:[#allocation10 + $0x148] sm:$0xff] }
 0xe2a   :  { %4343 = vmatpush1.msra.mxu0 %v4296_v51  ;;  %4414 = vmatpush1.msra.mxu1 %v4298_v42  ;;  %v4550_v51 = vld [vmem:[#allocation10 + $0x158] sm:$0xff]  ;;  %v4547_v42 = vld [vmem:[#allocation10 + $0x140] sm:$0xff] }
 0xe2b   :  { %4344 = vmatprep.subr.mxu0 %v8767_v10  ;;  %4415 = vmatprep.subr.mxu1 %v8769_v9  ;;  %v4568_v10 = vld [vmem:[#allocation10 + $0x1e8] sm:$0xff]  ;;  %v4570_v9 = vld [vmem:[#allocation10 + $0x1f8] sm:$0xff] }
 0xe2c   :  { %4345 = vmatpush1.msra.mxu0 %v8771_v2  ;;  %4416 = vmatpush1.msra.mxu1 %v8775_v13  ;;  %v10850_v2 = vld [vmem:[#allocation68_spill] sm:$0xff] }
 0xe2d   :  { %4346 = vmatprep.subr.mxu0 %v8777_v15  ;;  %4417 = vmatprep.subr.mxu1 %v8779_v5  ;;  %v2496_v13 = vadd.f32 %v10850_v2, %v10845_v61  ;;  %v10851_v5 = vld [vmem:[#allocation40_spill] sm:$0xff]  ;;  %v4546_v2 = vld [vmem:[#allocation10 + $0x138] sm:$0xff] }
 0xe2e   :  { %4347 = vmatpush1.msra.mxu0 %v8783_v14  ;;  %4418 = vmatpush1.msra.mxu1 %v8785_v38  ;;  %v2498_v14 = vadd.f32 %v10851_v5, %v8482_v32  ;;  %v4540_v5 = vld [vmem:[#allocation10 + $0x108] sm:$0xff] }
 0xe2f   :  { %4348 = vmatprep.subr.mxu0 %v8787_v28  ;;  %4419 = vmatprep.subr.mxu1 %v8791_v39 }
 0xe30   :  { %4349 = vmatpush1.msra.mxu0 %v8793_v41  ;;  %4420 = vmatpush1.msra.mxu1 %v10823_v55 }
 0xe31   :  { %4350 = vmatprep.subr.mxu0 %v10824_v22  ;;  %4421 = vmatprep.subr.mxu1 %v10825_v7 }
 0xe32   :  { %4351 = vmatpush1.msra.mxu0 %v10826_v63  ;;  %4422 = vmatpush1.msra.mxu1 %v10827_v26  ;;  %v10852_v63 = vld [vmem:[#allocation64_spill] sm:$0xff] }
 0xe33   :  { %4352 = vmatprep.subr.mxu0 %v10828_v24  ;;  %4423 = vmatprep.subr.mxu1 %v10829_v29  ;;  %v2611_v26 = vadd.f32 %v10852_v63, %v10746_v27  ;;  %v10853_v29 = vld [vmem:[#allocation20_spill] sm:$0xff]  ;;  %v4534_v63 = vld [vmem:[#allocation10 + $0xd8] sm:$0xff] }
 0xe34   :  { %4353 = vmatpush1.msra.mxu0 %v10830_v30  ;;  %4424 = vmatpush1.msra.mxu1 %v10831_v18  ;;  %v2609_v30 = vadd.f32 %v10853_v29, %v8497_v33  ;;  %v4528_v29 = vld [vmem:[#allocation10 + $0xa8] sm:$0xff] }
 0xe35   :  { %4354 = vmatprep.subr.mxu0 %v10832_v16  ;;  %4425 = vmatprep.subr.mxu1 %v10833_v36 }
 0xe36   :  { %4355 = vmatpush1.msra.mxu0 %v10834_v17  ;;  %4426 = vmatpush1.msra.mxu1 %v10835_v25 }
 0xe37   :  { %4356 = vmatprep.subr.mxu0 %v10836_v20  ;;  %4427 = vmatprep.subr.mxu1 %v10837_v34 }
 0xe38   :  { %4357 = vmatpush1.msra.mxu0 %v10838_v19  ;;  %4428 = vmatpush1.msra.mxu1 %v10839_v23 }
 0xe39   :  { %4358 = vmatprep.subr.mxu0 %v10840_v21  ;;  %4429 = vmatprep.subr.mxu1 %v10841_v1 }
 0xe3a   :  { %4359 = vmatpush1.msra.mxu0 %v10842_v6  ;;  %4430 = vmatpush1.msra.mxu1 %v10844_v49 }
 0xe3b   :  { %4593 = vmatprep.subr.mxu0 %v4568_v10  ;;  %4706 = vmatprep.subr.mxu1 %v4570_v9  ;;  %v4549_v10 = vld [vmem:[#allocation10 + $0x150] sm:$0xff]  ;;  %v4544_v9 = vld [vmem:[#allocation10 + $0x128] sm:$0xff] }
 0xeda   :  { %v4159_v15 = vpop.f32.mrf.mxu0  ;;  %v4230_v55 = vpop.f32.mrf.mxu1 }
 0xedb   :  { %v4235_v38 = vadd.f32 %v4159_v15, %v2496_v13  ;;  %v4237_v18 = vadd.f32 %v4230_v55, %v2609_v30  ;;  %v4543_v13 = vld [vmem:[#allocation10 + $0x120] sm:$0xff]  ;;  %v4545_v15 = vld [vmem:[#allocation10 + $0x130] sm:$0xff]  ;;  %v4530_v30 = vld [vmem:[#allocation10 + $0xb8] sm:$0xff] }
 0xedc   :  { %v4161_v28 = vpop.f32.mrf.mxu0  ;;  %v4232_v7 = vpop.f32.mrf.mxu1  ;;  %v4535_v55 = vld [vmem:[#allocation10 + $0xe0] sm:$0xff] }
 0xedd   :  { %v6406_v39 = vmul.f32 -1.442695, %v4235_v38  ;;  %v4236_v41 = vadd.f32 %v4161_v28, %v2498_v14  ;;  %v4238_v24 = vadd.f32 %v4232_v7, %v2611_v26  ;;  %v4542_v14 = vld [vmem:[#allocation10 + $0x118] sm:$0xff]  ;;  %v4539_v38 = vld [vmem:[#allocation10 + $0x100] sm:$0xff]  ;;  %v4541_v28 = vld [vmem:[#allocation10 + $0x110] sm:$0xff] }
 0xede   :  { %v4532_v7 = vld [vmem:[#allocation10 + $0xc8] sm:$0xff]  ;;  %v4531_v26 = vld [vmem:[#allocation10 + $0xc0] sm:$0xff] }
 0xedf   :  { %6722 = vpow2.f32 %v6406_v39  ;;  %v6407_v22 = vmul.f32 -1.442695, %v4236_v41  ;;  %v6408_v16 = vmul.f32 -1.442695, %v4238_v24  ;;  %v4536_v39 = vld [vmem:[#allocation10 + $0xe8] sm:$0xff]  ;;  %v4538_v41 = vld [vmem:[#allocation10 + $0xf8] sm:$0xff] }
 0xee0   :  { %v4533_v24 = vld [vmem:[#allocation10 + $0xd0] sm:$0xff] }
 0xee1   :  { %6724 = vpow2.f32 %v6407_v22  ;;  %v4537_v22 = vld [vmem:[#allocation10 + $0xf0] sm:$0xff] }
 0xee2   :  { %6726 = vtanh.f32 %v4237_v18  ;;  %v4527_v18 = vld [vmem:[#allocation10 + $0xa0] sm:$0xff] }
 0xee3   :  { %6728 = vpow2.f32 %v6408_v16  ;;  %v4529_v16 = vld [vmem:[#allocation10 + $0xb0] sm:$0xff] }
 0xeec   :  { %v6723_v36 = vpop.eup %6722 }
 0xeed   :  { %v4242_v17 = vadd.f32 1.0, %v6723_v36  ;;  %v4524_v36 = vld [vmem:[#allocation10 + $0x88] sm:$0xff] }
 0xeee   :  { %v6725_v25 = vpop.eup %6724 }
 0xeef   :  { %6730 = vrcp.f32 %v4242_v17  ;;  %v4248_v20 = vadd.f32 1.0, %v6725_v25  ;;  %v6727_v34 = vpop.eup %6726  ;;  %v4526_v17 = vld [vmem:[#allocation10 + $0x98] sm:$0xff]  ;;  %v4523_v25 = vld [vmem:[#allocation10 + $0x80] sm:$0xff] }
 0xef0   :  { %v6729_v19 = vpop.eup %6728 }
 0xef1   :  { %6732 = vrcp.f32 %v4248_v20  ;;  %v4255_v6 = vadd.f32 1.0, %v6729_v19  ;;  %v4525_v20 = vld [vmem:[#allocation10 + $0x90] sm:$0xff]  ;;  %v4522_v19 = vld [vmem:[#allocation10 + $0x78] sm:$0xff] }
 0xef3   :  { %6734 = vrcp.f32 %v4255_v6  ;;  %v4518_v6 = vld [vmem:[#allocation10 + $0x58] sm:$0xff] }
 0xefc   :  { %v6731_v23 = vpop.eup %6730 }
 0xefd   :  { %v4259_v21 = vmul.f32 %v6731_v23, %v6727_v34  ;;  %v4520_v34 = vld [vmem:[#allocation10 + $0x68] sm:$0xff]  ;;  %v4519_v23 = vld [vmem:[#allocation10 + $0x60] sm:$0xff] }
 0xefe   :  { %v6733_v1 = vpop.eup %6732 }
 0xeff   :  { %v4258_v49 = vmul.f32 %v6733_v1, %v9036_v12  ;;  %v4560_v12 = vld [vmem:[#allocation10 + $0x1a8] sm:$0xff] }
 0xf00   :  { %v6735_v4 = vpop.eup %6734  ;;  %v4516_v1 = vld [vmem:[#allocation10 + $0x48] sm:$0xff] }
 0xf01   :  { %v9086_v58 = vadd.f32 %v4259_v21, %v4258_v49  ;;  %v4521_v21 = vld [vmem:[#allocation10 + $0x70] sm:$0xff]  ;;  %v4515_v49 = vld [vmem:[#allocation10 + $0x40] sm:$0xff] }
 0xf03   :  { %6736 = vtanh.f32 %v9086_v58 }
 0xf10   :  { %v6737_v37 = vpop.eup %6736 }
 0xf11   :  { %v9089_v47 = vmul.f32 %v6737_v37, %v6735_v4  ;;  %v4517_v4 = vld [vmem:[#allocation10 + $0x50] sm:$0xff]  ;;  %v4512_v37 = vld [vmem:[#allocation10 + $0x28] sm:$0xff] }
 0xf13   :  { %4393 = vmatmul.mubr.f32.vlgmr.msra.gmra.mxu0 %v9089_v47  ;;  %4464 = vmatmul.mubr.f32.vlgmr.msra.gmra.mxu1 %v9089_v47 }
 0xf14   :  { %4594 = vmatpush1.msra.mxu0 %v4567_v48  ;;  %4707 = vmatpush1.msra.mxu1 %v4569_v35  ;;  %v4514_v48 = vld [vmem:[#allocation10 + $0x38] sm:$0xff]  ;;  %v4511_v35 = vld [vmem:[#allocation10 + $0x20] sm:$0xff] }
 0xf15   :  { %4595 = vmatprep.subr.mxu0 %v4564_v50  ;;  %4708 = vmatprep.subr.mxu1 %v4566_v57  ;;  %v4513_v50 = vld [vmem:[#allocation10 + $0x30] sm:$0xff]  ;;  %v4508_v57 = vld [vmem:[#allocation10 + $0x8] sm:$0xff] }
 0xf16   :  { %4596 = vmatpush1.msra.mxu0 %v4563_v44  ;;  %4709 = vmatpush1.msra.mxu1 %v4565_v62  ;;  %v4510_v44 = vld [vmem:[#allocation10 + $0x18] sm:$0xff]  ;;  %v4507_v62 = vld [vmem:[#allocation10] sm:$0xff] }
 0xf17   :  { %4597 = vmatprep.subr.mxu0 %v4560_v12  ;;  %4710 = vmatprep.subr.mxu1 %v4562_v40  ;;  %v4509_v12 = vld [vmem:[#allocation10 + $0x10] sm:$0xff]  ;;  %v10854_v40 = vld [vmem:[#allocation69_spill] sm:$0xff] }
 0xf18   :  { %4598 = vmatpush1.msra.mxu0 %v4559_v31  ;;  %4711 = vmatpush1.msra.mxu1 %v4561_v60  ;;  %v10855_v31 = vld [vmem:[#allocation44_spill] sm:$0xff]  ;;  %v10856_v60 = vld [vmem:[#allocation21_spill] sm:$0xff] }
 0xf19   :  { %4599 = vmatprep.subr.mxu0 %v4556_v0  ;;  %4712 = vmatprep.subr.mxu1 %v4558_v11  ;;  %v10857_v0 = vld [vmem:[#allocation50_spill] sm:$0xff]  ;;  %v9125_v11 = vld [vmem:[#allocation12 + $0x1f8] sm:$0xff] }
 0xf1a   :  { %4600 = vmatpush1.msra.mxu0 %v4555_v52  ;;  %4713 = vmatpush1.msra.mxu1 %v4557_v3  ;;  %10859 = vst [vmem:[#allocation49_spill] sm:$0xff] %v9125_v11  ;;  %v9131_v52 = vld [vmem:[#allocation12 + $0x1f0] sm:$0xff]  ;;  %v9137_v3 = vld [vmem:[#allocation12 + $0x1d8] sm:$0xff] }
 0xf1b   :  { %4601 = vmatprep.subr.mxu0 %v4552_v53  ;;  %4714 = vmatprep.subr.mxu1 %v4554_v46  ;;  %v9141_v53 = vld [vmem:[#allocation12 + $0x1c0] sm:$0xff]  ;;  %v9143_v46 = vld [vmem:[#allocation12 + $0x1d0] sm:$0xff] }
 0xf1c   :  { %4602 = vmatpush1.msra.mxu0 %v4551_v54  ;;  %4715 = vmatpush1.msra.mxu1 %v4553_v45  ;;  %v9147_v54 = vld [vmem:[#allocation12 + $0x1a8] sm:$0xff]  ;;  %v9149_v45 = vld [vmem:[#allocation12 + $0x1b8] sm:$0xff] }
 0xf1d   :  { %4603 = vmatprep.subr.mxu0 %v4548_v56  ;;  %4716 = vmatprep.subr.mxu1 %v4550_v51  ;;  %v9153_v56 = vld [vmem:[#allocation12 + $0x1a0] sm:$0xff]  ;;  %v9155_v51 = vld [vmem:[#allocation12 + $0x1b0] sm:$0xff] }
 0xf1e   :  { %4604 = vmatpush1.msra.mxu0 %v4547_v42  ;;  %4717 = vmatpush1.msra.mxu1 %v4549_v10  ;;  %v9159_v42 = vld [vmem:[#allocation12 + $0x188] sm:$0xff]  ;;  %v9161_v10 = vld [vmem:[#allocation12 + $0x198] sm:$0xff] }
 0xf1f   :  { %4605 = vmatprep.subr.mxu0 %v4544_v9  ;;  %4718 = vmatprep.subr.mxu1 %v4546_v2  ;;  %v9165_v9 = vld [vmem:[#allocation12 + $0x180] sm:$0xff]  ;;  %v9167_v2 = vld [vmem:[#allocation12 + $0x190] sm:$0xff] }
 0xf20   :  { %4606 = vmatpush1.msra.mxu0 %v4543_v13  ;;  %4719 = vmatpush1.msra.mxu1 %v4545_v15  ;;  %v9171_v13 = vld [vmem:[#allocation12 + $0x168] sm:$0xff]  ;;  %v9173_v15 = vld [vmem:[#allocation12 + $0x178] sm:$0xff] }
 0xf21   :  { %4607 = vmatprep.subr.mxu0 %v4540_v5  ;;  %4720 = vmatprep.subr.mxu1 %v4542_v14  ;;  %v9177_v5 = vld [vmem:[#allocation12 + $0x160] sm:$0xff]  ;;  %v9179_v14 = vld [vmem:[#allocation12 + $0x170] sm:$0xff] }
 0xf22   :  { %4608 = vmatpush1.msra.mxu0 %v4539_v38  ;;  %4721 = vmatpush1.msra.mxu1 %v4541_v28  ;;  %v9183_v38 = vld [vmem:[#allocation12 + $0x148] sm:$0xff]  ;;  %v9185_v28 = vld [vmem:[#allocation12 + $0x158] sm:$0xff] }
 0xf23   :  { %4609 = vmatprep.subr.mxu0 %v4536_v39  ;;  %4722 = vmatprep.subr.mxu1 %v4538_v41  ;;  %v9189_v39 = vld [vmem:[#allocation12 + $0x140] sm:$0xff]  ;;  %v9191_v41 = vld [vmem:[#allocation12 + $0x150] sm:$0xff] }
 0xf24   :  { %4610 = vmatpush1.msra.mxu0 %v4535_v55  ;;  %4723 = vmatpush1.msra.mxu1 %v4537_v22  ;;  %v9195_v55 = vld [vmem:[#allocation12 + $0x128] sm:$0xff]  ;;  %v9197_v22 = vld [vmem:[#allocation12 + $0x138] sm:$0xff] }
 0xf25   :  { %4611 = vmatprep.subr.mxu0 %v4532_v7  ;;  %4724 = vmatprep.subr.mxu1 %v4534_v63  ;;  %v9201_v7 = vld [vmem:[#allocation12 + $0x120] sm:$0xff]  ;;  %v9203_v63 = vld [vmem:[#allocation12 + $0x130] sm:$0xff] }
 0xf26   :  { %4612 = vmatpush1.msra.mxu0 %v4531_v26  ;;  %4725 = vmatpush1.msra.mxu1 %v4533_v24  ;;  %v9207_v26 = vld [vmem:[#allocation12 + $0x108] sm:$0xff]  ;;  %v9209_v24 = vld [vmem:[#allocation12 + $0x118] sm:$0xff] }
 0xf27   :  { %4613 = vmatprep.subr.mxu0 %v4528_v29  ;;  %4726 = vmatprep.subr.mxu1 %v4530_v30  ;;  %v9213_v29 = vld [vmem:[#allocation12 + $0x100] sm:$0xff]  ;;  %v9215_v30 = vld [vmem:[#allocation12 + $0x110] sm:$0xff] }
 0xf28   :  { %4614 = vmatpush1.msra.mxu0 %v4527_v18  ;;  %4727 = vmatpush1.msra.mxu1 %v4529_v16  ;;  %v9219_v18 = vld [vmem:[#allocation12 + $0xe8] sm:$0xff]  ;;  %v9221_v16 = vld [vmem:[#allocation12 + $0xf8] sm:$0xff] }
 0xf29   :  { %4615 = vmatprep.subr.mxu0 %v4524_v36  ;;  %4728 = vmatprep.subr.mxu1 %v4526_v17  ;;  %v9225_v36 = vld [vmem:[#allocation12 + $0xe0] sm:$0xff]  ;;  %v9227_v17 = vld [vmem:[#allocation12 + $0xf0] sm:$0xff] }
 0xf2a   :  { %4616 = vmatpush1.msra.mxu0 %v4523_v25  ;;  %4729 = vmatpush1.msra.mxu1 %v4525_v20  ;;  %v9231_v25 = vld [vmem:[#allocation12 + $0xc8] sm:$0xff]  ;;  %v9233_v20 = vld [vmem:[#allocation12 + $0xd8] sm:$0xff] }
 0xf2b   :  { %4617 = vmatprep.subr.mxu0 %v4520_v34  ;;  %4730 = vmatprep.subr.mxu1 %v4522_v19  ;;  %v9237_v34 = vld [vmem:[#allocation12 + $0xc0] sm:$0xff]  ;;  %v9239_v19 = vld [vmem:[#allocation12 + $0xd0] sm:$0xff] }
 0xf2c   :  { %4618 = vmatpush1.msra.mxu0 %v4519_v23  ;;  %4731 = vmatpush1.msra.mxu1 %v4521_v21  ;;  %v9243_v23 = vld [vmem:[#allocation12 + $0xa8] sm:$0xff]  ;;  %v9245_v21 = vld [vmem:[#allocation12 + $0xb8] sm:$0xff] }
 0xf2d   :  { %4619 = vmatprep.subr.mxu0 %v4516_v1  ;;  %4732 = vmatprep.subr.mxu1 %v4518_v6  ;;  %v9249_v1 = vld [vmem:[#allocation12 + $0xa0] sm:$0xff]  ;;  %v9251_v6 = vld [vmem:[#allocation12 + $0xb0] sm:$0xff] }
 0xf2e   :  { %4620 = vmatpush1.msra.mxu0 %v4515_v49  ;;  %4733 = vmatpush1.msra.mxu1 %v4517_v4  ;;  %10860 = vst [vmem:[#allocation36_spill] sm:$0xff] %v9249_v1  ;;  %10861 = vst [vmem:[#allocation38_spill] sm:$0xff] %v9251_v6  ;;  %v9255_v49 = vld [vmem:[#allocation12 + $0x88] sm:$0xff]  ;;  %v9257_v4 = vld [vmem:[#allocation12 + $0x98] sm:$0xff] }
 0xf2f   :  { %4621 = vmatprep.subr.mxu0 %v4512_v37  ;;  %4734 = vmatprep.subr.mxu1 %v4514_v48  ;;  %10862 = vst [vmem:[#allocation39_spill] sm:$0xff] %v9255_v49  ;;  %10863 = vst [vmem:[#allocation37_spill] sm:$0xff] %v9257_v4  ;;  %v9261_v37 = vld [vmem:[#allocation12 + $0x80] sm:$0xff]  ;;  %v9263_v48 = vld [vmem:[#allocation12 + $0x90] sm:$0xff] }
 0xf30   :  { %4622 = vmatpush1.msra.mxu0 %v4511_v35  ;;  %4735 = vmatpush1.msra.mxu1 %v4513_v50  ;;  %10864 = vst [vmem:[#allocation46_spill] sm:$0xff] %v9261_v37  ;;  %10865 = vst [vmem:[#allocation47_spill] sm:$0xff] %v9263_v48  ;;  %v9267_v35 = vld [vmem:[#allocation12 + $0x68] sm:$0xff]  ;;  %v9269_v50 = vld [vmem:[#allocation12 + $0x78] sm:$0xff] }
 0xf31   :  { %4623 = vmatprep.subr.mxu0 %v4508_v57  ;;  %4736 = vmatprep.subr.mxu1 %v4510_v44  ;;  %10866 = vst [vmem:[#allocation56_spill] sm:$0xff] %v9267_v35  ;;  %10867 = vst [vmem:[#allocation59_spill] sm:$0xff] %v9269_v50  ;;  %v9273_v57 = vld [vmem:[#allocation12 + $0x60] sm:$0xff]  ;;  %v9275_v44 = vld [vmem:[#allocation12 + $0x70] sm:$0xff] }
 0xf32   :  { %4624 = vmatpush1.msra.mxu0 %v4507_v62  ;;  %4657 = vmatprep.mubr.f32.mxu0 %v10843_v8  ;;  %10868 = vst [vmem:[#allocation57_spill] sm:$0xff] %v9273_v57  ;;  %10869 = vst [vmem:[#allocation58_spill] sm:$0xff] %v9275_v44  ;;  %v9279_v62 = vld [vmem:[#allocation12 + $0x48] sm:$0xff] }
 0xf33   :  { %4737 = vmatpush1.msra.mxu1 %v4509_v12  ;;  %4770 = vmatprep.mubr.f32.mxu1 %v10843_v8  ;;  %10870 = vst [vmem:[#allocation22_spill] sm:$0xff] %v9279_v62  ;;  %v9281_v12 = vld [vmem:[#allocation12 + $0x58] sm:$0xff] }
 0xf34   :  { %4658 = vmatmul.mubr.f32.vlgmr.msra.gmra.mxu0 %v10854_v40  ;;  %4771 = vmatmul.mubr.f32.vlgmr.msra.gmra.mxu1 %v10854_v40  ;;  %10871 = vst [vmem:[#allocation52_spill] sm:$0xff] %v9281_v12  ;;  %v9285_v40 = vld [vmem:[#allocation12 + $0x40] sm:$0xff] }
 0xf35   :  { %4663 = vmatprep.mubr.f32.mxu0 %v10843_v8  ;;  %4776 = vmatprep.mubr.f32.mxu1 %v10843_v8  ;;  %10872 = vst [vmem:[#allocation54_spill] sm:$0xff] %v9285_v40 }
 0xf36   :  { %4954 = vmatprep.subr.mxu1 %v9125_v11 }
 0xf37   :  { %4955 = vmatpush1.msra.mxu1 %v9131_v52 }
 0xf38   :  { %4664 = vmatmul.mubr.f32.gmra.mxu0 %v10855_v31  ;;  %4777 = vmatmul.mubr.f32.gmra.mxu1 %v10855_v31  ;;  %v9287_v31 = vld [vmem:[#allocation12 + $0x50] sm:$0xff] }
 0xf39   :  { %4669 = vmatprep.mubr.f32.mxu0 %v10843_v8  ;;  %4782 = vmatprep.mubr.f32.mxu1 %v10843_v8  ;;  %10873 = vst [vmem:[#allocation55_spill] sm:$0xff] %v9287_v31 }
 0xf3a   :  { %4956 = vmatprep.subr.mxu1 %v9137_v3 }
 0xf3b   :  { %4957 = vmatpush1.msra.mxu1 %v9143_v46 }
 0xf3c   :  { %4670 = vmatmul.mubr.f32.gmra.mxu0 %v10856_v60  ;;  %4783 = vmatmul.mubr.f32.gmra.mxu1 %v10856_v60  ;;  %v9291_v60 = vld [vmem:[#allocation12 + $0x28] sm:$0xff] }
 0xf3d   :  { %4675 = vmatprep.mubr.f32.mxu0 %v10843_v8  ;;  %4788 = vmatprep.mubr.f32.mxu1 %v10843_v8  ;;  %10874 = vst [vmem:[#allocation53_spill] sm:$0xff] %v9291_v60 }
 0xf3e   :  { %4958 = vmatprep.subr.mxu1 %v9149_v45 }
 0xf3f   :  { %4959 = vmatpush1.msra.mxu1 %v9155_v51 }
 0xf40   :  { %4676 = vmatmul.mubr.f32.gmra.mxu0 %v10857_v0  ;;  %4789 = vmatmul.mubr.f32.gmra.mxu1 %v10857_v0  ;;  %v9293_v0 = vld [vmem:[#allocation12 + $0x38] sm:$0xff] }
 0xf41   :  { %4681 = vmatprep.mubr.f32.mxu0 %v10843_v8  ;;  %4794 = vmatprep.mubr.f32.mxu1 %v10843_v8  ;;  %10875 = vst [vmem:[#allocation23_spill] sm:$0xff] %v9293_v0 }
 0xf42   :  { %4960 = vmatprep.subr.mxu1 %v9161_v10 }
 0xf43   :  { %4961 = vmatpush1.msra.mxu1 %v9167_v2 }
 0xf44   :  { %4682 = vmatmul.mubr.f32.gmra.mxu0 %v8959_v59  ;;  %4795 = vmatmul.mubr.f32.gmra.mxu1 %v8959_v59  ;;  %v9123_v59 = vld [vmem:[#allocation12 + $0x1e8] sm:$0xff] }
 0xf45   :  { %4687 = vmatprep.mubr.f32.mxu0 %v10843_v8  ;;  %4800 = vmatprep.mubr.f32.mxu1 %v10843_v8  ;;  %10858 = vst [vmem:[#allocation51_spill] sm:$0xff] %v9123_v59 }
 0xf46   :  { %4883 = vmatprep.subr.mxu0 %v9123_v59  ;;  %4962 = vmatprep.subr.mxu1 %v9173_v15 }
 0xf47   :  { %4963 = vmatpush1.msra.mxu1 %v9179_v14 }
 0xf48   :  { %4688 = vmatmul.mubr.f32.gmra.mxu0 %v9039_v43  ;;  %4801 = vmatmul.mubr.f32.gmra.mxu1 %v9039_v43  ;;  %v9129_v43 = vld [vmem:[#allocation12 + $0x1e0] sm:$0xff] }
 0xf49   :  { %4693 = vmatprep.mubr.f32.mxu0 %v10843_v8  ;;  %4806 = vmatprep.mubr.f32.mxu1 %v10843_v8 }
 0xf4a   :  { %4884 = vmatpush1.msra.mxu0 %v9129_v43  ;;  %4964 = vmatprep.subr.mxu1 %v9185_v28 }
 0xf4b   :  { %4965 = vmatpush1.msra.mxu1 %v9191_v41 }
 0xf4c   :  { %4694 = vmatmul.mubr.f32.gmra.mxu0 %v9089_v47  ;;  %4807 = vmatmul.mubr.f32.gmra.mxu1 %v9089_v47  ;;  %v9135_v47 = vld [vmem:[#allocation12 + $0x1c8] sm:$0xff] }
 0xf4d   :  { %4699 = vmatprep.mubr.f32.mxu0 %v10843_v8  ;;  %4812 = vmatprep.mubr.f32.mxu1 %v10843_v8 }
 0xf4e   :  { %4885 = vmatprep.subr.mxu0 %v9135_v47  ;;  %4966 = vmatprep.subr.mxu1 %v9197_v22 }
 0xf4f   :  { %4886 = vmatpush1.msra.mxu0 %v9141_v53  ;;  %4967 = vmatpush1.msra.mxu1 %v9203_v63 }
 0xf50   :  { %4887 = vmatprep.subr.mxu0 %v9147_v54  ;;  %4968 = vmatprep.subr.mxu1 %v9209_v24 }
 0xf51   :  { %4888 = vmatpush1.msra.mxu0 %v9153_v56  ;;  %4969 = vmatpush1.msra.mxu1 %v9215_v30 }
 0xf52   :  { %4889 = vmatprep.subr.mxu0 %v9159_v42  ;;  %4970 = vmatprep.subr.mxu1 %v9221_v16 }
 0xf53   :  { %4890 = vmatpush1.msra.mxu0 %v9165_v9  ;;  %4971 = vmatpush1.msra.mxu1 %v9227_v17 }
 0xf54   :  { %4891 = vmatprep.subr.mxu0 %v9171_v13  ;;  %4972 = vmatprep.subr.mxu1 %v9233_v20 }
 0xf55   :  { %4892 = vmatpush1.msra.mxu0 %v9177_v5  ;;  %4973 = vmatpush1.msra.mxu1 %v9239_v19 }
 0xf56   :  { %4893 = vmatprep.subr.mxu0 %v9183_v38  ;;  %4974 = vmatprep.subr.mxu1 %v9245_v21 }
 0xf57   :  { %4894 = vmatpush1.msra.mxu0 %v9189_v39  ;;  %4975 = vmatpush1.msra.mxu1 %v9251_v6 }
 0xf58   :  { %4895 = vmatprep.subr.mxu0 %v9195_v55  ;;  %4976 = vmatprep.subr.mxu1 %v9257_v4 }
 0xf59   :  { %4896 = vmatpush1.msra.mxu0 %v9201_v7  ;;  %4977 = vmatpush1.msra.mxu1 %v9263_v48 }
 0xf5a   :  { %4897 = vmatprep.subr.mxu0 %v9207_v26  ;;  %4978 = vmatprep.subr.mxu1 %v9269_v50 }
 0xf5b   :  { %4898 = vmatpush1.msra.mxu0 %v9213_v29  ;;  %4979 = vmatpush1.msra.mxu1 %v9275_v44  ;;  %v9297_v44 = vld [vmem:[#allocation12 + $0x20] sm:$0xff] }
 0xf5c   :  { %4899 = vmatprep.subr.mxu0 %v9219_v18  ;;  %4980 = vmatprep.subr.mxu1 %v9281_v12  ;;  %10876 = vst [vmem:[#allocation24_spill] sm:$0xff] %v9297_v44  ;;  %v9303_v12 = vld [vmem:[#allocation12 + $0x8] sm:$0xff] }
 0xf5d   :  { %4900 = vmatpush1.msra.mxu0 %v9225_v36  ;;  %4981 = vmatpush1.msra.mxu1 %v9287_v31  ;;  %10878 = vst [vmem:[#allocation26_spill] sm:$0xff] %v9303_v12  ;;  %v9307_v31 = vld [vmem:[#allocation12] sm:$0xff] }
 0xf5e   :  { %4901 = vmatprep.subr.mxu0 %v9231_v25  ;;  %4982 = vmatprep.subr.mxu1 %v9293_v0  ;;  %10880 = vst [vmem:[#allocation28_spill] sm:$0xff] %v9307_v31 }
 0xf5f   :  { %4902 = vmatpush1.msra.mxu0 %v9237_v34 }
 0xf60   :  { %4903 = vmatprep.subr.mxu0 %v9243_v23 }
 0xf61   :  { %4904 = vmatpush1.msra.mxu0 %v9249_v1 }
 0xf62   :  { %4905 = vmatprep.subr.mxu0 %v9255_v49  ;;  %v10885_v49 = vld [vmem:[#allocation67_spill] sm:$0xff] }
 0xf63   :  { %4906 = vmatpush1.msra.mxu0 %v9261_v37 }
 0xf64   :  { %4907 = vmatprep.subr.mxu0 %v9267_v35 }
 0xf65   :  { %4908 = vmatpush1.msra.mxu0 %v9273_v57  ;;  %v10883_v57 = vld [vmem:[#allocation65_spill] sm:$0xff] }
 0xf66   :  { %4909 = vmatprep.subr.mxu0 %v9279_v62  ;;  %v9299_v62 = vld [vmem:[#allocation12 + $0x30] sm:$0xff]  ;;  %v2504_v50 = vadd.f32 %v10883_v57, %v8482_v32 }
 0xf67   :  { %4910 = vmatpush1.msra.mxu0 %v9285_v40  ;;  %10877 = vst [vmem:[#allocation25_spill] sm:$0xff] %v9299_v62  ;;  %4983 = vmatpush1.msra.mxu1 %v9299_v62  ;;  %v9305_v40 = vld [vmem:[#allocation12 + $0x18] sm:$0xff]  ;;  %v10882_v62 = vld [vmem:[#allocation66_spill] sm:$0xff] }
 0xf68   :  { %4911 = vmatprep.subr.mxu0 %v9291_v60  ;;  %10879 = vst [vmem:[#allocation27_spill] sm:$0xff] %v9305_v40  ;;  %4984 = vmatprep.subr.mxu1 %v9305_v40  ;;  %v9311_v60 = vld [vmem:[#allocation12 + $0x10] sm:$0xff] }
 0xf69   :  { %4912 = vmatpush1.msra.mxu0 %v9297_v44  ;;  %10881 = vst [vmem:[#allocation30_spill] sm:$0xff] %v9311_v60  ;;  %4985 = vmatpush1.msra.mxu1 %v9311_v60  ;;  %v2502_v44 = vadd.f32 %v10882_v62, %v10845_v61  ;;  %v2615_v61 = vadd.f32 %v10885_v49, %v8497_v33  ;;  %v10888_v49 = vld [vmem:[#allocation39_spill] sm:$0xff] }
 0xf6a   :  { %4913 = vmatprep.subr.mxu0 %v9303_v12  ;;  %5124 = vmatprep.subr.mxu1 %v9125_v11 }
 0xf6b   :  { %4914 = vmatpush1.msra.mxu0 %v9307_v31 }
 0xf6c   :  { %5053 = vmatprep.subr.mxu0 %v9123_v59  ;;  %v10884_v59 = vld [vmem:[#allocation43_spill] sm:$0xff] }
 0xf6d   :  { %v2617_v4 = vadd.f32 %v10884_v59, %v10746_v27 }
 0xfd3   :  { %v4394_v0 = vpop.f32.mrf.mxu0  ;;  %v4465_v37 = vpop.f32.mrf.mxu1 }
 0xfd4   :  { %v4470_v12 = vadd.f32 %v4394_v0, %v2502_v44  ;;  %v4472_v62 = vadd.f32 %v4465_v37, %v2615_v61  ;;  %v10889_v37 = vld [vmem:[#allocation37_spill] sm:$0xff]  ;;  %v10892_v0 = vld [vmem:[#allocation56_spill] sm:$0xff]  ;;  %v10893_v61 = vld [vmem:[#allocation59_spill] sm:$0xff] }
 0xfd5   :  { %v4396_v35 = vpop.f32.mrf.mxu0  ;;  %v4467_v60 = vpop.f32.mrf.mxu1 }
 0xfd6   :  { %v6409_v40 = vmul.f32 -1.442695, %v4470_v12  ;;  %v4471_v48 = vadd.f32 %v4396_v35, %v2504_v50  ;;  %v4473_v11 = vadd.f32 %v4467_v60, %v2617_v4  ;;  %v10891_v60 = vld [vmem:[#allocation47_spill] sm:$0xff] }
 0xfd8   :  { %6738 = vpow2.f32 %v6409_v40  ;;  %v6410_v31 = vmul.f32 -1.442695, %v4471_v48  ;;  %v6411_v6 = vmul.f32 -1.442695, %v4473_v11 }
 0xfda   :  { %6740 = vpow2.f32 %v6410_v31  ;;  %v10890_v31 = vld [vmem:[#allocation46_spill] sm:$0xff] }
 0xfdb   :  { %6742 = vtanh.f32 %v4472_v62  ;;  %v10894_v62 = vld [vmem:[#allocation57_spill] sm:$0xff] }
 0xfdc   :  { %6744 = vpow2.f32 %v6411_v6  ;;  %v10887_v6 = vld [vmem:[#allocation38_spill] sm:$0xff] }
 0xfe5   :  { %v6739_v1 = vpop.eup %6738 }
 0xfe6   :  { %v4477_v32 = vadd.f32 1.0, %v6739_v1 }
 0xfe7   :  { %v6741_v57 = vpop.eup %6740 }
 0xfe8   :  { %6746 = vrcp.f32 %v4477_v32  ;;  %v4483_v35 = vadd.f32 1.0, %v6741_v57  ;;  %v6743_v48 = vpop.eup %6742  ;;  %v10895_v32 = vld [vmem:[#allocation58_spill] sm:$0xff] }
 0xfe9   :  { %v6745_v50 = vpop.eup %6744  ;;  %v10896_v57 = vld [vmem:[#allocation22_spill] sm:$0xff] }
 0xfea   :  { %6748 = vrcp.f32 %v4483_v35  ;;  %v4490_v27 = vadd.f32 1.0, %v6745_v50  ;;  %v10897_v35 = vld [vmem:[#allocation52_spill] sm:$0xff]  ;;  %v10899_v50 = vld [vmem:[#allocation55_spill] sm:$0xff] }
 0xfec   :  { %6750 = vrcp.f32 %v4490_v27  ;;  %v10903_v27 = vld [vmem:[#allocation25_spill] sm:$0xff] }
 0xff5   :  { %v6747_v44 = vpop.eup %6746 }
 0xff6   :  { %v4494_v12 = vmul.f32 %v6747_v44, %v6743_v48  ;;  %v10898_v48 = vld [vmem:[#allocation54_spill] sm:$0xff]  ;;  %v10900_v44 = vld [vmem:[#allocation53_spill] sm:$0xff] }
 0xff7   :  { %v6749_v40 = vpop.eup %6748 }
 0xff8   :  { %v4493_v59 = vmul.f32 %v6749_v40, %v9086_v58  ;;  %v10886_v58 = vld [vmem:[#allocation36_spill] sm:$0xff] }
 0xff9   :  { %v6751_v33 = vpop.eup %6750  ;;  %v10902_v40 = vld [vmem:[#allocation24_spill] sm:$0xff] }
 0xffa   :  { %v4495_v4 = vadd.f32 %v4494_v12, %v4493_v59  ;;  %v10901_v12 = vld [vmem:[#allocation23_spill] sm:$0xff]  ;;  %v10904_v59 = vld [vmem:[#allocation26_spill] sm:$0xff] }
 0xffc   :  { %6752 = vtanh.f32 %v4495_v4  ;;  %v10905_v4 = vld [vmem:[#allocation27_spill] sm:$0xff] }
0x1009   :  { %v6753_v11 = vpop.eup %6752 }
0x100a   :  { %v4497_v1 = vmul.f32 %v6753_v11, %v6751_v33  ;;  %v10906_v33 = vld [vmem:[#allocation28_spill] sm:$0xff]  ;;  %v10907_v11 = vld [vmem:[#allocation30_spill] sm:$0xff] }
0x100c   :  { %4700 = vmatmul.mubr.f32.gmra.mxu0 %v4497_v1  ;;  %4813 = vmatmul.mubr.f32.gmra.mxu1 %v4497_v1  ;;  %v10908_v1 = vld [vmem:[#allocation51_spill] sm:$0xff] }
0x100d   :  { %4947 = vmatprep.mubr.f32.mxu0 %v10843_v8  ;;  %5018 = vmatprep.mubr.f32.mxu1 %v10843_v8 }
0x1010   :  { %4948 = vmatmul.mubr.f32.vlgmr.msra.gmra.mxu0 %v10843_v8  ;;  %5019 = vmatmul.mubr.f32.vlgmr.msra.gmra.mxu1 %v10843_v8 }
0x1011   :  { %5054 = vmatpush1.msra.mxu0 %v9129_v43  ;;  %5125 = vmatpush1.msra.mxu1 %v9131_v52 }
0x1012   :  { %5055 = vmatprep.subr.mxu0 %v9135_v47  ;;  %5126 = vmatprep.subr.mxu1 %v9137_v3 }
0x1013   :  { %5056 = vmatpush1.msra.mxu0 %v9141_v53  ;;  %5127 = vmatpush1.msra.mxu1 %v9143_v46 }
0x1014   :  { %5057 = vmatprep.subr.mxu0 %v9147_v54  ;;  %5128 = vmatprep.subr.mxu1 %v9149_v45 }
0x1015   :  { %5058 = vmatpush1.msra.mxu0 %v9153_v56  ;;  %5129 = vmatpush1.msra.mxu1 %v9155_v51 }
0x1016   :  { %5059 = vmatprep.subr.mxu0 %v9159_v42  ;;  %5130 = vmatprep.subr.mxu1 %v9161_v10 }
0x1017   :  { %5060 = vmatpush1.msra.mxu0 %v9165_v9  ;;  %5131 = vmatpush1.msra.mxu1 %v9167_v2 }
0x1018   :  { %5061 = vmatprep.subr.mxu0 %v9171_v13  ;;  %5132 = vmatprep.subr.mxu1 %v9173_v15 }
0x1019   :  { %5062 = vmatpush1.msra.mxu0 %v9177_v5  ;;  %5133 = vmatpush1.msra.mxu1 %v9179_v14 }
0x101a   :  { %5063 = vmatprep.subr.mxu0 %v9183_v38  ;;  %5134 = vmatprep.subr.mxu1 %v9185_v28 }
0x101b   :  { %5064 = vmatpush1.msra.mxu0 %v9189_v39  ;;  %5135 = vmatpush1.msra.mxu1 %v9191_v41 }
0x101c   :  { %5065 = vmatprep.subr.mxu0 %v9195_v55  ;;  %5136 = vmatprep.subr.mxu1 %v9197_v22 }
0x101d   :  { %5066 = vmatpush1.msra.mxu0 %v9201_v7  ;;  %5137 = vmatpush1.msra.mxu1 %v9203_v63 }
0x101e   :  { %5067 = vmatprep.subr.mxu0 %v9207_v26  ;;  %5138 = vmatprep.subr.mxu1 %v9209_v24 }
0x101f   :  { %5068 = vmatpush1.msra.mxu0 %v9213_v29  ;;  %5139 = vmatpush1.msra.mxu1 %v9215_v30 }
0x1020   :  { %5069 = vmatprep.subr.mxu0 %v9219_v18  ;;  %5140 = vmatprep.subr.mxu1 %v9221_v16 }
0x1021   :  { %5070 = vmatpush1.msra.mxu0 %v9225_v36  ;;  %5141 = vmatpush1.msra.mxu1 %v9227_v17 }
0x1022   :  { %5071 = vmatprep.subr.mxu0 %v9231_v25  ;;  %5142 = vmatprep.subr.mxu1 %v9233_v20 }
0x1023   :  { %5072 = vmatpush1.msra.mxu0 %v9237_v34  ;;  %5143 = vmatpush1.msra.mxu1 %v9239_v19 }
0x1024   :  { %5073 = vmatprep.subr.mxu0 %v9243_v23  ;;  %5144 = vmatprep.subr.mxu1 %v9245_v21 }
0x1025   :  { %5074 = vmatpush1.msra.mxu0 %v10886_v58  ;;  %5145 = vmatpush1.msra.mxu1 %v10887_v6 }
0x1026   :  { %5075 = vmatprep.subr.mxu0 %v10888_v49  ;;  %5146 = vmatprep.subr.mxu1 %v10889_v37 }
0x1027   :  { %5076 = vmatpush1.msra.mxu0 %v10890_v31  ;;  %5147 = vmatpush1.msra.mxu1 %v10891_v60 }
0x1028   :  { %5077 = vmatprep.subr.mxu0 %v10892_v0  ;;  %5148 = vmatprep.subr.mxu1 %v10893_v61 }
0x1029   :  { %5078 = vmatpush1.msra.mxu0 %v10894_v62  ;;  %5149 = vmatpush1.msra.mxu1 %v10895_v32 }
0x102a   :  { %5079 = vmatprep.subr.mxu0 %v10896_v57  ;;  %5150 = vmatprep.subr.mxu1 %v10897_v35 }
0x102b   :  { %5080 = vmatpush1.msra.mxu0 %v10898_v48  ;;  %5151 = vmatpush1.msra.mxu1 %v10899_v50 }
0x102c   :  { %5081 = vmatprep.subr.mxu0 %v10900_v44  ;;  %5152 = vmatprep.subr.mxu1 %v10901_v12  ;;  %v10909_v44 = vld [vmem:[#allocation49_spill] sm:$0xff]  ;;  %v4659_v12 = vpop.f32.mrf.mxu0 }
0x102d   :  { %5082 = vmatpush1.msra.mxu0 %v10902_v40  ;;  %5153 = vmatpush1.msra.mxu1 %v10903_v27  ;;  %v4772_v40 = vpop.f32.mrf.mxu1 }
0x102e   :  { %5083 = vmatprep.subr.mxu0 %v10904_v59  ;;  %5154 = vmatprep.subr.mxu1 %v10905_v4  ;;  %v4661_v50 = vpop.f32.mrf.mxu0 }
0x102f   :  { %5084 = vmatpush1.msra.mxu0 %v10906_v33  ;;  %5117 = vmatprep.mubr.f32.mxu0 %v10843_v8  ;;  %v4774_v27 = vpop.f32.mrf.mxu1 }
0x1030   :  { %5155 = vmatpush1.msra.mxu1 %v10907_v11  ;;  %5188 = vmatprep.mubr.f32.mxu1 %v10843_v8  ;;  %v9396_v48 = vpop.f32.mrf.mxu0 }
0x1031   :  { %5223 = vmatprep.subr.mxu0 %v10908_v1  ;;  %5294 = vmatprep.subr.mxu1 %v10909_v44  ;;  %10910 = vst [vmem:[#allocation41_spill] sm:$0xff] %v9396_v48  ;;  %v9398_v59 = vpop.f32.mrf.mxu1 }
0x1032   :  { %10911 = vst [vmem:[#allocation31_spill] sm:$0xff] %v9398_v59  ;;  %v9400_v4 = vpop.f32.mrf.mxu0 }
0x1033   :  { %10912 = vst [vmem:[#allocation29_spill] sm:$0xff] %v9400_v4  ;;  %v9402_v33 = vpop.f32.mrf.mxu1 }
0x1034   :  { %10913 = vst [vmem:[#allocation32_spill] sm:$0xff] %v9402_v33  ;;  %v9404_v35 = vpop.f32.mrf.mxu0 }
0x1035   :  { %10914 = vst [vmem:[#allocation34_spill] sm:$0xff] %v9404_v35  ;;  %v9406_v11 = vpop.f32.mrf.mxu1 }
0x1036   :  { %10915 = vst [vmem:[#allocation35_spill] sm:$0xff] %v9406_v11  ;;  %v9408_v8 = vpop.f32.mrf.mxu0 }
0x1037   :  { %10916 = vst [vmem:[#allocation33_spill] sm:$0xff] %v9408_v8  ;;  %v9410_v1 = vpop.f32.mrf.mxu1 }
0x1038   :  { %10917 = vst [vmem:[#allocation45_spill] sm:$0xff] %v9410_v1  ;;  %v9412_v44 = vpop.f32.mrf.mxu0 }
0x1039   :  { %10918 = vst [vmem:[#allocation48_spill] sm:$0xff] %v9412_v44  ;;  %v9414_v57 = vpop.f32.mrf.mxu1 }
0x103a   :  { %10919 = vst [vmem:[#allocation42_spill] sm:$0xff] %v9414_v57  ;;  %v9416_v32 = vpop.f32.mrf.mxu0 }
0x103b   :  { %10920 = vst [vmem:[#allocation60_spill] sm:$0xff] %v9416_v32  ;;  %v9418_v48 = vpop.f32.mrf.mxu1 }
0x103c   :  { %10921 = vst [vmem:[#allocation63_spill] sm:$0xff] %v9418_v48  ;;  %v9420_v59 = vpop.f32.mrf.mxu0 }
0x103d   :  { %10922 = vst [vmem:[#allocation61_spill] sm:$0xff] %v9420_v59  ;;  %v9422_v4 = vpop.f32.mrf.mxu1 }
0x103e   :  { %10923 = vst [vmem:[#allocation62_spill] sm:$0xff] %v9422_v4  ;;  %v9424_v33 = vpop.f32.mrf.mxu0  ;;  %v4571_v4 = vld [vmem:[%s10155_s9] sm:$0xf] }
0x103f   :  { %10924 = vst [vmem:[#allocation68_spill] sm:$0xff] %v9424_v33  ;;  %v9426_v35 = vpop.f32.mrf.mxu1  ;;  %v10933_v33 = vld [vmem:[#allocation18_spill] sm:$0xff] }
0x1040   :  { %10925 = vst [vmem:[#allocation40_spill] sm:$0xff] %v9426_v35  ;;  %v9428_v11 = vpop.f32.mrf.mxu0  ;;  %v9446_v35 = vrot.slane %v4571_v4, %v10933_v33 }
0x1041   :  { %10926 = vst [vmem:[#allocation64_spill] sm:$0xff] %v9428_v11  ;;  %v9430_v8 = vpop.f32.mrf.mxu1 }
0x1042   :  { %10927 = vst [vmem:[#allocation20_spill] sm:$0xff] %v9430_v8  ;;  %v9432_v1 = vpop.f32.mrf.mxu0  ;;  %10934 = vst [vmem:[#allocation65_spill] sm:$0xff] %v9446_v35 }
0x1043   :  { %10928 = vst [vmem:[#allocation69_spill] sm:$0xff] %v9432_v1  ;;  %v9434_v44 = vpop.f32.mrf.mxu1  ;;  %v10937_v1 = vld [vmem:[#allocation16_spill] sm:$0xff] }
0x1044   :  { %10929 = vst [vmem:[#allocation44_spill] sm:$0xff] %v9434_v44  ;;  %v9436_v57 = vpop.f32.mrf.mxu0  ;;  %v9453_v48 = vrot.slane %v4571_v4, %v10937_v1  ;;  %v10941_v1 = vld [vmem:[#allocation17_spill] sm:$0xff] }
0x1045   :  { %10930 = vst [vmem:[#allocation21_spill] sm:$0xff] %v9436_v57  ;;  %v9438_v32 = vpop.f32.mrf.mxu1  ;;  %v9464_v37 = vrot.slane %v4571_v4, %v10941_v1 }
0x1046   :  { %10931 = vst [vmem:[#allocation50_spill] sm:$0xff] %v9438_v32  ;;  %v9443_v59 = vpop.f32.mrf.mxu0  ;;  %v4660_v32 = vadd.f32 %v4659_v12, %v9446_v35  ;;  %v4662_v61 = vadd.f32 %v4661_v50, %v9453_v48  ;;  %v10943_v12 = vld [vmem:[#allocation19_spill] sm:$0xff] }
0x1047   :  { %10932 = vst [vmem:[#allocation66_spill] sm:$0xff] %v9443_v59  ;;  %v9448_v11 = vpop.f32.mrf.mxu1  ;;  %10942 = vst [vmem:[#allocation17_spill] sm:$0xff] %v9464_v37  ;;  %v9468_v35 = vrot.slane %v4571_v4, %v10943_v12 }
0x1048   :  { %10935 = vst [vmem:[#allocation43_spill] sm:$0xff] %v9448_v11 }
0x10cc   :  { %v9450_v8 = vpop.f32.mrf.mxu0  ;;  %v9455_v44 = vpop.f32.mrf.mxu1 }
0x10cd   :  { %10936 = vst [vmem:[#allocation67_spill] sm:$0xff] %v9450_v8  ;;  %10938 = vst [vmem:[#allocation36_spill] sm:$0xff] %v9455_v44 }
0x10ce   :  { %v9457_v57 = vpop.f32.mrf.mxu0  ;;  %v9461_v59 = vpop.f32.mrf.mxu1 }
0x10cf   :  { %10939 = vst [vmem:[#allocation18_spill] sm:$0xff] %v9457_v57  ;;  %10940 = vst [vmem:[#allocation16_spill] sm:$0xff] %v9461_v59  ;;  %v4775_v57 = vadd.f32 %v4774_v27, %v9464_v37  ;;  %v4773_v59 = vadd.f32 %v4772_v40, %v9468_v35 }
0x10d0   :  { %v4949_v62 = vpop.f32.mrf.mxu0  ;;  %v5020_v8 = vpop.f32.mrf.mxu1 }
0x10d1   :  { %v5025_v33 = vadd.f32 %v4949_v62, %v4660_v32 }
0x10d2   :  { %v4951_v0 = vpop.f32.mrf.mxu0  ;;  %v5022_v44 = vpop.f32.mrf.mxu1 }
0x10d3   :  { %v6412_v60 = vmul.f32 -1.442695, %v5025_v33  ;;  %v5026_v11 = vadd.f32 %v4951_v0, %v4662_v61  ;;  %v5028_v50 = vadd.f32 %v5022_v44, %v4775_v57  ;;  %v5027_v33 = vadd.f32 %v5020_v8, %v4773_v59  ;;  %v10945_v59 = vld [vmem:[#allocation46_spill] sm:$0xff] }
0x10d5   :  { %6754 = vpow2.f32 %v6412_v60  ;;  %v6413_v31 = vmul.f32 -1.442695, %v5026_v11  ;;  %v6414_v62 = vmul.f32 -1.442695, %v5028_v50  ;;  %v10946_v50 = vld [vmem:[#allocation47_spill] sm:$0xff] }
0x10d7   :  { %6756 = vpow2.f32 %v6413_v31 }
0x10d8   :  { %6758 = vpow2.f32 %v6414_v62  ;;  %v10947_v62 = vld [vmem:[#allocation56_spill] sm:$0xff] }
0x10e2   :  { %v6755_v32 = vpop.eup %6754 }
0x10e3   :  { %v5032_v0 = vadd.f32 1.0, %v6755_v32  ;;  %v10948_v32 = vld [vmem:[#allocation59_spill] sm:$0xff] }
0x10e4   :  { %v6757_v60 = vpop.eup %6756 }
0x10e5   :  { %6760 = vrcp.f32 %v5032_v0  ;;  %v5038_v61 = vadd.f32 1.0, %v6757_v60  ;;  %v6759_v31 = vpop.eup %6758  ;;  %v10950_v0 = vld [vmem:[#allocation58_spill] sm:$0xff] }
0x10e6   :  { %6762 = vtanh.f32 %v5027_v33  ;;  %v5045_v37 = vadd.f32 1.0, %v6759_v31  ;;  %v10949_v33 = vld [vmem:[#allocation57_spill] sm:$0xff]  ;;  %v10951_v60 = vld [vmem:[#allocation22_spill] sm:$0xff] }
0x10e7   :  { %6764 = vrcp.f32 %v5038_v61  ;;  %v10952_v61 = vld [vmem:[#allocation52_spill] sm:$0xff]  ;;  %v10953_v31 = vld [vmem:[#allocation54_spill] sm:$0xff] }
0x10e8   :  { %6766 = vrcp.f32 %v5045_v37  ;;  %v10944_v37 = vld [vmem:[#allocation37_spill] sm:$0xff] }
0x10f2   :  { %v6761_v11 = vpop.eup %6760 }
0x10f3   :  { %v6763_v1 = vpop.eup %6762 }
0x10f4   :  { %v6765_v27 = vpop.eup %6764  ;;  %v5049_v12 = vmul.f32 %v6763_v1, %v6761_v11  ;;  %v10954_v11 = vld [vmem:[#allocation55_spill] sm:$0xff]  ;;  %v10955_v1 = vld [vmem:[#allocation53_spill] sm:$0xff] }
0x10f5   :  { %v5048_v4 = vmul.f32 0.0, %v6765_v27  ;;  %v6767_v8 = vpop.eup %6766  ;;  %v10956_v27 = vld [vmem:[#allocation23_spill] sm:$0xff] }
0x10f7   :  { %v9471_v57 = vadd.f32 %v5049_v12, %v5048_v4  ;;  %v10957_v4 = vld [vmem:[#allocation24_spill] sm:$0xff]  ;;  %v10958_v12 = vld [vmem:[#allocation25_spill] sm:$0xff] }
0x10f9   :  { %6768 = vtanh.f32 %v9471_v57 }
0x1106   :  { %v6769_v44 = vpop.eup %6768 }
0x1107   :  { %v5052_v40 = vmul.f32 %v6769_v44, %v6767_v8  ;;  %v10959_v8 = vld [vmem:[#allocation26_spill] sm:$0xff]  ;;  %v10960_v44 = vld [vmem:[#allocation27_spill] sm:$0xff] }
0x1109   :  { %5118 = vmatmul.mubr.f32.vlgmr.msra.gmra.mxu0 %v5052_v40  ;;  %5189 = vmatmul.mubr.f32.vlgmr.msra.gmra.mxu1 %v5052_v40  ;;  %v10961_v40 = vld [vmem:[#allocation28_spill] sm:$0xff] }
0x110a   :  { %5224 = vmatpush1.msra.mxu0 %v9129_v43  ;;  %5295 = vmatpush1.msra.mxu1 %v9131_v52 }
0x110b   :  { %5225 = vmatprep.subr.mxu0 %v9135_v47  ;;  %5296 = vmatprep.subr.mxu1 %v9137_v3 }
0x110c   :  { %5226 = vmatpush1.msra.mxu0 %v9141_v53  ;;  %5297 = vmatpush1.msra.mxu1 %v9143_v46 }
0x110d   :  { %5227 = vmatprep.subr.mxu0 %v9147_v54  ;;  %5298 = vmatprep.subr.mxu1 %v9149_v45 }
0x110e   :  { %5228 = vmatpush1.msra.mxu0 %v9153_v56  ;;  %5299 = vmatpush1.msra.mxu1 %v9155_v51 }
0x110f   :  { %5229 = vmatprep.subr.mxu0 %v9159_v42  ;;  %5300 = vmatprep.subr.mxu1 %v9161_v10 }
0x1110   :  { %5230 = vmatpush1.msra.mxu0 %v9165_v9  ;;  %5301 = vmatpush1.msra.mxu1 %v9167_v2 }
0x1111   :  { %5231 = vmatprep.subr.mxu0 %v9171_v13  ;;  %5302 = vmatprep.subr.mxu1 %v9173_v15 }
0x1112   :  { %5232 = vmatpush1.msra.mxu0 %v9177_v5  ;;  %5303 = vmatpush1.msra.mxu1 %v9179_v14 }
0x1113   :  { %5233 = vmatprep.subr.mxu0 %v9183_v38  ;;  %5304 = vmatprep.subr.mxu1 %v9185_v28 }
0x1114   :  { %5234 = vmatpush1.msra.mxu0 %v9189_v39  ;;  %5305 = vmatpush1.msra.mxu1 %v9191_v41 }
0x1115   :  { %5235 = vmatprep.subr.mxu0 %v9195_v55  ;;  %5306 = vmatprep.subr.mxu1 %v9197_v22 }
0x1116   :  { %5236 = vmatpush1.msra.mxu0 %v9201_v7  ;;  %5307 = vmatpush1.msra.mxu1 %v9203_v63 }
0x1117   :  { %5237 = vmatprep.subr.mxu0 %v9207_v26  ;;  %5308 = vmatprep.subr.mxu1 %v9209_v24 }
0x1118   :  { %5238 = vmatpush1.msra.mxu0 %v9213_v29  ;;  %5309 = vmatpush1.msra.mxu1 %v9215_v30 }
0x1119   :  { %5239 = vmatprep.subr.mxu0 %v9219_v18  ;;  %5310 = vmatprep.subr.mxu1 %v9221_v16 }
0x111a   :  { %5240 = vmatpush1.msra.mxu0 %v9225_v36  ;;  %5311 = vmatpush1.msra.mxu1 %v9227_v17 }
0x111b   :  { %5241 = vmatprep.subr.mxu0 %v9231_v25  ;;  %5312 = vmatprep.subr.mxu1 %v9233_v20 }
0x111c   :  { %5242 = vmatpush1.msra.mxu0 %v9237_v34  ;;  %5313 = vmatpush1.msra.mxu1 %v9239_v19 }
0x111d   :  { %5243 = vmatprep.subr.mxu0 %v9243_v23  ;;  %5314 = vmatprep.subr.mxu1 %v9245_v21 }
0x111e   :  { %5244 = vmatpush1.msra.mxu0 %v10886_v58  ;;  %5315 = vmatpush1.msra.mxu1 %v10887_v6 }
0x111f   :  { %5245 = vmatprep.subr.mxu0 %v10888_v49  ;;  %5316 = vmatprep.subr.mxu1 %v10944_v37  ;;  %v10971_v37 = vld [vmem:[#allocation31_spill] sm:$0xff] }
0x1120   :  { %5246 = vmatpush1.msra.mxu0 %v10945_v59  ;;  %5317 = vmatpush1.msra.mxu1 %v10946_v50  ;;  %v10969_v50 = vld [vmem:[#allocation17_spill] sm:$0xff] }
0x1121   :  { %5247 = vmatprep.subr.mxu0 %v10947_v62  ;;  %5318 = vmatprep.subr.mxu1 %v10948_v32 }
0x1122   :  { %5248 = vmatpush1.msra.mxu0 %v10949_v33  ;;  %5319 = vmatpush1.msra.mxu1 %v10950_v0 }
0x1123   :  { %5249 = vmatprep.subr.mxu0 %v10951_v60  ;;  %5320 = vmatprep.subr.mxu1 %v10952_v61  ;;  %v10962_v60 = vmov 0.0   ;;  %v10963_v61 = vld [vmem:[#allocation30_spill] sm:$0xff] }
0x1124   :  { %5250 = vmatpush1.msra.mxu0 %v10953_v31  ;;  %5321 = vmatpush1.msra.mxu1 %v10954_v11  ;;  %v10964_v11 = vld [vmem:[#allocation51_spill] sm:$0xff] }
0x1125   :  { %5251 = vmatprep.subr.mxu0 %v10955_v1  ;;  %5322 = vmatprep.subr.mxu1 %v10956_v27  ;;  %v10965_v1 = vld [vmem:[#allocation49_spill] sm:$0xff] }
0x1126   :  { %5252 = vmatpush1.msra.mxu0 %v10957_v4  ;;  %5323 = vmatpush1.msra.mxu1 %v10958_v12  ;;  %v10966_v27 = vld [vmem:[#allocation65_spill] sm:$0xff] }
0x1127   :  { %5253 = vmatprep.subr.mxu0 %v10959_v8  ;;  %5324 = vmatprep.subr.mxu1 %v10960_v44  ;;  %v10967_v4 = vld [vmem:[#allocation41_spill] sm:$0xff] }
0x1128   :  { %5254 = vmatpush1.msra.mxu0 %v10961_v40  ;;  %5287 = vmatprep.mubr.f32.mxu0 %v10962_v60  ;;  %v4666_v31 = vadd.f32 %v10967_v4, %v10966_v27  ;;  %v10968_v8 = vld [vmem:[#allocation29_spill] sm:$0xff]  ;;  %v4779_v4 = vadd.f32 %v10971_v37, %v9468_v35 }
0x1129   :  { %5325 = vmatpush1.msra.mxu1 %v10963_v61  ;;  %5358 = vmatprep.mubr.f32.mxu1 %v10962_v60  ;;  %v4668_v0 = vadd.f32 %v10968_v8, %v9453_v48 }
0x112a   :  { %5393 = vmatprep.subr.mxu0 %v10964_v11  ;;  %5464 = vmatprep.subr.mxu1 %v10965_v1  ;;  %v10970_v11 = vld [vmem:[#allocation32_spill] sm:$0xff] }
0x112b   :  { %v4781_v59 = vadd.f32 %v10970_v11, %v10969_v50 }
0x11c9   :  { %v5119_v12 = vpop.f32.mrf.mxu0  ;;  %v5190_v62 = vpop.f32.mrf.mxu1 }
0x11ca   :  { %v5195_v44 = vadd.f32 %v5119_v12, %v4666_v31  ;;  %v5197_v27 = vadd.f32 %v5190_v62, %v4779_v4  ;;  %v10991_v4 = vld [vmem:[#allocation28_spill] sm:$0xff] }
0x11cb   :  { %v5121_v33 = vpop.f32.mrf.mxu0  ;;  %v5192_v60 = vpop.f32.mrf.mxu1 }
0x11cc   :  { %v6415_v40 = vmul.f32 -1.442695, %v5195_v44  ;;  %v5196_v32 = vadd.f32 %v5121_v33, %v4668_v0  ;;  %v5198_v1 = vadd.f32 %v5192_v60, %v4781_v59 }
0x11ce   :  { %6770 = vpow2.f32 %v6415_v40  ;;  %v6416_v61 = vmul.f32 -1.442695, %v5196_v32  ;;  %v6417_v49 = vmul.f32 -1.442695, %v5198_v1  ;;  %v10988_v1 = vld [vmem:[#allocation25_spill] sm:$0xff]  ;;  %v10990_v40 = vld [vmem:[#allocation27_spill] sm:$0xff] }
0x11d0   :  { %6772 = vpow2.f32 %v6416_v61 }
0x11d1   :  { %6774 = vtanh.f32 %v5197_v27  ;;  %v10989_v27 = vld [vmem:[#allocation26_spill] sm:$0xff] }
0x11d2   :  { %6776 = vpow2.f32 %v6417_v49  ;;  %v10986_v49 = vld [vmem:[#allocation23_spill] sm:$0xff] }
0x11db   :  { %v6771_v6 = vpop.eup %6770 }
0x11dc   :  { %v5202_v8 = vadd.f32 1.0, %v6771_v6 }
0x11dd   :  { %v6773_v31 = vpop.eup %6772 }
0x11de   :  { %6778 = vrcp.f32 %v5202_v8  ;;  %v5208_v33 = vadd.f32 1.0, %v6773_v31  ;;  %v6775_v32 = vpop.eup %6774  ;;  %v10992_v8 = vmov 0.0   ;;  %v10993_v31 = vld [vmem:[#allocation30_spill] sm:$0xff] }
0x11df   :  { %v6777_v0 = vpop.eup %6776 }
0x11e0   :  { %6780 = vrcp.f32 %v5208_v33  ;;  %v5215_v11 = vadd.f32 1.0, %v6777_v0  ;;  %v10994_v33 = vld [vmem:[#allocation51_spill] sm:$0xff]  ;;  %v10996_v0 = vld [vmem:[#allocation65_spill] sm:$0xff] }
0x11e2   :  { %6782 = vrcp.f32 %v5215_v11  ;;  %v10998_v11 = vld [vmem:[#allocation33_spill] sm:$0xff] }
0x11eb   :  { %v6779_v61 = vpop.eup %6778 }
0x11ec   :  { %v5219_v12 = vmul.f32 %v6779_v61, %v6775_v32  ;;  %v10995_v32 = vld [vmem:[#allocation49_spill] sm:$0xff]  ;;  %v10997_v61 = vld [vmem:[#allocation34_spill] sm:$0xff] }
0x11ed   :  { %v6781_v44 = vpop.eup %6780 }
0x11ee   :  { %v5218_v59 = vmul.f32 %v6781_v44, %v9471_v57  ;;  %v10987_v57 = vld [vmem:[#allocation24_spill] sm:$0xff] }
0x11ef   :  { %v6783_v6 = vpop.eup %6782 }
0x11f0   :  { %v9549_v60 = vadd.f32 %v5219_v12, %v5218_v59  ;;  %v4672_v12 = vadd.f32 %v10997_v61, %v10996_v0  ;;  %v4674_v59 = vadd.f32 %v10998_v11, %v9453_v48 }
0x11f2   :  { %6784 = vtanh.f32 %v9549_v60 }
0x11ff   :  { %v6785_v37 = vpop.eup %6784 }
0x1200   :  { %v5222_v62 = vmul.f32 %v6785_v37, %v6783_v6 }
0x1202   :  { %5288 = vmatmul.mubr.f32.vlgmr.msra.gmra.mxu0 %v5222_v62  ;;  %5359 = vmatmul.mubr.f32.vlgmr.msra.gmra.mxu1 %v5222_v62 }
0x1203   :  { %5394 = vmatpush1.msra.mxu0 %v9129_v43  ;;  %5465 = vmatpush1.msra.mxu1 %v9131_v52  ;;  %v10972_v43 = vld [vmem:[#allocation38_spill] sm:$0xff]  ;;  %v10973_v52 = vld [vmem:[#allocation39_spill] sm:$0xff] }
0x1204   :  { %5395 = vmatprep.subr.mxu0 %v9135_v47  ;;  %5466 = vmatprep.subr.mxu1 %v9137_v3  ;;  %v10974_v47 = vld [vmem:[#allocation37_spill] sm:$0xff]  ;;  %v10975_v3 = vld [vmem:[#allocation46_spill] sm:$0xff] }
0x1205   :  { %5396 = vmatpush1.msra.mxu0 %v9141_v53  ;;  %5467 = vmatpush1.msra.mxu1 %v9143_v46  ;;  %v10976_v53 = vld [vmem:[#allocation47_spill] sm:$0xff]  ;;  %v10977_v46 = vld [vmem:[#allocation56_spill] sm:$0xff] }
0x1206   :  { %5397 = vmatprep.subr.mxu0 %v9147_v54  ;;  %5468 = vmatprep.subr.mxu1 %v9149_v45  ;;  %v10978_v54 = vld [vmem:[#allocation59_spill] sm:$0xff]  ;;  %v10979_v45 = vld [vmem:[#allocation57_spill] sm:$0xff] }
0x1207   :  { %5398 = vmatpush1.msra.mxu0 %v9153_v56  ;;  %5469 = vmatpush1.msra.mxu1 %v9155_v51  ;;  %v10980_v56 = vld [vmem:[#allocation58_spill] sm:$0xff] }
0x1208   :  { %5399 = vmatprep.subr.mxu0 %v9159_v42  ;;  %5470 = vmatprep.subr.mxu1 %v9161_v10  ;;  %v10981_v51 = vld [vmem:[#allocation22_spill] sm:$0xff]  ;;  %v10982_v42 = vld [vmem:[#allocation52_spill] sm:$0xff] }
0x1209   :  { %5400 = vmatpush1.msra.mxu0 %v9165_v9  ;;  %5471 = vmatpush1.msra.mxu1 %v9167_v2  ;;  %v10983_v10 = vld [vmem:[#allocation54_spill] sm:$0xff]  ;;  %v10984_v9 = vld [vmem:[#allocation55_spill] sm:$0xff]  ;;  %v10985_v2 = vld [vmem:[#allocation53_spill] sm:$0xff] }
0x120a   :  { %5401 = vmatprep.subr.mxu0 %v9171_v13  ;;  %5472 = vmatprep.subr.mxu1 %v9173_v15 }
0x120b   :  { %5402 = vmatpush1.msra.mxu0 %v9177_v5  ;;  %5473 = vmatpush1.msra.mxu1 %v9179_v14 }
0x120c   :  { %5403 = vmatprep.subr.mxu0 %v9183_v38  ;;  %5474 = vmatprep.subr.mxu1 %v9185_v28 }
0x120d   :  { %5404 = vmatpush1.msra.mxu0 %v9189_v39  ;;  %5475 = vmatpush1.msra.mxu1 %v9191_v41 }
0x120e   :  { %5405 = vmatprep.subr.mxu0 %v9195_v55  ;;  %5476 = vmatprep.subr.mxu1 %v9197_v22 }
0x120f   :  { %5406 = vmatpush1.msra.mxu0 %v9201_v7  ;;  %5477 = vmatpush1.msra.mxu1 %v9203_v63 }
0x1210   :  { %5407 = vmatprep.subr.mxu0 %v9207_v26  ;;  %5478 = vmatprep.subr.mxu1 %v9209_v24 }
0x1211   :  { %5408 = vmatpush1.msra.mxu0 %v9213_v29  ;;  %5479 = vmatpush1.msra.mxu1 %v9215_v30 }
0x1212   :  { %5409 = vmatprep.subr.mxu0 %v9219_v18  ;;  %5480 = vmatprep.subr.mxu1 %v9221_v16 }
0x1213   :  { %5410 = vmatpush1.msra.mxu0 %v9225_v36  ;;  %5481 = vmatpush1.msra.mxu1 %v9227_v17 }
0x1214   :  { %5411 = vmatprep.subr.mxu0 %v9231_v25  ;;  %5482 = vmatprep.subr.mxu1 %v9233_v20 }
0x1215   :  { %5412 = vmatpush1.msra.mxu0 %v9237_v34  ;;  %5483 = vmatpush1.msra.mxu1 %v9239_v19 }
0x1216   :  { %5413 = vmatprep.subr.mxu0 %v9243_v23  ;;  %5484 = vmatprep.subr.mxu1 %v9245_v21 }
0x1217   :  { %5414 = vmatpush1.msra.mxu0 %v10886_v58  ;;  %5485 = vmatpush1.msra.mxu1 %v10972_v43 }
0x1218   :  { %5415 = vmatprep.subr.mxu0 %v10973_v52  ;;  %5486 = vmatprep.subr.mxu1 %v10974_v47 }
0x1219   :  { %5416 = vmatpush1.msra.mxu0 %v10975_v3  ;;  %5487 = vmatpush1.msra.mxu1 %v10976_v53 }
0x121a   :  { %5417 = vmatprep.subr.mxu0 %v10977_v46  ;;  %5488 = vmatprep.subr.mxu1 %v10978_v54 }
0x121b   :  { %5418 = vmatpush1.msra.mxu0 %v10979_v45  ;;  %5489 = vmatpush1.msra.mxu1 %v10980_v56 }
0x121c   :  { %5419 = vmatprep.subr.mxu0 %v10981_v51  ;;  %5490 = vmatprep.subr.mxu1 %v10982_v42 }
0x121d   :  { %5420 = vmatpush1.msra.mxu0 %v10983_v10  ;;  %5491 = vmatpush1.msra.mxu1 %v10984_v9 }
0x121e   :  { %5421 = vmatprep.subr.mxu0 %v10985_v2  ;;  %5492 = vmatprep.subr.mxu1 %v10986_v49 }
0x121f   :  { %5422 = vmatpush1.msra.mxu0 %v10987_v57  ;;  %5493 = vmatpush1.msra.mxu1 %v10988_v1  ;;  %v11000_v1 = vld [vmem:[#allocation35_spill] sm:$0xff] }
0x1220   :  { %5423 = vmatprep.subr.mxu0 %v10989_v27  ;;  %5494 = vmatprep.subr.mxu1 %v10990_v40  ;;  %v4785_v61 = vadd.f32 %v11000_v1, %v9468_v35 }
0x1221   :  { %5424 = vmatpush1.msra.mxu0 %v10991_v4  ;;  %5457 = vmatprep.mubr.f32.mxu0 %v10992_v8 }
0x1222   :  { %5495 = vmatpush1.msra.mxu1 %v10993_v31  ;;  %5528 = vmatprep.mubr.f32.mxu1 %v10992_v8 }
0x1223   :  { %5563 = vmatprep.subr.mxu0 %v10994_v33  ;;  %5634 = vmatprep.subr.mxu1 %v10995_v32  ;;  %v10999_v33 = vld [vmem:[#allocation45_spill] sm:$0xff] }
0x1224   :  { %v4787_v27 = vadd.f32 %v10999_v33, %v10969_v50  ;;  %v9636_v33 = vld [vmem:[#allocation12 + $0x1c8] sm:$0xff] }
0x12c2   :  { %v5289_v44 = vpop.f32.mrf.mxu0  ;;  %v5360_v40 = vpop.f32.mrf.mxu1 }
0x12c3   :  { %v5365_v6 = vadd.f32 %v5289_v44, %v4672_v12  ;;  %v5367_v0 = vadd.f32 %v5360_v40, %v4785_v61  ;;  %v9645_v61 = vld [vmem:[#allocation12 + $0x1d0] sm:$0xff] }
0x12c4   :  { %v5291_v37 = vpop.f32.mrf.mxu0  ;;  %v5362_v8 = vpop.f32.mrf.mxu1 }
0x12c5   :  { %v6418_v62 = vmul.f32 -1.442695, %v5365_v6  ;;  %v5366_v4 = vadd.f32 %v5291_v37, %v4674_v59  ;;  %v5368_v32 = vadd.f32 %v5362_v8, %v4787_v27 }
0x12c7   :  { %6786 = vpow2.f32 %v6418_v62  ;;  %v6419_v31 = vmul.f32 -1.442695, %v5366_v4  ;;  %v6420_v57 = vmul.f32 -1.442695, %v5368_v32  ;;  %v9642_v32 = vld [vmem:[#allocation12 + $0x1c0] sm:$0xff] }
0x12c9   :  { %6788 = vpow2.f32 %v6419_v31 }
0x12ca   :  { %6790 = vtanh.f32 %v5367_v0  ;;  %v9633_v0 = vld [vmem:[#allocation12 + $0x1f0] sm:$0xff] }
0x12cb   :  { %6792 = vpow2.f32 %v6420_v57  ;;  %v9630_v57 = vld [vmem:[#allocation12 + $0x1e0] sm:$0xff] }
0x12d4   :  { %v6787_v49 = vpop.eup %6786 }
0x12d5   :  { %v5372_v11 = vadd.f32 1.0, %v6787_v49 }
0x12d6   :  { %v6789_v12 = vpop.eup %6788 }
0x12d7   :  { %6794 = vrcp.f32 %v5372_v11  ;;  %v5378_v44 = vadd.f32 1.0, %v6789_v12  ;;  %v6791_v4 = vpop.eup %6790  ;;  %v9648_v11 = vld [vmem:[#allocation12 + $0x1a8] sm:$0xff]  ;;  %v9651_v12 = vld [vmem:[#allocation12 + $0x1b8] sm:$0xff] }
0x12d8   :  { %v6793_v31 = vpop.eup %6792 }
0x12d9   :  { %6796 = vrcp.f32 %v5378_v44  ;;  %v5385_v62 = vadd.f32 1.0, %v6793_v31  ;;  %v9654_v44 = vld [vmem:[#allocation12 + $0x1a0] sm:$0xff]  ;;  %v9660_v31 = vld [vmem:[#allocation12 + $0x188] sm:$0xff] }
0x12db   :  { %6798 = vrcp.f32 %v5385_v62 }
0x12e4   :  { %v6795_v59 = vpop.eup %6794 }
0x12e5   :  { %v5389_v6 = vmul.f32 %v6795_v59, %v6791_v4  ;;  %v9657_v4 = vld [vmem:[#allocation12 + $0x1b0] sm:$0xff]  ;;  %v9663_v59 = vld [vmem:[#allocation12 + $0x198] sm:$0xff] }
0x12e6   :  { %v6797_v37 = vpop.eup %6796 }
0x12e7   :  { %v5388_v27 = vmul.f32 %v6797_v37, %v9549_v60  ;;  %v9639_v60 = vld [vmem:[#allocation12 + $0x1d8] sm:$0xff]  ;;  %v9669_v37 = vld [vmem:[#allocation12 + $0x190] sm:$0xff] }
0x12e8   :  { %v6799_v49 = vpop.eup %6798 }
0x12e9   :  { %v9627_v8 = vadd.f32 %v5389_v6, %v5388_v27  ;;  %v9666_v6 = vld [vmem:[#allocation12 + $0x180] sm:$0xff] }
0x12eb   :  { %6800 = vtanh.f32 %v9627_v8 }
0x12f8   :  { %v6801_v1 = vpop.eup %6800 }
0x12f9   :  { %v5392_v40 = vmul.f32 %v6801_v1, %v6799_v49 }
0x12fb   :  { %5458 = vmatmul.mubr.f32.vlgmr.msra.gmra.mxu0 %v5392_v40  ;;  %5529 = vmatmul.mubr.f32.vlgmr.msra.gmra.mxu1 %v5392_v40  ;;  %v9757_v40 = vld [vmem:[#allocation12 + $0x178] sm:$0xff] }
0x12fc   :  { %5564 = vmatpush1.msra.mxu0 %v9630_v57  ;;  %5635 = vmatpush1.msra.mxu1 %v9633_v0 }
0x12fd   :  { %5565 = vmatprep.subr.mxu0 %v9636_v33  ;;  %5636 = vmatprep.subr.mxu1 %v9639_v60 }
0x12fe   :  { %5566 = vmatpush1.msra.mxu0 %v9642_v32  ;;  %5637 = vmatpush1.msra.mxu1 %v9645_v61 }
0x12ff   :  { %5567 = vmatprep.subr.mxu0 %v9648_v11  ;;  %5638 = vmatprep.subr.mxu1 %v9651_v12 }
0x1300   :  { %5568 = vmatpush1.msra.mxu0 %v9654_v44  ;;  %5639 = vmatpush1.msra.mxu1 %v9657_v4 }
0x1301   :  { %5569 = vmatprep.subr.mxu0 %v9660_v31  ;;  %5640 = vmatprep.subr.mxu1 %v9663_v59 }
0x1302   :  { %5570 = vmatpush1.msra.mxu0 %v9666_v6  ;;  %5641 = vmatpush1.msra.mxu1 %v9669_v37 }
0x1303   :  { %5571 = vmatprep.subr.mxu0 %v9171_v13  ;;  %5642 = vmatprep.subr.mxu1 %v9173_v15  ;;  %v11001_v13 = vld [vmem:[#allocation23_spill] sm:$0xff]  ;;  %v11002_v15 = vld [vmem:[#allocation24_spill] sm:$0xff] }
0x1304   :  { %5572 = vmatpush1.msra.mxu0 %v9177_v5  ;;  %5643 = vmatpush1.msra.mxu1 %v9179_v14  ;;  %v11003_v5 = vld [vmem:[#allocation25_spill] sm:$0xff]  ;;  %v11004_v14 = vld [vmem:[#allocation26_spill] sm:$0xff] }
0x1305   :  { %5573 = vmatprep.subr.mxu0 %v9183_v38  ;;  %5644 = vmatprep.subr.mxu1 %v9185_v28  ;;  %v11005_v38 = vld [vmem:[#allocation27_spill] sm:$0xff]  ;;  %v11006_v28 = vld [vmem:[#allocation28_spill] sm:$0xff] }
0x1306   :  { %5574 = vmatpush1.msra.mxu0 %v9189_v39  ;;  %5645 = vmatpush1.msra.mxu1 %v9191_v41  ;;  %v11007_v39 = vmov 0.0   ;;  %v11008_v41 = vld [vmem:[#allocation30_spill] sm:$0xff] }
0x1307   :  { %5575 = vmatprep.subr.mxu0 %v9195_v55  ;;  %5646 = vmatprep.subr.mxu1 %v9197_v22  ;;  %v9722_v55 = vld [vmem:[#allocation12 + $0x1e8] sm:$0xff]  ;;  %v9725_v22 = vld [vmem:[#allocation12 + $0x1f8] sm:$0xff] }
0x1308   :  { %5576 = vmatpush1.msra.mxu0 %v9201_v7  ;;  %5647 = vmatpush1.msra.mxu1 %v9203_v63  ;;  %11009 = vst [vmem:[#allocation19_spill] sm:$0xff] %v9722_v55  ;;  %11010 = vst [vmem:[#allocation41_spill] sm:$0xff] %v9725_v22  ;;  %v11011_v7 = vld [vmem:[#allocation65_spill] sm:$0xff]  ;;  %v11012_v63 = vld [vmem:[#allocation48_spill] sm:$0xff] }
0x1309   :  { %5577 = vmatprep.subr.mxu0 %v9207_v26  ;;  %5648 = vmatprep.subr.mxu1 %v9209_v24  ;;  %v4678_v26 = vadd.f32 %v11012_v63, %v11011_v7  ;;  %v9781_v63 = vld [vmem:[#allocation12 + $0x138] sm:$0xff] }
0x130a   :  { %5578 = vmatpush1.msra.mxu0 %v9213_v29  ;;  %5649 = vmatpush1.msra.mxu1 %v9215_v30  ;;  %v11013_v29 = vld [vmem:[#allocation60_spill] sm:$0xff] }
0x130b   :  { %5579 = vmatprep.subr.mxu0 %v9219_v18  ;;  %5650 = vmatprep.subr.mxu1 %v9221_v16  ;;  %v4680_v30 = vadd.f32 %v11013_v29, %v9453_v48  ;;  %v9790_v29 = vld [vmem:[#allocation12 + $0x108] sm:$0xff] }
0x130c   :  { %5580 = vmatpush1.msra.mxu0 %v9225_v36  ;;  %5651 = vmatpush1.msra.mxu1 %v9227_v17 }
0x130d   :  { %5581 = vmatprep.subr.mxu0 %v9231_v25  ;;  %5652 = vmatprep.subr.mxu1 %v9233_v20 }
0x130e   :  { %5582 = vmatpush1.msra.mxu0 %v9237_v34  ;;  %5653 = vmatpush1.msra.mxu1 %v9239_v19  ;;  %v11014_v19 = vld [vmem:[#allocation63_spill] sm:$0xff] }
0x130f   :  { %5583 = vmatprep.subr.mxu0 %v9243_v23  ;;  %5654 = vmatprep.subr.mxu1 %v9245_v21  ;;  %v4793_v23 = vadd.f32 %v11014_v19, %v10969_v50  ;;  %v9817_v19 = vld [vmem:[#allocation12 + $0xd8] sm:$0xff] }
0x1310   :  { %5584 = vmatpush1.msra.mxu0 %v10886_v58  ;;  %5655 = vmatpush1.msra.mxu1 %v10972_v43  ;;  %v11015_v58 = vld [vmem:[#allocation42_spill] sm:$0xff] }
0x1311   :  { %5585 = vmatprep.subr.mxu0 %v10973_v52  ;;  %5656 = vmatprep.subr.mxu1 %v10974_v47  ;;  %v4791_v43 = vadd.f32 %v11015_v58, %v9468_v35  ;;  %v9826_v58 = vld [vmem:[#allocation12 + $0xa8] sm:$0xff] }
0x1312   :  { %5586 = vmatpush1.msra.mxu0 %v10975_v3  ;;  %5657 = vmatpush1.msra.mxu1 %v10976_v53 }
0x1313   :  { %5587 = vmatprep.subr.mxu0 %v10977_v46  ;;  %5658 = vmatprep.subr.mxu1 %v10978_v54 }
0x1314   :  { %5588 = vmatpush1.msra.mxu0 %v10979_v45  ;;  %5659 = vmatpush1.msra.mxu1 %v10980_v56 }
0x1315   :  { %5589 = vmatprep.subr.mxu0 %v10981_v51  ;;  %5660 = vmatprep.subr.mxu1 %v10982_v42 }
0x1316   :  { %5590 = vmatpush1.msra.mxu0 %v10983_v10  ;;  %5661 = vmatpush1.msra.mxu1 %v10984_v9 }
0x1317   :  { %5591 = vmatprep.subr.mxu0 %v10985_v2  ;;  %5662 = vmatprep.subr.mxu1 %v11001_v13  ;;  %v9760_v13 = vld [vmem:[#allocation12 + $0x160] sm:$0xff] }
0x1318   :  { %5592 = vmatpush1.msra.mxu0 %v11002_v15  ;;  %5663 = vmatpush1.msra.mxu1 %v11003_v5  ;;  %v9763_v15 = vld [vmem:[#allocation12 + $0x170] sm:$0xff]  ;;  %v9766_v5 = vld [vmem:[#allocation12 + $0x148] sm:$0xff] }
0x1319   :  { %5593 = vmatprep.subr.mxu0 %v11004_v14  ;;  %5664 = vmatprep.subr.mxu1 %v11005_v38  ;;  %v9769_v14 = vld [vmem:[#allocation12 + $0x158] sm:$0xff]  ;;  %v9772_v38 = vld [vmem:[#allocation12 + $0x140] sm:$0xff] }
0x131a   :  { %5594 = vmatpush1.msra.mxu0 %v11006_v28  ;;  %5627 = vmatprep.mubr.f32.mxu0 %v11007_v39  ;;  %v9775_v28 = vld [vmem:[#allocation12 + $0x150] sm:$0xff] }
0x131b   :  { %5665 = vmatpush1.msra.mxu1 %v11008_v41  ;;  %5698 = vmatprep.mubr.f32.mxu1 %v11007_v39  ;;  %v9778_v41 = vld [vmem:[#allocation12 + $0x128] sm:$0xff] }
0x131c   :  { %5733 = vmatprep.subr.mxu0 %v9722_v55  ;;  %5804 = vmatprep.subr.mxu1 %v9725_v22 }
0x13bb   :  { %v5459_v24 = vpop.f32.mrf.mxu0  ;;  %v5530_v25 = vpop.f32.mrf.mxu1 }
0x13bc   :  { %v5535_v18 = vadd.f32 %v5459_v24, %v4678_v26  ;;  %v5537_v52 = vadd.f32 %v5530_v25, %v4791_v43  ;;  %v9784_v26 = vld [vmem:[#allocation12 + $0x120] sm:$0xff]  ;;  %v9787_v24 = vld [vmem:[#allocation12 + $0x130] sm:$0xff]  ;;  %v9829_v43 = vld [vmem:[#allocation12 + $0xb8] sm:$0xff] }
0x13bd   :  { %v5461_v16 = vpop.f32.mrf.mxu0  ;;  %v5532_v34 = vpop.f32.mrf.mxu1  ;;  %v9808_v25 = vld [vmem:[#allocation12 + $0xe0] sm:$0xff] }
0x13be   :  { %v6421_v36 = vmul.f32 -1.442695, %v5535_v18  ;;  %v5536_v17 = vadd.f32 %v5461_v16, %v4680_v30  ;;  %v5538_v21 = vadd.f32 %v5532_v34, %v4793_v23  ;;  %v9793_v30 = vld [vmem:[#allocation12 + $0x118] sm:$0xff]  ;;  %v9796_v18 = vld [vmem:[#allocation12 + $0x100] sm:$0xff]  ;;  %v9799_v16 = vld [vmem:[#allocation12 + $0x110] sm:$0xff] }
0x13bf   :  { %v9814_v34 = vld [vmem:[#allocation12 + $0xc8] sm:$0xff]  ;;  %v9820_v23 = vld [vmem:[#allocation12 + $0xc0] sm:$0xff] }
0x13c0   :  { %6802 = vpow2.f32 %v6421_v36  ;;  %v6422_v20 = vmul.f32 -1.442695, %v5536_v17  ;;  %v6423_v47 = vmul.f32 -1.442695, %v5538_v21  ;;  %v9802_v36 = vld [vmem:[#allocation12 + $0xe8] sm:$0xff]  ;;  %v9805_v17 = vld [vmem:[#allocation12 + $0xf8] sm:$0xff] }
0x13c1   :  { %v9823_v21 = vld [vmem:[#allocation12 + $0xd0] sm:$0xff] }
0x13c2   :  { %6804 = vpow2.f32 %v6422_v20  ;;  %v9811_v20 = vld [vmem:[#allocation12 + $0xf0] sm:$0xff] }
0x13c3   :  { %6806 = vtanh.f32 %v5537_v52  ;;  %v9832_v52 = vld [vmem:[#allocation12 + $0xa0] sm:$0xff] }
0x13c4   :  { %6808 = vpow2.f32 %v6423_v47  ;;  %v9835_v47 = vld [vmem:[#allocation12 + $0xb0] sm:$0xff] }
0x13c5   :  { %11016 = vst [vmem:[#allocation29_spill] sm:$0xff] %v9835_v47 }
0x13cd   :  { %v6803_v3 = vpop.eup %6802 }
0x13ce   :  { %v5542_v53 = vadd.f32 1.0, %v6803_v3  ;;  %v9838_v3 = vld [vmem:[#allocation12 + $0x88] sm:$0xff] }
0x13cf   :  { %v6805_v46 = vpop.eup %6804  ;;  %11017 = vst [vmem:[#allocation17_spill] sm:$0xff] %v9838_v3 }
0x13d0   :  { %6810 = vrcp.f32 %v5542_v53  ;;  %v5548_v54 = vadd.f32 1.0, %v6805_v46  ;;  %v6807_v45 = vpop.eup %6806  ;;  %v9841_v53 = vld [vmem:[#allocation12 + $0x98] sm:$0xff]  ;;  %v9844_v46 = vld [vmem:[#allocation12 + $0x80] sm:$0xff] }
0x13d1   :  { %v6809_v56 = vpop.eup %6808  ;;  %11018 = vst [vmem:[#allocation32_spill] sm:$0xff] %v9841_v53  ;;  %11019 = vst [vmem:[#allocation31_spill] sm:$0xff] %v9844_v46 }
0x13d2   :  { %6812 = vrcp.f32 %v5548_v54  ;;  %v5555_v9 = vadd.f32 1.0, %v6809_v56  ;;  %v9847_v54 = vld [vmem:[#allocation12 + $0x90] sm:$0xff]  ;;  %v9853_v56 = vld [vmem:[#allocation12 + $0x78] sm:$0xff] }
0x13d3   :  { %11020 = vst [vmem:[#allocation38_spill] sm:$0xff] %v9847_v54  ;;  %11022 = vst [vmem:[#allocation37_spill] sm:$0xff] %v9853_v56 }
0x13d4   :  { %6814 = vrcp.f32 %v5555_v9  ;;  %v9865_v9 = vld [vmem:[#allocation12 + $0x58] sm:$0xff] }
0x13d5   :  { %11026 = vst [vmem:[#allocation59_spill] sm:$0xff] %v9865_v9 }
0x13dd   :  { %v6811_v51 = vpop.eup %6810 }
0x13de   :  { %v5559_v42 = vmul.f32 %v6811_v51, %v6807_v45  ;;  %v9850_v45 = vld [vmem:[#allocation12 + $0x68] sm:$0xff]  ;;  %v9856_v51 = vld [vmem:[#allocation12 + $0x60] sm:$0xff] }
0x13df   :  { %v6813_v10 = vpop.eup %6812  ;;  %11021 = vst [vmem:[#allocation39_spill] sm:$0xff] %v9850_v45  ;;  %11023 = vst [vmem:[#allocation46_spill] sm:$0xff] %v9856_v51 }
0x13e0   :  { %v5558_v2 = vmul.f32 %v6813_v10, %v9627_v8  ;;  %v9754_v8 = vld [vmem:[#allocation12 + $0x168] sm:$0xff] }
0x13e1   :  { %v6815_v27 = vpop.eup %6814  ;;  %v9862_v10 = vld [vmem:[#allocation12 + $0x48] sm:$0xff] }
0x13e2   :  { %v9737_v62 = vadd.f32 %v5559_v42, %v5558_v2  ;;  %v9859_v42 = vld [vmem:[#allocation12 + $0x70] sm:$0xff]  ;;  %11025 = vst [vmem:[#allocation56_spill] sm:$0xff] %v9862_v10  ;;  %v9868_v2 = vld [vmem:[#allocation12 + $0x40] sm:$0xff] }
0x13e3   :  { %11024 = vst [vmem:[#allocation47_spill] sm:$0xff] %v9859_v42  ;;  %11027 = vst [vmem:[#allocation57_spill] sm:$0xff] %v9868_v2 }
0x13e4   :  { %6816 = vtanh.f32 %v9737_v62 }
0x13f1   :  { %v6817_v49 = vpop.eup %6816 }
0x13f2   :  { %v5562_v1 = vmul.f32 %v6817_v49, %v6815_v27  ;;  %v9871_v27 = vld [vmem:[#allocation12 + $0x50] sm:$0xff]  ;;  %v9874_v49 = vld [vmem:[#allocation12 + $0x28] sm:$0xff] }
0x13f3   :  { %11028 = vst [vmem:[#allocation58_spill] sm:$0xff] %v9871_v27  ;;  %11029 = vst [vmem:[#allocation22_spill] sm:$0xff] %v9874_v49 }
0x13f4   :  { %5628 = vmatmul.mubr.f32.vlgmr.msra.gmra.mxu0 %v5562_v1  ;;  %5699 = vmatmul.mubr.f32.vlgmr.msra.gmra.mxu1 %v5562_v1  ;;  %v9877_v1 = vld [vmem:[#allocation12 + $0x38] sm:$0xff] }
0x13f5   :  { %5734 = vmatpush1.msra.mxu0 %v9630_v57  ;;  %5805 = vmatpush1.msra.mxu1 %v9633_v0  ;;  %11030 = vst [vmem:[#allocation52_spill] sm:$0xff] %v9877_v1 }
0x13f6   :  { %5735 = vmatprep.subr.mxu0 %v9636_v33  ;;  %5806 = vmatprep.subr.mxu1 %v9639_v60 }
0x13f7   :  { %5736 = vmatpush1.msra.mxu0 %v9642_v32  ;;  %5807 = vmatpush1.msra.mxu1 %v9645_v61 }
0x13f8   :  { %5737 = vmatprep.subr.mxu0 %v9648_v11  ;;  %5808 = vmatprep.subr.mxu1 %v9651_v12 }
0x13f9   :  { %5738 = vmatpush1.msra.mxu0 %v9654_v44  ;;  %5809 = vmatpush1.msra.mxu1 %v9657_v4 }
0x13fa   :  { %5739 = vmatprep.subr.mxu0 %v9660_v31  ;;  %5810 = vmatprep.subr.mxu1 %v9663_v59 }
0x13fb   :  { %5740 = vmatpush1.msra.mxu0 %v9666_v6  ;;  %5811 = vmatpush1.msra.mxu1 %v9669_v37 }
0x13fc   :  { %5741 = vmatprep.subr.mxu0 %v9754_v8  ;;  %5812 = vmatprep.subr.mxu1 %v9757_v40 }
0x13fd   :  { %5742 = vmatpush1.msra.mxu0 %v9760_v13  ;;  %5813 = vmatpush1.msra.mxu1 %v9763_v15 }
0x13fe   :  { %5743 = vmatprep.subr.mxu0 %v9766_v5  ;;  %5814 = vmatprep.subr.mxu1 %v9769_v14 }
0x13ff   :  { %5744 = vmatpush1.msra.mxu0 %v9772_v38  ;;  %5815 = vmatpush1.msra.mxu1 %v9775_v28 }
0x1400   :  { %5745 = vmatprep.subr.mxu0 %v9778_v41  ;;  %5816 = vmatprep.subr.mxu1 %v9781_v63 }
0x1401   :  { %5746 = vmatpush1.msra.mxu0 %v9784_v26  ;;  %5817 = vmatpush1.msra.mxu1 %v9787_v24 }
0x1402   :  { %5747 = vmatprep.subr.mxu0 %v9790_v29  ;;  %5818 = vmatprep.subr.mxu1 %v9793_v30 }
0x1403   :  { %5748 = vmatpush1.msra.mxu0 %v9796_v18  ;;  %5819 = vmatpush1.msra.mxu1 %v9799_v16 }
0x1404   :  { %5749 = vmatprep.subr.mxu0 %v9802_v36  ;;  %5820 = vmatprep.subr.mxu1 %v9805_v17 }
0x1405   :  { %5750 = vmatpush1.msra.mxu0 %v9808_v25  ;;  %5821 = vmatpush1.msra.mxu1 %v9811_v20 }
0x1406   :  { %5751 = vmatprep.subr.mxu0 %v9814_v34  ;;  %5822 = vmatprep.subr.mxu1 %v9817_v19 }
0x1407   :  { %5752 = vmatpush1.msra.mxu0 %v9820_v23  ;;  %5823 = vmatpush1.msra.mxu1 %v9823_v21 }
0x1408   :  { %5753 = vmatprep.subr.mxu0 %v9826_v58  ;;  %5824 = vmatprep.subr.mxu1 %v9829_v43 }
0x1409   :  { %5754 = vmatpush1.msra.mxu0 %v9832_v52  ;;  %5825 = vmatpush1.msra.mxu1 %v9835_v47 }
0x140a   :  { %5755 = vmatprep.subr.mxu0 %v9838_v3  ;;  %5826 = vmatprep.subr.mxu1 %v9841_v53  ;;  %v11040_v53 = vld [vmem:[#allocation62_spill] sm:$0xff] }
0x140b   :  { %5756 = vmatpush1.msra.mxu0 %v9844_v46  ;;  %5827 = vmatpush1.msra.mxu1 %v9847_v54 }
0x140c   :  { %5757 = vmatprep.subr.mxu0 %v9850_v45  ;;  %5828 = vmatprep.subr.mxu1 %v9853_v56 }
0x140d   :  { %5758 = vmatpush1.msra.mxu0 %v9856_v51  ;;  %5829 = vmatpush1.msra.mxu1 %v9859_v42 }
0x140e   :  { %5759 = vmatprep.subr.mxu0 %v9862_v10  ;;  %5830 = vmatprep.subr.mxu1 %v9865_v9  ;;  %v9880_v10 = vld [vmem:[#allocation12 + $0x20] sm:$0xff]  ;;  %v9883_v9 = vld [vmem:[#allocation12 + $0x30] sm:$0xff] }
0x140f   :  { %5760 = vmatpush1.msra.mxu0 %v9868_v2  ;;  %5831 = vmatpush1.msra.mxu1 %v9871_v27  ;;  %11031 = vst [vmem:[#allocation54_spill] sm:$0xff] %v9880_v10  ;;  %11032 = vst [vmem:[#allocation55_spill] sm:$0xff] %v9883_v9  ;;  %v9886_v2 = vld [vmem:[#allocation12 + $0x8] sm:$0xff]  ;;  %v9889_v27 = vld [vmem:[#allocation12 + $0x18] sm:$0xff] }
0x1410   :  { %5761 = vmatprep.subr.mxu0 %v9874_v49  ;;  %5832 = vmatprep.subr.mxu1 %v9877_v1  ;;  %11033 = vst [vmem:[#allocation53_spill] sm:$0xff] %v9886_v2  ;;  %11034 = vst [vmem:[#allocation51_spill] sm:$0xff] %v9889_v27  ;;  %v9892_v49 = vld [vmem:[#allocation12] sm:$0xff]  ;;  %v9896_v1 = vld [vmem:[#allocation12 + $0x10] sm:$0xff] }
0x1411   :  { %5762 = vmatpush1.msra.mxu0 %v9880_v10  ;;  %5833 = vmatpush1.msra.mxu1 %v9883_v9  ;;  %11035 = vst [vmem:[#allocation49_spill] sm:$0xff] %v9892_v49  ;;  %11036 = vst [vmem:[#allocation34_spill] sm:$0xff] %v9896_v1  ;;  %v11038_v10 = vld [vmem:[#allocation68_spill] sm:$0xff] }
0x1412   :  { %5763 = vmatprep.subr.mxu0 %v9886_v2  ;;  %5834 = vmatprep.subr.mxu1 %v9889_v27  ;;  %v11037_v2 = vld [vmem:[#allocation61_spill] sm:$0xff]  ;;  %v4686_v42 = vadd.f32 %v11038_v10, %v9453_v48 }
0x1413   :  { %5764 = vmatpush1.msra.mxu0 %v9892_v49  ;;  %5797 = vmatprep.mubr.f32.mxu0 %v11007_v39  ;;  %v4684_v9 = vadd.f32 %v11037_v2, %v11011_v7  ;;  %v4797_v2 = vadd.f32 %v11040_v53, %v9468_v35  ;;  %v11043_v53 = vld [vmem:[#allocation32_spill] sm:$0xff] }
0x1414   :  { %5835 = vmatpush1.msra.mxu1 %v9896_v1  ;;  %5868 = vmatprep.mubr.f32.mxu1 %v11007_v39 }
0x1415   :  { %5903 = vmatprep.subr.mxu0 %v9722_v55  ;;  %5974 = vmatprep.subr.mxu1 %v9725_v22  ;;  %v11039_v55 = vld [vmem:[#allocation40_spill] sm:$0xff] }
0x1416   :  { %v4799_v46 = vadd.f32 %v11039_v55, %v10969_v50 }
0x14b4   :  { %v5629_v27 = vpop.f32.mrf.mxu0  ;;  %v5700_v54 = vpop.f32.mrf.mxu1 }
0x14b5   :  { %v5705_v49 = vadd.f32 %v5629_v27, %v4684_v9  ;;  %v5707_v7 = vadd.f32 %v5700_v54, %v4797_v2  ;;  %v11044_v54 = vld [vmem:[#allocation31_spill] sm:$0xff] }
0x14b6   :  { %v5631_v51 = vpop.f32.mrf.mxu0  ;;  %v5702_v39 = vpop.f32.mrf.mxu1  ;;  %v11046_v2 = vld [vmem:[#allocation39_spill] sm:$0xff] }
0x14b7   :  { %v6424_v56 = vmul.f32 -1.442695, %v5705_v49  ;;  %v5706_v45 = vadd.f32 %v5631_v51, %v4686_v42  ;;  %v5708_v22 = vadd.f32 %v5702_v39, %v4799_v46 }
0x14b9   :  { %6818 = vpow2.f32 %v6424_v56  ;;  %v6425_v1 = vmul.f32 -1.442695, %v5706_v45  ;;  %v6426_v3 = vmul.f32 -1.442695, %v5708_v22 }
0x14bb   :  { %6820 = vpow2.f32 %v6425_v1  ;;  %v11045_v1 = vld [vmem:[#allocation38_spill] sm:$0xff] }
0x14bc   :  { %6822 = vtanh.f32 %v5707_v7 }
0x14bd   :  { %6824 = vpow2.f32 %v6426_v3  ;;  %v11042_v3 = vld [vmem:[#allocation17_spill] sm:$0xff] }
0x14c6   :  { %v6819_v47 = vpop.eup %6818 }
0x14c7   :  { %v5712_v10 = vadd.f32 1.0, %v6819_v47 }
0x14c8   :  { %v6821_v9 = vpop.eup %6820 }
0x14c9   :  { %6826 = vrcp.f32 %v5712_v10  ;;  %v5718_v56 = vadd.f32 1.0, %v6821_v9  ;;  %v6823_v45 = vpop.eup %6822  ;;  %v11047_v10 = vld [vmem:[#allocation37_spill] sm:$0xff]  ;;  %v11048_v9 = vld [vmem:[#allocation46_spill] sm:$0xff] }
0x14ca   :  { %v6825_v51 = vpop.eup %6824 }
0x14cb   :  { %6828 = vrcp.f32 %v5718_v56  ;;  %v5725_v55 = vadd.f32 1.0, %v6825_v51  ;;  %v11049_v56 = vld [vmem:[#allocation47_spill] sm:$0xff] }
0x14cc   :  { %v11051_v51 = vld [vmem:[#allocation59_spill] sm:$0xff] }
0x14cd   :  { %6830 = vrcp.f32 %v5725_v55  ;;  %v11055_v55 = vld [vmem:[#allocation52_spill] sm:$0xff] }
0x14d6   :  { %v6827_v42 = vpop.eup %6826 }
0x14d7   :  { %v5729_v27 = vmul.f32 %v6827_v42, %v6823_v45  ;;  %v11050_v45 = vld [vmem:[#allocation56_spill] sm:$0xff]  ;;  %v11052_v42 = vld [vmem:[#allocation57_spill] sm:$0xff] }
0x14d8   :  { %v6829_v49 = vpop.eup %6828 }
0x14d9   :  { %v5728_v39 = vmul.f32 %v6829_v49, %v9737_v62  ;;  %v11041_v62 = vld [vmem:[#allocation29_spill] sm:$0xff]  ;;  %v11054_v49 = vld [vmem:[#allocation22_spill] sm:$0xff] }
0x14da   :  { %v6831_v22 = vpop.eup %6830 }
0x14db   :  { %v9911_v46 = vadd.f32 %v5729_v27, %v5728_v39  ;;  %v11053_v27 = vld [vmem:[#allocation58_spill] sm:$0xff] }
0x14dc   :  { %v11056_v39 = vld [vmem:[#allocation54_spill] sm:$0xff] }
0x14dd   :  { %6832 = vtanh.f32 %v9911_v46 }
0x14ea   :  { %v6833_v7 = vpop.eup %6832 }
0x14eb   :  { %v5732_v47 = vmul.f32 %v6833_v7, %v6831_v22  ;;  %v11057_v22 = vld [vmem:[#allocation55_spill] sm:$0xff]  ;;  %v11058_v7 = vld [vmem:[#allocation53_spill] sm:$0xff] }
0x14ed   :  { %5798 = vmatmul.mubr.f32.vlgmr.msra.gmra.mxu0 %v5732_v47  ;;  %5869 = vmatmul.mubr.f32.vlgmr.msra.gmra.mxu1 %v5732_v47  ;;  %v11059_v47 = vld [vmem:[#allocation51_spill] sm:$0xff] }
0x14ee   :  { %5904 = vmatpush1.msra.mxu0 %v9630_v57  ;;  %5975 = vmatpush1.msra.mxu1 %v9633_v0 }
0x14ef   :  { %5905 = vmatprep.subr.mxu0 %v9636_v33  ;;  %5976 = vmatprep.subr.mxu1 %v9639_v60 }
0x14f0   :  { %5906 = vmatpush1.msra.mxu0 %v9642_v32  ;;  %5977 = vmatpush1.msra.mxu1 %v9645_v61 }
0x14f1   :  { %5907 = vmatprep.subr.mxu0 %v9648_v11  ;;  %5978 = vmatprep.subr.mxu1 %v9651_v12 }
0x14f2   :  { %5908 = vmatpush1.msra.mxu0 %v9654_v44  ;;  %5979 = vmatpush1.msra.mxu1 %v9657_v4 }
0x14f3   :  { %5909 = vmatprep.subr.mxu0 %v9660_v31  ;;  %5980 = vmatprep.subr.mxu1 %v9663_v59 }
0x14f4   :  { %5910 = vmatpush1.msra.mxu0 %v9666_v6  ;;  %5981 = vmatpush1.msra.mxu1 %v9669_v37 }
0x14f5   :  { %5911 = vmatprep.subr.mxu0 %v9754_v8  ;;  %5982 = vmatprep.subr.mxu1 %v9757_v40 }
0x14f6   :  { %5912 = vmatpush1.msra.mxu0 %v9760_v13  ;;  %5983 = vmatpush1.msra.mxu1 %v9763_v15 }
0x14f7   :  { %5913 = vmatprep.subr.mxu0 %v9766_v5  ;;  %5984 = vmatprep.subr.mxu1 %v9769_v14 }
0x14f8   :  { %5914 = vmatpush1.msra.mxu0 %v9772_v38  ;;  %5985 = vmatpush1.msra.mxu1 %v9775_v28 }
0x14f9   :  { %5915 = vmatprep.subr.mxu0 %v9778_v41  ;;  %5986 = vmatprep.subr.mxu1 %v9781_v63 }
0x14fa   :  { %5916 = vmatpush1.msra.mxu0 %v9784_v26  ;;  %5987 = vmatpush1.msra.mxu1 %v9787_v24 }
0x14fb   :  { %5917 = vmatprep.subr.mxu0 %v9790_v29  ;;  %5988 = vmatprep.subr.mxu1 %v9793_v30 }
0x14fc   :  { %5918 = vmatpush1.msra.mxu0 %v9796_v18  ;;  %5989 = vmatpush1.msra.mxu1 %v9799_v16 }
0x14fd   :  { %5919 = vmatprep.subr.mxu0 %v9802_v36  ;;  %5990 = vmatprep.subr.mxu1 %v9805_v17 }
0x14fe   :  { %5920 = vmatpush1.msra.mxu0 %v9808_v25  ;;  %5991 = vmatpush1.msra.mxu1 %v9811_v20 }
0x14ff   :  { %5921 = vmatprep.subr.mxu0 %v9814_v34  ;;  %5992 = vmatprep.subr.mxu1 %v9817_v19 }
0x1500   :  { %5922 = vmatpush1.msra.mxu0 %v9820_v23  ;;  %5993 = vmatpush1.msra.mxu1 %v9823_v21 }
0x1501   :  { %5923 = vmatprep.subr.mxu0 %v9826_v58  ;;  %5994 = vmatprep.subr.mxu1 %v9829_v43 }
0x1502   :  { %5924 = vmatpush1.msra.mxu0 %v9832_v52  ;;  %5995 = vmatpush1.msra.mxu1 %v11041_v62 }
0x1503   :  { %5925 = vmatprep.subr.mxu0 %v11042_v3  ;;  %5996 = vmatprep.subr.mxu1 %v11043_v53  ;;  %v11069_v53 = vld [vmem:[#allocation20_spill] sm:$0xff] }
0x1504   :  { %5926 = vmatpush1.msra.mxu0 %v11044_v54  ;;  %5997 = vmatpush1.msra.mxu1 %v11045_v1 }
0x1505   :  { %5927 = vmatprep.subr.mxu0 %v11046_v2  ;;  %5998 = vmatprep.subr.mxu1 %v11047_v10 }
0x1506   :  { %5928 = vmatpush1.msra.mxu0 %v11048_v9  ;;  %5999 = vmatpush1.msra.mxu1 %v11049_v56  ;;  %v11060_v56 = vld [vmem:[#allocation49_spill] sm:$0xff] }
0x1507   :  { %5929 = vmatprep.subr.mxu0 %v11050_v45  ;;  %6000 = vmatprep.subr.mxu1 %v11051_v51  ;;  %v11061_v45 = vmov 0.0   ;;  %v11062_v51 = vld [vmem:[#allocation34_spill] sm:$0xff] }
0x1508   :  { %5930 = vmatpush1.msra.mxu0 %v11052_v42  ;;  %6001 = vmatpush1.msra.mxu1 %v11053_v27  ;;  %v11063_v27 = vld [vmem:[#allocation19_spill] sm:$0xff] }
0x1509   :  { %5931 = vmatprep.subr.mxu0 %v11054_v49  ;;  %6002 = vmatprep.subr.mxu1 %v11055_v55  ;;  %v11064_v49 = vld [vmem:[#allocation41_spill] sm:$0xff] }
0x150a   :  { %5932 = vmatpush1.msra.mxu0 %v11056_v39  ;;  %6003 = vmatpush1.msra.mxu1 %v11057_v22  ;;  %v11065_v55 = vld [vmem:[#allocation65_spill] sm:$0xff]  ;;  %v11066_v39 = vld [vmem:[#allocation64_spill] sm:$0xff] }
0x150b   :  { %5933 = vmatprep.subr.mxu0 %v11058_v7  ;;  %6004 = vmatprep.subr.mxu1 %v11059_v47  ;;  %v4690_v42 = vadd.f32 %v11066_v39, %v11065_v55  ;;  %v11067_v7 = vld [vmem:[#allocation69_spill] sm:$0xff]  ;;  %v4803_v39 = vadd.f32 %v11069_v53, %v9468_v35 }
0x150c   :  { %5934 = vmatpush1.msra.mxu0 %v11060_v56  ;;  %5967 = vmatprep.mubr.f32.mxu0 %v11061_v45  ;;  %v4692_v9 = vadd.f32 %v11067_v7, %v9453_v48 }
0x150d   :  { %6005 = vmatpush1.msra.mxu1 %v11062_v51  ;;  %6038 = vmatprep.mubr.f32.mxu1 %v11061_v45 }
0x150e   :  { %6073 = vmatprep.subr.mxu0 %v11063_v27  ;;  %6144 = vmatprep.subr.mxu1 %v11064_v49  ;;  %v11068_v27 = vld [vmem:[#allocation44_spill] sm:$0xff] }
0x150f   :  { %v4805_v54 = vadd.f32 %v11068_v27, %v10969_v50 }
0x15ad   :  { %v5799_v22 = vpop.f32.mrf.mxu0  ;;  %v5870_v1 = vpop.f32.mrf.mxu1 }
0x15ae   :  { %v5875_v47 = vadd.f32 %v5799_v22, %v4690_v42  ;;  %v5877_v55 = vadd.f32 %v5870_v1, %v4803_v39 }
0x15af   :  { %v5801_v10 = vpop.f32.mrf.mxu0  ;;  %v5872_v45 = vpop.f32.mrf.mxu1 }
0x15b0   :  { %v6427_v56 = vmul.f32 -1.442695, %v5875_v47  ;;  %v5876_v2 = vadd.f32 %v5801_v10, %v4692_v9  ;;  %v5878_v49 = vadd.f32 %v5872_v45, %v4805_v54 }
0x15b2   :  { %6834 = vpow2.f32 %v6427_v56  ;;  %v6428_v51 = vmul.f32 -1.442695, %v5876_v2  ;;  %v6429_v3 = vmul.f32 -1.442695, %v5878_v49 }
0x15b4   :  { %6836 = vpow2.f32 %v6428_v51 }
0x15b5   :  { %6838 = vtanh.f32 %v5877_v55 }
0x15b6   :  { %6840 = vpow2.f32 %v6429_v3 }
0x15bf   :  { %v6835_v62 = vpop.eup %6834 }
0x15c0   :  { %v5882_v7 = vadd.f32 1.0, %v6835_v62 }
0x15c1   :  { %v6837_v42 = vpop.eup %6836 }
0x15c2   :  { %6842 = vrcp.f32 %v5882_v7  ;;  %v5888_v10 = vadd.f32 1.0, %v6837_v42  ;;  %v6839_v2 = vpop.eup %6838 }
0x15c3   :  { %v6841_v9 = vpop.eup %6840 }
0x15c4   :  { %6844 = vrcp.f32 %v5888_v10  ;;  %v5895_v47 = vadd.f32 1.0, %v6841_v9 }
0x15c6   :  { %6846 = vrcp.f32 %v5895_v47 }
0x15cf   :  { %v6843_v56 = vpop.eup %6842 }
0x15d0   :  { %v5899_v51 = vmul.f32 %v6843_v56, %v6839_v2 }
0x15d1   :  { %v6845_v22 = vpop.eup %6844 }
0x15d2   :  { %v5898_v54 = vmul.f32 %v6845_v22, %v9911_v46 }
0x15d3   :  { %v6847_v62 = vpop.eup %6846 }
0x15d4   :  { %v9989_v45 = vadd.f32 %v5899_v51, %v5898_v54 }
0x15d6   :  { %6848 = vtanh.f32 %v9989_v45 }
0x15e3   :  { %v6849_v53 = vpop.eup %6848 }
0x15e4   :  { %v5902_v1 = vmul.f32 %v6849_v53, %v6847_v62  ;;  %v6258_v62 = vld [vmem:[%s10156_s10 + $0x78] sm:$0xff]  ;;  %v6256_v53 = vld [vmem:[%s10156_s10 + $0x68] sm:$0xff] }
0x15e6   :  { %5968 = vmatmul.mubr.f32.vlgmr.msra.gmra.mxu0 %v5902_v1  ;;  %6039 = vmatmul.mubr.f32.vlgmr.msra.gmra.mxu1 %v5902_v1  ;;  %v6255_v1 = vld [vmem:[%s10156_s10 + $0x60] sm:$0xff] }
0x15e7   :  { %6074 = vmatpush1.msra.mxu0 %v9630_v57  ;;  %6145 = vmatpush1.msra.mxu1 %v9633_v0  ;;  %v11070_v57 = vld [vmem:[#allocation29_spill] sm:$0xff] }
0x15e8   :  { %6075 = vmatprep.subr.mxu0 %v9636_v33  ;;  %6146 = vmatprep.subr.mxu1 %v9639_v60  ;;  %v11071_v0 = vld [vmem:[#allocation17_spill] sm:$0xff]  ;;  %v11072_v33 = vld [vmem:[#allocation32_spill] sm:$0xff]  ;;  %v11073_v60 = vld [vmem:[#allocation31_spill] sm:$0xff] }
0x15e9   :  { %6076 = vmatpush1.msra.mxu0 %v9642_v32  ;;  %6147 = vmatpush1.msra.mxu1 %v9645_v61  ;;  %v11074_v32 = vld [vmem:[#allocation38_spill] sm:$0xff]  ;;  %v11075_v61 = vld [vmem:[#allocation39_spill] sm:$0xff] }
0x15ea   :  { %6077 = vmatprep.subr.mxu0 %v9648_v11  ;;  %6148 = vmatprep.subr.mxu1 %v9651_v12  ;;  %v11076_v11 = vld [vmem:[#allocation37_spill] sm:$0xff]  ;;  %v11077_v12 = vld [vmem:[#allocation46_spill] sm:$0xff] }
0x15eb   :  { %6078 = vmatpush1.msra.mxu0 %v9654_v44  ;;  %6149 = vmatpush1.msra.mxu1 %v9657_v4  ;;  %v11078_v44 = vld [vmem:[#allocation47_spill] sm:$0xff]  ;;  %v11079_v4 = vld [vmem:[#allocation56_spill] sm:$0xff] }
0x15ec   :  { %6079 = vmatprep.subr.mxu0 %v9660_v31  ;;  %6150 = vmatprep.subr.mxu1 %v9663_v59  ;;  %v11080_v31 = vld [vmem:[#allocation59_spill] sm:$0xff]  ;;  %v11081_v59 = vld [vmem:[#allocation57_spill] sm:$0xff] }
0x15ed   :  { %6080 = vmatpush1.msra.mxu0 %v9666_v6  ;;  %6151 = vmatpush1.msra.mxu1 %v9669_v37  ;;  %v11082_v6 = vld [vmem:[#allocation58_spill] sm:$0xff] }
0x15ee   :  { %6081 = vmatprep.subr.mxu0 %v9754_v8  ;;  %6152 = vmatprep.subr.mxu1 %v9757_v40  ;;  %v11083_v37 = vld [vmem:[#allocation22_spill] sm:$0xff]  ;;  %v11084_v8 = vld [vmem:[#allocation52_spill] sm:$0xff] }
0x15ef   :  { %6082 = vmatpush1.msra.mxu0 %v9760_v13  ;;  %6153 = vmatpush1.msra.mxu1 %v9763_v15  ;;  %v11085_v40 = vld [vmem:[#allocation54_spill] sm:$0xff]  ;;  %v11086_v13 = vld [vmem:[#allocation55_spill] sm:$0xff]  ;;  %v11087_v15 = vld [vmem:[#allocation53_spill] sm:$0xff] }
0x15f0   :  { %6083 = vmatprep.subr.mxu0 %v9766_v5  ;;  %6154 = vmatprep.subr.mxu1 %v9769_v14  ;;  %v11088_v5 = vld [vmem:[#allocation51_spill] sm:$0xff]  ;;  %v11089_v14 = vld [vmem:[#allocation49_spill] sm:$0xff] }
0x15f1   :  { %6084 = vmatpush1.msra.mxu0 %v9772_v38  ;;  %6155 = vmatpush1.msra.mxu1 %v9775_v28  ;;  %v11090_v38 = vmov 0.0   ;;  %v11091_v28 = vld [vmem:[#allocation34_spill] sm:$0xff] }
0x15f2   :  { %6085 = vmatprep.subr.mxu0 %v9778_v41  ;;  %6156 = vmatprep.subr.mxu1 %v9781_v63  ;;  %v11092_v41 = vld [vmem:[#allocation65_spill] sm:$0xff] }
0x15f3   :  { %6086 = vmatpush1.msra.mxu0 %v9784_v26  ;;  %6157 = vmatpush1.msra.mxu1 %v9787_v24  ;;  %v11093_v63 = vld [vmem:[#allocation21_spill] sm:$0xff] }
0x15f4   :  { %6087 = vmatprep.subr.mxu0 %v9790_v29  ;;  %6158 = vmatprep.subr.mxu1 %v9793_v30  ;;  %v4696_v26 = vadd.f32 %v11093_v63, %v11092_v41  ;;  %v11094_v29 = vld [vmem:[#allocation66_spill] sm:$0xff] }
0x15f5   :  { %6088 = vmatpush1.msra.mxu0 %v9796_v18  ;;  %6159 = vmatpush1.msra.mxu1 %v9799_v16  ;;  %v4698_v30 = vadd.f32 %v11094_v29, %v9453_v48  ;;  %v11099_v29 = vld [vmem:[#allocation16_spill] sm:$0xff] }
0x15f6   :  { %6089 = vmatprep.subr.mxu0 %v9802_v36  ;;  %6160 = vmatprep.subr.mxu1 %v9805_v17 }
0x15f7   :  { %6090 = vmatpush1.msra.mxu0 %v9808_v25  ;;  %6161 = vmatpush1.msra.mxu1 %v9811_v20 }
0x15f8   :  { %6091 = vmatprep.subr.mxu0 %v9814_v34  ;;  %6162 = vmatprep.subr.mxu1 %v9817_v19  ;;  %v11095_v19 = vld [vmem:[#allocation43_spill] sm:$0xff] }
0x15f9   :  { %6092 = vmatpush1.msra.mxu0 %v9820_v23  ;;  %6163 = vmatpush1.msra.mxu1 %v9823_v21  ;;  %v4811_v23 = vadd.f32 %v11095_v19, %v10969_v50 }
0x15fa   :  { %6093 = vmatprep.subr.mxu0 %v9826_v58  ;;  %6164 = vmatprep.subr.mxu1 %v9829_v43  ;;  %v11096_v58 = vld [vmem:[#allocation50_spill] sm:$0xff] }
0x15fb   :  { %6094 = vmatpush1.msra.mxu0 %v9832_v52  ;;  %6165 = vmatpush1.msra.mxu1 %v11070_v57  ;;  %v4809_v43 = vadd.f32 %v11096_v58, %v9468_v35  ;;  %v6254_v57 = vld [vmem:[%s10156_s10 + $0x58] sm:$0xff] }
0x15fc   :  { %6095 = vmatprep.subr.mxu0 %v11071_v0  ;;  %6166 = vmatprep.subr.mxu1 %v11072_v33  ;;  %v6253_v0 = vld [vmem:[%s10156_s10 + $0x50] sm:$0xff]  ;;  %v6252_v33 = vld [vmem:[%s10156_s10 + $0x48] sm:$0xff] }
0x15fd   :  { %6096 = vmatpush1.msra.mxu0 %v11073_v60  ;;  %6167 = vmatpush1.msra.mxu1 %v11074_v32  ;;  %v6251_v60 = vld [vmem:[%s10156_s10 + $0x40] sm:$0xff]  ;;  %v6250_v32 = vld [vmem:[%s10156_s10 + $0x38] sm:$0xff] }
0x15fe   :  { %6097 = vmatprep.subr.mxu0 %v11075_v61  ;;  %6168 = vmatprep.subr.mxu1 %v11076_v11  ;;  %v6249_v61 = vld [vmem:[%s10156_s10 + $0x30] sm:$0xff]  ;;  %v6248_v11 = vld [vmem:[%s10156_s10 + $0x28] sm:$0xff] }
0x15ff   :  { %6098 = vmatpush1.msra.mxu0 %v11077_v12  ;;  %6169 = vmatpush1.msra.mxu1 %v11078_v44  ;;  %v6247_v12 = vld [vmem:[%s10156_s10 + $0x20] sm:$0xff]  ;;  %v6246_v44 = vld [vmem:[%s10156_s10 + $0x18] sm:$0xff] }
0x1600   :  { %6099 = vmatprep.subr.mxu0 %v11079_v4  ;;  %6170 = vmatprep.subr.mxu1 %v11080_v31  ;;  %v6245_v4 = vld [vmem:[%s10156_s10 + $0x10] sm:$0xff]  ;;  %v6244_v31 = vld [vmem:[%s10156_s10 + $0x8] sm:$0xff] }
0x1601   :  { %6100 = vmatpush1.msra.mxu0 %v11081_v59  ;;  %6171 = vmatpush1.msra.mxu1 %v11082_v6  ;;  %v6243_v59 = vld [vmem:[%s10156_s10] sm:$0xff] }
0x1602   :  { %6101 = vmatprep.subr.mxu0 %v11083_v37  ;;  %6172 = vmatprep.subr.mxu1 %v11084_v8  ;;  %v11097_v6 = vld [vmem:[#allocation67_spill] sm:$0xff] }
0x1603   :  { %6102 = vmatpush1.msra.mxu0 %v11085_v40  ;;  %6173 = vmatpush1.msra.mxu1 %v11086_v13  ;;  %v4702_v37 = vadd.f32 %v11097_v6, %v11092_v41  ;;  %v11098_v40 = vld [vmem:[#allocation18_spill] sm:$0xff] }
0x1604   :  { %6103 = vmatprep.subr.mxu0 %v11087_v15  ;;  %6174 = vmatprep.subr.mxu1 %v11088_v5  ;;  %v4704_v13 = vadd.f32 %v11098_v40, %v9453_v48 }
0x1605   :  { %6104 = vmatpush1.msra.mxu0 %v11089_v14  ;;  %6137 = vmatprep.mubr.f32.mxu0 %v11090_v38 }
0x1606   :  { %6175 = vmatpush1.msra.mxu1 %v11091_v28  ;;  %6208 = vmatprep.mubr.f32.mxu1 %v11090_v38 }
0x1607   :  { %6454 = vmatprep.subr.mxu0 %v11090_v38 }
0x16a6   :  { %v5969_v24 = vpop.f32.mrf.mxu0  ;;  %v6040_v25 = vpop.f32.mrf.mxu1 }
0x16a7   :  { %v6045_v18 = vadd.f32 %v5969_v24, %v4696_v26  ;;  %v6047_v52 = vadd.f32 %v6040_v25, %v4809_v43 }
0x16a8   :  { %v5971_v16 = vpop.f32.mrf.mxu0  ;;  %v6042_v34 = vpop.f32.mrf.mxu1 }
0x16a9   :  { %v6430_v36 = vmul.f32 -1.442695, %v6045_v18  ;;  %v6046_v17 = vadd.f32 %v5971_v16, %v4698_v30  ;;  %v6048_v21 = vadd.f32 %v6042_v34, %v4811_v23  ;;  %v11100_v18 = vld [vmem:[#allocation36_spill] sm:$0xff] }
0x16aa   :  { %v4815_v41 = vadd.f32 %v11100_v18, %v9468_v35 }
0x16ab   :  { %6850 = vpow2.f32 %v6430_v36  ;;  %v6431_v20 = vmul.f32 -1.442695, %v6046_v17  ;;  %v6432_v46 = vmul.f32 -1.442695, %v6048_v21 }
0x16ad   :  { %6852 = vpow2.f32 %v6431_v20 }
0x16ae   :  { %6854 = vtanh.f32 %v6047_v52 }
0x16af   :  { %6856 = vpow2.f32 %v6432_v46 }
0x16b8   :  { %v6851_v3 = vpop.eup %6850 }
0x16b9   :  { %v6052_v55 = vadd.f32 1.0, %v6851_v3 }
0x16ba   :  { %v6853_v27 = vpop.eup %6852 }
0x16bb   :  { %6858 = vrcp.f32 %v6052_v55  ;;  %v6058_v49 = vadd.f32 1.0, %v6853_v27  ;;  %v6855_v39 = vpop.eup %6854  ;;  %v6436_v55 = vld [vmem:[#allocation4] ss:$0 sm:$0xff] }
0x16bc   :  { %v6857_v7 = vpop.eup %6856 }
0x16bd   :  { %6860 = vrcp.f32 %v6058_v49  ;;  %v6065_v9 = vadd.f32 1.0, %v6857_v7 }
0x16bf   :  { %6862 = vrcp.f32 %v6065_v9 }
0x16c8   :  { %v6859_v42 = vpop.eup %6858 }
0x16c9   :  { %v6069_v10 = vmul.f32 %v6859_v42, %v6855_v39 }
0x16ca   :  { %v6861_v2 = vpop.eup %6860 }
0x16cb   :  { %v6068_v56 = vmul.f32 %v6861_v2, %v9989_v45  ;;  %v6257_v45 = vld [vmem:[%s10156_s10 + $0x70] sm:$0xff] }
0x16cc   :  { %v6863_v22 = vpop.eup %6862 }
0x16cd   :  { %v10066_v51 = vadd.f32 %v6069_v10, %v6068_v56 }
0x16cf   :  { %6864 = vtanh.f32 %v10066_v51 }
0x16dc   :  { %v6865_v47 = vpop.eup %6864 }
0x16dd   :  { %v6072_v54 = vmul.f32 %v6865_v47, %v6863_v22 }
0x16df   :  { %6138 = vmatmul.mubr.f32.vlgmr.msra.gmra.mxu0 %v6072_v54  ;;  %6209 = vmatmul.mubr.f32.vlgmr.msra.gmra.mxu1 %v6072_v54 }
0x16e0   :  { %6455 = vmatpush3.msra.mxu0 %v6258_v62  ;;  %6486 = vmatprep.mubr.msk.f32.mxu0 %vm7060_vm2, %v11090_v38 }
0x16e1   :  { %6456 = vmatprep.subr.mxu0 %v11090_v38 }
0x16e2   :  { %6457 = vmatpush3.msra.mxu0 %v6257_v45 }
0x16e3   :  { %6458 = vmatprep.subr.mxu0 %v11090_v38 }
0x16e4   :  { %6459 = vmatpush3.msra.mxu0 %v6256_v53 }
0x16e5   :  { %6460 = vmatprep.subr.mxu0 %v11090_v38 }
0x16e6   :  { %6461 = vmatpush3.msra.mxu0 %v6255_v1 }
0x16e7   :  { %6462 = vmatprep.subr.mxu0 %v11090_v38 }
0x16e8   :  { %6463 = vmatpush3.msra.mxu0 %v6254_v57 }
0x16e9   :  { %6464 = vmatprep.subr.mxu0 %v11090_v38 }
0x16ea   :  { %6465 = vmatpush3.msra.mxu0 %v6253_v0 }
0x16eb   :  { %6466 = vmatprep.subr.mxu0 %v11090_v38 }
0x16ec   :  { %6467 = vmatpush3.msra.mxu0 %v6252_v33 }
0x16ed   :  { %6468 = vmatprep.subr.mxu0 %v11090_v38 }
0x16ee   :  { %6469 = vmatpush3.msra.mxu0 %v6251_v60 }
0x16ef   :  { %6470 = vmatprep.subr.mxu0 %v11090_v38 }
0x16f0   :  { %6471 = vmatpush3.msra.mxu0 %v6250_v32 }
0x16f1   :  { %6472 = vmatprep.subr.mxu0 %v11090_v38 }
0x16f2   :  { %6473 = vmatpush3.msra.mxu0 %v6249_v61 }
0x16f3   :  { %6474 = vmatprep.subr.mxu0 %v11090_v38 }
0x16f4   :  { %6475 = vmatpush3.msra.mxu0 %v6248_v11 }
0x16f5   :  { %6476 = vmatprep.subr.mxu0 %v11090_v38 }
0x16f6   :  { %6477 = vmatpush3.msra.mxu0 %v6247_v12 }
0x16f7   :  { %6478 = vmatprep.subr.mxu0 %v11090_v38 }
0x16f8   :  { %6479 = vmatpush3.msra.mxu0 %v6246_v44 }
0x16f9   :  { %6480 = vmatprep.subr.mxu0 %v11090_v38 }
0x16fa   :  { %6481 = vmatpush3.msra.mxu0 %v6245_v4 }
0x16fb   :  { %6482 = vmatprep.subr.mxu0 %v11090_v38 }
0x16fc   :  { %6483 = vmatpush3.msra.mxu0 %v6244_v31 }
0x16fd   :  { %6484 = vmatprep.subr.mxu0 %v11090_v38  ;;  %v4817_v38 = vadd.f32 %v11099_v29, %v10969_v50 }
0x16fe   :  { %6485 = vmatpush3.msra.mxu0 %v6243_v59 }
0x179f   :  { %v6139_v8 = vpop.f32.mrf.mxu0  ;;  %v6210_v63 = vpop.f32.mrf.mxu1 }
0x17a0   :  { %v6215_v15 = vadd.f32 %v6139_v8, %v4702_v37  ;;  %v6217_v16 = vadd.f32 %v6210_v63, %v4815_v41 }
0x17a1   :  { %v6141_v5 = vpop.f32.mrf.mxu0  ;;  %v6212_v24 = vpop.f32.mrf.mxu1 }
0x17a2   :  { %v6433_v14 = vmul.f32 -1.442695, %v6215_v15  ;;  %v6216_v28 = vadd.f32 %v6141_v5, %v4704_v13  ;;  %v6218_v30 = vadd.f32 %v6212_v24, %v4817_v38 }
0x17a4   :  { %6866 = vpow2.f32 %v6433_v14  ;;  %v6434_v26 = vmul.f32 -1.442695, %v6216_v28  ;;  %v6435_v36 = vmul.f32 -1.442695, %v6218_v30 }
0x17a6   :  { %6868 = vpow2.f32 %v6434_v26 }
0x17a7   :  { %6870 = vtanh.f32 %v6217_v16 }
0x17a8   :  { %6872 = vpow2.f32 %v6435_v36 }
0x17b1   :  { %v6867_v17 = vpop.eup %6866 }
0x17b2   :  { %v6222_v48 = vadd.f32 1.0, %v6867_v17 }
0x17b3   :  { %v6869_v25 = vpop.eup %6868 }
0x17b4   :  { %6874 = vrcp.f32 %v6222_v48  ;;  %v6228_v20 = vadd.f32 1.0, %v6869_v25  ;;  %v6871_v34 = vpop.eup %6870 }
0x17b5   :  { %v6873_v19 = vpop.eup %6872 }
0x17b6   :  { %6876 = vrcp.f32 %v6228_v20  ;;  %v6235_v50 = vadd.f32 1.0, %v6873_v19 }
0x17b8   :  { %6878 = vrcp.f32 %v6235_v50 }
0x17c1   :  { %v6875_v23 = vpop.eup %6874 }
0x17c2   :  { %v6239_v21 = vmul.f32 %v6875_v23, %v6871_v34 }
0x17c3   :  { %v6877_v58 = vpop.eup %6876 }
0x17c4   :  { %v6238_v43 = vmul.f32 %v6877_v58, %v10066_v51 }
0x17c5   :  { %v6879_v35 = vpop.eup %6878 }
0x17c6   :  { %v6240_v52 = vadd.f32 %v6239_v21, %v6238_v43 }
0x17c8   :  { %6880 = vtanh.f32 %v6240_v52 }
0x17d5   :  { %v6881_v46 = vpop.eup %6880 }
0x17d6   :  { %v6242_v3 = vmul.f32 %v6881_v46, %v6879_v35 }
0x17d8   :  { %6487 = vmatmul.mubr.f32.vlgmr.msra.gmra.mxu0 %v6242_v3 }
0x1898   :  { %v6332_v27 = vpop.f32.mrf.mxu0 }
0x1899   :  { %v6333_v49 = vadd.f32 %v6436_v55, %v6332_v27 }
0x189a   :  { %v6488_v39 = vpop.f32.mrf.mxu0 }
0x189b   :  { %6336 = vst.msk [vmem:[%s10158_s12] sm:$0xff] %vm159_vm1, %v6333_v49 }
0x189c   :  { %6341 = vsyncpa [#allocation6], 1 }
0x189d   :  { %6342 = vsyncpa [#allocation8], 1 }
0x189e   :  { %6343 = vsyncpa [#allocation11], 1 }

</bundles_post_ra>
